<compile_context>
chip_gen: v5e
topology: v5e:2x2
jax: 0.10.0
libtpu: 0.0.40
codegen_flags: <defaults>
</compile_context>

<pallas_src>
import functools

import jax
import jax.numpy as jnp
from jax.experimental import pallas as pl
from jax.experimental.pallas import tpu as pltpu


# --------------------------------------------------------------------------------------
# VMEM sizing helpers (per-generation: v5e/v6e 128 MiB, v7x 64 MiB physical VMEM).
# --------------------------------------------------------------------------------------
@functools.lru_cache(maxsize=None)
def _tpu_vmem_capacity_bytes():
    try:
        return int(pltpu.get_tpu_info().vmem_capacity_bytes)
    except Exception:
        return 64 * 1024 * 1024          # conservative (v7x-sized) fallback


def _vmem_block_budget():
    # Per-step working-set budget used to size row strips: ~1/3 of physical VMEM, capped
    # so v5e/v6e use ~40 MiB strips while v7x stays around ~21 MiB.
    return max(8 << 20, min(_tpu_vmem_capacity_bytes() // 3, 40 << 20))


def _vmem_limit_bytes():
    # Scoped-VMEM limit handed to Mosaic (the default scoped limit is far below physical).
    return int(min(_tpu_vmem_capacity_bytes() * 3 // 4, 100 << 20))


def _largest_divisor_at_most(n, cap):
    # TODO(synk): support a masked short last strip instead of requiring a divisor, so a
    #             prime H does not degenerate to 1-row strips.
    cap = int(max(1, min(n, cap)))
    for d in range(cap, 0, -1):
        if n % d == 0:
            return d
    return 1


# --------------------------------------------------------------------------------------
# Kernel 1: ConvTranspose2d(kernel=2, stride=2, padding=0).
# With stride == kernel there is no output overlap:
#   y[n, 2i+a, 2j+b, o] = sum_c x[n, i, j, c] * W[c, o, a, b] + bias[o]
# Per row strip: two MXU matmuls (one per output-row parity a) against weights packed as
# (C, 2*Cout) with the (b, o) taps on the lane axis.  Each parity is stored directly into
# an (N, H, 2, W, 2*Cout) layout whose row-major reshape IS the depth-to-space result.
# --------------------------------------------------------------------------------------
def _make_deconv2x2_kernel(compute_dtype):
    def kernel(x_ref, w_ref, b_ref, o_ref):
        # x_ref: (1, TH, W, C); w_ref: (2, C, 2*Cout); b_ref: (1, 2*Cout) f32;
        # o_ref: (1, TH, 2, W, 2*Cout)   [axis 2 = output-row parity a]
        TH, W, C = x_ref.shape[1], x_ref.shape[2], x_ref.shape[3]
        two_cout = o_ref.shape[-1]
        x2d = x_ref[0].reshape(TH * W, C).astype(compute_dtype)
        bias = b_ref[...]                                   # (1, 2*Cout) f32, broadcasts
        for a in range(2):
            y = jax.lax.dot_general(x2d, w_ref[a], (((1,), (0,)), ((), ())),
                                    preferred_element_type=jnp.float32) + bias
            o_ref[0, :, a, :, :] = y.reshape(TH, W, two_cout).astype(o_ref.dtype)
    return kernel


def conv_transpose_2x2_s2(x_nhwc, w_t, b_t, *, out_dtype=jnp.float32,
                          compute_dtype=jnp.bfloat16, max_block_rows=None):
    """x_nhwc: (N,H,W,C). w_t: PyTorch ConvTranspose2d weight (Cin, Cout, 2, 2). b_t: (Cout,).
    Returns (N, 2H, 2W, Cout) in out_dtype."""
    N, H, W, C = x_nhwc.shape
    Cout = w_t.shape[1]
    # w_packed[a, c, b*Cout + o] = w_t[c, o, a, b];  b_packed[b*Cout + o] = b_t[o]
    w_packed = jnp.transpose(w_t, (2, 0, 3, 1)).reshape(2, C, 2 * Cout).astype(compute_dtype)
    b_packed = jnp.concatenate([b_t, b_t]).reshape(1, 2 * Cout).astype(jnp.float32)

    in_sz = x_nhwc.dtype.itemsize
    out_sz = jnp.dtype(out_dtype).itemsize
    c_sz = jnp.dtype(compute_dtype).itemsize
    # Per-input-row bytes: double-buffered input block + cast copy, double-buffered output
    # block (both parities) + f32 matmul results.
    row_bytes = W * (C * (2 * in_sz + c_sz) + 2 * 2 * Cout * (2 * out_sz + 4))
    cap = max(1, _vmem_block_budget() // max(row_bytes, 1))
    if N == 1:
        cap = min(cap, max(1, H // 2))           # keep >= 2 grid steps for megacore
    if max_block_rows is not None:
        cap = min(cap, max_block_rows)
    TH = _largest_divisor_at_most(H, cap)

    out = pl.pallas_call(
        _make_deconv2x2_kernel(compute_dtype),
        out_shape=jax.ShapeDtypeStruct((N, H, 2, W, 2 * Cout), out_dtype),
        grid=(N, H // TH),
        in_specs=[
            pl.BlockSpec((1, TH, W, C), lambda n, i: (n, i, 0, 0)),
            pl.BlockSpec((2, C, 2 * Cout), lambda n, i: (0, 0, 0)),
            pl.BlockSpec((1, 2 * Cout), lambda n, i: (0, 0)),
        ],
        out_specs=pl.BlockSpec((1, TH, 2, W, 2 * Cout), lambda n, i: (n, i, 0, 0, 0)),
        compiler_params=pltpu.CompilerParams(
            dimension_semantics=("parallel", "parallel"),
            vmem_limit_bytes=_vmem_limit_bytes()),
    )(x_nhwc, w_packed, b_packed)

    # (N, H, 2, W, 2*Cout) -> (N, 2H, 2W, Cout) is a pure row-major reshape (no transpose).
    return out.reshape(N, 2 * H, 2 * W, Cout)


# --------------------------------------------------------------------------------------
# Kernel 2: Conv2d 3x3 / stride 1 / padding 1 ("same") + bias + ReLU over `num_in` channel
# groups summed into one output (fuses UpConv's channel concat).
# Each input contributes three BlockSpec-pipelined blocks per step: the body row strip and
# two 1-row halo blocks (index_map clamps at the image border; border rows are zeroed in
# the kernel).  The 3x3 taps of all groups are folded into one im2col patch with
# K = 9 * sum(Cin_k) -> a single MXU matmul per strip.
# --------------------------------------------------------------------------------------
def _make_conv3x3_relu_kernel(num_in, compute_dtype):
    def kernel(*refs):
        bodies = [refs[3 * k + 0] for k in range(num_in)]
        tops = [refs[3 * k + 1] for k in range(num_in)]
        bots = [refs[3 * k + 2] for k in range(num_in)]
        w_ref = refs[3 * num_in]
        b_ref = refs[3 * num_in + 1]
        o_ref = refs[3 * num_in + 2]

        i = pl.program_id(1)
        nh = pl.num_programs(1)
        TH, W, Cout = o_ref.shape[1], o_ref.shape[2], o_ref.shape[3]

        pieces = []
        for k in range(num_in):
            body = bodies[k][0]                                   # (TH, W, Ck)
            ck = body.shape[-1]
            zrow = jnp.zeros((1, W, ck), body.dtype)
            top = jnp.where(i > 0, tops[k][0], zrow)              # zero at image top
            bot = jnp.where(i < nh - 1, bots[k][0], zrow)         # zero at image bottom
            xr = jnp.concatenate([top, body, bot], axis=0)        # (TH+2, W, Ck)
            zcol = jnp.zeros((TH + 2, 1, ck), body.dtype)
            xp = jnp.concatenate([zcol, xr, zcol], axis=1)        # (TH+2, W+2, Ck)
            xp = xp.astype(compute_dtype)
            for dy in range(3):
                for dx in range(3):
                    pieces.append(xp[dy:dy + TH, dx:dx + W, :])
        # im2col: K = 9 * sum(Ck) on the contraction axis -> one MXU matmul per strip.
        patch = jnp.concatenate(pieces, axis=-1).reshape(TH * W, -1)
        acc = jax.lax.dot_general(patch, w_ref[...], (((1,), (0,)), ((), ())),
                                  preferred_element_type=jnp.float32)
        acc = acc + b_ref[...]                                    # (1, Cout) f32 broadcast
        # TODO(synk): lane-dense (W*Cout) output slab would speed the store path when
        #             Cout < 128, at the cost of an XLA relayout for the consumer.
        o_ref[0] = jnp.maximum(acc, 0.0).reshape(TH, W, Cout).astype(o_ref.dtype)
    return kernel


def conv3x3_same_relu(inputs, weights_hwio, bias, *, out_dtype=jnp.float32,
                      compute_dtype=jnp.bfloat16, max_block_rows=None):
    """inputs: list of NHWC arrays sharing (N,H,W) (channel groups, i.e. a fused concat).
    weights_hwio: list of (3,3,Cin_k,Cout) weights matching `inputs`.  bias: (Cout,)."""
    num_in = len(inputs)
    N, H, W = inputs[0].shape[:3]
    Cout = weights_hwio[0].shape[-1]
    c_total = sum(int(x.shape[-1]) for x in inputs)

    c_sz = jnp.dtype(compute_dtype).itemsize
    out_sz = jnp.dtype(out_dtype).itemsize
    in_bytes = sum(int(x.shape[-1]) * x.dtype.itemsize for x in inputs)
    # Per-output-row bytes: double-buffered input blocks + in-register padded copy,
    # im2col patch, double-buffered output block + f32 accumulator.
    row_bytes = W * (4 * in_bytes + 9 * c_total * c_sz + Cout * (2 * out_sz + 4))
    cap = max(1, _vmem_block_budget() // max(row_bytes, 1))
    if N == 1:
        cap = min(cap, max(1, H // 2))           # keep >= 2 grid steps for megacore
    if max_block_rows is not None:
        cap = min(cap, max_block_rows)
    TH = _largest_divisor_at_most(H, cap)

    args, in_specs = [], []
    for x in inputs:
        ck = int(x.shape[-1])
        in_specs += [
            # Body strip plus two 1-row halo blocks; all three are auto-pipelined
            # (double-buffered / prefetched across grid steps) by the BlockSpec machinery.
            pl.BlockSpec((1, TH, W, ck), lambda n, i: (n, i, 0, 0)),
            pl.BlockSpec((1, 1, W, ck),
                         lambda n, i, TH=TH: (n, jnp.maximum(i * TH - 1, 0), 0, 0)),
            pl.BlockSpec((1, 1, W, ck),
                         lambda n, i, TH=TH, H=H: (n, jnp.minimum((i + 1) * TH, H - 1), 0, 0)),
        ]
        args += [x, x, x]

    # Weights packed for im2col: K index order = [group k][dy][dx][c], matching the kernel.
    w_cat = jnp.concatenate([w.reshape(9 * w.shape[2], Cout) for w in weights_hwio],
                            axis=0).astype(compute_dtype)
    in_specs += [pl.BlockSpec(w_cat.shape, lambda n, i: (0, 0)),
                 pl.BlockSpec((1, Cout), lambda n, i: (0, 0))]

    return pl.pallas_call(
        _make_conv3x3_relu_kernel(num_in, compute_dtype),
        out_shape=jax.ShapeDtypeStruct((N, H, W, Cout), out_dtype),
        grid=(N, H // TH),
        in_specs=in_specs,
        out_specs=pl.BlockSpec((1, TH, W, Cout), lambda n, i: (n, i, 0, 0)),
        compiler_params=pltpu.CompilerParams(
            dimension_semantics=("parallel", "parallel"),
            vmem_limit_bytes=_vmem_limit_bytes()),
    )(*args, w_cat, bias.reshape(1, Cout).astype(jnp.float32))


# --------------------------------------------------------------------------------------
# UpConv forward
# --------------------------------------------------------------------------------------
@functools.partial(jax.jit, static_argnames=("compute_dtype",))
def upconv_forward(params, x_nchw, x_skip_nchw, compute_dtype=jnp.bfloat16):
    x = jnp.transpose(x_nchw, (0, 2, 3, 1))              # NCHW -> NHWC
    xs = jnp.transpose(x_skip_nchw, (0, 2, 3, 1))
    act_dtype = jnp.float32 if compute_dtype == jnp.float32 else jnp.bfloat16

    # TODO(synk): fuse the deconv into the first conv (compute the upsampled strip in VMEM)
    #             to remove the HBM round trip of the 4x-sized upsampled intermediate.
    x_up = conv_transpose_2x2_s2(x, params["wt"], params["bt"],
                                 out_dtype=act_dtype, compute_dtype=compute_dtype)

    # First conv: the channel concat is fused by splitting w1 into channel groups.
    c_up = x_up.shape[-1]
    w1_up = jnp.transpose(params["w1"][:, :c_up], (2, 3, 1, 0))   # (3,3,C_up,Cout)
    w1_sk = jnp.transpose(params["w1"][:, c_up:], (2, 3, 1, 0))   # (3,3,C_skip,Cout)
    y = conv3x3_same_relu([x_up, xs], [w1_up, w1_sk], params["b1"],
                          out_dtype=act_dtype, compute_dtype=compute_dtype)

    w2 = jnp.transpose(params["w2"], (2, 3, 1, 0))
    y = conv3x3_same_relu([y], [w2], params["b2"],
                          out_dtype=jnp.float32, compute_dtype=compute_dtype)
    return jnp.transpose(y, (0, 3, 1, 2))                # NHWC -> NCHW


# --------------------------------------------------------------------------------------
# Pure-JAX references for sanity checks.
# --------------------------------------------------------------------------------------
def _reference_forward(params, x_nchw, x_skip_nchw):
    x = jnp.transpose(x_nchw, (0, 2, 3, 1))
    xs = jnp.transpose(x_skip_nchw, (0, 2, 3, 1))
    y = jnp.einsum("nijc,coab->niajbo", x, params["wt"]) + params["bt"]
    N, H, _, W, _, C = y.shape
    x = y.reshape(N, 2 * H, 2 * W, C)
    x = jnp.concatenate([x, xs], axis=-1)

    def conv_relu(x, w, b):
        xp = jnp.pad(x, ((0, 0), (1, 1), (1, 1), (0, 0)))
        out = jnp.zeros(x.shape[:3] + (w.shape[0],), jnp.float32) + b
        H, W = x.shape[1], x.shape[2]
        for dy in range(3):
            for dx in range(3):
                out = out + jnp.einsum(
                    "nhwc,oc->nhwo", xp[:, dy:dy + H, dx:dx + W, :], w[:, :, dy, dx])
        return jnp.maximum(out, 0.0)

    x = conv_relu(x, params["w1"], params["b1"])
    x = conv_relu(x, params["w2"], params["b2"])
    return jnp.transpose(x, (0, 3, 1, 2))


def _conv3x3_relu_ref(inputs, weights_hwio, bias):
    N, H, W = inputs[0].shape[:3]
    Cout = weights_hwio[0].shape[-1]
    out = jnp.zeros((N, H, W, Cout), jnp.float32) + bias
    for x, w in zip(inputs, weights_hwio):
        xp = jnp.pad(x, ((0, 0), (1, 1), (1, 1), (0, 0)))
        for dy in range(3):
            for dx in range(3):
                out = out + jnp.einsum("nhwc,co->nhwo",
                                       xp[:, dy:dy + H, dx:dx + W, :], w[dy, dx])
    return jnp.maximum(out, 0.0)


def init_params(key, in_channels, in_channels_skip, out_channels):
    ks = jax.random.split(key, 6)
    cat = in_channels + in_channels_skip

    def u(k, shape, fan_in):
        bound = 1.0 / jnp.sqrt(fan_in)
        return jax.random.uniform(k, shape, jnp.float32, -bound, bound)

    return {
        "wt": u(ks[0], (in_channels, in_channels, 2, 2), in_channels * 4),
        "bt": u(ks[1], (in_channels,), in_channels * 4),
        "w1": u(ks[2], (out_channels, cat, 3, 3), cat * 9),
        "b1": u(ks[3], (out_channels,), cat * 9),
        "w2": u(ks[4], (out_channels, out_channels, 3, 3), out_channels * 9),
        "b2": u(ks[5], (out_channels,), out_channels * 9),
    }


if __name__ == "__main__":
    key = jax.random.PRNGKey(0)
    k_p, k_x, k_s, k_a, k_b, k_wa, k_wb, k_bb = jax.random.split(key, 8)

    in_channels, in_channels_skip, out_channels = 4, 4, 8
    N, H, W = 2, 8, 8                                    # skip connection is at 2H x 2W

    params = init_params(k_p, in_channels, in_channels_skip, out_channels)
    x = jax.random.normal(k_x, (N, in_channels, H, W), jnp.float32)
    x_skip = jax.random.normal(k_s, (N, in_channels_skip, 2 * H, 2 * W), jnp.float32)

    ref = _reference_forward(params, x, x_skip)

    # Exact-math path (f32 MXU operands / f32 intermediates) -> tight tolerance.
    out_f32 = jax.block_until_ready(
        upconv_forward(params, x, x_skip, compute_dtype=jnp.float32))
    assert out_f32.shape == (N, out_channels, 2 * H, 2 * W), out_f32.shape
    assert jnp.allclose(out_f32, ref, atol=2e-4, rtol=2e-4), \
        float(jnp.max(jnp.abs(out_f32 - ref)))

    # Default fast path (bf16 MXU operands + bf16 HBM intermediates) -> loose tolerance.
    out = jax.block_until_ready(
        upconv_forward(params, x, x_skip, compute_dtype=jnp.bfloat16))
    assert out.shape == (N, out_channels, 2 * H, 2 * W), out.shape
    assert jnp.allclose(out, ref, atol=5e-2, rtol=5e-2), \
        float(jnp.max(jnp.abs(out - ref)))

    # Multi-strip tiling consistency for the deconv (exercises the strip grid path).
    x_nhwc = jnp.transpose(x, (0, 2, 3, 1))
    up_a = conv_transpose_2x2_s2(x_nhwc, params["wt"], params["bt"],
                                 out_dtype=jnp.float32, compute_dtype=jnp.float32)
    up_b = conv_transpose_2x2_s2(x_nhwc, params["wt"], params["bt"],
                                 out_dtype=jnp.float32, compute_dtype=jnp.float32,
                                 max_block_rows=2)
    assert jnp.allclose(up_a, up_b, atol=1e-5, rtol=1e-5)

    # Multi-strip conv (forces the halo-block path) against a pure-JAX reference.
    xa = jax.random.normal(k_a, (2, 16, 16, 4), jnp.float32)
    xb = jax.random.normal(k_b, (2, 16, 16, 6), jnp.float32)
    wa = 0.1 * jax.random.normal(k_wa, (3, 3, 4, 8), jnp.float32)
    wb = 0.1 * jax.random.normal(k_wb, (3, 3, 6, 8), jnp.float32)
    bb = 0.1 * jax.random.normal(k_bb, (8,), jnp.float32)
    want = _conv3x3_relu_ref([xa, xb], [wa, wb], bb)
    got_f32 = jax.block_until_ready(
        conv3x3_same_relu([xa, xb], [wa, wb], bb, out_dtype=jnp.float32,
                          compute_dtype=jnp.float32, max_block_rows=4))
    assert jnp.allclose(got_f32, want, atol=2e-4, rtol=2e-4), \
        float(jnp.max(jnp.abs(got_f32 - want)))
    got_bf16 = jax.block_until_ready(
        conv3x3_same_relu([xa, xb], [wa, wb], bb, out_dtype=jnp.float32,
                          compute_dtype=jnp.bfloat16, max_block_rows=4))
    assert jnp.allclose(got_bf16, want, atol=5e-2, rtol=5e-2), \
        float(jnp.max(jnp.abs(got_bf16 - want)))

    print("KERNEL_OK")
</pallas_src>

<mosaic_0001>
module attributes {stable_mosaic.version = 11 : i64} {
  func.func @kernel(%arg0: i32, %arg1: i32, %arg2: memref<1x8x8x4xf32, #tpu.memory_space<vmem>>, %arg3: memref<2x4x8xf32, #tpu.memory_space<vmem>>, %arg4: memref<1x8xf32, #tpu.memory_space<vmem>>, %arg5: memref<1x8x2x8x8xf32, #tpu.memory_space<vmem>>) attributes {dimension_semantics = [#tpu.dimension_semantics<parallel>, #tpu.dimension_semantics<parallel>], iteration_bounds = array<i64: 2, 1>, scalar_prefetch = 0 : i64, scratch_operands = 0 : i64, tpu.core_type = #tpu.core_type<tc>, window_params = [{transform_indices = @transform_0, window_bounds = array<i64: 1, 8, 8, 4>}, {pipeline_mode = #tpu.pipeline_mode<synchronous>, transform_indices = @transform_1, window_bounds = array<i64: 2, 4, 8>}, {pipeline_mode = #tpu.pipeline_mode<synchronous>, transform_indices = @transform_2, window_bounds = array<i64: 1, 8>}, {transform_indices = @transform_3, window_bounds = array<i64: 1, 8, 2, 8, 8>}]} {
    %c0 = arith.constant 0 : index
    %c0_0 = arith.constant 0 : index
    %c0_1 = arith.constant 0 : index
    %c0_2 = arith.constant 0 : index
    %0 = vector.load %arg2[%c0, %c0_0, %c0_1, %c0_2] : memref<1x8x8x4xf32, #tpu.memory_space<vmem>>, vector<1x8x8x4xf32>
    %1 = vector.shape_cast %0 : vector<1x8x8x4xf32> to vector<8x8x4xf32>
    %2 = vector.shape_cast %1 : vector<8x8x4xf32> to vector<64x4xf32>
    %c0_3 = arith.constant 0 : index
    %c0_4 = arith.constant 0 : index
    %3 = vector.load %arg4[%c0_3, %c0_4] : memref<1x8xf32, #tpu.memory_space<vmem>>, vector<1x8xf32>
    %c0_5 = arith.constant 0 : index
    %c0_6 = arith.constant 0 : index
    %c0_7 = arith.constant 0 : index
    %4 = vector.load %arg3[%c0_5, %c0_6, %c0_7] : memref<2x4x8xf32, #tpu.memory_space<vmem>>, vector<1x4x8xf32>
    %5 = vector.shape_cast %4 : vector<1x4x8xf32> to vector<4x8xf32>
    %cst = arith.constant dense<0.000000e+00> : vector<64x8xf32>
    %6 = tpu.matmul %2, %5, %cst {dimension_numbers = #tpu.dot_dimension_numbers<[1], [0], [0], [1], [0, 0, 1, 1], [], []>} : vector<64x4xf32>, vector<4x8xf32>, vector<64x8xf32> -> vector<64x8xf32>
    %7 = vector.broadcast %3 : vector<1x8xf32> to vector<64x8xf32>
    %8 = arith.addf %6, %7 : vector<64x8xf32>
    %9 = vector.shape_cast %8 : vector<64x8xf32> to vector<8x8x8xf32>
    %c0_8 = arith.constant 0 : index
    %c0_9 = arith.constant 0 : index
    %c0_10 = arith.constant 0 : index
    %c0_11 = arith.constant 0 : index
    %c0_12 = arith.constant 0 : index
    %10 = vector.load %arg5[%c0_8, %c0_9, %c0_10, %c0_11, %c0_12] : memref<1x8x2x8x8xf32, #tpu.memory_space<vmem>>, vector<1x8x1x8x8xf32>
    %11 = vector.shape_cast %10 : vector<1x8x1x8x8xf32> to vector<8x8x8xf32>
    %12 = vector.shape_cast %9 : vector<8x8x8xf32> to vector<1x8x1x8x8xf32>
    tpu.vector_store %arg5[%c0_8, %c0_9, %c0_10, %c0_11, %c0_12], %12 {strides = array<i32>} : memref<1x8x2x8x8xf32, #tpu.memory_space<vmem>>, vector<1x8x1x8x8xf32>,
    %c1 = arith.constant 1 : index
    %c0_13 = arith.constant 0 : index
    %c0_14 = arith.constant 0 : index
    %13 = vector.load %arg3[%c1, %c0_13, %c0_14] : memref<2x4x8xf32, #tpu.memory_space<vmem>>, vector<1x4x8xf32>
    %14 = vector.shape_cast %13 : vector<1x4x8xf32> to vector<4x8xf32>
    %cst_15 = arith.constant dense<0.000000e+00> : vector<64x8xf32>
    %15 = tpu.matmul %2, %14, %cst_15 {dimension_numbers = #tpu.dot_dimension_numbers<[1], [0], [0], [1], [0, 0, 1, 1], [], []>} : vector<64x4xf32>, vector<4x8xf32>, vector<64x8xf32> -> vector<64x8xf32>
    %16 = vector.broadcast %3 : vector<1x8xf32> to vector<64x8xf32>
    %17 = arith.addf %15, %16 : vector<64x8xf32>
    %18 = vector.shape_cast %17 : vector<64x8xf32> to vector<8x8x8xf32>
    %c0_16 = arith.constant 0 : index
    %c0_17 = arith.constant 0 : index
    %c1_18 = arith.constant 1 : index
    %c0_19 = arith.constant 0 : index
    %c0_20 = arith.constant 0 : index
    %19 = vector.load %arg5[%c0_16, %c0_17, %c1_18, %c0_19, %c0_20] : memref<1x8x2x8x8xf32, #tpu.memory_space<vmem>>, vector<1x8x1x8x8xf32>
    %20 = vector.shape_cast %19 : vector<1x8x1x8x8xf32> to vector<8x8x8xf32>
    %21 = vector.shape_cast %18 : vector<8x8x8xf32> to vector<1x8x1x8x8xf32>
    tpu.vector_store %arg5[%c0_16, %c0_17, %c1_18, %c0_19, %c0_20], %21 {strides = array<i32>} : memref<1x8x2x8x8xf32, #tpu.memory_space<vmem>>, vector<1x8x1x8x8xf32>,
    return
  }
  func.func @transform_0(%arg0: i32, %arg1: i32) -> (i32, i32, i32, i32) {
    %c0_i32 = arith.constant 0 : i32
    %c0_i32_0 = arith.constant 0 : i32
    %c0_i32_1 = arith.constant 0 : i32
    return %arg0, %arg1, %c0_i32, %c0_i32_0 : i32, i32, i32, i32
  }
  func.func @transform_1(%arg0: i32, %arg1: i32) -> (i32, i32, i32) {
    %c0_i32 = arith.constant 0 : i32
    %c0_i32_0 = arith.constant 0 : i32
    %c0_i32_1 = arith.constant 0 : i32
    %c0_i32_2 = arith.constant 0 : i32
    return %c0_i32, %c0_i32_0, %c0_i32_1 : i32, i32, i32
  }
  func.func @transform_2(%arg0: i32, %arg1: i32) -> (i32, i32) {
    %c0_i32 = arith.constant 0 : i32
    %c0_i32_0 = arith.constant 0 : i32
    %c0_i32_1 = arith.constant 0 : i32
    return %c0_i32, %c0_i32_0 : i32, i32
  }
  func.func @transform_3(%arg0: i32, %arg1: i32) -> (i32, i32, i32, i32, i32) {
    %c0_i32 = arith.constant 0 : i32
    %c0_i32_0 = arith.constant 0 : i32
    %c0_i32_1 = arith.constant 0 : i32
    %c0_i32_2 = arith.constant 0 : i32
    return %arg0, %arg1, %c0_i32, %c0_i32_0, %c0_i32_1 : i32, i32, i32, i32, i32
  }
}

module attributes {stable_mosaic.version = 11 : i64} {
  func.func @kernel(%arg0: i32, %arg1: i32, %arg2: memref<1x16x16x4xf32, #tpu.memory_space<vmem>>, %arg3: memref<1x1x16x4xf32, #tpu.memory_space<vmem>>, %arg4: memref<1x1x16x4xf32, #tpu.memory_space<vmem>>, %arg5: memref<1x16x16x4xf32, #tpu.memory_space<vmem>>, %arg6: memref<1x1x16x4xf32, #tpu.memory_space<vmem>>, %arg7: memref<1x1x16x4xf32, #tpu.memory_space<vmem>>, %arg8: memref<72x8xf32, #tpu.memory_space<vmem>>, %arg9: memref<1x8xf32, #tpu.memory_space<vmem>>, %arg10: memref<1x16x16x8xf32, #tpu.memory_space<vmem>>) attributes {dimension_semantics = [#tpu.dimension_semantics<parallel>, #tpu.dimension_semantics<parallel>], iteration_bounds = array<i64: 2, 1>, scalar_prefetch = 0 : i64, scratch_operands = 0 : i64, tpu.core_type = #tpu.core_type<tc>, window_params = [{transform_indices = @transform_0, window_bounds = array<i64: 1, 16, 16, 4>}, {transform_indices = @transform_1, window_bounds = array<i64: 1, 1, 16, 4>}, {transform_indices = @transform_2, window_bounds = array<i64: 1, 1, 16, 4>}, {transform_indices = @transform_3, window_bounds = array<i64: 1, 16, 16, 4>}, {transform_indices = @transform_4, window_bounds = array<i64: 1, 1, 16, 4>}, {transform_indices = @transform_5, window_bounds = array<i64: 1, 1, 16, 4>}, {pipeline_mode = #tpu.pipeline_mode<synchronous>, transform_indices = @transform_6, window_bounds = array<i64: 72, 8>}, {pipeline_mode = #tpu.pipeline_mode<synchronous>, transform_indices = @transform_7, window_bounds = array<i64: 1, 8>}, {transform_indices = @transform_8, window_bounds = array<i64: 1, 16, 16, 8>}]} {
    %c0 = arith.constant 0 : index
    %c0_0 = arith.constant 0 : index
    %c0_1 = arith.constant 0 : index
    %c0_2 = arith.constant 0 : index
    %0 = vector.load %arg2[%c0, %c0_0, %c0_1, %c0_2] : memref<1x16x16x4xf32, #tpu.memory_space<vmem>>, vector<1x16x16x4xf32>
    %1 = vector.shape_cast %0 : vector<1x16x16x4xf32> to vector<16x16x4xf32>
    %cst = arith.constant 0.000000e+00 : f32
    %2 = vector.broadcast %cst : f32 to vector<1x16x4xf32>
    %c0_i32 = arith.constant 0 : i32
    %3 = arith.cmpi sgt, %arg1, %c0_i32 : i32
    %c0_3 = arith.constant 0 : index
    %c0_4 = arith.constant 0 : index
    %c0_5 = arith.constant 0 : index
    %c0_6 = arith.constant 0 : index
    %4 = vector.load %arg3[%c0_3, %c0_4, %c0_5, %c0_6] : memref<1x1x16x4xf32, #tpu.memory_space<vmem>>, vector<1x1x16x4xf32>
    %5 = vector.shape_cast %4 : vector<1x1x16x4xf32> to vector<1x16x4xf32>
    %6 = arith.select %3, %5, %2 : vector<1x16x4xf32>
    %c0_i32_7 = arith.constant 0 : i32
    %7 = arith.cmpi slt, %arg1, %c0_i32_7 : i32
    %c0_8 = arith.constant 0 : index
    %c0_9 = arith.constant 0 : index
    %c0_10 = arith.constant 0 : index
    %c0_11 = arith.constant 0 : index
    %8 = vector.load %arg4[%c0_8, %c0_9, %c0_10, %c0_11] : memref<1x1x16x4xf32, #tpu.memory_space<vmem>>, vector<1x1x16x4xf32>
    %9 = vector.shape_cast %8 : vector<1x1x16x4xf32> to vector<1x16x4xf32>
    %10 = arith.select %7, %9, %2 : vector<1x16x4xf32>
    %11 = tpu.concatenate %6, %1, %10 in 0 : vector<1x16x4xf32>, vector<16x16x4xf32>, vector<1x16x4xf32> -> vector<18x16x4xf32>
    %cst_12 = arith.constant 0.000000e+00 : f32
    %12 = vector.broadcast %cst_12 : f32 to vector<18x1x4xf32>
    %13 = tpu.concatenate %12, %11, %12 in 1 : vector<18x1x4xf32>, vector<18x16x4xf32>, vector<18x1x4xf32> -> vector<18x18x4xf32>
    %14 = vector.extract_strided_slice %13 {offsets = [0, 0, 0], sizes = [16, 16, 4], strides = [1, 1, 1]} : vector<18x18x4xf32> to vector<16x16x4xf32>
    %15 = vector.extract_strided_slice %13 {offsets = [0, 1, 0], sizes = [16, 16, 4], strides = [1, 1, 1]} : vector<18x18x4xf32> to vector<16x16x4xf32>
    %16 = vector.extract_strided_slice %13 {offsets = [0, 2, 0], sizes = [16, 16, 4], strides = [1, 1, 1]} : vector<18x18x4xf32> to vector<16x16x4xf32>
    %17 = vector.extract_strided_slice %13 {offsets = [1, 0, 0], sizes = [16, 16, 4], strides = [1, 1, 1]} : vector<18x18x4xf32> to vector<16x16x4xf32>
    %18 = vector.extract_strided_slice %13 {offsets = [1, 1, 0], sizes = [16, 16, 4], strides = [1, 1, 1]} : vector<18x18x4xf32> to vector<16x16x4xf32>
    %19 = vector.extract_strided_slice %13 {offsets = [1, 2, 0], sizes = [16, 16, 4], strides = [1, 1, 1]} : vector<18x18x4xf32> to vector<16x16x4xf32>
    %20 = vector.extract_strided_slice %13 {offsets = [2, 0, 0], sizes = [16, 16, 4], strides = [1, 1, 1]} : vector<18x18x4xf32> to vector<16x16x4xf32>
    %21 = vector.extract_strided_slice %13 {offsets = [2, 1, 0], sizes = [16, 16, 4], strides = [1, 1, 1]} : vector<18x18x4xf32> to vector<16x16x4xf32>
    %22 = vector.extract_strided_slice %13 {offsets = [2, 2, 0], sizes = [16, 16, 4], strides = [1, 1, 1]} : vector<18x18x4xf32> to vector<16x16x4xf32>
    %c0_13 = arith.constant 0 : index
    %c0_14 = arith.constant 0 : index
    %c0_15 = arith.constant 0 : index
    %c0_16 = arith.constant 0 : index
    %23 = vector.load %arg5[%c0_13, %c0_14, %c0_15, %c0_16] : memref<1x16x16x4xf32, #tpu.memory_space<vmem>>, vector<1x16x16x4xf32>
    %24 = vector.shape_cast %23 : vector<1x16x16x4xf32> to vector<16x16x4xf32>
    %cst_17 = arith.constant 0.000000e+00 : f32
    %25 = vector.broadcast %cst_17 : f32 to vector<1x16x4xf32>
    %c0_i32_18 = arith.constant 0 : i32
    %26 = arith.cmpi sgt, %arg1, %c0_i32_18 : i32
    %c0_19 = arith.constant 0 : index
    %c0_20 = arith.constant 0 : index
    %c0_21 = arith.constant 0 : index
    %c0_22 = arith.constant 0 : index
    %27 = vector.load %arg6[%c0_19, %c0_20, %c0_21, %c0_22] : memref<1x1x16x4xf32, #tpu.memory_space<vmem>>, vector<1x1x16x4xf32>
    %28 = vector.shape_cast %27 : vector<1x1x16x4xf32> to vector<1x16x4xf32>
    %29 = arith.select %26, %28, %25 : vector<1x16x4xf32>
    %c0_i32_23 = arith.constant 0 : i32
    %30 = arith.cmpi slt, %arg1, %c0_i32_23 : i32
    %c0_24 = arith.constant 0 : index
    %c0_25 = arith.constant 0 : index
    %c0_26 = arith.constant 0 : index
    %c0_27 = arith.constant 0 : index
    %31 = vector.load %arg7[%c0_24, %c0_25, %c0_26, %c0_27] : memref<1x1x16x4xf32, #tpu.memory_space<vmem>>, vector<1x1x16x4xf32>
    %32 = vector.shape_cast %31 : vector<1x1x16x4xf32> to vector<1x16x4xf32>
    %33 = arith.select %30, %32, %25 : vector<1x16x4xf32>
    %34 = tpu.concatenate %29, %24, %33 in 0 : vector<1x16x4xf32>, vector<16x16x4xf32>, vector<1x16x4xf32> -> vector<18x16x4xf32>
    %cst_28 = arith.constant 0.000000e+00 : f32
    %35 = vector.broadcast %cst_28 : f32 to vector<18x1x4xf32>
    %36 = tpu.concatenate %35, %34, %35 in 1 : vector<18x1x4xf32>, vector<18x16x4xf32>, vector<18x1x4xf32> -> vector<18x18x4xf32>
    %37 = vector.extract_strided_slice %36 {offsets = [0, 0, 0], sizes = [16, 16, 4], strides = [1, 1, 1]} : vector<18x18x4xf32> to vector<16x16x4xf32>
    %38 = vector.extract_strided_slice %36 {offsets = [0, 1, 0], sizes = [16, 16, 4], strides = [1, 1, 1]} : vector<18x18x4xf32> to vector<16x16x4xf32>
    %39 = vector.extract_strided_slice %36 {offsets = [0, 2, 0], sizes = [16, 16, 4], strides = [1, 1, 1]} : vector<18x18x4xf32> to vector<16x16x4xf32>
    %40 = vector.extract_strided_slice %36 {offsets = [1, 0, 0], sizes = [16, 16, 4], strides = [1, 1, 1]} : vector<18x18x4xf32> to vector<16x16x4xf32>
    %41 = vector.extract_strided_slice %36 {offsets = [1, 1, 0], sizes = [16, 16, 4], strides = [1, 1, 1]} : vector<18x18x4xf32> to vector<16x16x4xf32>
    %42 = vector.extract_strided_slice %36 {offsets = [1, 2, 0], sizes = [16, 16, 4], strides = [1, 1, 1]} : vector<18x18x4xf32> to vector<16x16x4xf32>
    %43 = vector.extract_strided_slice %36 {offsets = [2, 0, 0], sizes = [16, 16, 4], strides = [1, 1, 1]} : vector<18x18x4xf32> to vector<16x16x4xf32>
    %44 = vector.extract_strided_slice %36 {offsets = [2, 1, 0], sizes = [16, 16, 4], strides = [1, 1, 1]} : vector<18x18x4xf32> to vector<16x16x4xf32>
    %45 = vector.extract_strided_slice %36 {offsets = [2, 2, 0], sizes = [16, 16, 4], strides = [1, 1, 1]} : vector<18x18x4xf32> to vector<16x16x4xf32>
    %46 = tpu.concatenate %14, %15, %16, %17, %18, %19, %20, %21, %22, %37, %38, %39, %40, %41, %42, %43 in 2 : vector<16x16x4xf32>, vector<16x16x4xf32>, vector<16x16x4xf32>, vector<16x16x4xf32>, vector<16x16x4xf32>, vector<16x16x4xf32>, vector<16x16x4xf32>, vector<16x16x4xf32>, vector<16x16x4xf32>, vector<16x16x4xf32>, vector<16x16x4xf32>, vector<16x16x4xf32>, vector<16x16x4xf32>, vector<16x16x4xf32>, vector<16x16x4xf32>, vector<16x16x4xf32> -> vector<16x16x64xf32>
    %47 = tpu.concatenate %44, %45 in 2 : vector<16x16x4xf32>, vector<16x16x4xf32> -> vector<16x16x8xf32>
    %48 = tpu.concatenate %46, %47 in 2 : vector<16x16x64xf32>, vector<16x16x8xf32> -> vector<16x16x72xf32>
    %49 = vector.shape_cast %48 : vector<16x16x72xf32> to vector<256x72xf32>
    %c0_29 = arith.constant 0 : index
    %c0_30 = arith.constant 0 : index
    %50 = vector.load %arg8[%c0_29, %c0_30] : memref<72x8xf32, #tpu.memory_space<vmem>>, vector<72x8xf32>
    %cst_31 = arith.constant dense<0.000000e+00> : vector<256x8xf32>
    %51 = tpu.matmul %49, %50, %cst_31 {dimension_numbers = #tpu.dot_dimension_numbers<[1], [0], [0], [1], [0, 0, 1, 1], [], []>} : vector<256x72xf32>, vector<72x8xf32>, vector<256x8xf32> -> vector<256x8xf32>
    %c0_32 = arith.constant 0 : index
    %c0_33 = arith.constant 0 : index
    %52 = vector.load %arg9[%c0_32, %c0_33] : memref<1x8xf32, #tpu.memory_space<vmem>>, vector<1x8xf32>
    %53 = vector.broadcast %52 : vector<1x8xf32> to vector<256x8xf32>
    %54 = arith.addf %51, %53 : vector<256x8xf32>
    %cst_34 = arith.constant 0.000000e+00 : f32
    %55 = vector.broadcast %cst_34 : f32 to vector<256x8xf32>
    %56 = arith.maximumf %54, %55 : vector<256x8xf32>
    %57 = vector.shape_cast %56 : vector<256x8xf32> to vector<16x16x8xf32>
    %c0_35 = arith.constant 0 : index
    %c0_36 = arith.constant 0 : index
    %c0_37 = arith.constant 0 : index
    %c0_38 = arith.constant 0 : index
    %58 = vector.load %arg10[%c0_35, %c0_36, %c0_37, %c0_38] : memref<1x16x16x8xf32, #tpu.memory_space<vmem>>, vector<1x16x16x8xf32>
    %59 = vector.shape_cast %58 : vector<1x16x16x8xf32> to vector<16x16x8xf32>
    %60 = vector.shape_cast %57 : vector<16x16x8xf32> to vector<1x16x16x8xf32>
    tpu.vector_store %arg10[%c0_35, %c0_36, %c0_37, %c0_38], %60 {strides = array<i32>} : memref<1x16x16x8xf32, #tpu.memory_space<vmem>>, vector<1x16x16x8xf32>,
    return
  }
  func.func @transform_0(%arg0: i32, %arg1: i32) -> (i32, i32, i32, i32) {
    %c0_i32 = arith.constant 0 : i32
    %c0_i32_0 = arith.constant 0 : i32
    %c0_i32_1 = arith.constant 0 : i32
    return %arg0, %arg1, %c0_i32, %c0_i32_0 : i32, i32, i32, i32
  }
  func.func @transform_1(%arg0: i32, %arg1: i32) -> (i32, i32, i32, i32) {
    %c16_i32 = arith.constant 16 : i32
    %0 = arith.muli %arg1, %c16_i32 : i32
    %c1_i32 = arith.constant 1 : i32
    %1 = arith.subi %0, %c1_i32 : i32
    %c0_i32 = arith.constant 0 : i32
    %2 = arith.maxsi %1, %c0_i32 : i32
    %c0_i32_0 = arith.constant 0 : i32
    %c0_i32_1 = arith.constant 0 : i32
    %c0_i32_2 = arith.constant 0 : i32
    return %arg0, %2, %c0_i32_0, %c0_i32_1 : i32, i32, i32, i32
  }
  func.func @transform_2(%arg0: i32, %arg1: i32) -> (i32, i32, i32, i32) {
    %c1_i32 = arith.constant 1 : i32
    %0 = arith.addi %arg1, %c1_i32 : i32
    %c16_i32 = arith.constant 16 : i32
    %1 = arith.muli %0, %c16_i32 : i32
    %c15_i32 = arith.constant 15 : i32
    %2 = arith.minsi %1, %c15_i32 : i32
    %c0_i32 = arith.constant 0 : i32
    %c0_i32_0 = arith.constant 0 : i32
    %c0_i32_1 = arith.constant 0 : i32
    return %arg0, %2, %c0_i32, %c0_i32_0 : i32, i32, i32, i32
  }
  func.func @transform_3(%arg0: i32, %arg1: i32) -> (i32, i32, i32, i32) {
    %c0_i32 = arith.constant 0 : i32
    %c0_i32_0 = arith.constant 0 : i32
    %c0_i32_1 = arith.constant 0 : i32
    return %arg0, %arg1, %c0_i32, %c0_i32_0 : i32, i32, i32, i32
  }
  func.func @transform_4(%arg0: i32, %arg1: i32) -> (i32, i32, i32, i32) {
    %c16_i32 = arith.constant 16 : i32
    %0 = arith.muli %arg1, %c16_i32 : i32
    %c1_i32 = arith.constant 1 : i32
    %1 = arith.subi %0, %c1_i32 : i32
    %c0_i32 = arith.constant 0 : i32
    %2 = arith.maxsi %1, %c0_i32 : i32
    %c0_i32_0 = arith.constant 0 : i32
    %c0_i32_1 = arith.constant 0 : i32
    %c0_i32_2 = arith.constant 0 : i32
    return %arg0, %2, %c0_i32_0, %c0_i32_1 : i32, i32, i32, i32
  }
  func.func @transform_5(%arg0: i32, %arg1: i32) -> (i32, i32, i32, i32) {
    %c1_i32 = arith.constant 1 : i32
    %0 = arith.addi %arg1, %c1_i32 : i32
    %c16_i32 = arith.constant 16 : i32
    %1 = arith.muli %0, %c16_i32 : i32
    %c15_i32 = arith.constant 15 : i32
    %2 = arith.minsi %1, %c15_i32 : i32
    %c0_i32 = arith.constant 0 : i32
    %c0_i32_0 = arith.constant 0 : i32
    %c0_i32_1 = arith.constant 0 : i32
    return %arg0, %2, %c0_i32, %c0_i32_0 : i32, i32, i32, i32
  }
  func.func @transform_6(%arg0: i32, %arg1: i32) -> (i32, i32) {
    %c0_i32 = arith.constant 0 : i32
    %c0_i32_0 = arith.constant 0 : i32
    %c0_i32_1 = arith.constant 0 : i32
    return %c0_i32, %c0_i32_0 : i32, i32
  }
  func.func @transform_7(%arg0: i32, %arg1: i32) -> (i32, i32) {
    %c0_i32 = arith.constant 0 : i32
    %c0_i32_0 = arith.constant 0 : i32
    %c0_i32_1 = arith.constant 0 : i32
    return %c0_i32, %c0_i32_0 : i32, i32
  }
  func.func @transform_8(%arg0: i32, %arg1: i32) -> (i32, i32, i32, i32) {
    %c0_i32 = arith.constant 0 : i32
    %c0_i32_0 = arith.constant 0 : i32
    %c0_i32_1 = arith.constant 0 : i32
    return %arg0, %arg1, %c0_i32, %c0_i32_0 : i32, i32, i32, i32
  }
}

module attributes {stable_mosaic.version = 11 : i64} {
  func.func @kernel(%arg0: i32, %arg1: i32, %arg2: memref<1x16x16x8xf32, #tpu.memory_space<vmem>>, %arg3: memref<1x1x16x8xf32, #tpu.memory_space<vmem>>, %arg4: memref<1x1x16x8xf32, #tpu.memory_space<vmem>>, %arg5: memref<72x8xf32, #tpu.memory_space<vmem>>, %arg6: memref<1x8xf32, #tpu.memory_space<vmem>>, %arg7: memref<1x16x16x8xf32, #tpu.memory_space<vmem>>) attributes {dimension_semantics = [#tpu.dimension_semantics<parallel>, #tpu.dimension_semantics<parallel>], iteration_bounds = array<i64: 2, 1>, scalar_prefetch = 0 : i64, scratch_operands = 0 : i64, tpu.core_type = #tpu.core_type<tc>, window_params = [{transform_indices = @transform_0, window_bounds = array<i64: 1, 16, 16, 8>}, {transform_indices = @transform_1, window_bounds = array<i64: 1, 1, 16, 8>}, {transform_indices = @transform_2, window_bounds = array<i64: 1, 1, 16, 8>}, {pipeline_mode = #tpu.pipeline_mode<synchronous>, transform_indices = @transform_3, window_bounds = array<i64: 72, 8>}, {pipeline_mode = #tpu.pipeline_mode<synchronous>, transform_indices = @transform_4, window_bounds = array<i64: 1, 8>}, {transform_indices = @transform_5, window_bounds = array<i64: 1, 16, 16, 8>}]} {
    %c0 = arith.constant 0 : index
    %c0_0 = arith.constant 0 : index
    %c0_1 = arith.constant 0 : index
    %c0_2 = arith.constant 0 : index
    %0 = vector.load %arg2[%c0, %c0_0, %c0_1, %c0_2] : memref<1x16x16x8xf32, #tpu.memory_space<vmem>>, vector<1x16x16x8xf32>
    %1 = vector.shape_cast %0 : vector<1x16x16x8xf32> to vector<16x16x8xf32>
    %cst = arith.constant 0.000000e+00 : f32
    %2 = vector.broadcast %cst : f32 to vector<1x16x8xf32>
    %c0_i32 = arith.constant 0 : i32
    %3 = arith.cmpi sgt, %arg1, %c0_i32 : i32
    %c0_3 = arith.constant 0 : index
    %c0_4 = arith.constant 0 : index
    %c0_5 = arith.constant 0 : index
    %c0_6 = arith.constant 0 : index
    %4 = vector.load %arg3[%c0_3, %c0_4, %c0_5, %c0_6] : memref<1x1x16x8xf32, #tpu.memory_space<vmem>>, vector<1x1x16x8xf32>
    %5 = vector.shape_cast %4 : vector<1x1x16x8xf32> to vector<1x16x8xf32>
    %6 = arith.select %3, %5, %2 : vector<1x16x8xf32>
    %c0_i32_7 = arith.constant 0 : i32
    %7 = arith.cmpi slt, %arg1, %c0_i32_7 : i32
    %c0_8 = arith.constant 0 : index
    %c0_9 = arith.constant 0 : index
    %c0_10 = arith.constant 0 : index
    %c0_11 = arith.constant 0 : index
    %8 = vector.load %arg4[%c0_8, %c0_9, %c0_10, %c0_11] : memref<1x1x16x8xf32, #tpu.memory_space<vmem>>, vector<1x1x16x8xf32>
    %9 = vector.shape_cast %8 : vector<1x1x16x8xf32> to vector<1x16x8xf32>
    %10 = arith.select %7, %9, %2 : vector<1x16x8xf32>
    %11 = tpu.concatenate %6, %1, %10 in 0 : vector<1x16x8xf32>, vector<16x16x8xf32>, vector<1x16x8xf32> -> vector<18x16x8xf32>
    %cst_12 = arith.constant 0.000000e+00 : f32
    %12 = vector.broadcast %cst_12 : f32 to vector<18x1x8xf32>
    %13 = tpu.concatenate %12, %11, %12 in 1 : vector<18x1x8xf32>, vector<18x16x8xf32>, vector<18x1x8xf32> -> vector<18x18x8xf32>
    %14 = vector.extract_strided_slice %13 {offsets = [0, 0, 0], sizes = [16, 16, 8], strides = [1, 1, 1]} : vector<18x18x8xf32> to vector<16x16x8xf32>
    %15 = vector.extract_strided_slice %13 {offsets = [0, 1, 0], sizes = [16, 16, 8], strides = [1, 1, 1]} : vector<18x18x8xf32> to vector<16x16x8xf32>
    %16 = vector.extract_strided_slice %13 {offsets = [0, 2, 0], sizes = [16, 16, 8], strides = [1, 1, 1]} : vector<18x18x8xf32> to vector<16x16x8xf32>
    %17 = vector.extract_strided_slice %13 {offsets = [1, 0, 0], sizes = [16, 16, 8], strides = [1, 1, 1]} : vector<18x18x8xf32> to vector<16x16x8xf32>
    %18 = vector.extract_strided_slice %13 {offsets = [1, 1, 0], sizes = [16, 16, 8], strides = [1, 1, 1]} : vector<18x18x8xf32> to vector<16x16x8xf32>
    %19 = vector.extract_strided_slice %13 {offsets = [1, 2, 0], sizes = [16, 16, 8], strides = [1, 1, 1]} : vector<18x18x8xf32> to vector<16x16x8xf32>
    %20 = vector.extract_strided_slice %13 {offsets = [2, 0, 0], sizes = [16, 16, 8], strides = [1, 1, 1]} : vector<18x18x8xf32> to vector<16x16x8xf32>
    %21 = vector.extract_strided_slice %13 {offsets = [2, 1, 0], sizes = [16, 16, 8], strides = [1, 1, 1]} : vector<18x18x8xf32> to vector<16x16x8xf32>
    %22 = vector.extract_strided_slice %13 {offsets = [2, 2, 0], sizes = [16, 16, 8], strides = [1, 1, 1]} : vector<18x18x8xf32> to vector<16x16x8xf32>
    %23 = tpu.concatenate %14, %15, %16, %17, %18, %19, %20, %21, %22 in 2 : vector<16x16x8xf32>, vector<16x16x8xf32>, vector<16x16x8xf32>, vector<16x16x8xf32>, vector<16x16x8xf32>, vector<16x16x8xf32>, vector<16x16x8xf32>, vector<16x16x8xf32>, vector<16x16x8xf32> -> vector<16x16x72xf32>
    %24 = vector.shape_cast %23 : vector<16x16x72xf32> to vector<256x72xf32>
    %c0_13 = arith.constant 0 : index
    %c0_14 = arith.constant 0 : index
    %25 = vector.load %arg5[%c0_13, %c0_14] : memref<72x8xf32, #tpu.memory_space<vmem>>, vector<72x8xf32>
    %cst_15 = arith.constant dense<0.000000e+00> : vector<256x8xf32>
    %26 = tpu.matmul %24, %25, %cst_15 {dimension_numbers = #tpu.dot_dimension_numbers<[1], [0], [0], [1], [0, 0, 1, 1], [], []>} : vector<256x72xf32>, vector<72x8xf32>, vector<256x8xf32> -> vector<256x8xf32>
    %c0_16 = arith.constant 0 : index
    %c0_17 = arith.constant 0 : index
    %27 = vector.load %arg6[%c0_16, %c0_17] : memref<1x8xf32, #tpu.memory_space<vmem>>, vector<1x8xf32>
    %28 = vector.broadcast %27 : vector<1x8xf32> to vector<256x8xf32>
    %29 = arith.addf %26, %28 : vector<256x8xf32>
    %cst_18 = arith.constant 0.000000e+00 : f32
    %30 = vector.broadcast %cst_18 : f32 to vector<256x8xf32>
    %31 = arith.maximumf %29, %30 : vector<256x8xf32>
    %32 = vector.shape_cast %31 : vector<256x8xf32> to vector<16x16x8xf32>
    %c0_19 = arith.constant 0 : index
    %c0_20 = arith.constant 0 : index
    %c0_21 = arith.constant 0 : index
    %c0_22 = arith.constant 0 : index
    %33 = vector.load %arg7[%c0_19, %c0_20, %c0_21, %c0_22] : memref<1x16x16x8xf32, #tpu.memory_space<vmem>>, vector<1x16x16x8xf32>
    %34 = vector.shape_cast %33 : vector<1x16x16x8xf32> to vector<16x16x8xf32>
    %35 = vector.shape_cast %32 : vector<16x16x8xf32> to vector<1x16x16x8xf32>
    tpu.vector_store %arg7[%c0_19, %c0_20, %c0_21, %c0_22], %35 {strides = array<i32>} : memref<1x16x16x8xf32, #tpu.memory_space<vmem>>, vector<1x16x16x8xf32>,
    return
  }
  func.func @transform_0(%arg0: i32, %arg1: i32) -> (i32, i32, i32, i32) {
    %c0_i32 = arith.constant 0 : i32
    %c0_i32_0 = arith.constant 0 : i32
    %c0_i32_1 = arith.constant 0 : i32
    return %arg0, %arg1, %c0_i32, %c0_i32_0 : i32, i32, i32, i32
  }
  func.func @transform_1(%arg0: i32, %arg1: i32) -> (i32, i32, i32, i32) {
    %c16_i32 = arith.constant 16 : i32
    %0 = arith.muli %arg1, %c16_i32 : i32
    %c1_i32 = arith.constant 1 : i32
    %1 = arith.subi %0, %c1_i32 : i32
    %c0_i32 = arith.constant 0 : i32
    %2 = arith.maxsi %1, %c0_i32 : i32
    %c0_i32_0 = arith.constant 0 : i32
    %c0_i32_1 = arith.constant 0 : i32
    %c0_i32_2 = arith.constant 0 : i32
    return %arg0, %2, %c0_i32_0, %c0_i32_1 : i32, i32, i32, i32
  }
  func.func @transform_2(%arg0: i32, %arg1: i32) -> (i32, i32, i32, i32) {
    %c1_i32 = arith.constant 1 : i32
    %0 = arith.addi %arg1, %c1_i32 : i32
    %c16_i32 = arith.constant 16 : i32
    %1 = arith.muli %0, %c16_i32 : i32
    %c15_i32 = arith.constant 15 : i32
    %2 = arith.minsi %1, %c15_i32 : i32
    %c0_i32 = arith.constant 0 : i32
    %c0_i32_0 = arith.constant 0 : i32
    %c0_i32_1 = arith.constant 0 : i32
    return %arg0, %2, %c0_i32, %c0_i32_0 : i32, i32, i32, i32
  }
  func.func @transform_3(%arg0: i32, %arg1: i32) -> (i32, i32) {
    %c0_i32 = arith.constant 0 : i32
    %c0_i32_0 = arith.constant 0 : i32
    %c0_i32_1 = arith.constant 0 : i32
    return %c0_i32, %c0_i32_0 : i32, i32
  }
  func.func @transform_4(%arg0: i32, %arg1: i32) -> (i32, i32) {
    %c0_i32 = arith.constant 0 : i32
    %c0_i32_0 = arith.constant 0 : i32
    %c0_i32_1 = arith.constant 0 : i32
    return %c0_i32, %c0_i32_0 : i32, i32
  }
  func.func @transform_5(%arg0: i32, %arg1: i32) -> (i32, i32, i32, i32) {
    %c0_i32 = arith.constant 0 : i32
    %c0_i32_0 = arith.constant 0 : i32
    %c0_i32_1 = arith.constant 0 : i32
    return %arg0, %arg1, %c0_i32, %c0_i32_0 : i32, i32, i32, i32
  }
}

</mosaic_0001>

<bundles_post_ra>
// kernel: upconv_forward.3
= control target key start
LH: loop header
LB: loop body
LE: loop exit
PB: predicated region body
PF: predicated region fallthrough
CT: control target
= control target key end

     0   :  { %s563_s12 = smov 0   ;;  %s565_s13 = smov 0   ;;  %s659_s0 = inlined_call_operand.vmem [shape: f32[2,8,8,4], index: 0, kind: input, shape index: {}]   ;;  %s660_s1 = inlined_call_operand.vmem [shape: f32[2,4,8], index: 1, kind: input, shape index: {}]   ;;  %s661_s2 = inlined_call_operand.vmem [shape: f32[1,8], index: 2, kind: input, shape index: {}]   ;;  %s662_s3 = inlined_call_operand.vmem [shape: f32[2,8,2,8,8], index: 3, kind: output, shape index: {}]  }
   0x1   :  { %s567_s14 = smov 0  }
   0x2 LB: > { %s25_s15 = sadd.s32 1, %s537_s13  ;;  %p456_p0 = scmp.ge.s32.totalorder %s541_s14, 1  ;;  %s541_s14 = sphi %s567_s14, %s13_s14   ;;  %s537_s13 = sphi %s565_s13, %s664_s13   ;;  %s533_s12 = sphi %s563_s12, %s663_s12  }
   0x3   : > { %p27_p1 = scmp.ge.s32.totalorder %s25_s15, 2  ;;  %p158_p2 = scmp.lt.s32.totalorder %s541_s14, 3 }
   0x5   : > { %s666_s15 = smov (%p27_p1, %s25_s15), 0  ;;  %p159_p3 = pnand %p456_p0, %p158_p2 }
   0x6   : > { %p192_p4 = scmp.lt.s32.totalorder (!%p159_p3), %s533_s12, 1 }
   0x7   : > { %162 = sbr.rel (%p159_p3) target bundleno = 176 (0xb0), region = 32 }
   0xc   : > { %v221_v0 = vld [vmem:[%s660_s1] sm:$0xf]  ;;  %vm250_vm0 = vcmask 1043456   ;;  %v470_v1 = vld [vmem:[%s660_s1 + $0x4] sm:$0xf]  ;;  %s668_s12 = smov (!%p192_p4, %s533_s12), 1 }
   0xd   : > { %492 = vmatpush.msk.msra.mxu2 %vm250_vm0, %v221_v0  ;;  %493 = vmatpush.msk.msra.mxu3 %vm250_vm0, %v470_v1  ;;  %s490_s20 = sshll.u32 %s668_s12, 6  ;;  %vm225_vm1 = vcmask 31744   ;;  %s491_s24 = sshll.u32 %s668_s12, 7  ;;  %v518_v10 = vld [vmem:[%s661_s2] ss:$0 sm:$0xff]  ;;  %vm295_vm2 = vcmask 64512  }
   0xe   : > { %461 = vmatpush.msk.msra.mxu0 %vm250_vm0, %v221_v0  ;;  %471 = vmatpush.msk.msra.mxu1 %vm250_vm0, %v470_v1  ;;  %s199_s23 = scalar_lea.vmem %s659_s0, %s490_s20  ;;  %s616_s29 = scalar_lea.vmem %s662_s3, %s491_s24 }
   0xf   : > { %v216_v2 = vld [vmem:[%s199_s23 + $0x20] sm:$0xff]  ;;  %v217_v4 = vld [vmem:[%s199_s23 + $0x28] sm:$0xff]  ;;  %v218_v6 = vld [vmem:[%s199_s23 + $0x30] sm:$0xff] }
  0x10   : > { %v212_v3 = vld [vmem:[%s199_s23] sm:$0xff]  ;;  %466 = vmatmul.msk.f32.vlgmr.msra.gmra.mxu2 %vm225_vm1, %v216_v2  ;;  %476 = vmatmul.msk.f32.vlgmr.msra.gmra.mxu3 %vm225_vm1, %v216_v2  ;;  %v213_v5 = vld [vmem:[%s199_s23 + $0x8] sm:$0xff]  ;;  %v214_v7 = vld [vmem:[%s199_s23 + $0x10] sm:$0xff] }
  0x11   : > { %462 = vmatmul.msk.f32.vlgmr.msra.gmra.mxu0 %vm225_vm1, %v212_v3  ;;  %472 = vmatmul.msk.f32.vlgmr.msra.gmra.mxu1 %vm225_vm1, %v212_v3  ;;  %v219_v8 = vld [vmem:[%s199_s23 + $0x38] sm:$0xff] }
  0x12   : > { %v215_v9 = vld [vmem:[%s199_s23 + $0x18] sm:$0xff] }
  0x18   : > { %467 = vmatmul.msk.f32.gmra.mxu2 %vm225_vm1, %v217_v4  ;;  %477 = vmatmul.msk.f32.gmra.mxu3 %vm225_vm1, %v217_v4 }
  0x19   : > { %463 = vmatmul.msk.f32.gmra.mxu0 %vm225_vm1, %v213_v5  ;;  %473 = vmatmul.msk.f32.gmra.mxu1 %vm225_vm1, %v213_v5 }
  0x20   : > { %468 = vmatmul.msk.f32.gmra.mxu2 %vm225_vm1, %v218_v6  ;;  %478 = vmatmul.msk.f32.gmra.mxu3 %vm225_vm1, %v218_v6 }
  0x21   : > { %464 = vmatmul.msk.f32.gmra.mxu0 %vm225_vm1, %v214_v7  ;;  %474 = vmatmul.msk.f32.gmra.mxu1 %vm225_vm1, %v214_v7 }
  0x28   : > { %469 = vmatmul.msk.f32.gmra.mxu2 %vm225_vm1, %v219_v8  ;;  %479 = vmatmul.msk.f32.gmra.mxu3 %vm225_vm1, %v219_v8 }
  0x29   : > { %465 = vmatmul.msk.f32.gmra.mxu0 %vm225_vm1, %v215_v9  ;;  %475 = vmatmul.msk.f32.gmra.mxu1 %vm225_vm1, %v215_v9 }
  0x8e   : > { %v271_v11 = vpop.f32.mrf.mxu0  ;;  %v326_v12 = vpop.f32.mrf.mxu1 }
  0x8f   : > { %v272_v13 = vadd.f32 %v518_v10, %v271_v11  ;;  %v327_v14 = vadd.f32 %v518_v10, %v326_v12 }
  0x91   : > { %296 = vst.msk [vmem:[%s616_s29] sm:$0xff] %vm295_vm2, %v272_v13 }
  0x92   : > { %480 = vst.msk [vmem:[%s616_s29 + $0x8] sm:$0xff] %vm295_vm2, %v327_v14 }
  0x93   : > { %v283_v15 = vpop.f32.mrf.mxu2  ;;  %v338_v16 = vpop.f32.mrf.mxu3 }
  0x94   : > { %v284_v17 = vadd.f32 %v518_v10, %v283_v15  ;;  %v339_v18 = vadd.f32 %v518_v10, %v338_v16 }
  0x96   : > { %300 = vst.msk [vmem:[%s616_s29 + $0x40] sm:$0xff] %vm295_vm2, %v284_v17  ;;  %v274_v19 = vpop.f32.mrf.mxu0  ;;  %v329_v20 = vpop.f32.mrf.mxu1 }
  0x97   : > { %484 = vst.msk [vmem:[%s616_s29 + $0x48] sm:$0xff] %vm295_vm2, %v339_v18  ;;  %v275_v21 = vadd.f32 %v518_v10, %v274_v19  ;;  %v330_v22 = vadd.f32 %v518_v10, %v329_v20 }
  0x99   : > { %297 = vst.msk [vmem:[%s616_s29 + $0x10] sm:$0xff] %vm295_vm2, %v275_v21 }
  0x9a   : > { %481 = vst.msk [vmem:[%s616_s29 + $0x18] sm:$0xff] %vm295_vm2, %v330_v22 }
  0x9b   : > { %v286_v23 = vpop.f32.mrf.mxu2  ;;  %v341_v24 = vpop.f32.mrf.mxu3 }
  0x9c   : > { %v287_v25 = vadd.f32 %v518_v10, %v286_v23  ;;  %v342_v26 = vadd.f32 %v518_v10, %v341_v24 }
  0x9e   : > { %301 = vst.msk [vmem:[%s616_s29 + $0x50] sm:$0xff] %vm295_vm2, %v287_v25  ;;  %v277_v27 = vpop.f32.mrf.mxu0  ;;  %v332_v28 = vpop.f32.mrf.mxu1 }
  0x9f   : > { %485 = vst.msk [vmem:[%s616_s29 + $0x58] sm:$0xff] %vm295_vm2, %v342_v26  ;;  %v278_v29 = vadd.f32 %v518_v10, %v277_v27  ;;  %v333_v30 = vadd.f32 %v518_v10, %v332_v28 }
  0xa1   : > { %298 = vst.msk [vmem:[%s616_s29 + $0x20] sm:$0xff] %vm295_vm2, %v278_v29 }
  0xa2   : > { %482 = vst.msk [vmem:[%s616_s29 + $0x28] sm:$0xff] %vm295_vm2, %v333_v30 }
  0xa3   : > { %v289_v31 = vpop.f32.mrf.mxu2  ;;  %v344_v32 = vpop.f32.mrf.mxu3 }
  0xa4   : > { %v290_v33 = vadd.f32 %v518_v10, %v289_v31  ;;  %v345_v34 = vadd.f32 %v518_v10, %v344_v32 }
  0xa6   : > { %302 = vst.msk [vmem:[%s616_s29 + $0x60] sm:$0xff] %vm295_vm2, %v290_v33  ;;  %v280_v35 = vpop.f32.mrf.mxu0  ;;  %v335_v36 = vpop.f32.mrf.mxu1 }
  0xa7   : > { %486 = vst.msk [vmem:[%s616_s29 + $0x68] sm:$0xff] %vm295_vm2, %v345_v34  ;;  %v281_v37 = vadd.f32 %v518_v10, %v280_v35  ;;  %v336_v38 = vadd.f32 %v518_v10, %v335_v36 }
  0xa9   : > { %299 = vst.msk [vmem:[%s616_s29 + $0x30] sm:$0xff] %vm295_vm2, %v281_v37 }
  0xaa   : > { %483 = vst.msk [vmem:[%s616_s29 + $0x38] sm:$0xff] %vm295_vm2, %v336_v38 }
  0xab   : > { %v292_v39 = vpop.f32.mrf.mxu2  ;;  %v347_v40 = vpop.f32.mrf.mxu3 }
  0xac   : > { %v293_v41 = vadd.f32 %v518_v10, %v292_v39  ;;  %v348_v42 = vadd.f32 %v518_v10, %v347_v40 }
  0xae   : > { %303 = vst.msk [vmem:[%s616_s29 + $0x70] sm:$0xff] %vm295_vm2, %v293_v41 }
  0xaf   : > { %487 = vst.msk [vmem:[%s616_s29 + $0x78] sm:$0xff] %vm295_vm2, %v348_v42 }
  0xb0 PF: > { %s13_s14 = sadd.s32 1, %s541_s14   ;;  %s663_s12 = smov %s537_s13 }
  0xb1   : > { %p10_p5 = scmp.ge.s32.totalorder %s13_s14, 4   ;;  %s664_s13 = smov %s666_s15 }
  0xb3   :  { %12 = sbr.rel (!%p10_p5) target bundleno = 2 (0x2), region = 64 }

// kernel: upconv_forward.5
= control target key start
LH: loop header
LB: loop body
LE: loop exit
PB: predicated region body
PF: predicated region fallthrough
CT: control target
= control target key end

     0   :  { %s2496_s18 = smov 0   ;;  %s2498_s19 = smov 0   ;;  %s4504_s0 = inlined_call_operand.vmem [shape: f32[2,16,16,8], index: 0, kind: input, shape index: {}, may-alias: {0,1,2}]   ;;  %s4505_s1 = inlined_call_operand.vmem [shape: f32[2,16,16,8], index: 1, kind: input, shape index: {}, may-alias: {0,1,2}]   ;;  %s4506_s2 = inlined_call_operand.vmem [shape: f32[2,16,16,8], index: 2, kind: input, shape index: {}, may-alias: {0,1,2}]   ;;  %s4507_s3 = inlined_call_operand.vmem [shape: f32[72,8], index: 3, kind: input, shape index: {}]   ;;  %s4508_s4 = inlined_call_operand.vmem [shape: f32[1,8], index: 4, kind: input, shape index: {}]   ;;  %s4509_s5 = inlined_call_operand.vmem [shape: f32[2,16,16,8], index: 5, kind: output, shape index: {}]  }
   0x1   :  { %s2500_s20 = smov 0  }
   0x2 LB: > { %s27_s1 = sadd.s32 1, %s2451_s19  ;;  %p2299_p0 = scmp.ge.s32.totalorder %s2455_s20, 1  ;;  %s2455_s20 = sphi %s2500_s20, %s15_s20   ;;  %s2451_s19 = sphi %s2498_s19, %s5017_s19   ;;  %s2447_s18 = sphi %s2496_s18, %s5016_s18  }
   0x3   : > { %p29_p1 = scmp.ge.s32.totalorder %s27_s1, 2  ;;  %p273_p2 = scmp.lt.s32.totalorder %s2455_s20, 3 }
   0x5   : > { %s5019_s1 = smov (%p29_p1, %s27_s1), 0  ;;  %p274_p3 = pnand %p2299_p0, %p273_p2 }
   0x7   : > { %277 = sbr.rel (%p274_p3) target bundleno = 936 (0x3a8), region = 40 }
   0xc   : > { %vm477_vm0 = vcmask 1040384   ;;  %p338_p4 = scmp.lt.s32.totalorder %s2447_s18, 1  ;;  %v2457_v0 = vmov 0.0   ;;  %vm652_vm1 = vcmask 1046528   ;;  %s2458_s24 = smov 8   ;;  %vm829_vm2 = vcmask 1045504  }
   0xd   : > { %v2514_v1 = vrot.slane %v2457_v0, 7  ;;  %s2459_s25 = smov 16   ;;  %s2460_s26 = smov 24   ;;  %vm1606_vm3 = vcmask 64512   ;;  %vm1639_vm4 = vcmask 130048   ;;  %vm1672_vm5 = vcmask 195584  }
   0xe   : > { %s5021_s18 = smov (!%p338_p4, %s2447_s18), 1  ;;  %s2461_s27 = smov 32   ;;  %vm1705_vm6 = vcmask 261120   ;;  %vm1738_vm7 = vcmask 326656   ;;  %vm1771_vm8 = vcmask 392192   ;;  %vm1804_vm9 = vcmask 457728  }
   0xf   : > { %4637 = vst [vmem:[#allocation2_spill] sm:$0xff] %v2514_v1  ;;  %v2520_v2 = vsel %vm477_vm0, 0.0, %v2514_v1  ;;  %v2524_v3 = vsel %vm477_vm0, %v2514_v1, 0.0  ;;  %v654_v4 = vrot.slane %v2514_v1, 1  ;;  %s2342_s2 = sshll.u32 %s5021_s18, 8  ;;  %s2462_s28 = smov 40  }
  0x10   : > { %4638 = vst [vmem:[#allocation3_spill] sm:$0xff] %v2520_v2  ;;  %v653_v5 = vrot.slane %v2520_v2, 1  ;;  %v656_v6 = vrot.slane %v2524_v3, 1  ;;  %s2535_s23 = scalar_lea.vmem %s4504_s0, %s2342_s2  ;;  %s2463_s29 = smov 48   ;;  %vm1837_vm10 = vcmask 523264   ;;  %vm1883_vm11 = vcmask 588800  }
  0x11   : > { %v395_v9 = vld [vmem:[%s2535_s23 + $0x10] sm:$0xff]  ;;  %v396_v10 = vld [vmem:[%s2535_s23 + $0x18] sm:$0xff]  ;;  %v393_v11 = vld [vmem:[%s2535_s23] sm:$0xff]  ;;  %s2464_s30 = smov 56   ;;  %s2465_s6 = smov 64  }
  0x12   : > { %v655_v7 = vsel %vm652_vm1, %v653_v5, %v654_v4  ;;  %v657_v8 = vsel %vm652_vm1, %v654_v4, %v656_v6  ;;  %v484_v13 = vrot.slane %v395_v9, 7  ;;  %v485_v14 = vrot.slane %v396_v10, 7  ;;  %v394_v15 = vld [vmem:[%s2535_s23 + $0x8] sm:$0xff]  ;;  %v397_v16 = vld [vmem:[%s2535_s23 + $0x20] sm:$0xff]  ;;  %v399_v29 = vld [vmem:[%s2535_s23 + $0x30] sm:$0xff]  ;;  %s4340_s7 = scalar_lea.vmem %s4509_s5, %s2342_s2 }
  0x13   : > { %v2542_v12 = vpack.i.bf16 %v657_v8, %v655_v7  ;;  %v398_v17 = vld [vmem:[%s2535_s23 + $0x28] sm:$0xff]  ;;  %v481_v18 = vrot.slane %v393_v11, 7  ;;  %v482_v19 = vrot.slane %v394_v15, 7  ;;  %v487_v20 = vrot.slane %v397_v16, 7  ;;  %v400_v37 = vld [vmem:[%s2535_s23 + $0x38] sm:$0xff]  ;;  %v401_v46 = vld [vmem:[%s2535_s23 + $0x40] sm:$0xff] }
  0x14   : > { %v488_v21 = vrot.slane %v398_v17, 7  ;;  %v2550_v22 = vsel %vm477_vm0, %v484_v13, %v485_v14  ;;  %v2553_v23 = vsel %vm477_vm0, %v485_v14, 0.0  ;;  %v2556_v24 = vsel %vm477_vm0, 0.0, %v484_v13  ;;  %v402_v47 = vld [vmem:[%s2535_s23 + $0x48] sm:$0xff]  ;;  %v403_v56 = vld [vmem:[%s2535_s23 + $0x50] sm:$0xff]  ;;  %v404_v57 = vld [vmem:[%s2535_s23 + $0x58] sm:$0xff] }
  0x15   : > { %4639 = vst [vmem:[#allocation4_spill] sm:$0xff] %v2542_v12  ;;  %2408 = vrot.lane.b32.xlu0 %v2542_v12, %s2458_s24  ;;  %v664_v25 = vrot.slane %v2550_v22, 1  ;;  %v666_v26 = vrot.slane %v2553_v23, 1  ;;  %v2561_v27 = vsel %vm477_vm0, %v481_v18, %v482_v19  ;;  %v2564_v28 = vsel %vm477_vm0, %v482_v19, 0.0  ;;  %v405_v13 = vld [vmem:[%s2535_s23 + $0x60] sm:$0xff]  ;;  %v406_v14 = vld [vmem:[%s2535_s23 + $0x68] sm:$0xff] }
  0x16   : > { %4640 = vst [vmem:[#allocation5_spill] sm:$0xff] %v2550_v22  ;;  %v659_v30 = vrot.slane %v2561_v27, 1  ;;  %v661_v31 = vrot.slane %v2564_v28, 1  ;;  %v2570_v32 = vsel %vm477_vm0, 0.0, %v481_v18  ;;  %v2573_v33 = vsel %vm477_vm0, %v487_v20, %v488_v21 }
  0x17   : > { %4641 = vst [vmem:[#allocation6_spill] sm:$0xff] %v2556_v24  ;;  %v2576_v34 = vsel %vm652_vm1, %v664_v25, %v666_v26  ;;  %v658_v35 = vrot.slane %v2570_v32, 1  ;;  %v2580_v36 = vsel %vm477_vm0, 0.0, %v487_v20  ;;  %v490_v39 = vrot.slane %v399_v29, 7  ;;  %v408_v26 = vld [vmem:[%s2535_s23 + $0x78] sm:$0xff] }
  0x18   : > { %4642 = vst [vmem:[#allocation7_spill] sm:$0xff] %v2561_v27  ;;  %743 = vrot.lane.b32.xlu2 %v2576_v34, %s2458_s24  ;;  %v2586_v38 = vsel %vm652_vm1, %v659_v30, %v661_v31  ;;  %v668_v41 = vrot.slane %v2580_v36, 1  ;;  %v669_v42 = vrot.slane %v2573_v33, 1  ;;  %v663_v43 = vrot.slane %v2556_v24, 1 }
  0x19   : > { %4643 = vst [vmem:[#allocation8_spill] sm:$0xff] %v2570_v32  ;;  %739 = vrot.lane.b32.xlu1 %v2586_v38, %s2458_s24  ;;  %v2591_v40 = vsel %vm652_vm1, %v658_v35, %v659_v30  ;;  %v2597_v44 = vsel %vm477_vm0, %v488_v21, 0.0  ;;  %v491_v45 = vrot.slane %v400_v37, 7  ;;  %v2611_v51 = vsel %vm477_vm0, 0.0, %v490_v39 }
  0x1a   : > { %4644 = vst [vmem:[#allocation9_spill] sm:$0xff] %v2573_v33  ;;  %v2604_v48 = vsel %vm652_vm1, %v668_v41, %v669_v42  ;;  %v2607_v49 = vsel %vm652_vm1, %v663_v43, %v664_v25  ;;  %v671_v50 = vrot.slane %v2597_v44, 1  ;;  %v493_v54 = vrot.slane %v401_v46, 7  ;;  %v407_v25 = vld [vmem:[%s2535_s23 + $0x70] sm:$0xff] }
  0x1b   : > { %4645 = vst [vmem:[#allocation10_spill] sm:$0xff] %v2576_v34  ;;  %v2614_v52 = vsel %vm477_vm0, %v490_v39, %v491_v45  ;;  %v2617_v53 = vsel %vm477_vm0, %v491_v45, 0.0  ;;  %v494_v55 = vrot.slane %v402_v47, 7  ;;  %v673_v61 = vrot.slane %v2611_v51, 1  ;;  %v410_v45 = vld [vmem:[%s2535_s23 + $0x88] sm:$0xff] }
  0x1c   : > { %4646 = vst [vmem:[#allocation11_spill] sm:$0xff] %v2604_v48  ;;  %v2626_v58 = vsel %vm652_vm1, %v669_v42, %v671_v50  ;;  %v674_v59 = vrot.slane %v2614_v52, 1  ;;  %v676_v60 = vrot.slane %v2617_v53, 1  ;;  %v2635_v63 = vsel %vm477_vm0, 0.0, %v493_v54  ;;  %v409_v42 = vld [vmem:[%s2535_s23 + $0x80] sm:$0xff] }
  0x1d   : > { %737 = vrot.lane.b32.xlu0 %v2591_v40, %s2458_s24  ;;  %4647 = vst [vmem:[#allocation12_spill] sm:$0xff] %v2611_v51  ;;  %v2632_v62 = vsel %vm477_vm0, %v493_v54, %v494_v55  ;;  %v496_v0 = vrot.slane %v403_v56, 7  ;;  %v497_v4 = vrot.slane %v404_v57, 7  ;;  %v678_v6 = vrot.slane %v2635_v63, 1 }
  0x1e   : > { %4648 = vst [vmem:[#allocation13_spill] sm:$0xff] %v2614_v52  ;;  %v2640_v5 = vsel %vm652_vm1, %v674_v59, %v676_v60  ;;  %v679_v7 = vrot.slane %v2632_v62, 1  ;;  %v2645_v8 = vsel %vm652_vm1, %v673_v61, %v674_v59  ;;  %v2654_v11 = vsel %vm477_vm0, %v494_v55, 0.0 }
  0x1f   : > { %4649 = vst [vmem:[#allocation14_spill] sm:$0xff] %v2626_v58  ;;  %v2648_v9 = vsel %vm477_vm0, %v496_v0, %v497_v4  ;;  %v2651_v10 = vsel %vm477_vm0, 0.0, %v496_v0  ;;  %v681_v18 = vrot.slane %v2654_v11, 1  ;;  %v2669_v19 = vsel %vm477_vm0, %v497_v4, 0.0 }
  0x20   : > { %745 = vrot.lane.b32.xlu2 %v2604_v48, %s2458_s24  ;;  %4650 = vst [vmem:[#allocation15_spill] sm:$0xff] %v2640_v5  ;;  %v2663_v15 = vsel %vm652_vm1, %v678_v6, %v679_v7  ;;  %v683_v16 = vrot.slane %v2651_v10, 1  ;;  %v684_v17 = vrot.slane %v2648_v9, 1  ;;  %v499_v20 = vrot.slane %v405_v13, 7 }
  0x21   : > { %741 = vrot.lane.b32.xlu1 %v2607_v49, %s2458_s24  ;;  %4651 = vst [vmem:[#allocation16_spill] sm:$0xff] %v2645_v8  ;;  %v500_v21 = vrot.slane %v406_v14, 7  ;;  %v2679_v30 = vsel %vm652_vm1, %v679_v7, %v681_v18  ;;  %v686_v31 = vrot.slane %v2669_v19, 1  ;;  %v502_v39 = vrot.slane %v407_v25, 7  ;;  %v411_v14 = vld [vmem:[%s2535_s23 + $0x90] sm:$0xff] }
  0x22   : > { %4652 = vst [vmem:[#allocation17_spill] sm:$0xff] %v2663_v15  ;;  %v2676_v29 = vsel %vm652_vm1, %v683_v16, %v684_v17  ;;  %v503_v41 = vrot.slane %v408_v26, 7  ;;  %v2690_v43 = vsel %vm477_vm0, 0.0, %v499_v20  ;;  %v505_v54 = vrot.slane %v409_v42, 7  ;;  %v412_v16 = vld [vmem:[%s2535_s23 + $0x98] sm:$0xff] }
  0x23   : > { %4653 = vst [vmem:[#allocation18_spill] sm:$0xff] %v2676_v29  ;;  %v2683_v35 = vsel %vm477_vm0, %v499_v20, %v500_v21  ;;  %v2686_v37 = vsel %vm477_vm0, %v500_v21, 0.0  ;;  %v2698_v46 = vsel %vm652_vm1, %v684_v17, %v686_v31  ;;  %v688_v55 = vrot.slane %v2690_v43, 1 }
  0x24   : > { %4654 = vst [vmem:[#allocation19_spill] sm:$0xff] %v2679_v30  ;;  %v689_v47 = vrot.slane %v2683_v35, 1  ;;  %v691_v50 = vrot.slane %v2686_v37, 1  ;;  %v2704_v56 = vsel %vm477_vm0, %v502_v39, %v503_v41  ;;  %v2707_v57 = vsel %vm477_vm0, 0.0, %v502_v39  ;;  %v413_v39 = vld [vmem:[%s2535_s23 + $0xa0] sm:$0xff] }
  0x25   : > { %747 = vrot.lane.b32.xlu0 %v2626_v58, %s2458_s24  ;;  %4655 = vst [vmem:[#allocation20_spill] sm:$0xff] %v2698_v46  ;;  %v506_v59 = vrot.slane %v410_v45, 7  ;;  %v693_v61 = vrot.slane %v2707_v57, 1  ;;  %v694_v0 = vrot.slane %v2704_v56, 1  ;;  %v2723_v7 = vsel %vm477_vm0, 0.0, %v505_v54 }
  0x26   : > { %v2712_v60 = vsel %vm652_vm1, %v689_v47, %v691_v50  ;;  %v2717_v4 = vsel %vm652_vm1, %v688_v55, %v689_v47  ;;  %v2726_v13 = vsel %vm477_vm0, %v503_v41, 0.0  ;;  %v698_v18 = vrot.slane %v2723_v7, 1  ;;  %v414_v41 = vld [vmem:[%s2535_s23 + $0xa8] sm:$0xff] }
  0x27   : > { %4656 = vst [vmem:[#allocation21_spill] sm:$0xff] %v2712_v60  ;;  %v2720_v6 = vsel %vm477_vm0, %v505_v54, %v506_v59  ;;  %v2735_v17 = vsel %vm652_vm1, %v693_v61, %v694_v0  ;;  %v2740_v21 = vsel %vm477_vm0, %v506_v59, 0.0  ;;  %v696_v25 = vrot.slane %v2726_v13, 1 }
  0x28   : > { %751 = vrot.lane.b32.xlu2 %v2640_v5, %s2458_s24  ;;  %4657 = vst [vmem:[#allocation22_spill] sm:$0xff] %v2717_v4  ;;  %v699_v20 = vrot.slane %v2720_v6, 1  ;;  %v508_v26 = vrot.slane %v411_v14, 7  ;;  %v509_v31 = vrot.slane %v412_v16, 7  ;;  %v701_v42 = vrot.slane %v2740_v21, 1  ;;  %v415_v14 = vld [vmem:[%s2535_s23 + $0xb0] sm:$0xff] }
  0x29   : > { %749 = vrot.lane.b32.xlu1 %v2645_v8, %s2458_s24  ;;  %4658 = vst [vmem:[#allocation23_spill] sm:$0xff] %v2735_v17  ;;  %v511_v47 = vrot.slane %v413_v39, 7  ;;  %v512_v50 = vrot.slane %v414_v41, 7  ;;  %v2752_v54 = vsel %vm652_vm1, %v694_v0, %v696_v25  ;;  %v416_v16 = vld [vmem:[%s2535_s23 + $0xb8] sm:$0xff]  ;;  %v514_v41 = vrot.slane %v415_v14, 7 }
  0x2a   : > { %v2749_v45 = vsel %vm652_vm1, %v698_v18, %v699_v20  ;;  %4660 = vst [vmem:[#allocation25_spill] sm:$0xff] %v2752_v54  ;;  %v2755_v55 = vsel %vm477_vm0, %v508_v26, %v509_v31  ;;  %v2758_v59 = vsel %vm477_vm0, %v509_v31, 0.0  ;;  %v2761_v61 = vsel %vm477_vm0, 0.0, %v508_v26 }
  0x2b   : > { %4659 = vst [vmem:[#allocation24_spill] sm:$0xff] %v2749_v45  ;;  %v2768_v18 = vsel %vm652_vm1, %v699_v20, %v701_v42  ;;  %v704_v0 = vrot.slane %v2755_v55, 1  ;;  %v706_v25 = vrot.slane %v2758_v59, 1  ;;  %v2775_v31 = vsel %vm477_vm0, %v511_v47, %v512_v50 }
  0x2c   : > { %4661 = vst [vmem:[#allocation26_spill] sm:$0xff] %v2768_v18  ;;  %v2778_v26 = vsel %vm477_vm0, 0.0, %v511_v47  ;;  %v703_v39 = vrot.slane %v2761_v61, 1  ;;  %v515_v20 = vrot.slane %v416_v16, 7  ;;  %v833_v42 = vrot.slane %v2524_v3, 2 }
  0x2d   : > { %753 = vrot.lane.b32.xlu0 %v2663_v15, %s2458_s24  ;;  %4662 = vst [vmem:[#allocation27_spill] sm:$0xff] %v2775_v31  ;;  %v708_v12 = vrot.slane %v2778_v26, 1  ;;  %v2790_v47 = vsel %vm477_vm0, %v512_v50, 0.0  ;;  %v831_v14 = vrot.slane %v2514_v1, 2 }
  0x2e   : > { %4663 = vst [vmem:[#allocation28_spill] sm:$0xff] %v2778_v26  ;;  %v2795_v3 = vsel %vm652_vm1, %v703_v39, %v704_v0  ;;  %v2798_v16 = vsel %vm477_vm0, %v514_v41, %v515_v20  ;;  %v711_v39 = vrot.slane %v2790_v47, 1 }
  0x2f   : > { %4665 = vst [vmem:[#allocation30_spill] sm:$0xff] %v2795_v3 }
  0x30   : > { %757 = vrot.lane.b32.xlu2 %v2676_v29, %s2458_s24  ;;  %4666 = vst [vmem:[#allocation31_spill] sm:$0xff] %v2798_v16  ;;  %v422_v29 = vld [vmem:[%s2535_s23 + $0xe8] sm:$0xff] }
  0x31   : > { %755 = vrot.lane.b32.xlu1 %v2679_v30, %s2458_s24 }
  0x35   : > { %759 = vrot.lane.b32.xlu0 %v2698_v46, %s2458_s24 }
  0x38   : > { %763 = vrot.lane.b32.xlu2 %v2712_v60, %s2458_s24  ;;  %v834_v60 = vsel %vm829_vm2, %v831_v14, %v833_v42 }
  0x39   : > { %761 = vrot.lane.b32.xlu1 %v2717_v4, %s2458_s24  ;;  %v418_v4 = vld [vmem:[%s2535_s23 + $0xc8] sm:$0xff] }
  0x3d   : > { %765 = vrot.lane.b32.xlu0 %v2735_v17, %s2458_s24  ;;  %v830_v17 = vrot.slane %v2520_v2, 2  ;;  %v2820_v2 = vsel %vm477_vm0, %v515_v20, 0.0 }
  0x3f   : > { %v832_v50 = vsel %vm829_vm2, %v830_v17, %v831_v14  ;;  %v714_v17 = vrot.slane %v2798_v16, 1  ;;  %v518_v14 = vrot.slane %v418_v4, 7 }
  0x40   : > { %769 = vrot.lane.b32.xlu2 %v2749_v45, %s2458_s24  ;;  %v2787_v45 = vsel %vm652_vm1, %v704_v0, %v706_v25  ;;  %v417_v25 = vld [vmem:[%s2535_s23 + $0xc0] sm:$0xff]  ;;  %v2813_v1 = vpack.i.bf16 %v834_v60, %v832_v50 }
  0x41   : > { %767 = vrot.lane.b32.xlu1 %v2752_v54, %s2458_s24  ;;  %v709_v54 = vrot.slane %v2775_v31, 1  ;;  %4664 = vst [vmem:[#allocation29_spill] sm:$0xff] %v2787_v45  ;;  %v517_v42 = vrot.slane %v417_v25, 7  ;;  %v2837_v4 = vsel %vm477_vm0, %v518_v14, 0.0 }
  0x42   : > { %4669 = vst [vmem:[#allocation34_spill] sm:$0xff] %v2813_v1 }
  0x43   : > { %v2810_v0 = vsel %vm652_vm1, %v708_v12, %v709_v54  ;;  %v419_v12 = vld [vmem:[%s2535_s23 + $0xd0] sm:$0xff]  ;;  %v2830_v50 = vsel %vm652_vm1, %v709_v54, %v711_v39  ;;  %v2834_v46 = vsel %vm477_vm0, %v517_v42, %v518_v14  ;;  %v2840_v20 = vsel %vm477_vm0, 0.0, %v517_v42 }
  0x44   : > { %4668 = vst [vmem:[#allocation33_spill] sm:$0xff] %v2810_v0  ;;  %v520_v25 = vrot.slane %v419_v12, 7  ;;  %v719_v39 = vrot.slane %v2834_v46, 1  ;;  %v718_v42 = vrot.slane %v2840_v20, 1 }
  0x45   : > { %771 = vrot.lane.b32.xlu0 %v2768_v18, %s2458_s24  ;;  %v2801_v18 = vsel %vm477_vm0, 0.0, %v514_v41  ;;  %4671 = vst [vmem:[#allocation36_spill] sm:$0xff] %v2830_v50 }
  0x46   : > { %4667 = vst [vmem:[#allocation32_spill] sm:$0xff] %v2801_v18  ;;  %v713_v41 = vrot.slane %v2801_v18, 1  ;;  %v2868_v15 = vsel %vm652_vm1, %v718_v42, %v719_v39 }
  0x47   : > { %4672 = vst [vmem:[#allocation37_spill] sm:$0xff] %v2834_v46 }
  0x48   : > { %775 = vrot.lane.b32.xlu2 %v2787_v45, %s2458_s24  ;;  %v420_v45 = vld [vmem:[%s2535_s23 + $0xd8] sm:$0xff]  ;;  %v2827_v60 = vsel %vm652_vm1, %v713_v41, %v714_v17  ;;  %4673 = vst [vmem:[#allocation38_spill] sm:$0xff] %v2840_v20  ;;  %v721_v41 = vrot.slane %v2837_v4, 1 }
  0x49   : > { %773 = vrot.lane.b32.xlu1 %v2795_v3, %s2458_s24  ;;  %4670 = vst [vmem:[#allocation35_spill] sm:$0xff] %v2827_v60  ;;  %v716_v3 = vrot.slane %v2820_v2, 1  ;;  %v521_v30 = vrot.slane %v420_v45, 7  ;;  %v2858_v45 = vsel %vm477_vm0, 0.0, %v520_v25 }
  0x4a   : > { %4677 = vst [vmem:[#allocation42_spill] sm:$0xff] %v2868_v15 }
  0x4b   : > { %v2849_v54 = vsel %vm652_vm1, %v714_v17, %v716_v3  ;;  %v2855_v14 = vsel %vm477_vm0, %v520_v25, %v521_v30  ;;  %v2863_v3 = vsel %vm652_vm1, %v719_v39, %v721_v41  ;;  %v723_v17 = vrot.slane %v2858_v45, 1 }
  0x4c   : > { %4674 = vst [vmem:[#allocation39_spill] sm:$0xff] %v2849_v54 }
  0x4d   : > { %777 = vrot.lane.b32.xlu0 %v2810_v0, %s2458_s24  ;;  %v421_v0 = vld [vmem:[%s2535_s23 + $0xe0] sm:$0xff]  ;;  %4675 = vst [vmem:[#allocation40_spill] sm:$0xff] %v2855_v14 }
  0x4e   : > { %v523_v12 = vrot.slane %v421_v0, 7  ;;  %4676 = vst [vmem:[#allocation41_spill] sm:$0xff] %v2863_v3 }
  0x50   : > { %781 = vrot.lane.b32.xlu2 %v2827_v60, %s2458_s24  ;;  %v524_v60 = vrot.slane %v422_v29, 7  ;;  %v2874_v25 = vsel %vm477_vm0, 0.0, %v523_v12  ;;  %v2877_v29 = vsel %vm477_vm0, %v521_v30, 0.0 }
  0x51   : > { %779 = vrot.lane.b32.xlu1 %v2830_v50, %s2458_s24  ;;  %v724_v50 = vrot.slane %v2855_v14, 1  ;;  %4679 = vst [vmem:[#allocation44_spill] sm:$0xff] %v2874_v25  ;;  %v728_v39 = vrot.slane %v2874_v25, 1  ;;  %v726_v42 = vrot.slane %v2877_v29, 1 }
  0x52   : > { %v2871_v8 = vsel %vm477_vm0, %v523_v12, %v524_v60  ;;  %v2890_v12 = vsel %vm477_vm0, %v524_v60, 0.0 }
  0x53   : > { %4678 = vst [vmem:[#allocation43_spill] sm:$0xff] %v2871_v8  ;;  %v2884_v0 = vsel %vm652_vm1, %v723_v17, %v724_v50  ;;  %v729_v41 = vrot.slane %v2871_v8, 1  ;;  %v2899_v17 = vsel %vm652_vm1, %v724_v50, %v726_v42  ;;  %v838_v50 = vrot.slane %v2564_v28, 2 }
  0x54   : > { %4680 = vst [vmem:[#allocation45_spill] sm:$0xff] %v2884_v0  ;;  %v843_v42 = vrot.slane %v2553_v23, 2 }
  0x55   : > { %783 = vrot.lane.b32.xlu0 %v2849_v54, %s2458_s24  ;;  %v2895_v30 = vsel %vm652_vm1, %v728_v39, %v729_v41  ;;  %4682 = vst [vmem:[#allocation47_spill] sm:$0xff] %v2899_v17 }
  0x56   : > { %4681 = vst [vmem:[#allocation46_spill] sm:$0xff] %v2895_v30 }
  0x58   : > { %787 = vrot.lane.b32.xlu2 %v2863_v3, %s2458_s24  ;;  %v835_v3 = vrot.slane %v2570_v32, 2 }
  0x59   : > { %785 = vrot.lane.b32.xlu1 %v2868_v15, %s2458_s24  ;;  %v731_v15 = vrot.slane %v2890_v12, 1 }
  0x5b   : > { %v2906_v60 = vsel %vm652_vm1, %v729_v41, %v731_v15  ;;  %v841_v41 = vrot.slane %v2550_v22, 2 }
  0x5c   : > { %4683 = vst [vmem:[#allocation48_spill] sm:$0xff] %v2906_v60 }
  0x5d   : > { %789 = vrot.lane.b32.xlu0 %v2884_v0, %s2458_s24  ;;  %v836_v0 = vrot.slane %v2561_v27, 2  ;;  %v2929_v28 = vsel %vm829_vm2, %v841_v41, %v843_v42 }
  0x5e   : > { %4686 = vst [vmem:[#allocation51_spill] sm:$0xff] %v2929_v28 }
  0x5f   : > { %v2913_v39 = vsel %vm829_vm2, %v835_v3, %v836_v0  ;;  %v2921_v15 = vsel %vm829_vm2, %v836_v0, %v838_v50  ;;  %v845_v3 = vrot.slane %v2580_v36, 2  ;;  %v850_v0 = vrot.slane %v2611_v51, 2 }
  0x60   : > { %793 = vrot.lane.b32.xlu2 %v2895_v30, %s2458_s24  ;;  %4684 = vst [vmem:[#allocation49_spill] sm:$0xff] %v2913_v39  ;;  %v851_v50 = vrot.slane %v2614_v52, 2 }
  0x61   : > { %791 = vrot.lane.b32.xlu1 %v2899_v17, %s2458_s24  ;;  %4685 = vst [vmem:[#allocation50_spill] sm:$0xff] %v2921_v15 }
  0x65   : > { %795 = vrot.lane.b32.xlu0 %v2906_v60, %s2458_s24  ;;  %v840_v60 = vrot.slane %v2556_v24, 2 }
  0x68   : > { %914 = vrot.lane.b32.xlu2 %v2913_v39, %s2459_s25  ;;  %v846_v39 = vrot.slane %v2573_v33, 2 }
  0x69   : > { %2413 = vrot.lane.b32.xlu1 %v2813_v1, %s2459_s25  ;;  %v2934_v1 = vsel %vm829_vm2, %v840_v60, %v841_v41  ;;  %v2951_v60 = vsel %vm829_vm2, %v850_v0, %v851_v50  ;;  %v853_v41 = vrot.slane %v2617_v53, 2  ;;  %v855_v53 = vrot.slane %v2635_v63, 2 }
  0x6a   : > { %v2941_v23 = vsel %vm829_vm2, %v845_v3, %v846_v39  ;;  %4689 = vst [vmem:[#allocation54_spill] sm:$0xff] %v2951_v60 }
  0x6b   : > { %4687 = vst [vmem:[#allocation52_spill] sm:$0xff] %v2941_v23  ;;  %v2962_v3 = vsel %vm829_vm2, %v851_v50, %v853_v41  ;;  %v865_v41 = vrot.slane %v2690_v43, 2 }
  0x6c   : > { %4691 = vst [vmem:[#allocation56_spill] sm:$0xff] %v2962_v3 }
  0x6d   : > { %916 = vrot.lane.b32.xlu0 %v2921_v15, %s2459_s25  ;;  %v848_v15 = vrot.slane %v2597_v44, 2  ;;  %v856_v44 = vrot.slane %v2632_v62, 2 }
  0x6f   : > { %v2977_v50 = vsel %vm829_vm2, %v855_v53, %v856_v44  ;;  %v868_v53 = vrot.slane %v2686_v37, 2  ;;  %v870_v37 = vrot.slane %v2707_v57, 2 }
  0x70   : > { %920 = vrot.lane.b32.xlu2 %v2929_v28, %s2459_s25  ;;  %v2955_v28 = vsel %vm829_vm2, %v846_v39, %v848_v15  ;;  %v860_v15 = vrot.slane %v2651_v10, 2  ;;  %4694 = vst [vmem:[#allocation59_spill] sm:$0xff] %v2977_v50 }
  0x71   : > { %918 = vrot.lane.b32.xlu1 %v2934_v1, %s2459_s25  ;;  %4690 = vst [vmem:[#allocation55_spill] sm:$0xff] %v2955_v28 }
  0x72   : > { %v2945_v42 = vpop.permute.xlu2 %743 }
  0x73   : > { %4688 = vst [vmem:[#allocation53_spill] sm:$0xff] %v2945_v42  ;;  %v858_v42 = vrot.slane %v2654_v11, 2 }
  0x75   : > { %922 = vrot.lane.b32.xlu0 %v2941_v23, %s2459_s25  ;;  %v2972_v39 = vsel %vm829_vm2, %v856_v44, %v858_v42  ;;  %v866_v42 = vrot.slane %v2683_v35, 2 }
  0x76   : > { %4693 = vst [vmem:[#allocation58_spill] sm:$0xff] %v2972_v39 }
  0x77   : > { %v2994_v44 = vsel %vm829_vm2, %v865_v41, %v866_v42  ;;  %v873_v41 = vrot.slane %v2726_v13, 2 }
  0x78   : > { %926 = vrot.lane.b32.xlu2 %v2951_v60, %s2459_s25  ;;  %v861_v60 = vrot.slane %v2648_v9, 2  ;;  %4697 = vst [vmem:[#allocation62_spill] sm:$0xff] %v2994_v44 }
  0x79   : > { %924 = vrot.lane.b32.xlu1 %v2955_v28, %s2459_s25 }
  0x7a   : > { %v2966_v0 = vpop.permute.xlu2 %745  ;;  %v2984_v11 = vsel %vm829_vm2, %v860_v15, %v861_v60 }
  0x7b   : > { %4692 = vst [vmem:[#allocation57_spill] sm:$0xff] %v2966_v0 }
  0x7c   : > { %4695 = vst [vmem:[#allocation60_spill] sm:$0xff] %v2984_v11 }
  0x7d   : > { %928 = vrot.lane.b32.xlu0 %v2962_v3, %s2459_s25  ;;  %v863_v3 = vrot.slane %v2669_v19, 2  ;;  %v3007_v19 = vsel %vm829_vm2, %v866_v42, %v868_v53  ;;  %v876_v42 = vrot.slane %v2720_v6, 2 }
  0x7e   : > { %4700 = vst [vmem:[#allocation65_spill] sm:$0xff] %v3007_v19 }
  0x7f   : > { %v3000_v15 = vsel %vm829_vm2, %v861_v60, %v863_v3  ;;  %v875_v3 = vrot.slane %v2723_v7, 2 }
  0x80   : > { %932 = vrot.lane.b32.xlu2 %v2972_v39, %s2459_s25  ;;  %4699 = vst [vmem:[#allocation64_spill] sm:$0xff] %v3000_v15 }
  0x81   : > { %930 = vrot.lane.b32.xlu1 %v2977_v50, %s2459_s25 }
  0x82   : > { %v2988_v0 = vpop.permute.xlu2 %751 }
  0x83   : > { %4696 = vst [vmem:[#allocation61_spill] sm:$0xff] %v2988_v0  ;;  %v871_v0 = vrot.slane %v2704_v56, 2 }
  0x85   : > { %934 = vrot.lane.b32.xlu0 %v2984_v11, %s2459_s25  ;;  %v3019_v60 = vsel %vm829_vm2, %v871_v0, %v873_v41  ;;  %v3026_v13 = vsel %vm829_vm2, %v870_v37, %v871_v0  ;;  %v880_v41 = vrot.slane %v2761_v61, 2  ;;  %v883_v37 = vrot.slane %v2758_v59, 2 }
  0x86   : > { %4703 = vst [vmem:[#allocation68_spill] sm:$0xff] %v3019_v60  ;;  %v885_v59 = vrot.slane %v2778_v26, 2 }
  0x87   : > { %v2997_v39 = vpop.permute.xlu0 %2408  ;;  %4705 = vst [vmem:[#allocation70_spill] sm:$0xff] %v3026_v13 }
  0x88   : > { %4698 = vst [vmem:[#allocation63_spill] sm:$0xff] %v2997_v39  ;;  %938 = vrot.lane.b32.xlu2 %v2994_v44, %s2459_s25 }
  0x89   : > { %936 = vrot.lane.b32.xlu1 %v3000_v15, %s2459_s25 }
  0x8a   : > { %v3011_v11 = vpop.permute.xlu2 %757 }
  0x8b   : > { %4701 = vst [vmem:[#allocation66_spill] sm:$0xff] %v3011_v11  ;;  %v3014_v39 = vpop.permute.xlu1 %739  ;;  %v881_v11 = vrot.slane %v2755_v55, 2 }
  0x8c   : > { %4702 = vst [vmem:[#allocation67_spill] sm:$0xff] %v3014_v39  ;;  %v3033_v39 = vsel %vm829_vm2, %v875_v3, %v876_v42 }
  0x8d   : > { %940 = vrot.lane.b32.xlu0 %v3007_v19, %s2459_s25  ;;  %4706 = vst [vmem:[#allocation71_spill] sm:$0xff] %v3033_v39  ;;  %v3045_v0 = vsel %vm829_vm2, %v880_v41, %v881_v11  ;;  %v888_v41 = vrot.slane %v2790_v47, 2 }
  0x8e   : > { %4709 = vst [vmem:[#allocation74_spill] sm:$0xff] %v3045_v0 }
  0x8f   : > { %v3023_v53 = vpop.permute.xlu0 %737 }
  0x90   : > { %4704 = vst [vmem:[#allocation69_spill] sm:$0xff] %v3023_v53  ;;  %944 = vrot.lane.b32.xlu2 %v3019_v60, %s2459_s25  ;;  %v878_v53 = vrot.slane %v2740_v21, 2  ;;  %v3058_v21 = vsel %vm829_vm2, %v881_v11, %v883_v37  ;;  %v891_v11 = vrot.slane %v2798_v16, 2 }
  0x91   : > { %942 = vrot.lane.b32.xlu1 %v3026_v13, %s2459_s25  ;;  %4712 = vst [vmem:[#allocation77_spill] sm:$0xff] %v3058_v21 }
  0x92   : > { %v3037_v19 = vpop.permute.xlu2 %763  ;;  %v3051_v60 = vsel %vm829_vm2, %v876_v42, %v878_v53  ;;  %v890_v53 = vrot.slane %v2801_v18, 2 }
  0x93   : > { %4707 = vst [vmem:[#allocation72_spill] sm:$0xff] %v3037_v19  ;;  %v3040_v44 = vpop.permute.xlu1 %741 }
  0x94   : > { %4708 = vst [vmem:[#allocation73_spill] sm:$0xff] %v3040_v44  ;;  %v886_v44 = vrot.slane %v2775_v31, 2 }
  0x95   : > { %946 = vrot.lane.b32.xlu0 %v3033_v39, %s2459_s25  ;;  %4711 = vst [vmem:[#allocation76_spill] sm:$0xff] %v3051_v60 }
  0x96   : > { %v3070_v42 = vsel %vm829_vm2, %v886_v44, %v888_v41  ;;  %v3077_v47 = vsel %vm829_vm2, %v885_v59, %v886_v44  ;;  %v895_v41 = vrot.slane %v2840_v20, 2  ;;  %v898_v59 = vrot.slane %v2837_v4, 2 }
  0x97   : > { %v3048_v3 = vpop.permute.xlu0 %747  ;;  %4715 = vst [vmem:[#allocation80_spill] sm:$0xff] %v3070_v42  ;;  %v900_v4 = vrot.slane %v2858_v45, 2 }
  0x98   : > { %4710 = vst [vmem:[#allocation75_spill] sm:$0xff] %v3048_v3  ;;  %950 = vrot.lane.b32.xlu2 %v3045_v0, %s2459_s25 }
  0x99   : > { %948 = vrot.lane.b32.xlu1 %v3051_v60, %s2459_s25  ;;  %4717 = vst [vmem:[#allocation82_spill] sm:$0xff] %v3077_v47 }
  0x9a   : > { %v3062_v19 = vpop.permute.xlu2 %769 }
  0x9b   : > { %4713 = vst [vmem:[#allocation78_spill] sm:$0xff] %v3062_v19  ;;  %v3065_v3 = vpop.permute.xlu1 %749  ;;  %v896_v19 = vrot.slane %v2834_v46, 2 }
  0x9c   : > { %4714 = vst [vmem:[#allocation79_spill] sm:$0xff] %v3065_v3  ;;  %v3084_v3 = vsel %vm829_vm2, %v890_v53, %v891_v11 }
  0x9d   : > { %952 = vrot.lane.b32.xlu0 %v3058_v21, %s2459_s25  ;;  %4718 = vst [vmem:[#allocation83_spill] sm:$0xff] %v3084_v3  ;;  %v3096_v44 = vsel %vm829_vm2, %v895_v41, %v896_v19  ;;  %v903_v41 = vrot.slane %v2877_v29, 2 }
  0x9e   : > { %4721 = vst [vmem:[#allocation86_spill] sm:$0xff] %v3096_v44 }
  0x9f   : > { %v3074_v37 = vpop.permute.xlu0 %753 }
  0xa0   : > { %4716 = vst [vmem:[#allocation81_spill] sm:$0xff] %v3074_v37  ;;  %956 = vrot.lane.b32.xlu2 %v3070_v42, %s2459_s25  ;;  %v893_v37 = vrot.slane %v2820_v2, 2  ;;  %v3109_v2 = vsel %vm829_vm2, %v896_v19, %v898_v59  ;;  %v906_v19 = vrot.slane %v2871_v8, 2 }
  0xa1   : > { %954 = vrot.lane.b32.xlu1 %v3077_v47, %s2459_s25  ;;  %4724 = vst [vmem:[#allocation89_spill] sm:$0xff] %v3109_v2 }
  0xa2   : > { %v3088_v21 = vpop.permute.xlu2 %775  ;;  %v3102_v42 = vsel %vm829_vm2, %v891_v11, %v893_v37  ;;  %v905_v37 = vrot.slane %v2874_v25, 2 }
  0xa3   : > { %4719 = vst [vmem:[#allocation84_spill] sm:$0xff] %v3088_v21  ;;  %v3091_v0 = vpop.permute.xlu1 %755  ;;  %v901_v21 = vrot.slane %v2855_v14, 2 }
  0xa4   : > { %4720 = vst [vmem:[#allocation85_spill] sm:$0xff] %v3091_v0 }
  0xa5   : > { %958 = vrot.lane.b32.xlu0 %v3084_v3, %s2459_s25  ;;  %4723 = vst [vmem:[#allocation88_spill] sm:$0xff] %v3102_v42  ;;  %v3121_v11 = vsel %vm829_vm2, %v901_v21, %v903_v41  ;;  %v3128_v29 = vsel %vm829_vm2, %v900_v4, %v901_v21 }
  0xa6   : > { %4727 = vst [vmem:[#allocation92_spill] sm:$0xff] %v3121_v11 }
  0xa7   : > { %v3099_v53 = vpop.permute.xlu0 %759 }
  0xa8   : > { %4722 = vst [vmem:[#allocation87_spill] sm:$0xff] %v3099_v53  ;;  %962 = vrot.lane.b32.xlu2 %v3096_v44, %s2459_s25 }
  0xa9   : > { %960 = vrot.lane.b32.xlu1 %v3102_v42, %s2459_s25 }
  0xaa   : > { %v3113_v0 = vpop.permute.xlu2 %781 }
  0xab   : > { %4725 = vst [vmem:[#allocation90_spill] sm:$0xff] %v3113_v0  ;;  %v3116_v53 = vpop.permute.xlu1 %761  ;;  %v3135_v0 = vsel %vm829_vm2, %v905_v37, %v906_v19 }
  0xac   : > { %4726 = vst [vmem:[#allocation91_spill] sm:$0xff] %v3116_v53  ;;  %v908_v53 = vrot.slane %v2890_v12, 2 }
  0xad   : > { %964 = vrot.lane.b32.xlu0 %v3109_v2, %s2459_s25  ;;  %4729 = vst [vmem:[#allocation94_spill] sm:$0xff] %v3135_v0 }
  0xae   : > { %v3147_v4 = vsel %vm829_vm2, %v906_v19, %v908_v53 }
  0xaf   : > { %v3125_v59 = vpop.permute.xlu0 %765  ;;  %4732 = vst [vmem:[#allocation97_spill] sm:$0xff] %v3147_v4 }
  0xb0   : > { %4728 = vst [vmem:[#allocation93_spill] sm:$0xff] %v3125_v59  ;;  %968 = vrot.lane.b32.xlu2 %v3121_v11, %s2459_s25 }
  0xb1   : > { %966 = vrot.lane.b32.xlu1 %v3128_v29, %s2459_s25 }
  0xb2   : > { %v3137_v41 = vpop.permute.xlu2 %787 }
  0xb3   : > { %4730 = vst [vmem:[#allocation95_spill] sm:$0xff] %v3137_v41  ;;  %v3140_v2 = vpop.permute.xlu1 %767 }
  0xb5   : > { %970 = vrot.lane.b32.xlu0 %v3135_v0, %s2459_s25 }
  0xb7   : > { %v3144_v21 = vpop.permute.xlu0 %771 }
  0xb8   : > { %4731 = vst [vmem:[#allocation96_spill] sm:$0xff] %v3144_v21  ;;  %1007 = vrot.lane.b32.xlu2 %v2570_v32, %s2460_s26 }
  0xb9   : > { %972 = vrot.lane.b32.xlu1 %v3147_v4, %s2459_s25 }
  0xba   : > { %v3153_v37 = vpop.permute.xlu2 %793 }
  0xbb   : > { %4733 = vst [vmem:[#allocation98_spill] sm:$0xff] %v3153_v37  ;;  %v3155_v12 = vpop.permute.xlu1 %773 }
  0xbd   : > { %1009 = vrot.lane.b32.xlu0 %v2561_v27, %s2460_s26 }
  0xbf   : > { %v3159_v41 = vpop.permute.xlu0 %777 }
  0xc0   : > { %4734 = vst [vmem:[#allocation99_spill] sm:$0xff] %v3159_v41  ;;  %1013 = vrot.lane.b32.xlu2 %v2550_v22, %s2460_s26 }
  0xc1   : > { %1011 = vrot.lane.b32.xlu1 %v2556_v24, %s2460_s26 }
  0xc2   : > { %v3165_v53 = vpop.permute.xlu2 %914 }
  0xc3   : > { %4735 = vst [vmem:[#allocation100_spill] sm:$0xff] %v3165_v53  ;;  %v3167_v19 = vpop.permute.xlu1 %779 }
  0xc4   : > { %4736 = vst [vmem:[#allocation101_spill] sm:$0xff] %v3167_v19  ;;  %v423_v19 = vld [vmem:[%s2535_s23 + $0xf0] sm:$0xff] }
  0xc5   : > { %1015 = vrot.lane.b32.xlu0 %v2580_v36, %s2460_s26 }
  0xc7   : > { %v3171_v32 = vpop.permute.xlu0 %783 }
  0xc8   : > { %4737 = vst [vmem:[#allocation102_spill] sm:$0xff] %v3171_v32  ;;  %1019 = vrot.lane.b32.xlu2 %v2611_v51, %s2460_s26 }
  0xc9   : > { %1017 = vrot.lane.b32.xlu1 %v2573_v33, %s2460_s26 }
  0xca   : > { %v3177_v37 = vpop.permute.xlu2 %920 }
  0xcb   : > { %4738 = vst [vmem:[#allocation103_spill] sm:$0xff] %v3177_v37  ;;  %v3179_v27 = vpop.permute.xlu1 %785 }
  0xcc   : > { %4739 = vst [vmem:[#allocation104_spill] sm:$0xff] %v3179_v27 }
  0xcd   : > { %1021 = vrot.lane.b32.xlu0 %v2614_v52, %s2460_s26 }
  0xcf   : > { %v3183_v53 = vpop.permute.xlu0 %789 }
  0xd0   : > { %4740 = vst [vmem:[#allocation105_spill] sm:$0xff] %v3183_v53  ;;  %1025 = vrot.lane.b32.xlu2 %v2632_v62, %s2460_s26 }
  0xd1   : > { %1023 = vrot.lane.b32.xlu1 %v2635_v63, %s2460_s26 }
  0xd2   : > { %v3189_v32 = vpop.permute.xlu2 %926 }
  0xd3   : > { %4741 = vst [vmem:[#allocation106_spill] sm:$0xff] %v3189_v32  ;;  %v3191_v41 = vpop.permute.xlu1 %791 }
  0xd4   : > { %4742 = vst [vmem:[#allocation107_spill] sm:$0xff] %v3191_v41 }
  0xd5   : > { %1027 = vrot.lane.b32.xlu0 %v2651_v10, %s2460_s26 }
  0xd7   : > { %v3195_v37 = vpop.permute.xlu0 %795 }
  0xd8   : > { %4743 = vst [vmem:[#allocation108_spill] sm:$0xff] %v3195_v37  ;;  %1031 = vrot.lane.b32.xlu2 %v2690_v43, %s2460_s26 }
  0xd9   : > { %1029 = vrot.lane.b32.xlu1 %v2648_v9, %s2460_s26 }
  0xda   : > { %v3201_v53 = vpop.permute.xlu2 %932 }
  0xdb   : > { %v3203_v21 = vpop.permute.xlu1 %2413 }
  0xdc   : > { %4744 = vst [vmem:[#allocation109_spill] sm:$0xff] %v3203_v21 }
  0xdd   : > { %1033 = vrot.lane.b32.xlu0 %v2683_v35, %s2460_s26 }
  0xdf   : > { %v3207_v32 = vpop.permute.xlu0 %916 }
  0xe0   : > { %4745 = vst [vmem:[#allocation110_spill] sm:$0xff] %v3207_v32  ;;  %1037 = vrot.lane.b32.xlu2 %v2704_v56, %s2460_s26 }
  0xe1   : > { %1035 = vrot.lane.b32.xlu1 %v2707_v57, %s2460_s26 }
  0xe2   : > { %v3213_v37 = vpop.permute.xlu2 %938 }
  0xe3   : > { %v3215_v41 = vpop.permute.xlu1 %918 }
  0xe4   : > { %4746 = vst [vmem:[#allocation111_spill] sm:$0xff] %v3215_v41 }
  0xe5   : > { %1039 = vrot.lane.b32.xlu0 %v2723_v7, %s2460_s26 }
  0xe7   : > { %v3219_v59 = vpop.permute.xlu0 %922 }
  0xe8   : > { %4747 = vst [vmem:[#allocation112_spill] sm:$0xff] %v3219_v59  ;;  %1043 = vrot.lane.b32.xlu2 %v2761_v61, %s2460_s26 }
  0xe9   : > { %1041 = vrot.lane.b32.xlu1 %v2720_v6, %s2460_s26 }
  0xea   : > { %v3225_v32 = vpop.permute.xlu2 %944 }
  0xeb   : > { %v3227_v21 = vpop.permute.xlu1 %924 }
  0xec   : > { %4748 = vst [vmem:[#allocation113_spill] sm:$0xff] %v3227_v21 }
  0xed   : > { %1045 = vrot.lane.b32.xlu0 %v2755_v55, %s2460_s26 }
  0xef   : > { %v3231_v41 = vpop.permute.xlu0 %928 }
  0xf0   : > { %4749 = vst [vmem:[#allocation114_spill] sm:$0xff] %v3231_v41  ;;  %1049 = vrot.lane.b32.xlu2 %v2775_v31, %s2460_s26 }
  0xf1   : > { %1047 = vrot.lane.b32.xlu1 %v2778_v26, %s2460_s26 }
  0xf2   : > { %v3237_v59 = vpop.permute.xlu2 %950 }
  0xf3   : > { %v3239_v27 = vpop.permute.xlu1 %930 }
  0xf5   : > { %1051 = vrot.lane.b32.xlu0 %v2801_v18, %s2460_s26  ;;  %v526_v18 = vrot.slane %v423_v19, 7 }
  0xf7   : > { %v3243_v21 = vpop.permute.xlu0 %934 }
  0xf8   : > { %1055 = vrot.lane.b32.xlu2 %v2840_v20, %s2460_s26 }
  0xf9   : > { %1053 = vrot.lane.b32.xlu1 %v2798_v16, %s2460_s26  ;;  %v3265_v16 = vld [vmem:[%s2535_s23 + $0xf8] sm:$0xff] }
  0xfa   : > { %v3249_v41 = vpop.permute.xlu2 %956 }
  0xfb   : > { %4750 = vst [vmem:[#allocation115_spill] sm:$0xff] %v3249_v41  ;;  %v3251_v31 = vpop.permute.xlu1 %936 }
  0xfc   : > { %4751 = vst [vmem:[#allocation116_spill] sm:$0xff] %v3251_v31 }
  0xfd   : > { %1057 = vrot.lane.b32.xlu0 %v2834_v46, %s2460_s26  ;;  %v3272_v46 = vsel %vm477_vm0, 0.0, %v526_v18 }
  0xfe   : > { %4755 = vst [vmem:[#allocation120_spill] sm:$0xff] %v3272_v46 }
  0xff   : > { %v3255_v26 = vpop.permute.xlu0 %940 }
 0x100   : > { %4752 = vst [vmem:[#allocation117_spill] sm:$0xff] %v3255_v26  ;;  %1061 = vrot.lane.b32.xlu2 %v2855_v14, %s2460_s26  ;;  %v4602_v26 = vrot.slane %v3265_v16, 7  ;;  %v1104_v14 = vrot.slane %v3272_v46, 1 }
 0x101   : > { %1059 = vrot.lane.b32.xlu1 %v2858_v45, %s2460_s26 }
 0x102   : > { %v3262_v20 = vpop.permute.xlu2 %962  ;;  %v3284_v19 = vsel %vm477_vm0, %v526_v18, %v4602_v26 }
 0x103   : > { %4753 = vst [vmem:[#allocation118_spill] sm:$0xff] %v3262_v20  ;;  %v3267_v41 = vpop.permute.xlu1 %942 }
 0x104   : > { %4754 = vst [vmem:[#allocation119_spill] sm:$0xff] %v3267_v41 }
 0x105   : > { %1063 = vrot.lane.b32.xlu0 %v2874_v25, %s2460_s26  ;;  %4757 = vst [vmem:[#allocation122_spill] sm:$0xff] %v3284_v19 }
 0x107   : > { %v3275_v31 = vpop.permute.xlu0 %946 }
 0x108   : > { %4756 = vst [vmem:[#allocation121_spill] sm:$0xff] %v3275_v31  ;;  %1067 = vrot.lane.b32.xlu2 %v3272_v46, %s2460_s26 }
 0x109   : > { %1065 = vrot.lane.b32.xlu1 %v2871_v8, %s2460_s26 }
 0x10a   : > { %v3286_v41 = vpop.permute.xlu2 %968 }
 0x10b   : > { %4758 = vst [vmem:[#allocation123_spill] sm:$0xff] %v3286_v41  ;;  %v3288_v25 = vpop.permute.xlu1 %948 }
 0x10c   : > { %4759 = vst [vmem:[#allocation124_spill] sm:$0xff] %v3288_v25 }
 0x10d   : > { %1069 = vrot.lane.b32.xlu0 %v3284_v19, %s2460_s26 }
 0x10f   : > { %v3292_v20 = vpop.permute.xlu0 %952 }
 0x110   : > { %4760 = vst [vmem:[#allocation125_spill] sm:$0xff] %v3292_v20  ;;  %1111 = vrot.lane.b32.xlu2 %v2586_v38, %s2461_s27 }
 0x111   : > { %1109 = vrot.lane.b32.xlu1 %v2591_v40, %s2461_s27 }
 0x112   : > { %v3298_v8 = vpop.permute.xlu2 %1007 }
 0x113   : > { %4761 = vst [vmem:[#allocation126_spill] sm:$0xff] %v3298_v8  ;;  %v3300_v18 = vpop.permute.xlu1 %954 }
 0x114   : > { %4762 = vst [vmem:[#allocation127_spill] sm:$0xff] %v3300_v18 }
 0x115   : > { %1113 = vrot.lane.b32.xlu0 %v2607_v49, %s2461_s27 }
 0x117   : > { %v3304_v26 = vpop.permute.xlu0 %958 }
 0x118   : > { %4763 = vst [vmem:[#allocation128_spill] sm:$0xff] %v3304_v26  ;;  %1117 = vrot.lane.b32.xlu2 %v2604_v48, %s2461_s27  ;;  %v4767_v26 = vld [vmem:[#allocation16_spill] sm:$0xff] }
 0x119   : > { %1115 = vrot.lane.b32.xlu1 %v2576_v34, %s2461_s27  ;;  %v4770_v34 = vld [vmem:[#allocation17_spill] sm:$0xff] }
 0x11a   : > { %v3310_v20 = vpop.permute.xlu2 %1013 }
 0x11b   : > { %4764 = vst [vmem:[#allocation129_spill] sm:$0xff] %v3310_v20  ;;  %v3312_v38 = vpop.permute.xlu1 %960 }
 0x11c   : > { %4765 = vst [vmem:[#allocation130_spill] sm:$0xff] %v3312_v38  ;;  %v4772_v38 = vld [vmem:[#allocation18_spill] sm:$0xff] }
 0x11d   : > { %1119 = vrot.lane.b32.xlu0 %v2626_v58, %s2461_s27  ;;  %v4773_v58 = vld [vmem:[#allocation19_spill] sm:$0xff] }
 0x11f   : > { %v3316_v40 = vpop.permute.xlu0 %964 }
 0x120   : > { %4766 = vst [vmem:[#allocation131_spill] sm:$0xff] %v3316_v40  ;;  %1123 = vrot.lane.b32.xlu2 %v2640_v5, %s2461_s27 }
 0x121   : > { %1121 = vrot.lane.b32.xlu1 %v4767_v26, %s2461_s27  ;;  %v4776_v26 = vld [vmem:[#allocation20_spill] sm:$0xff] }
 0x122   : > { %v3322_v18 = vpop.permute.xlu2 %1019 }
 0x123   : > { %4768 = vst [vmem:[#allocation132_spill] sm:$0xff] %v3322_v18  ;;  %v3324_v48 = vpop.permute.xlu1 %966 }
 0x124   : > { %4769 = vst [vmem:[#allocation133_spill] sm:$0xff] %v3324_v48  ;;  %v4778_v48 = vld [vmem:[#allocation21_spill] sm:$0xff] }
 0x125   : > { %1125 = vrot.lane.b32.xlu0 %v4770_v34, %s2461_s27  ;;  %v4779_v34 = vld [vmem:[#allocation22_spill] sm:$0xff] }
 0x127   : > { %v3328_v20 = vpop.permute.xlu0 %970 }
 0x128   : > { %4771 = vst [vmem:[#allocation134_spill] sm:$0xff] %v3328_v20  ;;  %1129 = vrot.lane.b32.xlu2 %v4772_v38, %s2461_s27 }
 0x129   : > { %1127 = vrot.lane.b32.xlu1 %v4773_v58, %s2461_s27  ;;  %v4781_v58 = vld [vmem:[#allocation23_spill] sm:$0xff] }
 0x12a   : > { %v3334_v40 = vpop.permute.xlu2 %1025 }
 0x12b   : > { %4774 = vst [vmem:[#allocation18_spill] sm:$0xff] %v3334_v40  ;;  %v3336_v5 = vpop.permute.xlu1 %972 }
 0x12c   : > { %4775 = vst [vmem:[#allocation135_spill] sm:$0xff] %v3336_v5  ;;  %v4783_v5 = vld [vmem:[#allocation24_spill] sm:$0xff] }
 0x12d   : > { %1131 = vrot.lane.b32.xlu0 %v4776_v26, %s2461_s27 }
 0x12f   : > { %v3340_v18 = vpop.permute.xlu0 %1009 }
 0x130   : > { %4777 = vst [vmem:[#allocation136_spill] sm:$0xff] %v3340_v18  ;;  %1135 = vrot.lane.b32.xlu2 %v4778_v48, %s2461_s27  ;;  %v4784_v18 = vld [vmem:[#allocation25_spill] sm:$0xff] }
 0x131   : > { %1133 = vrot.lane.b32.xlu1 %v4779_v34, %s2461_s27  ;;  %v4787_v34 = vld [vmem:[#allocation26_spill] sm:$0xff] }
 0x132   : > { %v3346_v20 = vpop.permute.xlu2 %1031 }
 0x133   : > { %v3348_v8 = vpop.permute.xlu1 %1011 }
 0x134   : > { %4780 = vst [vmem:[#allocation137_spill] sm:$0xff] %v3348_v8  ;;  %v4789_v8 = vld [vmem:[#allocation29_spill] sm:$0xff] }
 0x135   : > { %1137 = vrot.lane.b32.xlu0 %v4781_v58, %s2461_s27  ;;  %v4790_v58 = vld [vmem:[#allocation30_spill] sm:$0xff] }
 0x137   : > { %v3352_v40 = vpop.permute.xlu0 %1015 }
 0x138   : > { %4782 = vst [vmem:[#allocation138_spill] sm:$0xff] %v3352_v40  ;;  %1141 = vrot.lane.b32.xlu2 %v4783_v5, %s2461_s27 }
 0x139   : > { %1139 = vrot.lane.b32.xlu1 %v4784_v18, %s2461_s27  ;;  %v4793_v18 = vld [vmem:[#allocation33_spill] sm:$0xff] }
 0x13a   : > { %v3358_v26 = vpop.permute.xlu2 %1037 }
 0x13b   : > { %4785 = vst [vmem:[#allocation139_spill] sm:$0xff] %v3358_v26  ;;  %v3360_v48 = vpop.permute.xlu1 %1017  ;;  %v4803_v26 = vrot.slane %v3265_v16, 7  ;;  %v4805_v16 = vld [vmem:[#allocation48_spill] sm:$0xff] }
 0x13c   : > { %4786 = vst [vmem:[#allocation140_spill] sm:$0xff] %v3360_v48  ;;  %v4794_v48 = vld [vmem:[#allocation35_spill] sm:$0xff] }
 0x13d   : > { %1143 = vrot.lane.b32.xlu0 %v4787_v34, %s2461_s27  ;;  %v4795_v34 = vld [vmem:[#allocation36_spill] sm:$0xff] }
 0x13f   : > { %v3364_v25 = vpop.permute.xlu0 %1021 }
 0x140   : > { %4788 = vst [vmem:[#allocation141_spill] sm:$0xff] %v3364_v25  ;;  %1147 = vrot.lane.b32.xlu2 %v4789_v8, %s2461_s27 }
 0x141   : > { %1145 = vrot.lane.b32.xlu1 %v4790_v58, %s2461_s27 }
 0x142   : > { %v3370_v40 = vpop.permute.xlu2 %1043 }
 0x143   : > { %4791 = vst [vmem:[#allocation30_spill] sm:$0xff] %v3370_v40  ;;  %v3372_v5 = vpop.permute.xlu1 %1023 }
 0x144   : > { %4792 = vst [vmem:[#allocation142_spill] sm:$0xff] %v3372_v5  ;;  %v4798_v5 = vld [vmem:[#allocation41_spill] sm:$0xff] }
 0x145   : > { %1149 = vrot.lane.b32.xlu0 %v4793_v18, %s2461_s27  ;;  %v4799_v18 = vld [vmem:[#allocation42_spill] sm:$0xff] }
 0x147   : > { %v3376_v41 = vpop.permute.xlu0 %1027 }
 0x148   : > { %1153 = vrot.lane.b32.xlu2 %v4794_v48, %s2461_s27 }
 0x149   : > { %1151 = vrot.lane.b32.xlu1 %v4795_v34, %s2461_s27  ;;  %v4801_v34 = vld [vmem:[#allocation45_spill] sm:$0xff] }
 0x14a   : > { %v3382_v25 = vpop.permute.xlu2 %1049 }
 0x14b   : > { %4796 = vst [vmem:[#allocation143_spill] sm:$0xff] %v3382_v25  ;;  %v3384_v8 = vpop.permute.xlu1 %1029 }
 0x14d   : > { %1155 = vrot.lane.b32.xlu0 %v2849_v54, %s2461_s27  ;;  %v3405_v54 = vsel %vm477_vm0, %v4803_v26, 0.0 }
 0x14f   : > { %v3388_v40 = vpop.permute.xlu0 %1033 }
 0x150   : > { %4797 = vst [vmem:[#allocation144_spill] sm:$0xff] %v3388_v40  ;;  %1159 = vrot.lane.b32.xlu2 %v4798_v5, %s2461_s27  ;;  %v1105_v5 = vrot.slane %v3284_v19, 1 }
 0x151   : > { %1157 = vrot.lane.b32.xlu1 %v4799_v18, %s2461_s27  ;;  %v1107_v18 = vrot.slane %v3405_v54, 1 }
 0x152   : > { %v3394_v31 = vpop.permute.xlu2 %1055 }
 0x153   : > { %4800 = vst [vmem:[#allocation145_spill] sm:$0xff] %v3394_v31  ;;  %v3396_v48 = vpop.permute.xlu1 %1035  ;;  %v3421_v26 = vsel %vm652_vm1, %v1105_v5, %v1107_v18 }
 0x154   : > { %4806 = vst [vmem:[#allocation147_spill] sm:$0xff] %v3421_v26 }
 0x155   : > { %1161 = vrot.lane.b32.xlu0 %v4801_v34, %s2461_s27 }
 0x157   : > { %v3400_v25 = vpop.permute.xlu0 %1039 }
 0x158   : > { %4802 = vst [vmem:[#allocation45_spill] sm:$0xff] %v3400_v25  ;;  %1165 = vrot.lane.b32.xlu2 %v2895_v30, %s2461_s27 }
 0x159   : > { %1163 = vrot.lane.b32.xlu1 %v2899_v17, %s2461_s27  ;;  %v3426_v17 = vsel %vm652_vm1, %v1104_v14, %v1105_v5  ;;  %v4812_v5 = vld [vmem:[#allocation50_spill] sm:$0xff] }
 0x15a   : > { %v3413_v31 = vpop.permute.xlu2 %1061  ;;  %4808 = vst [vmem:[#allocation149_spill] sm:$0xff] %v3426_v17 }
 0x15b   : > { %4804 = vst [vmem:[#allocation146_spill] sm:$0xff] %v3413_v31  ;;  %v3416_v25 = vpop.permute.xlu1 %1041 }
 0x15d   : > { %1167 = vrot.lane.b32.xlu0 %v4805_v16, %s2461_s27  ;;  %v4810_v16 = vld [vmem:[#allocation49_spill] sm:$0xff] }
 0x15f   : > { %v3423_v30 = vpop.permute.xlu0 %1045 }
 0x160   : > { %4807 = vst [vmem:[#allocation148_spill] sm:$0xff] %v3423_v30  ;;  %1171 = vrot.lane.b32.xlu2 %v3421_v26, %s2461_s27  ;;  %v4830_v30 = vld [vmem:[#allocation68_spill] sm:$0xff] }
 0x161   : > { %1169 = vrot.lane.b32.xlu1 %v3426_v17, %s2461_s27  ;;  %v4814_v17 = vld [vmem:[#allocation51_spill] sm:$0xff] }
 0x162   : > { %v3432_v31 = vpop.permute.xlu2 %1067 }
 0x163   : > { %4809 = vst [vmem:[#allocation150_spill] sm:$0xff] %v3432_v31  ;;  %v3434_v40 = vpop.permute.xlu1 %1047 }
 0x165   : > { %1210 = vrot.lane.b32.xlu0 %v4810_v16, %s2462_s28 }
 0x167   : > { %v3438_v18 = vpop.permute.xlu0 %1051 }
 0x168   : > { %4811 = vst [vmem:[#allocation49_spill] sm:$0xff] %v3438_v18  ;;  %1214 = vrot.lane.b32.xlu2 %v2934_v1, %s2462_s28 }
 0x169   : > { %1212 = vrot.lane.b32.xlu1 %v4812_v5, %s2462_s28  ;;  %v4817_v5 = vld [vmem:[#allocation54_spill] sm:$0xff] }
 0x16a   : > { %v3444_v14 = vpop.permute.xlu2 %1111 }
 0x16b   : > { %4813 = vst [vmem:[#allocation50_spill] sm:$0xff] %v3444_v14  ;;  %v3446_v26 = vpop.permute.xlu1 %1053 }
 0x16d   : > { %1216 = vrot.lane.b32.xlu0 %v4814_v17, %s2462_s28 }
 0x16f   : > { %v3450_v31 = vpop.permute.xlu0 %1057 }
 0x170   : > { %4815 = vst [vmem:[#allocation151_spill] sm:$0xff] %v3450_v31  ;;  %1220 = vrot.lane.b32.xlu2 %v2955_v28, %s2462_s28  ;;  %v4819_v31 = vld [vmem:[#allocation56_spill] sm:$0xff] }
 0x171   : > { %1218 = vrot.lane.b32.xlu1 %v2941_v23, %s2462_s28  ;;  %v4822_v23 = vld [vmem:[#allocation58_spill] sm:$0xff] }
 0x172   : > { %v3456_v16 = vpop.permute.xlu2 %1117 }
 0x173   : > { %4816 = vst [vmem:[#allocation152_spill] sm:$0xff] %v3456_v16  ;;  %v3458_v18 = vpop.permute.xlu1 %1059 }
 0x175   : > { %1222 = vrot.lane.b32.xlu0 %v4817_v5, %s2462_s28  ;;  %v4824_v5 = vld [vmem:[#allocation60_spill] sm:$0xff] }
 0x177   : > { %v3462_v14 = vpop.permute.xlu0 %1063 }
 0x178   : > { %4818 = vst [vmem:[#allocation153_spill] sm:$0xff] %v3462_v14  ;;  %1226 = vrot.lane.b32.xlu2 %v2977_v50, %s2462_s28 }
 0x179   : > { %1224 = vrot.lane.b32.xlu1 %v4819_v31, %s2462_s28  ;;  %v4826_v31 = vld [vmem:[#allocation62_spill] sm:$0xff] }
 0x17a   : > { %v3468_v17 = vpop.permute.xlu2 %1123 }
 0x17b   : > { %4820 = vst [vmem:[#allocation154_spill] sm:$0xff] %v3468_v17  ;;  %v3470_v28 = vpop.permute.xlu1 %1065 }
 0x17c   : > { %4821 = vst [vmem:[#allocation155_spill] sm:$0xff] %v3470_v28 }
 0x17d   : > { %1228 = vrot.lane.b32.xlu0 %v4822_v23, %s2462_s28  ;;  %v4828_v23 = vld [vmem:[#allocation65_spill] sm:$0xff] }
 0x17f   : > { %v3474_v16 = vpop.permute.xlu0 %1069 }
 0x180   : > { %4823 = vst [vmem:[#allocation156_spill] sm:$0xff] %v3474_v16  ;;  %1232 = vrot.lane.b32.xlu2 %v3000_v15, %s2462_s28 }
 0x181   : > { %1230 = vrot.lane.b32.xlu1 %v4824_v5, %s2462_s28 }
 0x182   : > { %v3480_v14 = vpop.permute.xlu2 %1129 }
 0x183   : > { %v3482_v50 = vpop.permute.xlu1 %1109 }
 0x184   : > { %4825 = vst [vmem:[#allocation60_spill] sm:$0xff] %v3482_v50  ;;  %v1208_v50 = vrot.slane %v3405_v54, 2 }
 0x185   : > { %1234 = vrot.lane.b32.xlu0 %v4826_v31, %s2462_s28 }
 0x187   : > { %v3486_v17 = vpop.permute.xlu0 %1113 }
 0x188   : > { %4827 = vst [vmem:[#allocation157_spill] sm:$0xff] %v3486_v17  ;;  %1238 = vrot.lane.b32.xlu2 %v3026_v13, %s2462_s28 }
 0x189   : > { %1236 = vrot.lane.b32.xlu1 %v4828_v23, %s2462_s28  ;;  %v4833_v23 = vld [vmem:[#allocation74_spill] sm:$0xff] }
 0x18a   : > { %v3492_v16 = vpop.permute.xlu2 %1135 }
 0x18b   : > { %v3494_v15 = vpop.permute.xlu1 %1115 }
 0x18c   : > { %4829 = vst [vmem:[#allocation158_spill] sm:$0xff] %v3494_v15 }
 0x18d   : > { %1240 = vrot.lane.b32.xlu0 %v4830_v30, %s2462_s28  ;;  %v4835_v30 = vld [vmem:[#allocation77_spill] sm:$0xff] }
 0x18f   : > { %v3498_v28 = vpop.permute.xlu0 %1119 }
 0x190   : > { %4831 = vst [vmem:[#allocation159_spill] sm:$0xff] %v3498_v28  ;;  %1244 = vrot.lane.b32.xlu2 %v3051_v60, %s2462_s28 }
 0x191   : > { %1242 = vrot.lane.b32.xlu1 %v3033_v39, %s2462_s28  ;;  %v4837_v39 = vld [vmem:[#allocation80_spill] sm:$0xff] }
 0x192   : > { %v3504_v31 = vpop.permute.xlu2 %1141 }
 0x193   : > { %v3506_v13 = vpop.permute.xlu1 %1121 }
 0x194   : > { %4832 = vst [vmem:[#allocation160_spill] sm:$0xff] %v3506_v13 }
 0x195   : > { %1246 = vrot.lane.b32.xlu0 %v4833_v23, %s2462_s28 }
 0x197   : > { %v3510_v17 = vpop.permute.xlu0 %1125 }
 0x198   : > { %4834 = vst [vmem:[#allocation74_spill] sm:$0xff] %v3510_v17  ;;  %1250 = vrot.lane.b32.xlu2 %v3077_v47, %s2462_s28 }
 0x199   : > { %1248 = vrot.lane.b32.xlu1 %v4835_v30, %s2462_s28 }
 0x19a   : > { %v3516_v28 = vpop.permute.xlu2 %1147 }
 0x19b   : > { %v3518_v60 = vpop.permute.xlu1 %1127 }
 0x19c   : > { %4836 = vst [vmem:[#allocation77_spill] sm:$0xff] %v3518_v60 }
 0x19d   : > { %1252 = vrot.lane.b32.xlu0 %v4837_v39, %s2462_s28  ;;  %v4839_v39 = vld [vmem:[#allocation89_spill] sm:$0xff] }
 0x19f   : > { %v1132_v15 = vpop.permute.xlu0 %1131 }
 0x1a0   : > { %1256 = vrot.lane.b32.xlu2 %v3102_v42, %s2462_s28 }
 0x1a1   : > { %1254 = vrot.lane.b32.xlu1 %v3084_v3, %s2462_s28  ;;  %v1205_v3 = vrot.slane %v3272_v46, 2 }
 0x1a2   : > { %v3526_v17 = vpop.permute.xlu2 %1153 }
 0x1a3   : > { %4838 = vst [vmem:[#allocation161_spill] sm:$0xff] %v3526_v17  ;;  %v3528_v47 = vpop.permute.xlu1 %1133  ;;  %v1206_v17 = vrot.slane %v3284_v19, 2 }
 0x1a5   : > { %1258 = vrot.lane.b32.xlu0 %v3096_v44, %s2462_s28  ;;  %v3565_v46 = vsel %vm829_vm2, %v1206_v17, %v1208_v50 }
 0x1a6   : > { %4842 = vst [vmem:[#allocation164_spill] sm:$0xff] %v3565_v46 }
 0x1a7   : > { %v3532_v13 = vpop.permute.xlu0 %1137 }
 0x1a8   : > { %1262 = vrot.lane.b32.xlu2 %v3128_v29, %s2462_s28 }
 0x1a9   : > { %1260 = vrot.lane.b32.xlu1 %v4839_v39, %s2462_s28  ;;  %v3553_v39 = vsel %vm829_vm2, %v1205_v3, %v1206_v17 }
 0x1aa   : > { %v3538_v60 = vpop.permute.xlu2 %1159  ;;  %4841 = vst [vmem:[#allocation163_spill] sm:$0xff] %v3553_v39 }
 0x1ab   : > { %4840 = vst [vmem:[#allocation162_spill] sm:$0xff] %v3538_v60  ;;  %v3540_v42 = vpop.permute.xlu1 %1139 }
 0x1ad   : > { %1264 = vrot.lane.b32.xlu0 %v3121_v11, %s2462_s28 }
 0x1af   : > { %v3546_v44 = vpop.permute.xlu0 %1143 }
 0x1b0   : > { %1268 = vrot.lane.b32.xlu2 %v3147_v4, %s2462_s28 }
 0x1b1   : > { %1266 = vrot.lane.b32.xlu1 %v3135_v0, %s2462_s28 }
 0x1b2   : > { %v3555_v60 = vpop.permute.xlu2 %1165 }
 0x1b3   : > { %v3558_v11 = vpop.permute.xlu1 %1145 }
 0x1b5   : > { %1270 = vrot.lane.b32.xlu0 %v3553_v39, %s2462_s28 }
 0x1b7   : > { %v3562_v19 = vpop.permute.xlu0 %1149 }
 0x1b8   : > { %1307 = vrot.lane.b32.xlu2 %v2556_v24, %s2463_s29  ;;  %v4848_v24 = vld [vmem:[#allocation85_spill] sm:$0xff] }
 0x1b9   : > { %1272 = vrot.lane.b32.xlu1 %v3565_v46, %s2462_s28 }
 0x1ba   : > { %v3571_v3 = vpop.permute.xlu2 %1171 }
 0x1bb   : > { %4843 = vst [vmem:[#allocation165_spill] sm:$0xff] %v3571_v3  ;;  %v3573_v54 = vpop.permute.xlu1 %1151  ;;  %v1618_v3 = vsel %vm1606_vm3, %v2632_v62, %v4848_v24 }
 0x1bc   : > { %v1651_v0 = vsel %vm1639_vm4, %v1618_v3, %v3201_v53  ;;  %v4849_v3 = vld [vmem:[#allocation91_spill] sm:$0xff] }
 0x1bd   : > { %1309 = vrot.lane.b32.xlu0 %v2550_v22, %s2463_s29 }
 0x1bf   : > { %v3577_v39 = vpop.permute.xlu0 %1155 }
 0x1c0   : > { %1313 = vrot.lane.b32.xlu2 %v2573_v33, %s2463_s29 }
 0x1c1   : > { %1311 = vrot.lane.b32.xlu1 %v2580_v36, %s2463_s29 }
 0x1c2   : > { %v3583_v17 = vpop.permute.xlu2 %1214 }
 0x1c3   : > { %4844 = vst [vmem:[#allocation166_spill] sm:$0xff] %v3583_v17  ;;  %v3585_v50 = vpop.permute.xlu1 %1157 }
 0x1c5   : > { %1315 = vrot.lane.b32.xlu0 %v2611_v51, %s2463_s29 }
 0x1c7   : > { %v3589_v46 = vpop.permute.xlu0 %1161 }
 0x1c8   : > { %1319 = vrot.lane.b32.xlu2 %v2635_v63, %s2463_s29 }
 0x1c9   : > { %1317 = vrot.lane.b32.xlu1 %v2614_v52, %s2463_s29 }
 0x1ca   : > { %v3595_v4 = vpop.permute.xlu2 %1220 }
 0x1cb   : > { %4845 = vst [vmem:[#allocation167_spill] sm:$0xff] %v3595_v4  ;;  %v3597_v33 = vpop.permute.xlu1 %1163 }
 0x1cd   : > { %1321 = vrot.lane.b32.xlu0 %v2632_v62, %s2463_s29 }
 0x1cf   : > { %v3601_v22 = vpop.permute.xlu0 %1167 }
 0x1d0   : > { %1325 = vrot.lane.b32.xlu2 %v2648_v9, %s2463_s29 }
 0x1d1   : > { %1323 = vrot.lane.b32.xlu1 %v2651_v10, %s2463_s29 }
 0x1d2   : > { %v3607_v51 = vpop.permute.xlu2 %1226 }
 0x1d3   : > { %4846 = vst [vmem:[#allocation168_spill] sm:$0xff] %v3607_v51  ;;  %v3609_v17 = vpop.permute.xlu1 %1169  ;;  %v1684_v51 = vsel %vm1672_vm5, %v1651_v0, %v3384_v8  ;;  %v1621_v8 = vsel %vm1606_vm3, %v2690_v43, %v4849_v3 }
 0x1d4   : > { %4847 = vst [vmem:[#allocation169_spill] sm:$0xff] %v3609_v17  ;;  %v1717_v17 = vsel %vm1705_vm6, %v1684_v51, %v1132_v15  ;;  %v1654_v0 = vsel %vm1639_vm4, %v1621_v8, %v3213_v37 }
 0x1d5   : > { %1327 = vrot.lane.b32.xlu0 %v2690_v43, %s2463_s29  ;;  %v1687_v51 = vsel %vm1672_vm5, %v1654_v0, %v3396_v48  ;;  %v1624_v48 = vsel %vm1606_vm3, %v2704_v56, %v3140_v2  ;;  %v4850_v2 = vld [vmem:[#allocation81_spill] sm:$0xff] }
 0x1d6   : > { %v1657_v3 = vsel %vm1639_vm4, %v1624_v48, %v3225_v32 }
 0x1d7   : > { %v3613_v4 = vpop.permute.xlu0 %1210 }
 0x1d8   : > { %1331 = vrot.lane.b32.xlu2 %v2707_v57, %s2463_s29 }
 0x1d9   : > { %1329 = vrot.lane.b32.xlu1 %v2683_v35, %s2463_s29 }
 0x1da   : > { %v1233_v52 = vpop.permute.xlu2 %1232 }
 0x1db   : > { %v3628_v24 = vsel %vm1738_vm7, %v1717_v17, %v1233_v52  ;;  %v3630_v62 = vpop.permute.xlu1 %1212  ;;  %v1720_v52 = vsel %vm1705_vm6, %v1687_v51, %v3532_v13  ;;  %v1690_v13 = vsel %vm1672_vm5, %v1657_v3, %v3416_v25  ;;  %v1627_v25 = vsel %vm1606_vm3, %v2761_v61, %v3155_v12  ;;  %v4851_v12 = vld [vmem:[#allocation66_spill] sm:$0xff]  ;;  %v4852_v3 = vld [vmem:[#allocation101_spill] sm:$0xff] }
 0x1dc   : > { %v1723_v8 = vsel %vm1705_vm6, %v1690_v13, %v3546_v44  ;;  %v1617_v44 = vsel %vm1606_vm3, %v2635_v63, %v4850_v2  ;;  %v4853_v13 = vld [vmem:[#allocation27_spill] sm:$0xff] }
 0x1dd   : > { %1333 = vrot.lane.b32.xlu0 %v2704_v56, %s2463_s29  ;;  %v4855_v2 = vld [vmem:[#allocation115_spill] sm:$0xff] }
 0x1df   : > { %v3634_v53 = vpop.permute.xlu0 %1216 }
 0x1e0   : > { %1337 = vrot.lane.b32.xlu2 %v2720_v6, %s2463_s29 }
 0x1e1   : > { %1335 = vrot.lane.b32.xlu1 %v2723_v7, %s2463_s29 }
 0x1e2   : > { %v1239_v15 = vpop.permute.xlu2 %1238 }
 0x1e3   : > { %v3650_v17 = vsel %vm1738_vm7, %v1720_v52, %v1239_v15  ;;  %v3652_v43 = vpop.permute.xlu1 %1218  ;;  %v1660_v52 = vsel %vm1639_vm4, %v1627_v25, %v3237_v59 }
 0x1e4   : > { %v1693_v15 = vsel %vm1672_vm5, %v1660_v52, %v3434_v40  ;;  %v4857_v52 = vld [vmem:[#allocation144_spill] sm:$0xff] }
 0x1e5   : > { %1339 = vrot.lane.b32.xlu0 %v2761_v61, %s2463_s29  ;;  %v1726_v63 = vsel %vm1705_vm6, %v1693_v15, %v3562_v19 }
 0x1e7   : > { %v3656_v37 = vpop.permute.xlu0 %1222 }
 0x1e8   : > { %1355 = vrot.lane.b32.xlu2 %v2858_v45, %s2463_s29 }
 0x1e9   : > { %1341 = vrot.lane.b32.xlu1 %v2755_v55, %s2463_s29 }
 0x1ea   : > { %v1245_v0 = vpop.permute.xlu2 %1244 }
 0x1eb   : > { %v3672_v51 = vsel %vm1738_vm7, %v1723_v8, %v1245_v0  ;;  %v3674_v56 = vpop.permute.xlu1 %1224  ;;  %v1630_v8 = vsel %vm1606_vm3, %v4853_v13, %v4852_v3  ;;  %v4864_v3 = vld [vmem:[#allocation93_spill] sm:$0xff] }
 0x1ed   : > { %1441 = vrot.lane.b32.xlu0 %v4790_v58, %s2464_s30  ;;  %v1650_v58 = vsel %vm1639_vm4, %v1617_v44, %v3239_v27 }
 0x1ee   : > { %v1683_v61 = vsel %vm1672_vm5, %v1650_v58, %v3376_v41 }
 0x1ef   : > { %v3678_v32 = vpop.permute.xlu0 %1228  ;;  %v1716_v27 = vsel %vm1705_vm6, %v1683_v61, %v3480_v14  ;;  %v4858_v61 = vld [vmem:[#allocation72_spill] sm:$0xff] }
 0x1f0   : > { %1542 = vrot.lane.b32.xlu2 %v4833_v23, %s2465_s6  ;;  %v1619_v23 = vsel %vm1606_vm3, %v2651_v10, %v4851_v12  ;;  %v4859_v12 = vld [vmem:[#allocation117_spill] sm:$0xff] }
 0x1f1   : > { %1457 = vrot.lane.b32.xlu1 %v4801_v34, %s2464_s30  ;;  %v1652_v34 = vsel %vm1639_vm4, %v1619_v23, %v3243_v21  ;;  %v4854_v21 = vld [vmem:[#allocation87_spill] sm:$0xff] }
 0x1f2   : > { %v1251_v59 = vpop.permute.xlu2 %1250  ;;  %v1685_v19 = vsel %vm1672_vm5, %v1652_v34, %v3346_v20  ;;  %v1620_v25 = vsel %vm1606_vm3, %v2648_v9, %v4854_v21  ;;  %v4856_v20 = vld [vmem:[#allocation116_spill] sm:$0xff]  ;;  %v4865_v21 = vld [vmem:[#allocation118_spill] sm:$0xff] }
 0x1f3   : > { %v3706_v48 = vsel %vm1738_vm7, %v1726_v63, %v1251_v59  ;;  %v1231_v40 = vpop.permute.xlu1 %1230  ;;  %v1718_v10 = vsel %vm1705_vm6, %v1685_v19, %v3528_v47  ;;  %v1653_v47 = vsel %vm1639_vm4, %v1620_v25, %v4856_v20  ;;  %v4862_v34 = vld [vmem:[#allocation104_spill] sm:$0xff]  ;;  %v4863_v19 = vld [vmem:[#allocation38_spill] sm:$0xff]  ;;  %v4867_v20 = vld [vmem:[#allocation45_spill] sm:$0xff] }
 0x1f4   : > { %v3711_v41 = vsel %vm1738_vm7, %v1716_v27, %v1231_v40  ;;  %v1686_v58 = vsel %vm1672_vm5, %v1653_v47, %v4857_v52  ;;  %v4861_v27 = vld [vmem:[#allocation139_spill] sm:$0xff]  ;;  %v4868_v52 = vld [vmem:[#allocation78_spill] sm:$0xff] }
 0x1f5   : > { %1558 = vrot.lane.b32.xlu0 %v3128_v29, %s2465_s6  ;;  %v1663_v29 = vsel %vm1639_vm4, %v1630_v8, %v4855_v2  ;;  %v1719_v63 = vsel %vm1705_vm6, %v1686_v58, %v3492_v16  ;;  %v1623_v8 = vsel %vm1606_vm3, %v2707_v57, %v4864_v3  ;;  %v4866_v2 = vld [vmem:[#allocation119_spill] sm:$0xff] }
 0x1f6   : > { %v1696_v44 = vsel %vm1672_vm5, %v1663_v29, %v3446_v26 }
 0x1f7   : > { %v1235_v14 = vpop.permute.xlu0 %1234  ;;  %v1729_v9 = vsel %vm1705_vm6, %v1696_v44, %v3577_v39  ;;  %v4860_v39 = vld [vmem:[#allocation40_spill] sm:$0xff] }
 0x1f8   : > { %v3723_v0 = vsel %vm1738_vm7, %v1718_v10, %v1235_v14  ;;  %1425 = vrot.lane.b32.xlu2 %v4772_v38, %s2464_s30  ;;  %v1622_v38 = vsel %vm1606_vm3, %v2683_v35, %v4858_v61  ;;  %v1633_v10 = vsel %vm1606_vm3, %v4863_v19, %v4862_v34  ;;  %v4875_v34 = vld [vmem:[#allocation124_spill] sm:$0xff] }
 0x1f9   : > { %1409 = vrot.lane.b32.xlu1 %v2607_v49, %s2464_s30  ;;  %v1655_v49 = vsel %vm1639_vm4, %v1622_v38, %v4859_v12  ;;  %v1666_v25 = vsel %vm1639_vm4, %v1633_v10, %v4865_v21  ;;  %v4871_v38 = vld [vmem:[#allocation30_spill] sm:$0xff]  ;;  %v4876_v10 = vld [vmem:[#allocation155_spill] sm:$0xff] }
 0x1fa   : > { %v1257_v15 = vpop.permute.xlu2 %1256  ;;  %v1688_v40 = vsel %vm1672_vm5, %v1655_v49, %v4861_v27  ;;  %v1699_v29 = vsel %vm1672_vm5, %v1666_v25, %v3458_v18  ;;  %v4873_v27 = vld [vmem:[#allocation96_spill] sm:$0xff] }
 0x1fb   : > { %v3748_v59 = vsel %vm1738_vm7, %v1729_v9, %v1257_v15  ;;  %v1237_v26 = vpop.permute.xlu1 %1236  ;;  %v1721_v35 = vsel %vm1705_vm6, %v1688_v40, %v3540_v42  ;;  %v1656_v42 = vsel %vm1639_vm4, %v1623_v8, %v4866_v2  ;;  %v1732_v57 = vsel %vm1705_vm6, %v1699_v29, %v3589_v46  ;;  %v4869_v15 = vld [vmem:[#allocation121_spill] sm:$0xff]  ;;  %v4878_v8 = vld [vmem:[#allocation63_spill] sm:$0xff]  ;;  %v4879_v25 = vld [vmem:[#allocation148_spill] sm:$0xff] }
 0x1fc   : > { %v3753_v23 = vsel %vm1738_vm7, %v1719_v63, %v1237_v26  ;;  %v1689_v47 = vsel %vm1672_vm5, %v1656_v42, %v4867_v20  ;;  %v4870_v46 = vld [vmem:[#allocation29_spill] sm:$0xff]  ;;  %v4872_v26 = vld [vmem:[#allocation107_spill] sm:$0xff]  ;;  %v1626_v40 = vsel %vm1606_vm3, %v2720_v6, %v4873_v27  ;;  %v2410_v21 = vunpack.i.l.bf16 %v4878_v8  ;;  %v4880_v29 = vld [vmem:[#allocation84_spill] sm:$0xff] }
 0x1fd   : > { %1357 = vrot.lane.b32.xlu0 %v4860_v39, %s2463_s29  ;;  %v1722_v58 = vsel %vm1705_vm6, %v1689_v47, %v3504_v31  ;;  %v1636_v12 = vsel %vm1606_vm3, %v4860_v39, %v4872_v26  ;;  %v4877_v39 = vld [vmem:[#allocation47_spill] sm:$0xff]  ;;  %v4881_v20 = vld [vmem:[#allocation109_spill] sm:$0xff]  ;;  %v4887_v26 = vld [vmem:[#allocation28_spill] sm:$0xff] }
 0x1fe   : > { %v2415_v47 = vunpack.i.l.bf16 %v4881_v20  ;;  %v4888_v27 = vld [vmem:[#allocation126_spill] sm:$0xff] }
 0x1ff   : > { %v1241_v16 = vpop.permute.xlu0 %1240 }
 0x200   : > { %v3765_v14 = vsel %vm1738_vm7, %v1721_v35, %v1241_v16  ;;  %1526 = vrot.lane.b32.xlu2 %v4824_v5, %s2465_s6  ;;  %v1625_v5 = vsel %vm1606_vm3, %v2723_v7, %v4868_v52  ;;  %v4874_v35 = vld [vmem:[#allocation123_spill] sm:$0xff] }
 0x201   : > { %1510 = vrot.lane.b32.xlu1 %v2934_v1, %s2465_s6  ;;  %v1658_v1 = vsel %vm1639_vm4, %v1625_v5, %v4869_v15  ;;  %v1669_v16 = vsel %vm1639_vm4, %v1636_v12, %v4874_v35  ;;  %v4882_v5 = vld [vmem:[#allocation125_spill] sm:$0xff]  ;;  %v4884_v15 = vld [vmem:[#allocation143_spill] sm:$0xff]  ;;  %v4889_v35 = vld [vmem:[#allocation20_spill] sm:$0xff] }
 0x202   : > { %v1263_v44 = vpop.permute.xlu2 %1262  ;;  %v1691_v63 = vsel %vm1672_vm5, %v1658_v1, %v4871_v38  ;;  %v1702_v3 = vsel %vm1672_vm5, %v1669_v16, %v4876_v10  ;;  %v4885_v1 = vld [vmem:[#allocation3_spill] sm:$0xff]  ;;  %v4892_v10 = vld [vmem:[#allocation10_spill] sm:$0xff] }
 0x203   : > { %v3790_v9 = vsel %vm1738_vm7, %v1732_v57, %v1263_v44  ;;  %v1243_v18 = vpop.permute.xlu1 %1242  ;;  %v1724_v7 = vsel %vm1705_vm6, %v1691_v63, %v3558_v11  ;;  %v1659_v11 = vsel %vm1639_vm4, %v1626_v40, %v4875_v34  ;;  %v1735_v2 = vsel %vm1705_vm6, %v1702_v3, %v3601_v22  ;;  %v4883_v22 = vld [vmem:[#allocation92_spill] sm:$0xff]  ;;  %v4890_v16 = vld [vmem:[#allocation127_spill] sm:$0xff]  ;;  %v4893_v3 = vld [vmem:[#allocation49_spill] sm:$0xff] }
 0x204   : > { %v3795_v61 = vsel %vm1738_vm7, %v1722_v58, %v1243_v18  ;;  %v1692_v6 = vsel %vm1672_vm5, %v1659_v11, %v4879_v25  ;;  %v4891_v34 = vld [vmem:[#allocation60_spill] sm:$0xff] }
 0x205   : > { %1443 = vrot.lane.b32.xlu0 %v4870_v46, %s2464_s30  ;;  %v1725_v57 = vsel %vm1705_vm6, %v1692_v6, %v3516_v28  ;;  %v1607_v46 = vsel %vm1606_vm3, %v4885_v1, %v2410_v21  ;;  %v4894_v6 = vld [vmem:[#allocation90_spill] sm:$0xff] }
 0x206   : > { %v1640_v63 = vsel %vm1639_vm4, %v1607_v46, %v2415_v47 }
 0x207   : > { %v1247_v31 = vpop.permute.xlu0 %1246  ;;  %v1673_v40 = vsel %vm1672_vm5, %v1640_v63, %v4888_v27  ;;  %v4901_v63 = vld [vmem:[#allocation110_spill] sm:$0xff] }
 0x208   : > { %v3807_v49 = vsel %vm1738_vm7, %v1724_v7, %v1247_v31  ;;  %1544 = vrot.lane.b32.xlu2 %v4835_v30, %s2465_s6  ;;  %v1628_v30 = vsel %vm1606_vm3, %v2755_v55, %v4880_v29  ;;  %v4886_v31 = vld [vmem:[#allocation99_spill] sm:$0xff]  ;;  %v1706_v11 = vsel %vm1705_vm6, %v1673_v40, %v4891_v34  ;;  %v4896_v29 = vld [vmem:[#allocation161_spill] sm:$0xff]  ;;  %v4902_v27 = vld [vmem:[#allocation102_spill] sm:$0xff] }
 0x209   : > { %1459 = vrot.lane.b32.xlu1 %v4877_v39, %s2464_s30  ;;  %v1661_v58 = vsel %vm1639_vm4, %v1628_v30, %v4882_v5  ;;  %v1629_v12 = vsel %vm1606_vm3, %v4887_v26, %v4886_v31  ;;  %v1739_v21 = vsel %vm1738_vm7, %v1706_v11, %v3613_v4  ;;  %v4898_v4 = vld [vmem:[#allocation145_spill] sm:$0xff]  ;;  %v4903_v40 = vld [vmem:[#allocation31_spill] sm:$0xff]  ;;  %v4906_v34 = vld [vmem:[#allocation130_spill] sm:$0xff] }
 0x20a   : > { %v1269_v42 = vpop.permute.xlu2 %1268  ;;  %v1694_v55 = vsel %vm1672_vm5, %v1661_v58, %v4884_v15  ;;  %v4899_v15 = vld [vmem:[#allocation67_spill] sm:$0xff]  ;;  %v4907_v11 = vld [vmem:[#allocation158_spill] sm:$0xff] }
 0x20b   : > { %v3834_v44 = vsel %vm1738_vm7, %v1735_v2, %v1269_v42  ;;  %v1249_v52 = vpop.permute.xlu1 %1248  ;;  %v1727_v28 = vsel %vm1705_vm6, %v1694_v55, %v3573_v54  ;;  %v1662_v54 = vsel %vm1639_vm4, %v1629_v12, %v4890_v16  ;;  %v4895_v2 = vld [vmem:[#allocation32_spill] sm:$0xff]  ;;  %v4900_v55 = vld [vmem:[#allocation7_spill] sm:$0xff] }
 0x20c   : > { %v3839_v18 = vsel %vm1738_vm7, %v1725_v57, %v1249_v52  ;;  %v1695_v39 = vsel %vm1672_vm5, %v1662_v54, %v4893_v3  ;;  %v1631_v42 = vsel %vm1606_vm3, %v4895_v2, %v4894_v6  ;;  %v4897_v52 = vld [vmem:[#allocation128_spill] sm:$0xff]  ;;  %v1610_v46 = vsel %vm1606_vm3, %v4900_v55, %v4899_v15  ;;  %v4905_v54 = vld [vmem:[#allocation51_spill] sm:$0xff] }
 0x20d   : > { %1560 = vrot.lane.b32.xlu0 %v4883_v22, %s2465_s6  ;;  %v1728_v30 = vsel %vm1705_vm6, %v1695_v39, %v4896_v29  ;;  %v1664_v5 = vsel %vm1639_vm4, %v1631_v42, %v4897_v52  ;;  %v1643_v31 = vsel %vm1639_vm4, %v1610_v46, %v4901_v63  ;;  %v4908_v3 = vld [vmem:[#allocation44_spill] sm:$0xff]  ;;  %v4909_v39 = vld [vmem:[#allocation151_spill] sm:$0xff]  ;;  %v4911_v29 = vld [vmem:[#allocation37_spill] sm:$0xff] }
 0x20e   : > { %v1697_v22 = vsel %vm1672_vm5, %v1664_v5, %v4898_v4  ;;  %v4910_v42 = vld [vmem:[#allocation95_spill] sm:$0xff]  ;;  %v4915_v46 = vld [vmem:[#allocation146_spill] sm:$0xff] }
 0x20f   : > { %v1253_v38 = vpop.permute.xlu0 %1252 }
 0x210   : > { %v3851_v7 = vsel %vm1738_vm7, %v1727_v28, %v1253_v38  ;;  %1427 = vrot.lane.b32.xlu2 %v4889_v35, %s2464_s30  ;;  %v1730_v28 = vsel %vm1705_vm6, %v1697_v22, %v3585_v50  ;;  %v4904_v35 = vld [vmem:[#allocation129_spill] sm:$0xff]  ;;  %v4913_v22 = vld [vmem:[#allocation131_spill] sm:$0xff] }
 0x211   : > { %1411 = vrot.lane.b32.xlu1 %v4892_v10, %s2464_s30  ;;  %v1676_v16 = vsel %vm1672_vm5, %v1643_v31, %v4904_v35 }
 0x212   : > { %v1308_v25 = vpop.permute.xlu2 %1307  ;;  %v1709_v10 = vsel %vm1705_vm6, %v1676_v16, %v4907_v11 }
 0x213   : > { %v3876_v47 = vsel %vm1771_vm8, %v1739_v21, %v1308_v25  ;;  %v1255_v57 = vpop.permute.xlu1 %1254  ;;  %v1742_v25 = vsel %vm1738_vm7, %v1709_v10, %v3634_v53  ;;  %v4914_v53 = vld [vmem:[#allocation64_spill] sm:$0xff]  ;;  %v4920_v10 = vld [vmem:[#allocation46_spill] sm:$0xff] }
 0x214   : > { %v3881_v58 = vsel %vm1738_vm7, %v1728_v30, %v1255_v57  ;;  %v1634_v30 = vsel %vm1606_vm3, %v4911_v29, %v4910_v42  ;;  %v4912_v57 = vld [vmem:[#allocation162_spill] sm:$0xff] }
 0x215   : > { %1343 = vrot.lane.b32.xlu0 %v4887_v26, %s2463_s29  ;;  %v1632_v26 = vsel %vm1606_vm3, %v4903_v40, %v4902_v27  ;;  %v1667_v15 = vsel %vm1639_vm4, %v1634_v30, %v4913_v22 }
 0x216   : > { %v1665_v50 = vsel %vm1639_vm4, %v1632_v26, %v4906_v34  ;;  %v4917_v26 = vld [vmem:[#allocation112_spill] sm:$0xff] }
 0x217   : > { %v1259_v38 = vpop.permute.xlu0 %1258  ;;  %v1698_v21 = vsel %vm1672_vm5, %v1665_v50, %v4909_v39  ;;  %v4919_v50 = vld [vmem:[#allocation132_spill] sm:$0xff] }
 0x218   : > { %v3895_v12 = vsel %vm1738_vm7, %v1730_v28, %v1259_v38  ;;  %1512 = vrot.lane.b32.xlu2 %v4905_v54, %s2465_s6  ;;  %v1731_v52 = vsel %vm1705_vm6, %v1698_v21, %v4912_v57  ;;  %v1700_v28 = vsel %vm1672_vm5, %v1667_v15, %v4915_v46  ;;  %v4916_v38 = vld [vmem:[#allocation57_spill] sm:$0xff]  ;;  %v4922_v39 = vld [vmem:[#allocation160_spill] sm:$0xff]  ;;  %v4925_v57 = vld [vmem:[#allocation98_spill] sm:$0xff] }
 0x219   : > { %1359 = vrot.lane.b32.xlu1 %v4908_v3, %s2463_s29  ;;  %v1613_v63 = vsel %vm1606_vm3, %v2580_v36, %v4916_v38  ;;  %v1733_v31 = vsel %vm1705_vm6, %v1700_v28, %v3597_v33  ;;  %v4918_v54 = vld [vmem:[#allocation105_spill] sm:$0xff]  ;;  %v4928_v38 = vld [vmem:[#allocation150_spill] sm:$0xff] }
 0x21a   : > { %v1314_v6 = vpop.permute.xlu2 %1313  ;;  %v1646_v35 = vsel %vm1639_vm4, %v1613_v63, %v4917_v26  ;;  %v1635_v34 = vsel %vm1606_vm3, %v2858_v45, %v4918_v54  ;;  %v4921_v36 = vld [vmem:[#allocation133_spill] sm:$0xff] }
 0x21b   : > { %v3920_v5 = vsel %vm1771_vm8, %v1742_v25, %v1314_v6  ;;  %v1261_v4 = vpop.permute.xlu1 %1260  ;;  %v1679_v11 = vsel %vm1672_vm5, %v1646_v35, %v4919_v50  ;;  %v1668_v33 = vsel %vm1639_vm4, %v1635_v34, %v4921_v36  ;;  %v4923_v25 = vld [vmem:[#allocation33_spill] sm:$0xff]  ;;  %v2416_v34 = vunpack.i.h.bf16 %v4881_v20  ;;  %v4932_v50 = vld [vmem:[#allocation114_spill] sm:$0xff]  ;;  %v4933_v36 = vld [vmem:[#allocation108_spill] sm:$0xff] }
 0x21c   : > { %v3925_v55 = vsel %vm1738_vm7, %v1731_v52, %v1261_v4  ;;  %v1712_v21 = vsel %vm1705_vm6, %v1679_v11, %v4922_v39  ;;  %v4924_v6 = vld [vmem:[#allocation153_spill] sm:$0xff]  ;;  %v1637_v52 = vsel %vm1606_vm3, %v4908_v3, %v4925_v57  ;;  %v4940_v57 = vld [vmem:[#allocation2_spill] sm:$0xff] }
 0x21d   : > { %1528 = vrot.lane.b32.xlu0 %v4914_v53, %s2465_s6  ;;  %v1701_v42 = vsel %vm1672_vm5, %v1668_v33, %v4924_v6  ;;  %v1745_v45 = vsel %vm1738_vm7, %v1712_v21, %v3656_v37  ;;  %v4926_v53 = vld [vmem:[#allocation134_spill] sm:$0xff]  ;;  %v4929_v3 = vld [vmem:[#allocation61_spill] sm:$0xff]  ;;  %v4934_v33 = vld [vmem:[#allocation43_spill] sm:$0xff] }
 0x21e   : > { %v1734_v4 = vsel %vm1705_vm6, %v1701_v42, %v3555_v60  ;;  %v1670_v46 = vsel %vm1639_vm4, %v1637_v52, %v4926_v53  ;;  %v4927_v37 = vld [vmem:[#allocation82_spill] sm:$0xff]  ;;  %v4931_v26 = vld [vmem:[#allocation169_spill] sm:$0xff]  ;;  %v1638_v39 = vsel %vm1606_vm3, %v4934_v33, %v4933_v36  ;;  %v4937_v6 = vld [vmem:[#allocation135_spill] sm:$0xff] }
 0x21f   : > { %v1265_v27 = vpop.permute.xlu0 %1264  ;;  %v1703_v63 = vsel %vm1672_vm5, %v1670_v46, %v4928_v38  ;;  %v4935_v21 = vld [vmem:[#allocation18_spill] sm:$0xff]  ;;  %v1671_v42 = vsel %vm1639_vm4, %v1638_v39, %v4937_v6  ;;  %v4938_v20 = vld [vmem:[#allocation77_spill] sm:$0xff]  ;;  %v1876_v6 = vld [vmem:[%s4507_s3 + $0x30] sm:$0xff] }
 0x220   : > { %v3939_v16 = vsel %vm1738_vm7, %v1733_v31, %v1265_v27  ;;  %1461 = vrot.lane.b32.xlu2 %v4920_v10, %s2464_s30  ;;  %v4930_v31 = vld [vmem:[#allocation13_spill] sm:$0xff]  ;;  %v2411_v27 = vunpack.i.h.bf16 %v4878_v8  ;;  %v1736_v35 = vsel %vm1705_vm6, %v1703_v63, %v4931_v26  ;;  %v4936_v8 = vld [vmem:[#allocation11_spill] sm:$0xff] }
 0x221   : > { %1445 = vrot.lane.b32.xlu1 %v4923_v25, %s2464_s30  ;;  %v1616_v60 = vsel %vm1606_vm3, %v4930_v31, %v4929_v3  ;;  %v4942_v38 = vld [vmem:[#allocation165_spill] sm:$0xff] }
 0x222   : > { %v1320_v30 = vpop.permute.xlu2 %1319  ;;  %v1649_v11 = vsel %vm1639_vm4, %v1616_v60, %v4932_v50  ;;  %v1608_v52 = vsel %vm1606_vm3, %v4940_v57, %v2411_v27  ;;  %v1878_v60 = vld [vmem:[%s4507_s3 + $0x40] sm:$0xff]  ;;  %v4943_v27 = vld [vmem:[#allocation136_spill] sm:$0xff]  ;;  %v4946_v39 = vld [vmem:[#allocation69_spill] sm:$0xff] }
 0x223   : > { %v3964_v22 = vsel %vm1771_vm8, %v1745_v45, %v1320_v30  ;;  %v1267_v15 = vpop.permute.xlu1 %1266  ;;  %v1682_v25 = vsel %vm1672_vm5, %v1649_v11, %v4935_v21  ;;  %v4939_v30 = vld [vmem:[#allocation94_spill] sm:$0xff]  ;;  %2347 = vmatpush.msra.mxu1 %v1878_v60  ;;  %2348 = vmatpush.msra.mxu2 %v1878_v60  ;;  %v4947_v21 = vld [vmem:[#allocation8_spill] sm:$0xff] }
 0x224   : > { %v3969_v28 = vsel %vm1738_vm7, %v1734_v4, %v1267_v15  ;;  %v1715_v45 = vsel %vm1705_vm6, %v1682_v25, %v4938_v20  ;;  %v4941_v4 = vld [vmem:[#allocation156_spill] sm:$0xff]  ;;  %2349 = vmatpush.msra.mxu3 %v1878_v60  ;;  %1987 = vmatpush.msra.mxu0 %v1878_v60  ;;  %v1609_v25 = vsel %vm1606_vm3, %v4947_v21, %v4946_v39  ;;  %v4958_v21 = vld [vmem:[#allocation53_spill] sm:$0xff] }
 0x225   : > { %1546 = vrot.lane.b32.xlu0 %v4927_v37, %s2465_s6  ;;  %v1704_v15 = vsel %vm1672_vm5, %v1671_v42, %v4941_v4  ;;  %v1748_v53 = vsel %vm1738_vm7, %v1715_v45, %v3678_v32  ;;  %v1641_v37 = vsel %vm1639_vm4, %v1608_v52, %v2416_v34  ;;  %v4944_v32 = vld [vmem:[#allocation22_spill] sm:$0xff]  ;;  %v4948_v42 = vld [vmem:[#allocation100_spill] sm:$0xff]  ;;  %v4950_v52 = vld [vmem:[#allocation73_spill] sm:$0xff] }
 0x226   : > { %v1737_v63 = vsel %vm1705_vm6, %v1704_v15, %v4942_v38  ;;  %v1674_v26 = vsel %vm1672_vm5, %v1641_v37, %v4943_v27  ;;  %v4945_v34 = vld [vmem:[#allocation50_spill] sm:$0xff]  ;;  %v1642_v20 = vsel %vm1639_vm4, %v1609_v25, %v4948_v42  ;;  %v4953_v37 = vld [vmem:[#allocation111_spill] sm:$0xff]  ;;  %v4959_v25 = vld [vmem:[#allocation5_spill] sm:$0xff] }
 0x227   : > { %v1271_v54 = vpop.permute.xlu0 %1270  ;;  %v1707_v50 = vsel %vm1705_vm6, %v1674_v26, %v4945_v34  ;;  %v4951_v4 = vld [vmem:[#allocation6_spill] sm:$0xff]  ;;  %v1612_v42 = vsel %vm1606_vm3, %v4959_v25, %v4958_v21 }
 0x228   : > { %v3985_v10 = vsel %vm1738_vm7, %v1736_v35, %v1271_v54  ;;  %1413 = vrot.lane.b32.xlu2 %v4936_v8, %s2464_s30  ;;  %v1877_v54 = vld [vmem:[%s4507_s3 + $0x38] sm:$0xff]  ;;  %v1740_v11 = vsel %vm1738_vm7, %v1707_v50, %v3630_v62  ;;  %v1611_v15 = vsel %vm1606_vm3, %v4951_v4, %v4950_v52  ;;  %v1874_v27 = vld [vmem:[%s4507_s3 + $0x20] sm:$0xff]  ;;  %v4956_v50 = vld [vmem:[#allocation52_spill] sm:$0xff] }
 0x229   : > { %1562 = vrot.lane.b32.xlu1 %v4939_v30, %s2465_s6  ;;  %2350 = vmatpush.msra.mxu1 %v1877_v54  ;;  %v4949_v62 = vld [vmem:[#allocation137_spill] sm:$0xff]  ;;  %v1875_v30 = vld [vmem:[%s4507_s3 + $0x28] sm:$0xff]  ;;  %v1644_v38 = vsel %vm1639_vm4, %v1611_v15, %v4953_v37  ;;  %v4955_v26 = vld [vmem:[#allocation138_spill] sm:$0xff] }
 0x22a   : > { %v1326_v46 = vpop.permute.xlu2 %1325  ;;  %2351 = vmatpush.msra.mxu2 %v1877_v54  ;;  %2352 = vmatpush.msra.mxu3 %v1877_v54  ;;  %v1675_v45 = vsel %vm1672_vm5, %v1642_v20, %v4949_v62  ;;  %v1872_v62 = vld [vmem:[%s4507_s3 + $0x10] sm:$0xff]  ;;  %v4963_v15 = vld [vmem:[#allocation62_spill] sm:$0xff] }
 0x22b   : > { %v4010_v3 = vsel %vm1771_vm8, %v1748_v53, %v1326_v46  ;;  %v1273_v31 = vpop.permute.xlu1 %1272  ;;  %2353 = vmatpush.msra.mxu1 %v1876_v6  ;;  %v4952_v53 = vld [vmem:[#allocation157_spill] sm:$0xff]  ;;  %1988 = vmatpush.msra.mxu0 %v1877_v54 }
 0x22c   : > { %v4018_v35 = vsel %vm1738_vm7, %v1737_v63, %v1273_v31  ;;  %2354 = vmatpush.msra.mxu2 %v1876_v6  ;;  %v1708_v46 = vsel %vm1705_vm6, %v1675_v45, %v4952_v53  ;;  %2355 = vmatpush.msra.mxu3 %v1876_v6  ;;  %v4954_v63 = vld [vmem:[#allocation166_spill] sm:$0xff]  ;;  %v4960_v45 = vld [vmem:[#allocation103_spill] sm:$0xff] }
 0x22d   : > { %1429 = vrot.lane.b32.xlu0 %v4944_v32, %s2464_s30  ;;  %2356 = vmatpush.msra.mxu1 %v1875_v30  ;;  %v1677_v32 = vsel %vm1672_vm5, %v1644_v38, %v4955_v26  ;;  %v1645_v52 = vsel %vm1639_vm4, %v1612_v42, %v4960_v45  ;;  %v1871_v53 = vld [vmem:[%s4507_s3 + $0x8] sm:$0xff]  ;;  %v4970_v42 = vld [vmem:[#allocation48_spill] sm:$0xff]  ;;  %v4971_v45 = vld [vmem:[#allocation154_spill] sm:$0xff] }
 0x22e   : > { %2357 = vmatpush.msra.mxu2 %v1875_v30  ;;  %2358 = vmatpush.msra.mxu3 %v1875_v30  ;;  %v4966_v38 = vld [vmem:[#allocation159_spill] sm:$0xff] }
 0x22f   : > { %v1310_v36 = vpop.permute.xlu0 %1309  ;;  %2359 = vmatpush.msra.mxu1 %v1874_v27  ;;  %1989 = vmatpush.msra.mxu0 %v1876_v6  ;;  %v4962_v6 = vld [vmem:[#allocation140_spill] sm:$0xff] }
 0x230   : > { %v4033_v8 = vsel %vm1771_vm8, %v1740_v11, %v1310_v36  ;;  %1361 = vrot.lane.b32.xlu2 %v4934_v33, %s2463_s29  ;;  %v4957_v11 = vld [vmem:[#allocation152_spill] sm:$0xff]  ;;  %2360 = vmatpush.msra.mxu2 %v1874_v27  ;;  %v1678_v4 = vsel %vm1672_vm5, %v1645_v52, %v4962_v6  ;;  %v4972_v6 = vld [vmem:[#allocation97_spill] sm:$0xff] }
 0x231   : > { %1345 = vrot.lane.b32.xlu1 %v4853_v13, %s2463_s29  ;;  %v1741_v13 = vsel %vm1738_vm7, %v1708_v46, %v4954_v63  ;;  %v1710_v36 = vsel %vm1705_vm6, %v1677_v32, %v4957_v11  ;;  %2361 = vmatpush.msra.mxu3 %v1874_v27  ;;  %v4964_v46 = vld [vmem:[#allocation75_spill] sm:$0xff]  ;;  %v1711_v63 = vsel %vm1705_vm6, %v1678_v4, %v4966_v38  ;;  %v4973_v4 = vld [vmem:[#allocation80_spill] sm:$0xff] }
 0x232   : > { %v1332_v33 = vpop.permute.xlu2 %1331  ;;  %v1743_v54 = vsel %vm1738_vm7, %v1710_v36, %v3652_v43  ;;  %v4961_v43 = vld [vmem:[#allocation36_spill] sm:$0xff]  ;;  %v4968_v32 = vld [vmem:[#allocation167_spill] sm:$0xff]  ;;  %1990 = vmatpush.msra.mxu0 %v1875_v30 }
 0x233   : > { %v4060_v31 = vsel %vm1771_vm8, %v3723_v0, %v1332_v33  ;;  %v1312_v60 = vpop.permute.xlu1 %1311  ;;  %v1873_v0 = vld [vmem:[%s4507_s3 + $0x18] sm:$0xff] }
 0x234   : > { %v4068_v34 = vsel %vm1771_vm8, %v1741_v13, %v1312_v60  ;;  %2362 = vmatpush.msra.mxu1 %v1873_v0  ;;  %2363 = vmatpush.msra.mxu2 %v1873_v0  ;;  %v4965_v33 = vld [vmem:[#allocation9_spill] sm:$0xff] }
 0x235   : > { %1514 = vrot.lane.b32.xlu0 %v4956_v50, %s2465_s6  ;;  %v1614_v37 = vsel %vm1606_vm3, %v4965_v33, %v4964_v46  ;;  %2364 = vmatpush.msra.mxu3 %v1873_v0  ;;  %v4967_v60 = vld [vmem:[#allocation113_spill] sm:$0xff]  ;;  %v1744_v50 = vsel %vm1738_vm7, %v1711_v63, %v4968_v32  ;;  %v4974_v33 = vld [vmem:[#allocation14_spill] sm:$0xff]  ;;  %v4979_v32 = vld [vmem:[#allocation79_spill] sm:$0xff] }
 0x236   : > { %2365 = vmatpush.msra.mxu1 %v1872_v62  ;;  %2366 = vmatpush.msra.mxu2 %v1872_v62  ;;  %v1647_v26 = vsel %vm1639_vm4, %v1614_v37, %v4967_v60 }
 0x237   : > { %v1316_v39 = vpop.permute.xlu0 %1315  ;;  %2367 = vmatpush.msra.mxu3 %v1872_v62  ;;  %1991 = vmatpush.msra.mxu0 %v1874_v27 }
 0x238   : > { %v4083_v20 = vsel %vm1771_vm8, %v1743_v54, %v1316_v39  ;;  %1447 = vrot.lane.b32.xlu2 %v4961_v43, %s2464_s30  ;;  %2368 = vmatpush.msra.mxu1 %v1871_v53  ;;  %v1870_v54 = vld [vmem:[%s4507_s3] sm:$0xff]  ;;  %v4969_v39 = vld [vmem:[#allocation141_spill] sm:$0xff] }
 0x239   : > { %1530 = vrot.lane.b32.xlu1 %v4963_v15, %s2465_s6  ;;  %2369 = vmatpush.msra.mxu2 %v1871_v53  ;;  %v1680_v21 = vsel %vm1672_vm5, %v1647_v26, %v4969_v39 }
 0x23a   : > { %v1338_v13 = vpop.permute.xlu2 %1337  ;;  %2371 = vmatpush.msra.mxu1 %v1870_v54  ;;  %2370 = vmatpush.msra.mxu3 %v1871_v53 }
 0x23b   : > { %v4110_v11 = vsel %vm1771_vm8, %v3765_v14, %v1338_v13  ;;  %v1318_v36 = vpop.permute.xlu1 %1317  ;;  %v1713_v14 = vsel %vm1705_vm6, %v1680_v21, %v4971_v45  ;;  %2372 = vmatpush.msra.mxu2 %v1870_v54  ;;  %1992 = vmatpush.msra.mxu0 %v1873_v0  ;;  %v4975_v0 = vld [vmem:[#allocation21_spill] sm:$0xff]  ;;  %v4983_v21 = vld [vmem:[#allocation142_spill] sm:$0xff] }
 0x23c   : > { %v4118_v25 = vsel %vm1771_vm8, %v1744_v50, %v1318_v36  ;;  %v1746_v52 = vsel %vm1738_vm7, %v1713_v14, %v3674_v56  ;;  %2373 = vmatpush.msra.mxu3 %v1870_v54  ;;  %v4977_v13 = vld [vmem:[#allocation65_spill] sm:$0xff]  ;;  %v4980_v50 = vld [vmem:[#allocation12_spill] sm:$0xff]  ;;  %v4984_v14 = vld [vmem:[#allocation74_spill] sm:$0xff] }
 0x23d   : > { %1463 = vrot.lane.b32.xlu0 %v4970_v42, %s2464_s30  ;;  %1993 = vmatpush.msra.mxu0 %v1872_v62 }
 0x23f   : > { %v1322_v43 = vpop.permute.xlu0 %1321  ;;  %1994 = vmatpush.msra.mxu0 %v1871_v53  ;;  %v4976_v53 = vld [vmem:[#allocation120_spill] sm:$0xff] }
 0x240   : > { %v4127_v30 = vsel %vm1771_vm8, %v1746_v52, %v1322_v43  ;;  %1564 = vrot.lane.b32.xlu2 %v4972_v6, %s2465_s6  ;;  %v4985_v43 = vld [vmem:[#allocation168_spill] sm:$0xff] }
 0x241   : > { %1548 = vrot.lane.b32.xlu1 %v4973_v4, %s2465_s6  ;;  %1995 = vmatpush.msra.mxu0 %v1870_v54  ;;  %v4981_v54 = vld [vmem:[#allocation35_spill] sm:$0xff] }
 0x242   : > { %v1356_v15 = vpop.permute.xlu2 %1355 }
 0x243   : > { %v1324_v46 = vpop.permute.xlu1 %1323 }
 0x245   : > { %1415 = vrot.lane.b32.xlu0 %v4974_v33, %s2464_s30  ;;  %v4987_v33 = vld [vmem:[#allocation149_spill] sm:$0xff] }
 0x247   : > { %v1328_v56 = vpop.permute.xlu0 %1327 }
 0x248   : > { %v4137_v27 = vsel %vm1771_vm8, %v3711_v41, %v1328_v56  ;;  %1347 = vrot.lane.b32.xlu2 %v4895_v2, %s2463_s29  ;;  %v4978_v2 = vld [vmem:[#allocation55_spill] sm:$0xff] }
 0x249   : > { %1431 = vrot.lane.b32.xlu1 %v4975_v0, %s2464_s30 }
 0x24a   : > { %v1543_v37 = vpop.permute.xlu2 %1542 }
 0x24b   : > { %v1330_v38 = vpop.permute.xlu1 %1329 }
 0x24c   : > { %v4145_v62 = vsel %vm1771_vm8, %v3628_v24, %v1330_v38  ;;  %v1615_v24 = vsel %vm1606_vm3, %v4980_v50, %v4979_v32  ;;  %v4990_v32 = vld [vmem:[#allocation16_spill] sm:$0xff] }
 0x24d   : > { %1363 = vrot.lane.b32.xlu0 %v4976_v53, %s2463_s29 }
 0x24f   : > { %v1334_v63 = vpop.permute.xlu0 %1333 }
 0x250   : > { %v4151_v41 = vsel %vm1771_vm8, %v3753_v23, %v1334_v63  ;;  %1532 = vrot.lane.b32.xlu2 %v4977_v13, %s2465_s6  ;;  %v4982_v23 = vld [vmem:[#allocation106_spill] sm:$0xff]  ;;  %v4988_v63 = vld [vmem:[#allocation163_spill] sm:$0xff] }
 0x251   : > { %1516 = vrot.lane.b32.xlu1 %v4978_v2, %s2465_s6  ;;  %v1648_v39 = vsel %vm1639_vm4, %v1615_v24, %v4982_v23 }
 0x252   : > { %v1426_v60 = vpop.permute.xlu2 %1425  ;;  %v1681_v42 = vsel %vm1672_vm5, %v1648_v39, %v4983_v21  ;;  %v4992_v21 = vld [vmem:[#allocation122_spill] sm:$0xff] }
 0x253   : > { %v1336_v26 = vpop.permute.xlu1 %1335  ;;  %v1714_v52 = vsel %vm1705_vm6, %v1681_v42, %v4984_v14 }
 0x254   : > { %v4162_v36 = vsel %vm1771_vm8, %v3650_v17, %v1336_v26  ;;  %v1747_v6 = vsel %vm1738_vm7, %v1714_v52, %v4985_v43  ;;  %v4986_v17 = vld [vmem:[#allocation83_spill] sm:$0xff] }
 0x255   : > { %1449 = vrot.lane.b32.xlu0 %v4981_v54, %s2464_s30  ;;  %v1780_v4 = vsel %vm1771_vm8, %v1747_v6, %v1324_v46  ;;  %v4989_v26 = vld [vmem:[#allocation23_spill] sm:$0xff] }
 0x256   : > { %v1813_v56 = vsel %vm1804_vm9, %v1780_v4, %v1426_v60 }
 0x257   : > { %v1340_v45 = vpop.permute.xlu0 %1339 }
 0x258   : > { %1550 = vrot.lane.b32.xlu2 %v4986_v17, %s2465_s6  ;;  %v1788_v13 = vsel %vm1771_vm8, %v3795_v61, %v1340_v45  ;;  %v1796_v61 = vsel %vm1771_vm8, %v3895_v12, %v1356_v15  ;;  %v4994_v12 = vld [vmem:[#allocation147_spill] sm:$0xff]  ;;  %v4996_v17 = vld [vmem:[#allocation88_spill] sm:$0xff] }
 0x259   : > { %1465 = vrot.lane.b32.xlu1 %v4987_v33, %s2464_s30  ;;  %v4995_v15 = vld [vmem:[#allocation39_spill] sm:$0xff] }
 0x25a   : > { %v1527_v0 = vpop.permute.xlu2 %1526 }
 0x25b   : > { %v1342_v38 = vpop.permute.xlu1 %1341  ;;  %v1846_v53 = vsel %vm1837_vm10, %v1813_v56, %v1527_v0 }
 0x25c   : > { %2316 = vmatmul.msk.f32.vlgmr.msra.gmra.mxu1 %vm1883_vm11, %v1846_v53  ;;  %v1789_v33 = vsel %vm1771_vm8, %v3672_v51, %v1342_v38  ;;  %v4997_v53 = vld [vmem:[#allocation15_spill] sm:$0xff]  ;;  %v2417_v51 = vpack.i.bf16 %v4940_v57, %v4885_v1  ;;  %v5000_v57 = vld [vmem:[#allocation56_spill] sm:$0xff] }
 0x25d   : > { %1566 = vrot.lane.b32.xlu0 %v4988_v63, %s2465_s6 }
 0x25f   : > { %v1442_v2 = vpop.permute.xlu0 %1441 }
 0x260   : > { %v1821_v46 = vsel %vm1804_vm9, %v1788_v13, %v1442_v2  ;;  %1433 = vrot.lane.b32.xlu2 %v4989_v26, %s2464_s30 }
 0x261   : > { %v1854_v60 = vsel %vm1837_vm10, %v1821_v46, %v1543_v37  ;;  %1417 = vrot.lane.b32.xlu1 %v4990_v32, %s2464_s30  ;;  %v4991_v37 = vld [vmem:[#allocation54_spill] sm:$0xff]  ;;  %v4999_v46 = vld [vmem:[#allocation25_spill] sm:$0xff] }
 0x262   : > { %2324 = vmatmul.msk.f32.vlgmr.msra.gmra.mxu2 %vm1883_vm11, %v1854_v60  ;;  %v1545_v50 = vpop.permute.xlu2 %1544 }
 0x263   : > { %v1458_v24 = vpop.permute.xlu1 %1457 }
 0x264   : > { %v1829_v54 = vsel %vm1804_vm9, %v1796_v61, %v1458_v24 }
 0x265   : > { %1349 = vrot.lane.b32.xlu0 %v4903_v40, %s2463_s29  ;;  %v4993_v40 = vld [vmem:[#allocation70_spill] sm:$0xff] }
 0x267   : > { %v1559_v23 = vpop.permute.xlu0 %1558 }
 0x268   : > { %v1862_v39 = vsel %vm1837_vm10, %v1829_v54, %v1559_v23  ;;  %1518 = vrot.lane.b32.xlu2 %v4991_v37, %s2465_s6  ;;  %v5001_v54 = vld [vmem:[#allocation42_spill] sm:$0xff]  ;;  %v5002_v23 = vld [vmem:[#allocation68_spill] sm:$0xff] }
 0x269   : > { %2332 = vmatmul.msk.f32.vlgmr.msra.gmra.mxu3 %vm1883_vm11, %v1862_v39  ;;  %1365 = vrot.lane.b32.xlu1 %v4992_v21, %s2463_s29  ;;  %v5003_v37 = vld [vmem:[#allocation4_spill] sm:$0xff] }
 0x26a   : > { %v1428_v42 = vpop.permute.xlu2 %1427 }
 0x26b   : > { %v1410_v45 = vpop.permute.xlu1 %1409 }
 0x26c   : > { %v1805_v43 = vsel %vm1804_vm9, %v3876_v47, %v1410_v45  ;;  %v4998_v47 = vld [vmem:[#allocation164_spill] sm:$0xff] }
 0x26d   : > { %1534 = vrot.lane.b32.xlu0 %v4993_v40, %s2465_s6  ;;  %v5004_v40 = vld [vmem:[#allocation34_spill] sm:$0xff] }
 0x26f   : > { %v1358_v14 = vpop.permute.xlu0 %1357 }
 0x270   : > { %1467 = vrot.lane.b32.xlu2 %v4994_v12, %s2464_s30  ;;  %v1797_v38 = vsel %vm1771_vm8, %v3925_v55, %v1358_v14  ;;  %v5005_v14 = vld [vmem:[#allocation86_spill] sm:$0xff] }
 0x271   : > { %1451 = vrot.lane.b32.xlu1 %v4995_v15, %s2464_s30 }
 0x272   : > { %v1513_v52 = vpop.permute.xlu2 %1512 }
 0x273   : > { %v1511_v6 = vpop.permute.xlu1 %1510 }
 0x274   : > { %v1838_v4 = vsel %vm1837_vm10, %v1805_v43, %v1511_v6 }
 0x275   : > { %1552 = vrot.lane.b32.xlu0 %v4996_v17, %s2465_s6  ;;  %2308 = vmatmul.msk.f32.vlgmr.msra.gmra.mxu0 %vm1883_vm11, %v1838_v4  ;;  %v5007_v4 = vld [vmem:[#allocation24_spill] sm:$0xff] }
 0x277   : > { %v1444_v56 = vpop.permute.xlu0 %1443 }
 0x278   : > { %v1822_v0 = vsel %vm1804_vm9, %v1789_v33, %v1444_v56  ;;  %1419 = vrot.lane.b32.xlu2 %v4997_v53, %s2464_s30 }
 0x279   : > { %v1855_v63 = vsel %vm1837_vm10, %v1822_v0, %v1545_v50  ;;  %1568 = vrot.lane.b32.xlu1 %v4998_v47, %s2465_s6  ;;  %v5008_v0 = vld [vmem:[#allocation59_spill] sm:$0xff] }
 0x27a   : > { %2325 = vmatmul.msk.f32.gmra.mxu2 %vm1883_vm11, %v1855_v63  ;;  %v1462_v13 = vpop.permute.xlu2 %1461  ;;  %v5009_v63 = vld [vmem:[#allocation41_spill] sm:$0xff] }
 0x27b   : > { %v1460_v2 = vpop.permute.xlu1 %1459 }
 0x27c   : > { %v1830_v26 = vsel %vm1804_vm9, %v1797_v38, %v1460_v2 }
 0x27d   : > { %1435 = vrot.lane.b32.xlu0 %v4999_v46, %s2464_s30  ;;  %v5011_v46 = vld [vmem:[#allocation89_spill] sm:$0xff] }
 0x27f   : > { %v1561_v60 = vpop.permute.xlu0 %1560 }
 0x280   : > { %v1863_v32 = vsel %vm1837_vm10, %v1830_v26, %v1561_v60  ;;  %2418 = vrot.lane.b32.xlu2 %v2417_v51, %s2463_s29  ;;  %v5012_v26 = vld [vmem:[#allocation26_spill] sm:$0xff]  ;;  %v5013_v60 = vld [vmem:[#allocation19_spill] sm:$0xff] }
 0x281   : > { %2333 = vmatmul.msk.f32.gmra.mxu3 %vm1883_vm11, %v1863_v32  ;;  %1351 = vrot.lane.b32.xlu1 %v4863_v19, %s2463_s29 }
 0x282   : > { %v1414_v50 = vpop.permute.xlu2 %1413 }
 0x283   : > { %v1412_v24 = vpop.permute.xlu1 %1411 }
 0x284   : > { %v1806_v1 = vsel %vm1804_vm9, %v4033_v8, %v1412_v24  ;;  %v1814_v8 = vsel %vm1804_vm9, %v4010_v3, %v1428_v42 }
 0x285   : > { %1520 = vrot.lane.b32.xlu0 %v5000_v57, %s2465_s6  ;;  %v1839_v55 = vsel %vm1837_vm10, %v1806_v1, %v1513_v52  ;;  %v5006_v52 = vld [vmem:[#allocation17_spill] sm:$0xff]  ;;  %v5014_v1 = vld [vmem:[#allocation58_spill] sm:$0xff] }
 0x286   : > { %2309 = vmatmul.msk.f32.gmra.mxu0 %vm1883_vm11, %v1839_v55 }
 0x287   : > { %v1344_v61 = vpop.permute.xlu0 %1343 }
 0x288   : > { %1453 = vrot.lane.b32.xlu2 %v5001_v54, %s2464_s30  ;;  %v1790_v43 = vsel %vm1771_vm8, %v3807_v49, %v1344_v61 }
 0x289   : > { %1536 = vrot.lane.b32.xlu1 %v5002_v23, %s2465_s6  ;;  %v5015_v23 = vld [vmem:[#allocation76_spill] sm:$0xff] }
 0x28a   : > { %v1362_v19 = vpop.permute.xlu2 %1361 }
 0x28b   : > { %v1360_v39 = vpop.permute.xlu1 %1359  ;;  %v1799_v57 = vsel %vm1771_vm8, %v3939_v16, %v1362_v19 }
 0x28c   : > { %v1798_v17 = vsel %vm1771_vm8, %v3790_v9, %v1360_v39 }
 0x28d   : > { %2423 = vrot.lane.b32.xlu0 %v5003_v37, %s2464_s30  ;;  %v1831_v49 = vsel %vm1804_vm9, %v1798_v17, %v1462_v13  ;;  %v1807_v13 = vsel %vm1804_vm9, %v4068_v34, %v1414_v50 }
 0x28f   : > { %v1529_v21 = vpop.permute.xlu0 %1528 }
 0x290   : > { %v1847_v45 = vsel %vm1837_vm10, %v1814_v8, %v1529_v21  ;;  %2428 = vrot.lane.b32.xlu2 %v5004_v40, %s2465_s6 }
 0x291   : > { %2317 = vmatmul.msk.f32.gmra.mxu1 %vm1883_vm11, %v1847_v45  ;;  %1554 = vrot.lane.b32.xlu1 %v5005_v14, %s2465_s6 }
 0x292   : > { %v1448_v12 = vpop.permute.xlu2 %1447 }
 0x293   : > { %v1446_v15 = vpop.permute.xlu1 %1445 }
 0x294   : > { %v1823_v3 = vsel %vm1804_vm9, %v1790_v43, %v1446_v15 }
 0x295   : > { %1421 = vrot.lane.b32.xlu0 %v5006_v52, %s2464_s30 }
 0x297   : > { %v1547_v42 = vpop.permute.xlu0 %1546 }
 0x298   : > { %v1856_v6 = vsel %vm1837_vm10, %v1823_v3, %v1547_v42  ;;  %1353 = vrot.lane.b32.xlu2 %v4911_v29, %s2463_s29  ;;  %v5010_v29 = vld [vmem:[#allocation71_spill] sm:$0xff] }
 0x299   : > { %2326 = vmatmul.msk.f32.gmra.mxu2 %vm1883_vm11, %v1856_v6  ;;  %1437 = vrot.lane.b32.xlu1 %v5007_v4, %s2464_s30 }
 0x29a   : > { %v1565_v33 = vpop.permute.xlu2 %1564 }
 0x29b   : > { %v1563_v56 = vpop.permute.xlu1 %1562 }
 0x29c   : > { %v1864_v53 = vsel %vm1837_vm10, %v1831_v49, %v1563_v56 }
 0x29d   : > { %1522 = vrot.lane.b32.xlu0 %v5008_v0, %s2465_s6  ;;  %2334 = vmatmul.msk.f32.gmra.mxu3 %vm1883_vm11, %v1864_v53 }
 0x29f   : > { %v1430_v9 = vpop.permute.xlu0 %1429 }
 0x2a0   : > { %1455 = vrot.lane.b32.xlu2 %v5009_v63, %s2464_s30  ;;  %v1815_v32 = vsel %vm1804_vm9, %v4137_v27, %v1430_v9 }
 0x2a1   : > { %1538 = vrot.lane.b32.xlu1 %v5010_v29, %s2465_s6 }
 0x2a2   : > { %v1348_v47 = vpop.permute.xlu2 %1347 }
 0x2a3   : > { %v1346_v2 = vpop.permute.xlu1 %1345  ;;  %v1792_v43 = vsel %vm1771_vm8, %v3706_v48, %v1348_v47 }
 0x2a4   : > { %v1791_v54 = vsel %vm1771_vm8, %v3839_v18, %v1346_v2 }
 0x2a5   : > { %1556 = vrot.lane.b32.xlu0 %v5011_v46, %s2465_s6  ;;  %v1824_v37 = vsel %vm1804_vm9, %v1791_v54, %v1448_v12 }
 0x2a7   : > { %v1515_v51 = vpop.permute.xlu0 %1514 }
 0x2a8   : > { %v1840_v38 = vsel %vm1837_vm10, %v1807_v13, %v1515_v51  ;;  %1439 = vrot.lane.b32.xlu2 %v5012_v26, %s2464_s30 }
 0x2a9   : > { %2310 = vmatmul.msk.f32.gmra.mxu0 %vm1883_vm11, %v1840_v38  ;;  %1423 = vrot.lane.b32.xlu1 %v5013_v60, %s2464_s30 }
 0x2aa   : > { %v1533_v50 = vpop.permute.xlu2 %1532 }
 0x2ab   : > { %v1531_v24 = vpop.permute.xlu1 %1530 }
 0x2ac   : > { %v1848_v34 = vsel %vm1837_vm10, %v1815_v32, %v1531_v24 }
 0x2ad   : > { %1524 = vrot.lane.b32.xlu0 %v5014_v1, %s2465_s6  ;;  %2318 = vmatmul.msk.f32.gmra.mxu1 %vm1883_vm11, %v1848_v34 }
 0x2af   : > { %v1464_v55 = vpop.permute.xlu0 %1463 }
 0x2b0   : > { %v1832_v61 = vsel %vm1804_vm9, %v1799_v57, %v1464_v55 }
 0x2b1   : > { %v1865_v27 = vsel %vm1837_vm10, %v1832_v61, %v1565_v33  ;;  %1540 = vrot.lane.b32.xlu1 %v5015_v23, %s2465_s6 }
 0x2b2   : > { %2335 = vmatmul.msk.f32.gmra.mxu3 %vm1883_vm11, %v1865_v27  ;;  %v1551_v19 = vpop.permute.xlu2 %1550 }
 0x2b3   : > { %v1549_v39 = vpop.permute.xlu1 %1548 }
 0x2b4   : > { %v1857_v8 = vsel %vm1837_vm10, %v1824_v37, %v1549_v39 }
 0x2b5   : > { %2327 = vmatmul.msk.f32.gmra.mxu2 %vm1883_vm11, %v1857_v8 }
 0x2b7   : > { %v1416_v16 = vpop.permute.xlu0 %1415 }
 0x2b8   : > { %v1808_v15 = vsel %vm1804_vm9, %v3920_v5, %v1416_v16 }
 0x2ba   : > { %v1434_v14 = vpop.permute.xlu2 %1433 }
 0x2bb   : > { %v1432_v21 = vpop.permute.xlu1 %1431  ;;  %v1817_v2 = vsel %vm1804_vm9, %v4060_v31, %v1434_v14 }
 0x2bc   : > { %v1816_v18 = vsel %vm1804_vm9, %v4145_v62, %v1432_v21 }
 0x2bd   : > { %v1849_v45 = vsel %vm1837_vm10, %v1816_v18, %v1533_v50 }
 0x2be   : > { %2319 = vmatmul.msk.f32.gmra.mxu1 %vm1883_vm11, %v1849_v45 }
 0x2bf   : > { %v1364_v40 = vpop.permute.xlu0 %1363 }
 0x2c0   : > { %v1800_v5 = vsel %vm1771_vm8, %v3969_v28, %v1364_v40  ;;  %v4332_v28 = vld [vmem:[%s4508_s4] ss:$0 sm:$0xff] }
 0x2c2   : > { %v1519_v6 = vpop.permute.xlu2 %1518 }
 0x2c3   : > { %v1517_v12 = vpop.permute.xlu1 %1516 }
 0x2c4   : > { %v1841_v52 = vsel %vm1837_vm10, %v1808_v15, %v1517_v12 }
 0x2c5   : > { %2311 = vmatmul.msk.f32.gmra.mxu0 %vm1883_vm11, %v1841_v52 }
 0x2c7   : > { %v1450_v3 = vpop.permute.xlu0 %1449 }
 0x2c8   : > { %v1825_v62 = vsel %vm1804_vm9, %v1792_v43, %v1450_v3 }
 0x2c9   : > { %v1858_v42 = vsel %vm1837_vm10, %v1825_v62, %v1551_v19 }
 0x2ca   : > { %2328 = vmatmul.msk.f32.gmra.mxu2 %vm1883_vm11, %v1858_v42  ;;  %v1468_v0 = vpop.permute.xlu2 %1467 }
 0x2cb   : > { %v1466_v17 = vpop.permute.xlu1 %1465 }
 0x2cc   : > { %v1833_v4 = vsel %vm1804_vm9, %v1800_v5, %v1466_v17 }
 0x2cf   : > { %v1567_v33 = vpop.permute.xlu0 %1566 }
 0x2d0   : > { %v1866_v56 = vsel %vm1837_vm10, %v1833_v4, %v1567_v33 }
 0x2d1   : > { %2336 = vmatmul.msk.f32.gmra.mxu3 %vm1883_vm11, %v1866_v56 }
 0x2d2   : > { %v1420_v13 = vpop.permute.xlu2 %1419 }
 0x2d3   : > { %v1418_v48 = vpop.permute.xlu1 %1417  ;;  %v1810_v21 = vsel %vm1804_vm9, %v4118_v25, %v1420_v13 }
 0x2d4   : > { %v1809_v49 = vsel %vm1804_vm9, %v4083_v20, %v1418_v48 }
 0x2d5   : > { %v1842_v53 = vsel %vm1837_vm10, %v1809_v49, %v1519_v6 }
 0x2d6   : > { %2312 = vmatmul.msk.f32.gmra.mxu0 %vm1883_vm11, %v1842_v53 }
 0x2d7   : > { %v1350_v9 = vpop.permute.xlu0 %1349 }
 0x2d8   : > { %v1793_v60 = vsel %vm1771_vm8, %v3851_v7, %v1350_v9 }
 0x2d9   : > { %v2021_v63 = vpop.f32.mrf.mxu1 }
 0x2da   : > { %v2022_v29 = vadd.f32 %v4332_v28, %v2021_v63  ;;  %v2419_v57 = vpop.permute.xlu2 %2418 }
 0x2db   : > { %v1366_v20 = vpop.permute.xlu1 %1365  ;;  %v2420_v15 = vunpack.i.l.bf16 %v2419_v57  ;;  %v2421_v4 = vunpack.i.h.bf16 %v2419_v57 }
 0x2dc   : > { %v2101_v47 = vmax.f32 %v2022_v29, 0.0  ;;  %v1801_v50 = vsel %vm1771_vm8, %v3834_v44, %v1366_v20 }
 0x2dd   : > { %v1834_v61 = vsel %vm1804_vm9, %v1801_v50, %v1468_v0 }
 0x2de   : > { %2133 = vst.msk [vmem:[%s4340_s7 + $0x40] sm:$0xff] %vm1606_vm3, %v2101_v47  ;;  %v1803_v47 = vsel %vm1771_vm8, %v4018_v35, %v2421_v4 }
 0x2df   : > { %v1535_v46 = vpop.permute.xlu0 %1534 }
 0x2e0   : > { %v1850_v51 = vsel %vm1837_vm10, %v1817_v2, %v1535_v46 }
 0x2e1   : > { %2320 = vmatmul.msk.f32.gmra.mxu1 %vm1883_vm11, %v1850_v51 }
 0x2e2   : > { %v1454_v37 = vpop.permute.xlu2 %1453 }
 0x2e3   : > { %v1452_v38 = vpop.permute.xlu1 %1451 }
 0x2e4   : > { %v1826_v24 = vsel %vm1804_vm9, %v1793_v60, %v1452_v38 }
 0x2e5   : > { %v2045_v26 = vpop.f32.mrf.mxu2 }
 0x2e6   : > { %v2046_v32 = vadd.f32 %v4332_v28, %v2045_v26 }
 0x2e7   : > { %v1553_v31 = vpop.permute.xlu0 %1552 }
 0x2e8   : > { %v2109_v1 = vmax.f32 %v2046_v32, 0.0  ;;  %v1859_v34 = vsel %vm1837_vm10, %v1826_v24, %v1553_v31 }
 0x2e9   : > { %2329 = vmatmul.msk.f32.gmra.mxu2 %vm1883_vm11, %v1859_v34 }
 0x2ea   : > { %2141 = vst.msk [vmem:[%s4340_s7 + $0x80] sm:$0xff] %vm1606_vm3, %v2109_v1  ;;  %v2429_v43 = vpop.permute.xlu2 %2428 }
 0x2eb   : > { %v1569_v55 = vpop.permute.xlu1 %1568  ;;  %v2430_v3 = vunpack.i.l.bf16 %v2429_v43  ;;  %v2431_v63 = vunpack.i.h.bf16 %v2429_v43 }
 0x2ec   : > { %v2069_v7 = vpop.f32.mrf.mxu3  ;;  %v1867_v27 = vsel %vm1837_vm10, %v1834_v61, %v1569_v55 }
 0x2ed   : > { %v2070_v54 = vadd.f32 %v4332_v28, %v2069_v7  ;;  %2337 = vmatmul.msk.f32.gmra.mxu3 %vm1883_vm11, %v1867_v27 }
 0x2ef   : > { %v2117_v23 = vmax.f32 %v2070_v54, 0.0  ;;  %v1436_v39 = vpop.permute.xlu0 %1435 }
 0x2f0   : > { %v1818_v40 = vsel %vm1804_vm9, %v4151_v41, %v1436_v39  ;;  %v1802_v41 = vsel %vm1771_vm8, %v3985_v10, %v2420_v15 }
 0x2f1   : > { %2149 = vst.msk [vmem:[%s4340_s7 + $0xc0] sm:$0xff] %vm1606_vm3, %v2117_v23 }
 0x2f2   : > { %v1997_v44 = vpop.f32.mrf.mxu0  ;;  %v1354_v13 = vpop.permute.xlu2 %1353 }
 0x2f3   : > { %v1998_v8 = vadd.f32 %v4332_v28, %v1997_v44  ;;  %v1352_v16 = vpop.permute.xlu1 %1351 }
 0x2f4   : > { %v1794_v17 = vsel %vm1771_vm8, %v3881_v58, %v1352_v16 }
 0x2f5   : > { %v2093_v19 = vmax.f32 %v1998_v8, 0.0  ;;  %v1827_v0 = vsel %vm1804_vm9, %v1794_v17, %v1454_v37 }
 0x2f7   : > { %v1521_v18 = vpop.permute.xlu0 %1520  ;;  %2125 = vst.msk [vmem:[%s4340_s7] sm:$0xff] %vm1606_vm3, %v2093_v19 }
 0x2f8   : > { %v1843_v45 = vsel %vm1837_vm10, %v1810_v21, %v1521_v18 }
 0x2f9   : > { %2313 = vmatmul.msk.f32.gmra.mxu0 %vm1883_vm11, %v1843_v45 }
 0x2fa   : > { %v1456_v1 = vpop.permute.xlu2 %1455 }
 0x2fb   : > { %v1537_v14 = vpop.permute.xlu1 %1536 }
 0x2fc   : > { %v1851_v12 = vsel %vm1837_vm10, %v1818_v40, %v1537_v14 }
 0x2fd   : > { %v2048_v52 = vpop.f32.mrf.mxu2  ;;  %2321 = vmatmul.msk.f32.gmra.mxu1 %vm1883_vm11, %v1851_v12 }
 0x2fe   : > { %v2049_v25 = vadd.f32 %v4332_v28, %v2048_v52 }
 0x2ff   : > { %v2424_v62 = vpop.permute.xlu0 %2423 }
 0x300   : > { %v2110_v42 = vmax.f32 %v2049_v25, 0.0  ;;  %v2425_v6 = vunpack.i.l.bf16 %v2424_v62  ;;  %v2426_v56 = vunpack.i.h.bf16 %v2424_v62 }
 0x302   : > { %2142 = vst.msk [vmem:[%s4340_s7 + $0x88] sm:$0xff] %vm1606_vm3, %v2110_v42  ;;  %v1835_v5 = vsel %vm1804_vm9, %v1802_v41, %v2425_v6  ;;  %v1836_v46 = vsel %vm1804_vm9, %v1803_v47, %v2426_v56  ;;  %v1440_v37 = vpop.permute.xlu2 %1439 }
 0x303   : > { %v1868_v33 = vsel %vm1837_vm10, %v1835_v5, %v2430_v3  ;;  %v1555_v48 = vpop.permute.xlu1 %1554  ;;  %v2000_v49 = vpop.f32.mrf.mxu0  ;;  %v1869_v51 = vsel %vm1837_vm10, %v1836_v46, %v2431_v63  ;;  %v1820_v19 = vsel %vm1804_vm9, %v4110_v11, %v1440_v37 }
 0x304   : > { %2338 = vmatmul.msk.f32.gmra.mxu3 %vm1883_vm11, %v1868_v33  ;;  %v2001_v58 = vadd.f32 %v4332_v28, %v2000_v49  ;;  %v2072_v53 = vpop.f32.mrf.mxu3  ;;  %v1860_v10 = vsel %vm1837_vm10, %v1827_v0, %v1555_v48 }
 0x305   : > { %v2073_v9 = vadd.f32 %v4332_v28, %v2072_v53  ;;  %2330 = vmatmul.msk.f32.gmra.mxu2 %vm1883_vm11, %v1860_v10 }
 0x306   : > { %v2094_v29 = vmax.f32 %v2001_v58, 0.0 }
 0x307   : > { %v1422_v20 = vpop.permute.xlu0 %1421  ;;  %v2118_v2 = vmax.f32 %v2073_v9, 0.0 }
 0x308   : > { %2126 = vst.msk [vmem:[%s4340_s7 + $0x8] sm:$0xff] %vm1606_vm3, %v2094_v29  ;;  %v1811_v60 = vsel %vm1804_vm9, %v3964_v22, %v1422_v20  ;;  %v1795_v22 = vsel %vm1771_vm8, %v3748_v59, %v1354_v13 }
 0x309   : > { %2150 = vst.msk [vmem:[%s4340_s7 + $0xc8] sm:$0xff] %vm1606_vm3, %v2118_v2  ;;  %v1828_v55 = vsel %vm1804_vm9, %v1795_v22, %v1456_v1 }
 0x30b   : > { %v1438_v38 = vpop.permute.xlu1 %1437 }
 0x30c   : > { %2339 = vmatmul.msk.f32.gmra.mxu3 %vm1883_vm11, %v1869_v51  ;;  %v1819_v34 = vsel %vm1804_vm9, %v4162_v36, %v1438_v38 }
 0x30e   : > { %v2024_v26 = vpop.f32.mrf.mxu1 }
 0x30f   : > { %v2025_v35 = vadd.f32 %v4332_v28, %v2024_v26  ;;  %v1523_v32 = vpop.permute.xlu0 %1522 }
 0x310   : > { %v1844_v24 = vsel %vm1837_vm10, %v1811_v60, %v1523_v32 }
 0x311   : > { %v2102_v31 = vmax.f32 %v2025_v35, 0.0  ;;  %2314 = vmatmul.msk.f32.gmra.mxu0 %vm1883_vm11, %v1844_v24 }
 0x313   : > { %2134 = vst.msk [vmem:[%s4340_s7 + $0x48] sm:$0xff] %vm1606_vm3, %v2102_v31  ;;  %v1539_v50 = vpop.permute.xlu1 %1538 }
 0x314   : > { %v1852_v57 = vsel %vm1837_vm10, %v1819_v34, %v1539_v50 }
 0x315   : > { %2322 = vmatmul.msk.f32.gmra.mxu1 %vm1883_vm11, %v1852_v57 }
 0x317   : > { %v1557_v7 = vpop.permute.xlu0 %1556 }
 0x318   : > { %v1861_v61 = vsel %vm1837_vm10, %v1828_v55, %v1557_v7 }
 0x319   : > { %2331 = vmatmul.msk.f32.gmra.mxu2 %vm1883_vm11, %v1861_v61 }
 0x31b   : > { %v1424_v54 = vpop.permute.xlu1 %1423 }
 0x31c   : > { %v2051_v27 = vpop.f32.mrf.mxu2  ;;  %v1812_v23 = vsel %vm1804_vm9, %v4127_v30, %v1424_v54 }
 0x31d   : > { %v2052_v36 = vadd.f32 %v4332_v28, %v2051_v27 }
 0x31f   : > { %v2111_v39 = vmax.f32 %v2052_v36, 0.0  ;;  %v1525_v44 = vpop.permute.xlu0 %1524 }
 0x320   : > { %v1845_v59 = vsel %vm1837_vm10, %v1812_v23, %v1525_v44  ;;  %v2075_v8 = vpop.f32.mrf.mxu3 }
 0x321   : > { %2143 = vst.msk [vmem:[%s4340_s7 + $0x90] sm:$0xff] %vm1606_vm3, %v2111_v39  ;;  %2315 = vmatmul.msk.f32.gmra.mxu0 %vm1883_vm11, %v1845_v59  ;;  %v2076_v16 = vadd.f32 %v4332_v28, %v2075_v8 }
 0x323   : > { %v2119_v21 = vmax.f32 %v2076_v16, 0.0  ;;  %v1541_v18 = vpop.permute.xlu1 %1540 }
 0x324   : > { %v1853_v30 = vsel %vm1837_vm10, %v1820_v19, %v1541_v18 }
 0x325   : > { %2151 = vst.msk [vmem:[%s4340_s7 + $0xd0] sm:$0xff] %vm1606_vm3, %v2119_v21  ;;  %2323 = vmatmul.msk.f32.gmra.mxu1 %vm1883_vm11, %v1853_v30 }
 0x326   : > { %v2003_v45 = vpop.f32.mrf.mxu0 }
 0x327   : > { %v2004_v40 = vadd.f32 %v4332_v28, %v2003_v45 }
 0x329   : > { %v2095_v14 = vmax.f32 %v2004_v40, 0.0 }
 0x32a   : > { %v2027_v15 = vpop.f32.mrf.mxu1 }
 0x32b   : > { %2127 = vst.msk [vmem:[%s4340_s7 + $0x10] sm:$0xff] %vm1606_vm3, %v2095_v14  ;;  %v2028_v11 = vadd.f32 %v4332_v28, %v2027_v15 }
 0x32d   : > { %v2103_v12 = vmax.f32 %v2028_v11, 0.0 }
 0x32f   : > { %2135 = vst.msk [vmem:[%s4340_s7 + $0x50] sm:$0xff] %vm1606_vm3, %v2103_v12 }
 0x335   : > { %v2078_v52 = vpop.f32.mrf.mxu3 }
 0x336   : > { %v2079_v43 = vadd.f32 %v4332_v28, %v2078_v52 }
 0x338   : > { %v2120_v25 = vmax.f32 %v2079_v43, 0.0  ;;  %v2054_v3 = vpop.f32.mrf.mxu2 }
 0x339   : > { %v2055_v62 = vadd.f32 %v4332_v28, %v2054_v3 }
 0x33a   : > { %2152 = vst.msk [vmem:[%s4340_s7 + $0xd8] sm:$0xff] %vm1606_vm3, %v2120_v25 }
 0x33b   : > { %v2112_v42 = vmax.f32 %v2055_v62, 0.0  ;;  %v2030_v6 = vpop.f32.mrf.mxu1 }
 0x33c   : > { %v2031_v17 = vadd.f32 %v4332_v28, %v2030_v6 }
 0x33d   : > { %2144 = vst.msk [vmem:[%s4340_s7 + $0x98] sm:$0xff] %vm1606_vm3, %v2112_v42 }
 0x33e   : > { %v2104_v41 = vmax.f32 %v2031_v17, 0.0 }
 0x340   : > { %2136 = vst.msk [vmem:[%s4340_s7 + $0x58] sm:$0xff] %vm1606_vm3, %v2104_v41 }
 0x342   : > { %v2006_v5 = vpop.f32.mrf.mxu0 }
 0x343   : > { %v2007_v4 = vadd.f32 %v4332_v28, %v2006_v5 }
 0x345   : > { %v2096_v33 = vmax.f32 %v2007_v4, 0.0 }
 0x347   : > { %2128 = vst.msk [vmem:[%s4340_s7 + $0x18] sm:$0xff] %vm1606_vm3, %v2096_v33 }
 0x34d   : > { %v2057_v56 = vpop.f32.mrf.mxu2 }
 0x34e   : > { %v2058_v48 = vadd.f32 %v4332_v28, %v2057_v56 }
 0x350   : > { %v2113_v49 = vmax.f32 %v2058_v48, 0.0 }
 0x352   : > { %2145 = vst.msk [vmem:[%s4340_s7 + $0xa0] sm:$0xff] %vm1606_vm3, %v2113_v49 }
 0x353   : > { %v2009_v0 = vpop.f32.mrf.mxu0 }
 0x354   : > { %v2081_v58 = vpop.f32.mrf.mxu3  ;;  %v2010_v53 = vadd.f32 %v4332_v28, %v2009_v0 }
 0x355   : > { %v2082_v10 = vadd.f32 %v4332_v28, %v2081_v58 }
 0x356   : > { %v2097_v9 = vmax.f32 %v2010_v53, 0.0 }
 0x357   : > { %v2121_v63 = vmax.f32 %v2082_v10, 0.0 }
 0x358   : > { %2129 = vst.msk [vmem:[%s4340_s7 + $0x20] sm:$0xff] %vm1606_vm3, %v2097_v9 }
 0x359   : > { %2153 = vst.msk [vmem:[%s4340_s7 + $0xe0] sm:$0xff] %vm1606_vm3, %v2121_v63 }
 0x35e   : > { %v2033_v29 = vpop.f32.mrf.mxu1 }
 0x35f   : > { %v2034_v20 = vadd.f32 %v4332_v28, %v2033_v29 }
 0x361   : > { %v2105_v47 = vmax.f32 %v2034_v20, 0.0 }
 0x363   : > { %2137 = vst.msk [vmem:[%s4340_s7 + $0x60] sm:$0xff] %vm1606_vm3, %v2105_v47 }
 0x36c   : > { %v2060_v2 = vpop.f32.mrf.mxu2 }
 0x36d   : > { %v2061_v46 = vadd.f32 %v4332_v28, %v2060_v2 }
 0x36f   : > { %v2114_v13 = vmax.f32 %v2061_v46, 0.0 }
 0x370   : > { %v2084_v51 = vpop.f32.mrf.mxu3 }
 0x371   : > { %2146 = vst.msk [vmem:[%s4340_s7 + $0xa8] sm:$0xff] %vm1606_vm3, %v2114_v13  ;;  %v2085_v38 = vadd.f32 %v4332_v28, %v2084_v51 }
 0x373   : > { %v2122_v26 = vmax.f32 %v2085_v38, 0.0 }
 0x375   : > { %2154 = vst.msk [vmem:[%s4340_s7 + $0xe8] sm:$0xff] %vm1606_vm3, %v2122_v26 }
 0x376   : > { %v2012_v60 = vpop.f32.mrf.mxu0 }
 0x377   : > { %v2013_v35 = vadd.f32 %v4332_v28, %v2012_v60 }
 0x379   : > { %v2098_v32 = vmax.f32 %v2013_v35, 0.0 }
 0x37a   : > { %v2036_v24 = vpop.f32.mrf.mxu1 }
 0x37b   : > { %2130 = vst.msk [vmem:[%s4340_s7 + $0x28] sm:$0xff] %vm1606_vm3, %v2098_v32  ;;  %v2037_v31 = vadd.f32 %v4332_v28, %v2036_v24 }
 0x37d   : > { %v2106_v1 = vmax.f32 %v2037_v31, 0.0 }
 0x37f   : > { %2138 = vst.msk [vmem:[%s4340_s7 + $0x68] sm:$0xff] %vm1606_vm3, %v2106_v1 }
 0x387   : > { %v2087_v34 = vpop.f32.mrf.mxu3 }
 0x388   : > { %v2088_v50 = vadd.f32 %v4332_v28, %v2087_v34  ;;  %v2063_v57 = vpop.f32.mrf.mxu2 }
 0x389   : > { %v2064_v55 = vadd.f32 %v4332_v28, %v2063_v57 }
 0x38a   : > { %v2123_v22 = vmax.f32 %v2088_v50, 0.0 }
 0x38b   : > { %v2115_v7 = vmax.f32 %v2064_v55, 0.0 }
 0x38c   : > { %2155 = vst.msk [vmem:[%s4340_s7 + $0xf0] sm:$0xff] %vm1606_vm3, %v2123_v22 }
 0x38d   : > { %2147 = vst.msk [vmem:[%s4340_s7 + $0xb0] sm:$0xff] %vm1606_vm3, %v2115_v7 }
 0x38e   : > { %v2015_v61 = vpop.f32.mrf.mxu0 }
 0x38f   : > { %v2016_v54 = vadd.f32 %v4332_v28, %v2015_v61  ;;  %v2090_v27 = vpop.f32.mrf.mxu3 }
 0x390   : > { %v2091_v36 = vadd.f32 %v4332_v28, %v2090_v27 }
 0x391   : > { %v2099_v23 = vmax.f32 %v2016_v54, 0.0 }
 0x392   : > { %v2124_v39 = vmax.f32 %v2091_v36, 0.0  ;;  %v2039_v44 = vpop.f32.mrf.mxu1 }
 0x393   : > { %2131 = vst.msk [vmem:[%s4340_s7 + $0x30] sm:$0xff] %vm1606_vm3, %v2099_v23  ;;  %v2040_v59 = vadd.f32 %v4332_v28, %v2039_v44 }
 0x394   : > { %2156 = vst.msk [vmem:[%s4340_s7 + $0xf8] sm:$0xff] %vm1606_vm3, %v2124_v39 }
 0x395   : > { %v2107_v37 = vmax.f32 %v2040_v59, 0.0 }
 0x397   : > { %2139 = vst.msk [vmem:[%s4340_s7 + $0x70] sm:$0xff] %vm1606_vm3, %v2107_v37 }
 0x39c   : > { %v2066_v8 = vpop.f32.mrf.mxu2 }
 0x39d   : > { %v2067_v16 = vadd.f32 %v4332_v28, %v2066_v8 }
 0x39e   : > { %v2018_v19 = vpop.f32.mrf.mxu0 }
 0x39f   : > { %v2116_v21 = vmax.f32 %v2067_v16, 0.0  ;;  %v2019_v18 = vadd.f32 %v4332_v28, %v2018_v19 }
 0x3a1   : > { %2148 = vst.msk [vmem:[%s4340_s7 + $0xb8] sm:$0xff] %vm1606_vm3, %v2116_v21  ;;  %v2100_v30 = vmax.f32 %v2019_v18, 0.0 }
 0x3a2   : > { %v2042_v45 = vpop.f32.mrf.mxu1 }
 0x3a3   : > { %2132 = vst.msk [vmem:[%s4340_s7 + $0x38] sm:$0xff] %vm1606_vm3, %v2100_v30  ;;  %v2043_v40 = vadd.f32 %v4332_v28, %v2042_v45 }
 0x3a5   : > { %v2108_v14 = vmax.f32 %v2043_v40, 0.0 }
 0x3a7   : > { %2140 = vst.msk [vmem:[%s4340_s7 + $0x78] sm:$0xff] %vm1606_vm3, %v2108_v14 }
 0x3a8 PF: > { %s15_s20 = sadd.s32 1, %s2455_s20   ;;  %s5016_s18 = smov %s2451_s19 }
 0x3a9   : > { %p12_p5 = scmp.ge.s32.totalorder %s15_s20, 4   ;;  %s5017_s19 = smov %s5019_s1 }
 0x3ab   :  { %14 = sbr.rel (!%p12_p5) target bundleno = 2 (0x2), region = 76 }

// kernel: upconv_forward.4
= control target key start
LH: loop header
LB: loop body
LE: loop exit
PB: predicated region body
PF: predicated region fallthrough
CT: control target
= control target key end

     0   :  { %s4645_s26 = smov 0   ;;  %s4647_s2 = smov 0   ;;  %s9205_s0 = inlined_call_operand.vmem [shape: f32[2,16,16,4], index: 0, kind: input, shape index: {}, may-alias: {0,1,2}]   ;;  %s9206_s1 = inlined_call_operand.vmem [shape: f32[2,16,16,4], index: 1, kind: input, shape index: {}, may-alias: {0,1,2}]   ;;  %s9207_s2 = inlined_call_operand.vmem [shape: f32[2,16,16,4], index: 2, kind: input, shape index: {}, may-alias: {0,1,2}]   ;;  %s9208_s3 = inlined_call_operand.vmem [shape: f32[2,16,16,4], index: 3, kind: input, shape index: {}, may-alias: {3,4,5}]   ;;  %s9209_s4 = inlined_call_operand.vmem [shape: f32[2,16,16,4], index: 4, kind: input, shape index: {}, may-alias: {3,4,5}]   ;;  %s9210_s5 = inlined_call_operand.vmem [shape: f32[2,16,16,4], index: 5, kind: input, shape index: {}, may-alias: {3,4,5}]   ;;  %s9211_s6 = inlined_call_operand.vmem [shape: f32[72,8], index: 6, kind: input, shape index: {}]   ;;  %s9212_s7 = inlined_call_operand.vmem [shape: f32[1,8], index: 7, kind: input, shape index: {}]   ;;  %s9213_s8 = inlined_call_operand.vmem [shape: f32[2,16,16,8], index: 8, kind: output, shape index: {}]  }
   0x1   :  { %s4649_s27 = smov 0  }
   0x2 LB: > { %s30_s4 = sadd.s32 1, %s4577_s2  ;;  %p4387_p0 = scmp.ge.s32.totalorder %s4581_s27, 1  ;;  %s4581_s27 = sphi %s4649_s27, %s18_s27   ;;  %s4577_s2 = sphi %s4647_s2, %s10748_s2   ;;  %s4573_s26 = sphi %s4645_s26, %s10747_s26  }
   0x3   : > { %p32_p1 = scmp.ge.s32.totalorder %s30_s4, 2  ;;  %p430_p2 = scmp.lt.s32.totalorder %s4581_s27, 3 }
   0x5   : > { %s10750_s4 = smov (%p32_p1, %s30_s4), 0  ;;  %p431_p3 = pnand %p4387_p0, %p430_p2 }
   0x7   : > { %434 = sbr.rel (%p431_p3) target bundleno = 1815 (0x717), region = 52 }
   0xc   : > { %vm721_vm0 = vcmask 1040384   ;;  %p537_p4 = scmp.lt.s32.totalorder %s4573_s26, 1  ;;  %v4583_v0 = vmov 0.0   ;;  %vm1114_vm1 = vcmask 1046528   ;;  %s4584_s9 = smov 4   ;;  %vm1291_vm2 = vcmask 1045504  }
   0xd   : > { %v4663_v1 = vrot.slane %v4583_v0, 7  ;;  %s4585_s10 = smov 8   ;;  %s4586_s11 = smov 12   ;;  %vm2945_vm3 = vcmask 31744   ;;  %vm2978_vm4 = vcmask 64512   ;;  %vm3011_vm5 = vcmask 97280  }
   0xe   : > { %s10752_s26 = smov (!%p537_p4, %s4573_s26), 1  ;;  %s4587_s12 = smov 16   ;;  %vm3044_vm6 = vcmask 130048   ;;  %vm9506_vm7 = vcmask 162816   ;;  %vm9504_vm8 = vcmask 195584   ;;  %vm9505_vm9 = vcmask 228352  }
   0xf   : > { %9507 = vst [vmem:[#allocation2_spill] sm:$0xff] %v4663_v1  ;;  %v4667_v2 = vsel %vm721_vm0, 0.0, %v4663_v1  ;;  %v4671_v3 = vsel %vm721_vm0, %v4663_v1, 0.0  ;;  %v1116_v4 = vrot.slane %v4663_v1, 1  ;;  %s4676_s5 = sshll.u32 %s10752_s26, 8  ;;  %s4588_s13 = smov 20  }
  0x10   : > { %9508 = vst [vmem:[#allocation3_spill] sm:$0xff] %v4667_v2  ;;  %v1115_v5 = vrot.slane %v4667_v2, 1  ;;  %v9214_v6 = vrot.slane %v4671_v3, 1  ;;  %s4682_s30 = scalar_lea.vmem %s9205_s0, %s4676_s5  ;;  %s4589_s14 = smov 24   ;;  %vm3176_vm10 = vcmask 261120   ;;  %vm9502_vm11 = vcmask 293888  }
  0x11   : > { %9509 = vst [vmem:[#allocation4_spill] sm:$0xff] %v4671_v3  ;;  %v639_v9 = vld [vmem:[%s4682_s30 + $0x10] sm:$0xff]  ;;  %v640_v10 = vld [vmem:[%s4682_s30 + $0x18] sm:$0xff]  ;;  %v637_v11 = vld [vmem:[%s4682_s30] sm:$0xff]  ;;  %s4590_s15 = smov 28   ;;  %s4591_s16 = smov 32  }
  0x12   : > { %v1117_v7 = vsel %vm1114_vm1, %v1115_v5, %v1116_v4  ;;  %v1119_v8 = vsel %vm1114_vm1, %v1116_v4, %v9214_v6  ;;  %v728_v13 = vrot.slane %v639_v9, 7  ;;  %v729_v14 = vrot.slane %v640_v10, 7  ;;  %v638_v15 = vld [vmem:[%s4682_s30 + $0x8] sm:$0xff]  ;;  %v641_v17 = vld [vmem:[%s4682_s30 + $0x20] sm:$0xff]  ;;  %v643_v36 = vld [vmem:[%s4682_s30 + $0x30] sm:$0xff]  ;;  %s6086_s19 = scalar_lea.vmem %s9208_s3, %s4676_s5  ;;  %s4592_s20 = smov 36  }
  0x13   : > { %v4691_v12 = vpack.i.bf16 %v1119_v8, %v1117_v7  ;;  %v725_v16 = vrot.slane %v637_v11, 7  ;;  %v642_v18 = vld [vmem:[%s4682_s30 + $0x28] sm:$0xff]  ;;  %v726_v19 = vrot.slane %v638_v15, 7  ;;  %v731_v20 = vrot.slane %v641_v17, 7  ;;  %v644_v37 = vld [vmem:[%s4682_s30 + $0x38] sm:$0xff]  ;;  %v645_v46 = vld [vmem:[%s4682_s30 + $0x40] sm:$0xff]  ;;  %s9016_s28 = scalar_lea.vmem %s9213_s8, %s4676_s5 }
  0x14   : > { %v732_v21 = vrot.slane %v642_v18, 7  ;;  %v4699_v22 = vsel %vm721_vm0, %v728_v13, %v729_v14  ;;  %v4702_v23 = vsel %vm721_vm0, %v729_v14, 0.0  ;;  %v4708_v25 = vsel %vm721_vm0, 0.0, %v728_v13  ;;  %v646_v47 = vld [vmem:[%s4682_s30 + $0x48] sm:$0xff]  ;;  %v647_v55 = vld [vmem:[%s4682_s30 + $0x50] sm:$0xff]  ;;  %v648_v57 = vld [vmem:[%s4682_s30 + $0x58] sm:$0xff] }
  0x15   : > { %9510 = vst [vmem:[#allocation5_spill] sm:$0xff] %v4691_v12  ;;  %4514 = vrot.lane.b32.xlu0 %v4691_v12, %s4584_s9  ;;  %v4705_v24 = vsel %vm721_vm0, 0.0, %v725_v16  ;;  %v1126_v26 = vrot.slane %v4699_v22, 1  ;;  %v1128_v27 = vrot.slane %v4702_v23, 1  ;;  %v4713_v28 = vsel %vm721_vm0, %v725_v16, %v726_v19  ;;  %v649_v13 = vld [vmem:[%s4682_s30 + $0x60] sm:$0xff]  ;;  %v650_v15 = vld [vmem:[%s4682_s30 + $0x68] sm:$0xff] }
  0x16   : > { %9511 = vst [vmem:[#allocation6_spill] sm:$0xff] %v4699_v22  ;;  %v4716_v29 = vsel %vm721_vm0, %v726_v19, 0.0  ;;  %v1121_v30 = vrot.slane %v4713_v28, 1  ;;  %v1120_v32 = vrot.slane %v4705_v24, 1  ;;  %v4722_v33 = vsel %vm721_vm0, %v731_v20, %v732_v21  ;;  %v660_v6 = vld [vmem:[%s4682_s30 + $0xb8] sm:$0xff]  ;;  %s4593_s21 = smov 40  }
  0x17   : > { %9512 = vst [vmem:[#allocation7_spill] sm:$0xff] %v4705_v24  ;;  %v1123_v31 = vrot.slane %v4716_v29, 1  ;;  %v4725_v34 = vsel %vm1114_vm1, %v1126_v26, %v1128_v27  ;;  %v4728_v35 = vsel %vm721_vm0, 0.0, %v731_v20  ;;  %v1131_v41 = vrot.slane %v4722_v33, 1  ;;  %v651_v27 = vld [vmem:[%s4682_s30 + $0x70] sm:$0xff]  ;;  %s4594_s22 = smov 44  }
  0x18   : > { %9513 = vst [vmem:[#allocation8_spill] sm:$0xff] %v4708_v25  ;;  %1205 = vrot.lane.b32.xlu2 %v4725_v34, %s4584_s9  ;;  %v4740_v39 = vsel %vm1114_vm1, %v1120_v32, %v1121_v30  ;;  %v1130_v40 = vrot.slane %v4728_v35, 1  ;;  %v1125_v42 = vrot.slane %v4708_v25, 1  ;;  %v4746_v43 = vsel %vm721_vm0, %v732_v21, 0.0  ;;  %s4595_s23 = smov 48   ;;  %s4596_s24 = smov 52  }
  0x19   : > { %9514 = vst [vmem:[#allocation9_spill] sm:$0xff] %v4713_v28  ;;  %v4735_v38 = vsel %vm1114_vm1, %v1121_v30, %v1123_v31  ;;  %v734_v44 = vrot.slane %v643_v36, 7  ;;  %v735_v45 = vrot.slane %v644_v37, 7  ;;  %v1133_v50 = vrot.slane %v4746_v43, 1  ;;  %v652_v30 = vld [vmem:[%s4682_s30 + $0x78] sm:$0xff]  ;;  %s4597_s25 = smov 56  }
  0x1a   : > { %9515 = vst [vmem:[#allocation10_spill] sm:$0xff] %v4722_v33  ;;  %1201 = vrot.lane.b32.xlu1 %v4735_v38, %s4584_s9  ;;  %v4753_v48 = vsel %vm1114_vm1, %v1130_v40, %v1131_v41  ;;  %v4756_v49 = vsel %vm1114_vm1, %v1125_v42, %v1126_v26  ;;  %v737_v53 = vrot.slane %v645_v46, 7  ;;  %v738_v54 = vrot.slane %v646_v47, 7  ;;  %v654_v46 = vld [vmem:[%s4682_s30 + $0x88] sm:$0xff]  ;;  %s4598_s1 = smov 60   ;;  %s4599_s26 = smov 64  }
  0x1b   : > { %9516 = vst [vmem:[#allocation11_spill] sm:$0xff] %v4725_v34  ;;  %v4760_v51 = vsel %vm721_vm0, %v734_v44, %v735_v45  ;;  %v4763_v52 = vsel %vm721_vm0, %v735_v45, 0.0  ;;  %v4767_v56 = vsel %vm721_vm0, 0.0, %v734_v44  ;;  %v4775_v58 = vsel %vm1114_vm1, %v1131_v41, %v1133_v50  ;;  %v653_v45 = vld [vmem:[%s4682_s30 + $0x80] sm:$0xff] }
  0x1c   : > { %9517 = vst [vmem:[#allocation12_spill] sm:$0xff] %v4728_v35  ;;  %v1136_v59 = vrot.slane %v4760_v51, 1  ;;  %v1138_v60 = vrot.slane %v4763_v52, 1  ;;  %v740_v61 = vrot.slane %v647_v55, 7  ;;  %v1135_v62 = vrot.slane %v4767_v56, 1 }
  0x1d   : > { %1199 = vrot.lane.b32.xlu0 %v4740_v39, %s4584_s9  ;;  %9518 = vst [vmem:[#allocation13_spill] sm:$0xff] %v4760_v51  ;;  %v4781_v63 = vsel %vm721_vm0, %v737_v53, %v738_v54  ;;  %v4784_v0 = vsel %vm721_vm0, 0.0, %v737_v53  ;;  %v741_v4 = vrot.slane %v648_v57, 7  ;;  %v4804_v14 = vsel %vm721_vm0, %v738_v54, 0.0 }
  0x1e   : > { %9519 = vst [vmem:[#allocation14_spill] sm:$0xff] %v4767_v56  ;;  %v4789_v5 = vsel %vm1114_vm1, %v1136_v59, %v1138_v60  ;;  %v1140_v7 = vrot.slane %v4784_v0, 1  ;;  %v1141_v8 = vrot.slane %v4781_v63, 1  ;;  %v4794_v9 = vsel %vm1114_vm1, %v1135_v62, %v1136_v59 }
  0x1f   : > { %9520 = vst [vmem:[#allocation15_spill] sm:$0xff] %v4775_v58  ;;  %v4797_v10 = vsel %vm721_vm0, %v740_v61, %v741_v4  ;;  %v4800_v11 = vsel %vm721_vm0, 0.0, %v740_v61  ;;  %v743_v19 = vrot.slane %v649_v13, 7  ;;  %v1143_v20 = vrot.slane %v4804_v14, 1 }
  0x20   : > { %1207 = vrot.lane.b32.xlu2 %v4753_v48, %s4584_s9  ;;  %9521 = vst [vmem:[#allocation16_spill] sm:$0xff] %v4781_v63  ;;  %v4812_v16 = vsel %vm1114_vm1, %v1140_v7, %v1141_v8  ;;  %v1145_v17 = vrot.slane %v4800_v11, 1  ;;  %v1146_v18 = vrot.slane %v4797_v10, 1  ;;  %v4818_v21 = vsel %vm721_vm0, %v741_v4, 0.0  ;;  %v655_v7 = vld [vmem:[%s4682_s30 + $0x90] sm:$0xff] }
  0x21   : > { %9522 = vst [vmem:[#allocation17_spill] sm:$0xff] %v4784_v0  ;;  %v744_v26 = vrot.slane %v650_v15, 7  ;;  %v1148_v32 = vrot.slane %v4818_v21, 1  ;;  %v4829_v36 = vsel %vm721_vm0, 0.0, %v743_v19  ;;  %v746_v37 = vrot.slane %v651_v27, 7 }
  0x22   : > { %1203 = vrot.lane.b32.xlu1 %v4756_v49, %s4584_s9  ;;  %9523 = vst [vmem:[#allocation18_spill] sm:$0xff] %v4789_v5  ;;  %v4825_v31 = vsel %vm1114_vm1, %v1145_v17, %v1146_v18  ;;  %v4832_v40 = vsel %vm1114_vm1, %v1141_v8, %v1143_v20  ;;  %v747_v44 = vrot.slane %v652_v30, 7  ;;  %v1150_v54 = vrot.slane %v4829_v36, 1  ;;  %v656_v17 = vld [vmem:[%s4682_s30 + $0x98] sm:$0xff] }
  0x23   : > { %9524 = vst [vmem:[#allocation19_spill] sm:$0xff] %v4794_v9  ;;  %v4835_v41 = vsel %vm721_vm0, %v743_v19, %v744_v26  ;;  %v4838_v42 = vsel %vm721_vm0, %v744_v26, 0.0  ;;  %v4847_v47 = vsel %vm1114_vm1, %v1146_v18, %v1148_v32  ;;  %v4856_v57 = vsel %vm721_vm0, 0.0, %v746_v37 }
  0x24   : > { %9525 = vst [vmem:[#allocation20_spill] sm:$0xff] %v4797_v10  ;;  %v1151_v50 = vrot.slane %v4835_v41, 1  ;;  %v1153_v53 = vrot.slane %v4838_v42, 1  ;;  %v4853_v55 = vsel %vm721_vm0, %v746_v37, %v747_v44  ;;  %v749_v59 = vrot.slane %v653_v45, 7  ;;  %v658_v45 = vld [vmem:[%s4682_s30 + $0xa8] sm:$0xff] }
  0x25   : > { %1209 = vrot.lane.b32.xlu0 %v4775_v58, %s4584_s9  ;;  %9526 = vst [vmem:[#allocation21_spill] sm:$0xff] %v4800_v11  ;;  %v750_v60 = vrot.slane %v654_v46, 7  ;;  %v1155_v62 = vrot.slane %v4856_v57, 1  ;;  %v1156_v4 = vrot.slane %v4853_v55, 1  ;;  %v4877_v18 = vsel %vm721_vm0, %v747_v44, 0.0  ;;  %v657_v44 = vld [vmem:[%s4682_s30 + $0xa0] sm:$0xff] }
  0x26   : > { %9527 = vst [vmem:[#allocation22_spill] sm:$0xff] %v4812_v16  ;;  %v4861_v61 = vsel %vm1114_vm1, %v1151_v50, %v1153_v53  ;;  %v4867_v8 = vsel %vm1114_vm1, %v1150_v54, %v1151_v50  ;;  %v4873_v15 = vsel %vm721_vm0, 0.0, %v749_v59  ;;  %v752_v19 = vrot.slane %v655_v7, 7  ;;  %v659_v7 = vld [vmem:[%s4682_s30 + $0xb0] sm:$0xff] }
  0x27   : > { %9528 = vst [vmem:[#allocation23_spill] sm:$0xff] %v4825_v31  ;;  %v4870_v13 = vsel %vm721_vm0, %v749_v59, %v750_v60  ;;  %v4884_v20 = vsel %vm1114_vm1, %v1155_v62, %v1156_v4  ;;  %v1160_v26 = vrot.slane %v4873_v15, 1  ;;  %v753_v30 = vrot.slane %v656_v17, 7 }
  0x28   : > { %1213 = vrot.lane.b32.xlu2 %v4789_v5, %s4584_s9  ;;  %9529 = vst [vmem:[#allocation24_spill] sm:$0xff] %v4829_v36  ;;  %v1161_v27 = vrot.slane %v4870_v13, 1  ;;  %v1158_v32 = vrot.slane %v4877_v18, 1  ;;  %v4890_v37 = vsel %vm721_vm0, %v750_v60, 0.0  ;;  %v755_v60 = vrot.slane %v657_v44, 7 }
  0x29   : > { %9530 = vst [vmem:[#allocation25_spill] sm:$0xff] %v4832_v40  ;;  %v1163_v50 = vrot.slane %v4890_v37, 1  ;;  %v4901_v53 = vsel %vm721_vm0, %v752_v19, %v753_v30  ;;  %v4904_v54 = vsel %vm721_vm0, %v753_v30, 0.0  ;;  %v756_v62 = vrot.slane %v658_v45, 7 }
  0x2a   : > { %1211 = vrot.lane.b32.xlu1 %v4794_v9, %s4584_s9  ;;  %9531 = vst [vmem:[#allocation26_spill] sm:$0xff] %v4835_v41  ;;  %v4897_v46 = vsel %vm1114_vm1, %v1160_v26, %v1161_v27  ;;  %v4907_v59 = vsel %vm1114_vm1, %v1156_v4, %v1158_v32  ;;  %v4911_v17 = vsel %vm721_vm0, 0.0, %v752_v19  ;;  %v1166_v26 = vrot.slane %v4901_v53, 1  ;;  %v666_v9 = vld [vmem:[%s4682_s30 + $0xe8] sm:$0xff] }
  0x2b   : > { %9532 = vst [vmem:[#allocation27_spill] sm:$0xff] %v4847_v47  ;;  %v1168_v12 = vrot.slane %v4904_v54, 1  ;;  %v4921_v4 = vsel %vm1114_vm1, %v1161_v27, %v1163_v50  ;;  %v758_v30 = vrot.slane %v659_v7, 7  ;;  %v1165_v19 = vrot.slane %v4911_v17, 1 }
  0x2c   : > { %9533 = vst [vmem:[#allocation28_spill] sm:$0xff] %v4853_v55  ;;  %v4925_v32 = vsel %vm721_vm0, %v755_v60, %v756_v62  ;;  %v4928_v44 = vsel %vm721_vm0, 0.0, %v755_v60  ;;  %v759_v45 = vrot.slane %v660_v6, 7  ;;  %v4941_v7 = vsel %vm721_vm0, %v756_v62, 0.0 }
  0x2d   : > { %1215 = vrot.lane.b32.xlu0 %v4812_v16, %s4584_s9  ;;  %9534 = vst [vmem:[#allocation29_spill] sm:$0xff] %v4856_v57  ;;  %v1171_v27 = vrot.slane %v4925_v32, 1  ;;  %v4938_v50 = vsel %vm721_vm0, 0.0, %v758_v30  ;;  %v4944_v6 = vsel %vm1114_vm1, %v1165_v19, %v1166_v26  ;;  %v1295_v34 = vrot.slane %v4671_v3, 2 }
  0x2e   : > { %9535 = vst [vmem:[#allocation30_spill] sm:$0xff] %v4861_v61  ;;  %v4947_v60 = vsel %vm721_vm0, %v758_v30, %v759_v45  ;;  %vm9503_vm12 = vcmask 326656   ;;  %vm3275_vm13 = vcmask 359424   ;;  %vm3308_vm14 = vcmask 392192  }
  0x2f   : > { %9536 = vst [vmem:[#allocation31_spill] sm:$0xff] %v4867_v8  ;;  %vm3341_vm15 = vcmask 424960  }
  0x30   : > { %1219 = vrot.lane.b32.xlu2 %v4825_v31, %s4584_s9  ;;  %9537 = vst [vmem:[#allocation32_spill] sm:$0xff] %v4870_v13 }
  0x31   : > { %9538 = vst [vmem:[#allocation33_spill] sm:$0xff] %v4873_v15 }
  0x32   : > { %1217 = vrot.lane.b32.xlu1 %v4832_v40, %s4584_s9  ;;  %9539 = vst [vmem:[#allocation34_spill] sm:$0xff] %v4884_v20 }
  0x33   : > { %9540 = vst [vmem:[#allocation35_spill] sm:$0xff] %v4897_v46 }
  0x34   : > { %9541 = vst [vmem:[#allocation36_spill] sm:$0xff] %v4901_v53 }
  0x35   : > { %1221 = vrot.lane.b32.xlu0 %v4847_v47, %s4584_s9  ;;  %9542 = vst [vmem:[#allocation37_spill] sm:$0xff] %v4907_v59  ;;  %v664_v47 = vld [vmem:[%s4682_s30 + $0xd8] sm:$0xff] }
  0x36   : > { %9543 = vst [vmem:[#allocation38_spill] sm:$0xff] %v4911_v17  ;;  %v765_v16 = vrot.slane %v664_v47, 7 }
  0x37   : > { %9544 = vst [vmem:[#allocation39_spill] sm:$0xff] %v4921_v4 }
  0x38   : > { %1225 = vrot.lane.b32.xlu2 %v4861_v61, %s4584_s9  ;;  %9545 = vst [vmem:[#allocation40_spill] sm:$0xff] %v4925_v32  ;;  %v4962_v61 = vsel %vm721_vm0, %v759_v45, 0.0 }
  0x39   : > { %9546 = vst [vmem:[#allocation41_spill] sm:$0xff] %v4928_v44 }
  0x3a   : > { %1223 = vrot.lane.b32.xlu1 %v4867_v8, %s4584_s9  ;;  %9548 = vst [vmem:[#allocation43_spill] sm:$0xff] %v4938_v50  ;;  %v1173_v8 = vrot.slane %v4941_v7, 1 }
  0x3b   : > { %9549 = vst [vmem:[#allocation44_spill] sm:$0xff] %v4944_v6 }
  0x3c   : > { %9550 = vst [vmem:[#allocation45_spill] sm:$0xff] %v4947_v60 }
  0x3d   : > { %1227 = vrot.lane.b32.xlu0 %v4884_v20, %s4584_s9  ;;  %v1175_v20 = vrot.slane %v4938_v50, 1 }
  0x40   : > { %1231 = vrot.lane.b32.xlu2 %v4897_v46, %s4584_s9  ;;  %v4933_v46 = vsel %vm1114_vm1, %v1166_v26, %v1168_v12  ;;  %v661_v12 = vld [vmem:[%s4682_s30 + $0xc0] sm:$0xff]  ;;  %v1176_v26 = vrot.slane %v4947_v60, 1 }
  0x41   : > { %9547 = vst [vmem:[#allocation42_spill] sm:$0xff] %v4933_v46  ;;  %v761_v30 = vrot.slane %v661_v12, 7 }
  0x42   : > { %1229 = vrot.lane.b32.xlu1 %v4907_v59, %s4584_s9  ;;  %v1170_v59 = vrot.slane %v4928_v44, 1  ;;  %v4969_v40 = vsel %vm1114_vm1, %v1175_v20, %v1176_v26 }
  0x43   : > { %9552 = vst [vmem:[#allocation47_spill] sm:$0xff] %v4969_v40  ;;  %v4982_v45 = vsel %vm721_vm0, 0.0, %v761_v30 }
  0x44   : > { %v4958_v62 = vsel %vm1114_vm1, %v1170_v59, %v1171_v27  ;;  %v4972_v59 = vsel %vm1114_vm1, %v1171_v27, %v1173_v8  ;;  %9555 = vst [vmem:[#allocation50_spill] sm:$0xff] %v4982_v45 }
  0x45   : > { %1233 = vrot.lane.b32.xlu0 %v4921_v4, %s4584_s9  ;;  %v662_v4 = vld [vmem:[%s4682_s30 + $0xc8] sm:$0xff]  ;;  %9551 = vst [vmem:[#allocation46_spill] sm:$0xff] %v4958_v62 }
  0x46   : > { %v762_v19 = vrot.slane %v662_v4, 7  ;;  %9553 = vst [vmem:[#allocation48_spill] sm:$0xff] %v4972_v59 }
  0x48   : > { %1237 = vrot.lane.b32.xlu2 %v4933_v46, %s4584_s9  ;;  %v663_v46 = vld [vmem:[%s4682_s30 + $0xd0] sm:$0xff]  ;;  %v4976_v31 = vsel %vm721_vm0, %v761_v30, %v762_v19  ;;  %v4979_v4 = vsel %vm721_vm0, %v762_v19, 0.0  ;;  %v1180_v30 = vrot.slane %v4982_v45, 1 }
  0x49   : > { %9554 = vst [vmem:[#allocation49_spill] sm:$0xff] %v4976_v31  ;;  %v764_v12 = vrot.slane %v663_v46, 7  ;;  %v1181_v20 = vrot.slane %v4976_v31, 1  ;;  %v1183_v27 = vrot.slane %v4979_v4, 1 }
  0x4a   : > { %1235 = vrot.lane.b32.xlu1 %v4944_v6, %s4584_s9  ;;  %v1178_v6 = vrot.slane %v4962_v61, 1 }
  0x4b   : > { %v4997_v46 = vsel %vm721_vm0, %v764_v12, %v765_v16  ;;  %v5000_v47 = vsel %vm721_vm0, 0.0, %v764_v12  ;;  %v5010_v5 = vsel %vm1114_vm1, %v1180_v30, %v1181_v20 }
  0x4c   : > { %v4991_v8 = vsel %vm1114_vm1, %v1176_v26, %v1178_v6  ;;  %9557 = vst [vmem:[#allocation52_spill] sm:$0xff] %v4997_v46  ;;  %v5005_v6 = vsel %vm1114_vm1, %v1181_v20, %v1183_v27  ;;  %v1185_v26 = vrot.slane %v5000_v47, 1 }
  0x4d   : > { %1239 = vrot.lane.b32.xlu0 %v4958_v62, %s4584_s9  ;;  %v665_v62 = vld [vmem:[%s4682_s30 + $0xe0] sm:$0xff]  ;;  %9556 = vst [vmem:[#allocation51_spill] sm:$0xff] %v4991_v8 }
  0x4e   : > { %9558 = vst [vmem:[#allocation53_spill] sm:$0xff] %v5000_v47  ;;  %v767_v19 = vrot.slane %v665_v62, 7 }
  0x4f   : > { %9559 = vst [vmem:[#allocation54_spill] sm:$0xff] %v5005_v6 }
  0x50   : > { %1243 = vrot.lane.b32.xlu2 %v4969_v40, %s4584_s9  ;;  %v768_v40 = vrot.slane %v666_v9, 7  ;;  %9560 = vst [vmem:[#allocation55_spill] sm:$0xff] %v5010_v5  ;;  %v5016_v12 = vsel %vm721_vm0, 0.0, %v767_v19  ;;  %v5019_v9 = vsel %vm721_vm0, %v765_v16, 0.0 }
  0x51   : > { %9562 = vst [vmem:[#allocation57_spill] sm:$0xff] %v5016_v12  ;;  %v1190_v20 = vrot.slane %v5016_v12, 1  ;;  %v1188_v30 = vrot.slane %v5019_v9, 1 }
  0x52   : > { %1241 = vrot.lane.b32.xlu1 %v4972_v59, %s4584_s9  ;;  %v1186_v59 = vrot.slane %v4997_v46, 1  ;;  %v5013_v58 = vsel %vm721_vm0, %v767_v19, %v768_v40  ;;  %v5032_v19 = vsel %vm721_vm0, %v768_v40, 0.0 }
  0x53   : > { %9561 = vst [vmem:[#allocation56_spill] sm:$0xff] %v5013_v58  ;;  %v1191_v27 = vrot.slane %v5013_v58, 1 }
  0x54   : > { %v5026_v62 = vsel %vm1114_vm1, %v1185_v26, %v1186_v59  ;;  %v5041_v26 = vsel %vm1114_vm1, %v1186_v59, %v1188_v30  ;;  %v1298_v59 = vrot.slane %v4713_v28, 2 }
  0x55   : > { %1245 = vrot.lane.b32.xlu0 %v4991_v8, %s4584_s9  ;;  %9563 = vst [vmem:[#allocation58_spill] sm:$0xff] %v5026_v62  ;;  %v5037_v16 = vsel %vm1114_vm1, %v1190_v20, %v1191_v27  ;;  %v1293_v8 = vrot.slane %v4663_v1, 2  ;;  %v1297_v20 = vrot.slane %v4705_v24, 2 }
  0x56   : > { %9564 = vst [vmem:[#allocation59_spill] sm:$0xff] %v5041_v26 }
  0x57   : > { %v1296_v1 = vsel %vm1291_vm2, %v1293_v8, %v1295_v34  ;;  %v5060_v3 = vsel %vm1291_vm2, %v1297_v20, %v1298_v59  ;;  %v1303_v34 = vrot.slane %v4699_v22, 2 }
  0x58   : > { %1249 = vrot.lane.b32.xlu2 %v5005_v6, %s4584_s9  ;;  %v1292_v6 = vrot.slane %v4667_v2, 2 }
  0x5a   : > { %1247 = vrot.lane.b32.xlu1 %v5010_v5, %s4584_s9  ;;  %v1193_v5 = vrot.slane %v5032_v19, 1  ;;  %v1294_v30 = vsel %vm1291_vm2, %v1292_v6, %v1293_v8  ;;  %v1305_v8 = vrot.slane %v4702_v23, 2  ;;  %v1302_v6 = vrot.slane %v4708_v25, 2 }
  0x5b   : > { %v5062_v2 = vpack.i.bf16 %v1296_v1, %v1294_v30 }
  0x5c   : > { %v5051_v40 = vsel %vm1114_vm1, %v1191_v27, %v1193_v5  ;;  %v5078_v1 = vsel %vm1291_vm2, %v1303_v34, %v1305_v8  ;;  %v1308_v27 = vrot.slane %v4722_v33, 2  ;;  %v5083_v20 = vsel %vm1291_vm2, %v1302_v6, %v1303_v34 }
  0x5d   : > { %1251 = vrot.lane.b32.xlu0 %v5026_v62, %s4584_s9  ;;  %9565 = vst [vmem:[#allocation60_spill] sm:$0xff] %v5062_v2  ;;  %v1310_v8 = vrot.slane %v4746_v43, 2  ;;  %v1315_v6 = vrot.slane %v4763_v52, 2  ;;  %v1318_v43 = vrot.slane %v4781_v63, 2  ;;  %v1317_v52 = vrot.slane %v4784_v0, 2 }
  0x60   : > { %1255 = vrot.lane.b32.xlu2 %v5037_v16, %s4584_s9 }
  0x62   : > { %1253 = vrot.lane.b32.xlu1 %v5041_v26, %s4584_s9  ;;  %v1300_v26 = vrot.slane %v4716_v29, 2  ;;  %v1307_v29 = vrot.slane %v4728_v35, 2 }
  0x64   : > { %v5070_v5 = vsel %vm1291_vm2, %v1298_v59, %v1300_v26  ;;  %v5090_v23 = vsel %vm1291_vm2, %v1307_v29, %v1308_v27  ;;  %v1312_v26 = vrot.slane %v4767_v56, 2  ;;  %v1313_v59 = vrot.slane %v4760_v51, 2 }
  0x65   : > { %1257 = vrot.lane.b32.xlu0 %v5051_v40, %s4584_s9 }
  0x66   : > { %v5100_v34 = vsel %vm1291_vm2, %v1312_v26, %v1313_v59  ;;  %v5111_v29 = vsel %vm1291_vm2, %v1313_v59, %v1315_v6  ;;  %v5126_v59 = vsel %vm1291_vm2, %v1317_v52, %v1318_v43  ;;  %v1327_v6 = vrot.slane %v4829_v36, 2 }
  0x67   : > { %9567 = vst [vmem:[#allocation62_spill] sm:$0xff] %v5100_v34  ;;  %v1330_v52 = vrot.slane %v4838_v42, 2  ;;  %v1332_v42 = vrot.slane %v4856_v57, 2 }
  0x68   : > { %1376 = vrot.lane.b32.xlu2 %v5060_v3, %s4585_s10  ;;  %9568 = vst [vmem:[#allocation63_spill] sm:$0xff] %v5111_v29 }
  0x69   : > { %9571 = vst [vmem:[#allocation66_spill] sm:$0xff] %v5126_v59 }
  0x6a   : > { %4519 = vrot.lane.b32.xlu1 %v5062_v2, %s4585_s10  ;;  %v5104_v2 = vsel %vm1291_vm2, %v1308_v27, %v1310_v8  ;;  %v1322_v8 = vrot.slane %v4800_v11, 2 }
  0x6d   : > { %1378 = vrot.lane.b32.xlu0 %v5070_v5, %s4585_s10 }
  0x70   : > { %1382 = vrot.lane.b32.xlu2 %v5078_v1, %s4585_s10 }
  0x72   : > { %1380 = vrot.lane.b32.xlu1 %v5083_v20, %s4585_s10  ;;  %v5094_v30 = vpop.permute.xlu2 %1205 }
  0x73   : > { %9566 = vst [vmem:[#allocation61_spill] sm:$0xff] %v5094_v30  ;;  %v1320_v30 = vrot.slane %v4804_v14, 2 }
  0x75   : > { %1384 = vrot.lane.b32.xlu0 %v5090_v23, %s4585_s10  ;;  %v5121_v27 = vsel %vm1291_vm2, %v1318_v43, %v1320_v30  ;;  %v1328_v30 = vrot.slane %v4835_v41, 2 }
  0x76   : > { %9570 = vst [vmem:[#allocation65_spill] sm:$0xff] %v5121_v27 }
  0x77   : > { %v5143_v43 = vsel %vm1291_vm2, %v1327_v6, %v1328_v30  ;;  %v1335_v6 = vrot.slane %v4877_v18, 2 }
  0x78   : > { %1388 = vrot.lane.b32.xlu2 %v5100_v34, %s4585_s10  ;;  %v1323_v34 = vrot.slane %v4797_v10, 2  ;;  %9574 = vst [vmem:[#allocation69_spill] sm:$0xff] %v5143_v43 }
  0x7a   : > { %1386 = vrot.lane.b32.xlu1 %v5104_v2, %s4585_s10  ;;  %v5115_v26 = vpop.permute.xlu2 %1207  ;;  %v5133_v14 = vsel %vm1291_vm2, %v1322_v8, %v1323_v34 }
  0x7b   : > { %9569 = vst [vmem:[#allocation64_spill] sm:$0xff] %v5115_v26 }
  0x7c   : > { %9572 = vst [vmem:[#allocation67_spill] sm:$0xff] %v5133_v14 }
  0x7d   : > { %1390 = vrot.lane.b32.xlu0 %v5111_v29, %s4585_s10  ;;  %v1325_v29 = vrot.slane %v4818_v21, 2  ;;  %v5156_v21 = vsel %vm1291_vm2, %v1328_v30, %v1330_v52  ;;  %v1338_v30 = vrot.slane %v4870_v13, 2 }
  0x7e   : > { %9577 = vst [vmem:[#allocation72_spill] sm:$0xff] %v5156_v21 }
  0x7f   : > { %v5149_v8 = vsel %vm1291_vm2, %v1323_v34, %v1325_v29  ;;  %v1337_v29 = vrot.slane %v4873_v15, 2 }
  0x80   : > { %1394 = vrot.lane.b32.xlu2 %v5121_v27, %s4585_s10  ;;  %9576 = vst [vmem:[#allocation71_spill] sm:$0xff] %v5149_v8 }
  0x82   : > { %1392 = vrot.lane.b32.xlu1 %v5126_v59, %s4585_s10  ;;  %v5137_v26 = vpop.permute.xlu2 %1213 }
  0x83   : > { %9573 = vst [vmem:[#allocation68_spill] sm:$0xff] %v5137_v26  ;;  %v1333_v26 = vrot.slane %v4853_v55, 2 }
  0x85   : > { %1396 = vrot.lane.b32.xlu0 %v5133_v14, %s4585_s10  ;;  %v5168_v34 = vsel %vm1291_vm2, %v1333_v26, %v1335_v6  ;;  %v5175_v18 = vsel %vm1291_vm2, %v1332_v42, %v1333_v26  ;;  %v1342_v6 = vrot.slane %v4911_v17, 2  ;;  %v1345_v42 = vrot.slane %v4904_v54, 2 }
  0x86   : > { %9580 = vst [vmem:[#allocation75_spill] sm:$0xff] %v5168_v34  ;;  %v1347_v54 = vrot.slane %v4928_v44, 2 }
  0x87   : > { %v5146_v27 = vpop.permute.xlu0 %4514  ;;  %9582 = vst [vmem:[#allocation77_spill] sm:$0xff] %v5175_v18 }
  0x88   : > { %9575 = vst [vmem:[#allocation70_spill] sm:$0xff] %v5146_v27  ;;  %1400 = vrot.lane.b32.xlu2 %v5143_v43, %s4585_s10 }
  0x8a   : > { %1398 = vrot.lane.b32.xlu1 %v5149_v8, %s4585_s10  ;;  %v5160_v14 = vpop.permute.xlu2 %1219 }
  0x8b   : > { %9578 = vst [vmem:[#allocation73_spill] sm:$0xff] %v5160_v14  ;;  %v1343_v14 = vrot.slane %v4901_v53, 2 }
  0x8c   : > { %v5163_v27 = vpop.permute.xlu1 %1201 }
  0x8d   : > { %9579 = vst [vmem:[#allocation74_spill] sm:$0xff] %v5163_v27  ;;  %1402 = vrot.lane.b32.xlu0 %v5156_v21, %s4585_s10  ;;  %v5182_v27 = vsel %vm1291_vm2, %v1337_v29, %v1338_v30  ;;  %v5194_v26 = vsel %vm1291_vm2, %v1342_v6, %v1343_v14  ;;  %v1350_v6 = vrot.slane %v4941_v7, 2 }
  0x8e   : > { %9583 = vst [vmem:[#allocation78_spill] sm:$0xff] %v5182_v27 }
  0x8f   : > { %v5172_v52 = vpop.permute.xlu0 %1199  ;;  %9586 = vst [vmem:[#allocation81_spill] sm:$0xff] %v5194_v26 }
  0x90   : > { %9581 = vst [vmem:[#allocation76_spill] sm:$0xff] %v5172_v52  ;;  %1406 = vrot.lane.b32.xlu2 %v5168_v34, %s4585_s10  ;;  %v1340_v52 = vrot.slane %v4890_v37, 2  ;;  %v5207_v37 = vsel %vm1291_vm2, %v1343_v14, %v1345_v42  ;;  %v1353_v14 = vrot.slane %v4947_v60, 2 }
  0x91   : > { %9589 = vst [vmem:[#allocation84_spill] sm:$0xff] %v5207_v37 }
  0x92   : > { %1404 = vrot.lane.b32.xlu1 %v5175_v18, %s4585_s10  ;;  %v5186_v21 = vpop.permute.xlu2 %1225  ;;  %v5200_v34 = vsel %vm1291_vm2, %v1338_v30, %v1340_v52  ;;  %v1352_v52 = vrot.slane %v4938_v50, 2 }
  0x93   : > { %9584 = vst [vmem:[#allocation79_spill] sm:$0xff] %v5186_v21 }
  0x94   : > { %v5189_v43 = vpop.permute.xlu1 %1203  ;;  %9588 = vst [vmem:[#allocation83_spill] sm:$0xff] %v5200_v34 }
  0x95   : > { %9585 = vst [vmem:[#allocation80_spill] sm:$0xff] %v5189_v43  ;;  %1408 = vrot.lane.b32.xlu0 %v5182_v27, %s4585_s10  ;;  %v1348_v43 = vrot.slane %v4925_v32, 2 }
  0x97   : > { %v5197_v29 = vpop.permute.xlu0 %1209  ;;  %v5219_v30 = vsel %vm1291_vm2, %v1348_v43, %v1350_v6  ;;  %v5226_v7 = vsel %vm1291_vm2, %v1347_v54, %v1348_v43  ;;  %v1357_v6 = vrot.slane %v4982_v45, 2  ;;  %v1360_v54 = vrot.slane %v4979_v4, 2 }
  0x98   : > { %9587 = vst [vmem:[#allocation82_spill] sm:$0xff] %v5197_v29  ;;  %1412 = vrot.lane.b32.xlu2 %v5194_v26, %s4585_s10  ;;  %v1362_v4 = vrot.slane %v5000_v47, 2 }
  0x99   : > { %9592 = vst [vmem:[#allocation87_spill] sm:$0xff] %v5219_v30 }
  0x9a   : > { %1410 = vrot.lane.b32.xlu1 %v5200_v34, %s4585_s10  ;;  %v5211_v21 = vpop.permute.xlu2 %1231 }
  0x9b   : > { %9590 = vst [vmem:[#allocation85_spill] sm:$0xff] %v5211_v21  ;;  %v1358_v21 = vrot.slane %v4976_v31, 2 }
  0x9c   : > { %v5214_v29 = vpop.permute.xlu1 %1211 }
  0x9d   : > { %9591 = vst [vmem:[#allocation86_spill] sm:$0xff] %v5214_v29  ;;  %1414 = vrot.lane.b32.xlu0 %v5207_v37, %s4585_s10  ;;  %v5233_v29 = vsel %vm1291_vm2, %v1352_v52, %v1353_v14  ;;  %v5245_v43 = vsel %vm1291_vm2, %v1357_v6, %v1358_v21  ;;  %v1365_v6 = vrot.slane %v5019_v9, 2 }
  0x9e   : > { %9596 = vst [vmem:[#allocation91_spill] sm:$0xff] %v5245_v43 }
  0x9f   : > { %v5223_v42 = vpop.permute.xlu0 %1215 }
  0xa0   : > { %9593 = vst [vmem:[#allocation88_spill] sm:$0xff] %v5223_v42  ;;  %1418 = vrot.lane.b32.xlu2 %v5219_v30, %s4585_s10  ;;  %v1355_v42 = vrot.slane %v4962_v61, 2  ;;  %v5258_v61 = vsel %vm1291_vm2, %v1358_v21, %v1360_v54  ;;  %v1368_v21 = vrot.slane %v5013_v58, 2 }
  0xa1   : > { %9599 = vst [vmem:[#allocation94_spill] sm:$0xff] %v5258_v61 }
  0xa2   : > { %1416 = vrot.lane.b32.xlu1 %v5226_v7, %s4585_s10  ;;  %v5237_v37 = vpop.permute.xlu2 %1237  ;;  %v5251_v30 = vsel %vm1291_vm2, %v1353_v14, %v1355_v42  ;;  %v1367_v42 = vrot.slane %v5016_v12, 2 }
  0xa3   : > { %9594 = vst [vmem:[#allocation89_spill] sm:$0xff] %v5237_v37  ;;  %v1363_v37 = vrot.slane %v4997_v46, 2 }
  0xa4   : > { %v5240_v26 = vpop.permute.xlu1 %1217  ;;  %9598 = vst [vmem:[#allocation93_spill] sm:$0xff] %v5251_v30 }
  0xa5   : > { %9595 = vst [vmem:[#allocation90_spill] sm:$0xff] %v5240_v26  ;;  %1420 = vrot.lane.b32.xlu0 %v5233_v29, %s4585_s10  ;;  %v5270_v14 = vsel %vm1291_vm2, %v1363_v37, %v1365_v6  ;;  %v5277_v9 = vsel %vm1291_vm2, %v1362_v4, %v1363_v37 }
  0xa6   : > { %9602 = vst [vmem:[#allocation97_spill] sm:$0xff] %v5270_v14 }
  0xa7   : > { %v5248_v52 = vpop.permute.xlu0 %1221  ;;  %9604 = vst [vmem:[#allocation99_spill] sm:$0xff] %v5277_v9 }
  0xa8   : > { %9597 = vst [vmem:[#allocation92_spill] sm:$0xff] %v5248_v52  ;;  %1424 = vrot.lane.b32.xlu2 %v5245_v43, %s4585_s10 }
  0xaa   : > { %1422 = vrot.lane.b32.xlu1 %v5251_v30, %s4585_s10  ;;  %v5262_v26 = vpop.permute.xlu2 %1243 }
  0xab   : > { %9600 = vst [vmem:[#allocation95_spill] sm:$0xff] %v5262_v26  ;;  %v5284_v26 = vsel %vm1291_vm2, %v1367_v42, %v1368_v21 }
  0xac   : > { %v5265_v52 = vpop.permute.xlu1 %1223 }
  0xad   : > { %9601 = vst [vmem:[#allocation96_spill] sm:$0xff] %v5265_v52  ;;  %1426 = vrot.lane.b32.xlu0 %v5258_v61, %s4585_s10  ;;  %v1370_v52 = vrot.slane %v5032_v19, 2 }
  0xaf   : > { %v5274_v54 = vpop.permute.xlu0 %1227  ;;  %v5296_v4 = vsel %vm1291_vm2, %v1368_v21, %v1370_v52 }
  0xb0   : > { %9603 = vst [vmem:[#allocation98_spill] sm:$0xff] %v5274_v54  ;;  %1430 = vrot.lane.b32.xlu2 %v5270_v14, %s4585_s10 }
  0xb2   : > { %1428 = vrot.lane.b32.xlu1 %v5277_v9, %s4585_s10  ;;  %v5286_v6 = vpop.permute.xlu2 %1249 }
  0xb3   : > { %9605 = vst [vmem:[#allocation100_spill] sm:$0xff] %v5286_v6 }
  0xb4   : > { %v5289_v61 = vpop.permute.xlu1 %1229 }
  0xb5   : > { %9606 = vst [vmem:[#allocation101_spill] sm:$0xff] %v5289_v61  ;;  %1432 = vrot.lane.b32.xlu0 %v5284_v26, %s4585_s10 }
  0xb7   : > { %v5293_v37 = vpop.permute.xlu0 %1233 }
  0xb8   : > { %9607 = vst [vmem:[#allocation102_spill] sm:$0xff] %v5293_v37  ;;  %1469 = vrot.lane.b32.xlu2 %v4705_v24, %s4586_s11 }
  0xba   : > { %1434 = vrot.lane.b32.xlu1 %v5296_v4, %s4585_s10  ;;  %v5302_v42 = vpop.permute.xlu2 %1255 }
  0xbb   : > { %9608 = vst [vmem:[#allocation103_spill] sm:$0xff] %v5302_v42  ;;  %v5414_v42 = vld [vmem:[%s4682_s30 + $0xf8] sm:$0xff] }
  0xbc   : > { %v5304_v19 = vpop.permute.xlu1 %1235 }
  0xbd   : > { %9609 = vst [vmem:[#allocation104_spill] sm:$0xff] %v5304_v19  ;;  %1471 = vrot.lane.b32.xlu0 %v4713_v28, %s4586_s11 }
  0xbf   : > { %v5308_v6 = vpop.permute.xlu0 %1239 }
  0xc0   : > { %9610 = vst [vmem:[#allocation105_spill] sm:$0xff] %v5308_v6  ;;  %1475 = vrot.lane.b32.xlu2 %v4699_v22, %s4586_s11 }
  0xc2   : > { %1473 = vrot.lane.b32.xlu1 %v4708_v25, %s4586_s11  ;;  %v5314_v52 = vpop.permute.xlu2 %1376 }
  0xc3   : > { %9611 = vst [vmem:[#allocation106_spill] sm:$0xff] %v5314_v52 }
  0xc4   : > { %v5316_v21 = vpop.permute.xlu1 %1241 }
  0xc5   : > { %9612 = vst [vmem:[#allocation107_spill] sm:$0xff] %v5316_v21  ;;  %1477 = vrot.lane.b32.xlu0 %v4728_v35, %s4586_s11 }
  0xc7   : > { %v5320_v37 = vpop.permute.xlu0 %1245 }
  0xc8   : > { %9613 = vst [vmem:[#allocation108_spill] sm:$0xff] %v5320_v37  ;;  %1481 = vrot.lane.b32.xlu2 %v4767_v56, %s4586_s11 }
  0xca   : > { %1479 = vrot.lane.b32.xlu1 %v4722_v33, %s4586_s11  ;;  %v5326_v6 = vpop.permute.xlu2 %1382 }
  0xcb   : > { %9614 = vst [vmem:[#allocation109_spill] sm:$0xff] %v5326_v6 }
  0xcc   : > { %v5328_v19 = vpop.permute.xlu1 %1247 }
  0xcd   : > { %9615 = vst [vmem:[#allocation110_spill] sm:$0xff] %v5328_v19  ;;  %1483 = vrot.lane.b32.xlu0 %v4760_v51, %s4586_s11 }
  0xcf   : > { %v5332_v61 = vpop.permute.xlu0 %1251 }
  0xd0   : > { %9616 = vst [vmem:[#allocation111_spill] sm:$0xff] %v5332_v61  ;;  %1487 = vrot.lane.b32.xlu2 %v4781_v63, %s4586_s11 }
  0xd2   : > { %1485 = vrot.lane.b32.xlu1 %v4784_v0, %s4586_s11  ;;  %v5338_v21 = vpop.permute.xlu2 %1388 }
  0xd3   : > { %9617 = vst [vmem:[#allocation112_spill] sm:$0xff] %v5338_v21 }
  0xd4   : > { %v5340_v37 = vpop.permute.xlu1 %1253 }
  0xd5   : > { %9618 = vst [vmem:[#allocation113_spill] sm:$0xff] %v5340_v37  ;;  %1489 = vrot.lane.b32.xlu0 %v4800_v11, %s4586_s11 }
  0xd7   : > { %v5344_v54 = vpop.permute.xlu0 %1257 }
  0xd8   : > { %9619 = vst [vmem:[#allocation114_spill] sm:$0xff] %v5344_v54  ;;  %1493 = vrot.lane.b32.xlu2 %v4829_v36, %s4586_s11 }
  0xda   : > { %1491 = vrot.lane.b32.xlu1 %v4797_v10, %s4586_s11  ;;  %v5350_v19 = vpop.permute.xlu2 %1394 }
  0xdb   : > { %9620 = vst [vmem:[#allocation115_spill] sm:$0xff] %v5350_v19 }
  0xdc   : > { %v5352_v61 = vpop.permute.xlu1 %4519 }
  0xdd   : > { %9621 = vst [vmem:[#allocation116_spill] sm:$0xff] %v5352_v61  ;;  %1495 = vrot.lane.b32.xlu0 %v4835_v41, %s4586_s11 }
  0xdf   : > { %v5356_v21 = vpop.permute.xlu0 %1378 }
  0xe0   : > { %9622 = vst [vmem:[#allocation117_spill] sm:$0xff] %v5356_v21  ;;  %1499 = vrot.lane.b32.xlu2 %v4853_v55, %s4586_s11 }
  0xe2   : > { %1497 = vrot.lane.b32.xlu1 %v4856_v57, %s4586_s11  ;;  %v5362_v54 = vpop.permute.xlu2 %1400 }
  0xe3   : > { %9623 = vst [vmem:[#allocation118_spill] sm:$0xff] %v5362_v54 }
  0xe4   : > { %v5364_v6 = vpop.permute.xlu1 %1380 }
  0xe5   : > { %9624 = vst [vmem:[#allocation119_spill] sm:$0xff] %v5364_v6  ;;  %1501 = vrot.lane.b32.xlu0 %v4873_v15, %s4586_s11 }
  0xe7   : > { %v5368_v19 = vpop.permute.xlu0 %1384 }
  0xe8   : > { %9625 = vst [vmem:[#allocation120_spill] sm:$0xff] %v5368_v19  ;;  %1505 = vrot.lane.b32.xlu2 %v4911_v17, %s4586_s11 }
  0xea   : > { %1503 = vrot.lane.b32.xlu1 %v4870_v13, %s4586_s11  ;;  %v5374_v21 = vpop.permute.xlu2 %1406 }
  0xeb   : > { %9626 = vst [vmem:[#allocation121_spill] sm:$0xff] %v5374_v21 }
  0xec   : > { %v5376_v37 = vpop.permute.xlu1 %1386 }
  0xed   : > { %9627 = vst [vmem:[#allocation122_spill] sm:$0xff] %v5376_v37  ;;  %1507 = vrot.lane.b32.xlu0 %v4901_v53, %s4586_s11 }
  0xef   : > { %v5380_v54 = vpop.permute.xlu0 %1390 }
  0xf0   : > { %9628 = vst [vmem:[#allocation123_spill] sm:$0xff] %v5380_v54  ;;  %1511 = vrot.lane.b32.xlu2 %v4925_v32, %s4586_s11 }
  0xf2   : > { %1509 = vrot.lane.b32.xlu1 %v4928_v44, %s4586_s11  ;;  %v5386_v19 = vpop.permute.xlu2 %1412 }
  0xf3   : > { %9629 = vst [vmem:[#allocation124_spill] sm:$0xff] %v5386_v19 }
  0xf4   : > { %v5388_v6 = vpop.permute.xlu1 %1392 }
  0xf5   : > { %9630 = vst [vmem:[#allocation125_spill] sm:$0xff] %v5388_v6  ;;  %1513 = vrot.lane.b32.xlu0 %v4938_v50, %s4586_s11  ;;  %v667_v6 = vld [vmem:[%s4682_s30 + $0xf0] sm:$0xff] }
  0xf7   : > { %v5392_v21 = vpop.permute.xlu0 %1396 }
  0xf8   : > { %9631 = vst [vmem:[#allocation126_spill] sm:$0xff] %v5392_v21  ;;  %1517 = vrot.lane.b32.xlu2 %v4982_v45, %s4586_s11  ;;  %v770_v21 = vrot.slane %v667_v6, 7 }
  0xfa   : > { %1515 = vrot.lane.b32.xlu1 %v4947_v60, %s4586_s11  ;;  %v5398_v54 = vpop.permute.xlu2 %1418 }
  0xfb   : > { %9632 = vst [vmem:[#allocation127_spill] sm:$0xff] %v5398_v54 }
  0xfc   : > { %v5400_v37 = vpop.permute.xlu1 %1398 }
  0xfd   : > { %9633 = vst [vmem:[#allocation128_spill] sm:$0xff] %v5400_v37  ;;  %1519 = vrot.lane.b32.xlu0 %v4976_v31, %s4586_s11  ;;  %v5421_v37 = vsel %vm721_vm0, 0.0, %v770_v21 }
  0xff   : > { %v5404_v19 = vpop.permute.xlu0 %1402 }
 0x100   : > { %9634 = vst [vmem:[#allocation129_spill] sm:$0xff] %v5404_v19  ;;  %1523 = vrot.lane.b32.xlu2 %v4997_v46, %s4586_s11  ;;  %v9296_v19 = vrot.slane %v5414_v42, 7 }
 0x102   : > { %1521 = vrot.lane.b32.xlu1 %v5000_v47, %s4586_s11  ;;  %v5411_v52 = vpop.permute.xlu2 %1424  ;;  %v5433_v6 = vsel %vm721_vm0, %v770_v21, %v9296_v19 }
 0x103   : > { %9635 = vst [vmem:[#allocation130_spill] sm:$0xff] %v5411_v52 }
 0x104   : > { %v5416_v54 = vpop.permute.xlu1 %1404 }
 0x105   : > { %9636 = vst [vmem:[#allocation131_spill] sm:$0xff] %v5416_v54  ;;  %1525 = vrot.lane.b32.xlu0 %v5016_v12, %s4586_s11 }
 0x107   : > { %v5424_v61 = vpop.permute.xlu0 %1408 }
 0x108   : > { %9637 = vst [vmem:[#allocation132_spill] sm:$0xff] %v5424_v61  ;;  %1529 = vrot.lane.b32.xlu2 %v5421_v37, %s4586_s11 }
 0x10a   : > { %1527 = vrot.lane.b32.xlu1 %v5013_v58, %s4586_s11  ;;  %v5435_v52 = vpop.permute.xlu2 %1430 }
 0x10b   : > { %9638 = vst [vmem:[#allocation133_spill] sm:$0xff] %v5435_v52 }
 0x10c   : > { %v5437_v54 = vpop.permute.xlu1 %1410 }
 0x10d   : > { %9639 = vst [vmem:[#allocation134_spill] sm:$0xff] %v5437_v54  ;;  %1531 = vrot.lane.b32.xlu0 %v5433_v6, %s4586_s11 }
 0x10f   : > { %v5441_v24 = vpop.permute.xlu0 %1414 }
 0x110   : > { %9640 = vst [vmem:[#allocation135_spill] sm:$0xff] %v5441_v24  ;;  %1573 = vrot.lane.b32.xlu2 %v4735_v38, %s4587_s12  ;;  %v9644_v24 = vld [vmem:[#allocation11_spill] sm:$0xff] }
 0x112   : > { %1571 = vrot.lane.b32.xlu1 %v4740_v39, %s4587_s12  ;;  %v5447_v61 = vpop.permute.xlu2 %1469  ;;  %v9647_v39 = vld [vmem:[#allocation15_spill] sm:$0xff] }
 0x113   : > { %9641 = vst [vmem:[#allocation136_spill] sm:$0xff] %v5447_v61 }
 0x114   : > { %v5449_v21 = vpop.permute.xlu1 %1416 }
 0x115   : > { %9642 = vst [vmem:[#allocation137_spill] sm:$0xff] %v5449_v21  ;;  %1575 = vrot.lane.b32.xlu0 %v4756_v49, %s4587_s12  ;;  %v9649_v21 = vld [vmem:[#allocation18_spill] sm:$0xff] }
 0x117   : > { %v5453_v19 = vpop.permute.xlu0 %1420 }
 0x118   : > { %9643 = vst [vmem:[#allocation138_spill] sm:$0xff] %v5453_v19  ;;  %1579 = vrot.lane.b32.xlu2 %v4753_v48, %s4587_s12  ;;  %v9650_v19 = vld [vmem:[#allocation19_spill] sm:$0xff] }
 0x11a   : > { %1577 = vrot.lane.b32.xlu1 %v9644_v24, %s4587_s12  ;;  %v5459_v54 = vpop.permute.xlu2 %1475  ;;  %v9653_v24 = vld [vmem:[#allocation22_spill] sm:$0xff] }
 0x11b   : > { %9645 = vst [vmem:[#allocation139_spill] sm:$0xff] %v5459_v54 }
 0x11c   : > { %v5461_v38 = vpop.permute.xlu1 %1422 }
 0x11d   : > { %9646 = vst [vmem:[#allocation140_spill] sm:$0xff] %v5461_v38  ;;  %1581 = vrot.lane.b32.xlu0 %v9647_v39, %s4587_s12  ;;  %v9655_v38 = vld [vmem:[#allocation23_spill] sm:$0xff] }
 0x11f   : > { %v5465_v61 = vpop.permute.xlu0 %1426 }
 0x120   : > { %9648 = vst [vmem:[#allocation141_spill] sm:$0xff] %v5465_v61  ;;  %1585 = vrot.lane.b32.xlu2 %v9649_v21, %s4587_s12  ;;  %v9656_v61 = vld [vmem:[#allocation25_spill] sm:$0xff] }
 0x122   : > { %1583 = vrot.lane.b32.xlu1 %v9650_v19, %s4587_s12  ;;  %v5471_v52 = vpop.permute.xlu2 %1481  ;;  %v9659_v19 = vld [vmem:[#allocation27_spill] sm:$0xff] }
 0x123   : > { %9651 = vst [vmem:[#allocation142_spill] sm:$0xff] %v5471_v52 }
 0x124   : > { %v5473_v28 = vpop.permute.xlu1 %1428 }
 0x125   : > { %9652 = vst [vmem:[#allocation143_spill] sm:$0xff] %v5473_v28  ;;  %1587 = vrot.lane.b32.xlu0 %v9653_v24, %s4587_s12  ;;  %v9661_v28 = vld [vmem:[#allocation30_spill] sm:$0xff] }
 0x127   : > { %v5477_v54 = vpop.permute.xlu0 %1432 }
 0x128   : > { %9654 = vst [vmem:[#allocation144_spill] sm:$0xff] %v5477_v54  ;;  %1591 = vrot.lane.b32.xlu2 %v9655_v38, %s4587_s12  ;;  %v9662_v54 = vld [vmem:[#allocation31_spill] sm:$0xff] }
 0x12a   : > { %1589 = vrot.lane.b32.xlu1 %v9656_v61, %s4587_s12  ;;  %v5483_v39 = vpop.permute.xlu2 %1487  ;;  %v9665_v61 = vld [vmem:[#allocation34_spill] sm:$0xff] }
 0x12b   : > { %9657 = vst [vmem:[#allocation145_spill] sm:$0xff] %v5483_v39 }
 0x12c   : > { %v5485_v21 = vpop.permute.xlu1 %1434 }
 0x12d   : > { %9658 = vst [vmem:[#allocation146_spill] sm:$0xff] %v5485_v21  ;;  %1593 = vrot.lane.b32.xlu0 %v9659_v19, %s4587_s12  ;;  %v9667_v21 = vld [vmem:[#allocation35_spill] sm:$0xff] }
 0x12f   : > { %v5489_v52 = vpop.permute.xlu0 %1471 }
 0x130   : > { %9660 = vst [vmem:[#allocation147_spill] sm:$0xff] %v5489_v52  ;;  %1597 = vrot.lane.b32.xlu2 %v9661_v28, %s4587_s12  ;;  %v9668_v52 = vld [vmem:[#allocation37_spill] sm:$0xff] }
 0x132   : > { %1595 = vrot.lane.b32.xlu1 %v9662_v54, %s4587_s12  ;;  %v5495_v24 = vpop.permute.xlu2 %1493  ;;  %v9671_v54 = vld [vmem:[#allocation39_spill] sm:$0xff] }
 0x133   : > { %9663 = vst [vmem:[#allocation148_spill] sm:$0xff] %v5495_v24 }
 0x134   : > { %v5497_v38 = vpop.permute.xlu1 %1473 }
 0x135   : > { %9664 = vst [vmem:[#allocation149_spill] sm:$0xff] %v5497_v38  ;;  %1599 = vrot.lane.b32.xlu0 %v9665_v61, %s4587_s12  ;;  %v9673_v38 = vld [vmem:[#allocation42_spill] sm:$0xff] }
 0x137   : > { %v5501_v39 = vpop.permute.xlu0 %1477 }
 0x138   : > { %9666 = vst [vmem:[#allocation150_spill] sm:$0xff] %v5501_v39  ;;  %1603 = vrot.lane.b32.xlu2 %v9667_v21, %s4587_s12  ;;  %v9674_v39 = vld [vmem:[#allocation44_spill] sm:$0xff] }
 0x13a   : > { %1601 = vrot.lane.b32.xlu1 %v9668_v52, %s4587_s12  ;;  %v5507_v19 = vpop.permute.xlu2 %1499  ;;  %v9677_v52 = vld [vmem:[#allocation46_spill] sm:$0xff] }
 0x13b   : > { %9669 = vst [vmem:[#allocation151_spill] sm:$0xff] %v5507_v19 }
 0x13c   : > { %v5509_v28 = vpop.permute.xlu1 %1479 }
 0x13d   : > { %9670 = vst [vmem:[#allocation152_spill] sm:$0xff] %v5509_v28  ;;  %1605 = vrot.lane.b32.xlu0 %v9671_v54, %s4587_s12  ;;  %v9679_v28 = vld [vmem:[#allocation47_spill] sm:$0xff] }
 0x13f   : > { %v5513_v24 = vpop.permute.xlu0 %1483 }
 0x140   : > { %9672 = vst [vmem:[#allocation153_spill] sm:$0xff] %v5513_v24  ;;  %1609 = vrot.lane.b32.xlu2 %v9673_v38, %s4587_s12  ;;  %v9680_v24 = vld [vmem:[#allocation48_spill] sm:$0xff] }
 0x142   : > { %1607 = vrot.lane.b32.xlu1 %v9674_v39, %s4587_s12  ;;  %v5519_v61 = vpop.permute.xlu2 %1505  ;;  %v9683_v39 = vld [vmem:[#allocation51_spill] sm:$0xff] }
 0x143   : > { %9675 = vst [vmem:[#allocation154_spill] sm:$0xff] %v5519_v61 }
 0x144   : > { %v5521_v21 = vpop.permute.xlu1 %1485 }
 0x145   : > { %9676 = vst [vmem:[#allocation155_spill] sm:$0xff] %v5521_v21  ;;  %1611 = vrot.lane.b32.xlu0 %v9677_v52, %s4587_s12  ;;  %v9685_v21 = vld [vmem:[#allocation54_spill] sm:$0xff] }
 0x147   : > { %v5525_v19 = vpop.permute.xlu0 %1489 }
 0x148   : > { %9678 = vst [vmem:[#allocation156_spill] sm:$0xff] %v5525_v19  ;;  %1615 = vrot.lane.b32.xlu2 %v9679_v28, %s4587_s12  ;;  %v9686_v19 = vld [vmem:[#allocation55_spill] sm:$0xff] }
 0x14a   : > { %1613 = vrot.lane.b32.xlu1 %v9680_v24, %s4587_s12  ;;  %v5531_v54 = vpop.permute.xlu2 %1511 }
 0x14b   : > { %9681 = vst [vmem:[#allocation48_spill] sm:$0xff] %v5531_v54 }
 0x14c   : > { %v5533_v38 = vpop.permute.xlu1 %1491 }
 0x14d   : > { %9682 = vst [vmem:[#allocation157_spill] sm:$0xff] %v5533_v38  ;;  %1617 = vrot.lane.b32.xlu0 %v9683_v39, %s4587_s12  ;;  %v9690_v38 = vrot.slane %v5414_v42, 7 }
 0x14f   : > { %v5537_v61 = vpop.permute.xlu0 %1495  ;;  %v5554_v39 = vsel %vm721_vm0, %v9690_v38, 0.0 }
 0x150   : > { %9684 = vst [vmem:[#allocation158_spill] sm:$0xff] %v5537_v61  ;;  %1621 = vrot.lane.b32.xlu2 %v9685_v21, %s4587_s12  ;;  %v9691_v61 = vld [vmem:[#allocation59_spill] sm:$0xff] }
 0x152   : > { %1619 = vrot.lane.b32.xlu1 %v9686_v19, %s4587_s12  ;;  %v5543_v52 = vpop.permute.xlu2 %1517 }
 0x153   : > { %9687 = vst [vmem:[#allocation54_spill] sm:$0xff] %v5543_v52  ;;  %v1567_v52 = vrot.slane %v5433_v6, 1 }
 0x154   : > { %v5545_v28 = vpop.permute.xlu1 %1497 }
 0x155   : > { %9688 = vst [vmem:[#allocation159_spill] sm:$0xff] %v5545_v28  ;;  %1623 = vrot.lane.b32.xlu0 %v5026_v62, %s4587_s12  ;;  %v1569_v28 = vrot.slane %v5554_v39, 1  ;;  %v1566_v62 = vrot.slane %v5421_v37, 1 }
 0x157   : > { %v5549_v54 = vpop.permute.xlu0 %1501  ;;  %v5570_v42 = vsel %vm1114_vm1, %v1567_v52, %v1569_v28 }
 0x158   : > { %9689 = vst [vmem:[#allocation160_spill] sm:$0xff] %v5549_v54  ;;  %1627 = vrot.lane.b32.xlu2 %v5037_v16, %s4587_s12 }
 0x15a   : > { %1625 = vrot.lane.b32.xlu1 %v9691_v61, %s4587_s12  ;;  %v5562_v19 = vpop.permute.xlu2 %1523  ;;  %v5575_v61 = vsel %vm1114_vm1, %v1566_v62, %v1567_v52 }
 0x15b   : > { %9692 = vst [vmem:[#allocation161_spill] sm:$0xff] %v5562_v19 }
 0x15c   : > { %v5565_v54 = vpop.permute.xlu1 %1503 }
 0x15d   : > { %9693 = vst [vmem:[#allocation162_spill] sm:$0xff] %v5565_v54  ;;  %1629 = vrot.lane.b32.xlu0 %v5051_v40, %s4587_s12 }
 0x15f   : > { %v5572_v38 = vpop.permute.xlu0 %1507 }
 0x160   : > { %9694 = vst [vmem:[#allocation163_spill] sm:$0xff] %v5572_v38  ;;  %1633 = vrot.lane.b32.xlu2 %v5570_v42, %s4587_s12 }
 0x162   : > { %1631 = vrot.lane.b32.xlu1 %v5575_v61, %s4587_s12  ;;  %v5581_v19 = vpop.permute.xlu2 %1529 }
 0x163   : > { %9695 = vst [vmem:[#allocation164_spill] sm:$0xff] %v5581_v19  ;;  %v9708_v19 = vld [vmem:[#allocation65_spill] sm:$0xff] }
 0x164   : > { %v5583_v54 = vpop.permute.xlu1 %1509 }
 0x165   : > { %9696 = vst [vmem:[#allocation165_spill] sm:$0xff] %v5583_v54  ;;  %1672 = vrot.lane.b32.xlu0 %v5060_v3, %s4588_s13 }
 0x167   : > { %v5587_v28 = vpop.permute.xlu0 %1513 }
 0x168   : > { %9697 = vst [vmem:[#allocation166_spill] sm:$0xff] %v5587_v28  ;;  %1676 = vrot.lane.b32.xlu2 %v5083_v20, %s4588_s13 }
 0x16a   : > { %1674 = vrot.lane.b32.xlu1 %v5070_v5, %s4588_s13  ;;  %v5593_v62 = vpop.permute.xlu2 %1573  ;;  %v9703_v5 = vld [vmem:[#allocation62_spill] sm:$0xff] }
 0x16b   : > { %9698 = vst [vmem:[#allocation167_spill] sm:$0xff] %v5593_v62 }
 0x16c   : > { %v5595_v52 = vpop.permute.xlu1 %1515 }
 0x16d   : > { %9699 = vst [vmem:[#allocation168_spill] sm:$0xff] %v5595_v52  ;;  %1678 = vrot.lane.b32.xlu0 %v5078_v1, %s4588_s13  ;;  %v9705_v52 = vld [vmem:[#allocation63_spill] sm:$0xff] }
 0x16f   : > { %v5599_v54 = vpop.permute.xlu0 %1519 }
 0x170   : > { %9700 = vst [vmem:[#allocation169_spill] sm:$0xff] %v5599_v54  ;;  %1682 = vrot.lane.b32.xlu2 %v5104_v2, %s4588_s13 }
 0x172   : > { %1680 = vrot.lane.b32.xlu1 %v5090_v23, %s4588_s13  ;;  %v5605_v3 = vpop.permute.xlu2 %1579 }
 0x173   : > { %9701 = vst [vmem:[#allocation170_spill] sm:$0xff] %v5605_v3 }
 0x174   : > { %v5607_v28 = vpop.permute.xlu1 %1521 }
 0x175   : > { %9702 = vst [vmem:[#allocation171_spill] sm:$0xff] %v5607_v28  ;;  %1684 = vrot.lane.b32.xlu0 %v9703_v5, %s4588_s13  ;;  %v9710_v28 = vld [vmem:[#allocation67_spill] sm:$0xff] }
 0x177   : > { %v5611_v38 = vpop.permute.xlu0 %1525 }
 0x178   : > { %9704 = vst [vmem:[#allocation62_spill] sm:$0xff] %v5611_v38  ;;  %1688 = vrot.lane.b32.xlu2 %v5126_v59, %s4588_s13 }
 0x17a   : > { %1686 = vrot.lane.b32.xlu1 %v9705_v52, %s4588_s13  ;;  %v5617_v54 = vpop.permute.xlu2 %1585  ;;  %v9713_v52 = vld [vmem:[#allocation69_spill] sm:$0xff] }
 0x17b   : > { %9706 = vst [vmem:[#allocation172_spill] sm:$0xff] %v5617_v54 }
 0x17c   : > { %v5619_v62 = vpop.permute.xlu1 %1527 }
 0x17d   : > { %9707 = vst [vmem:[#allocation173_spill] sm:$0xff] %v5619_v62  ;;  %1690 = vrot.lane.b32.xlu0 %v9708_v19, %s4588_s13 }
 0x17f   : > { %v5623_v3 = vpop.permute.xlu0 %1531 }
 0x180   : > { %9709 = vst [vmem:[#allocation65_spill] sm:$0xff] %v5623_v3  ;;  %1694 = vrot.lane.b32.xlu2 %v5149_v8, %s4588_s13  ;;  %v9715_v3 = vld [vmem:[#allocation72_spill] sm:$0xff] }
 0x182   : > { %1692 = vrot.lane.b32.xlu1 %v9710_v28, %s4588_s13  ;;  %v5629_v38 = vpop.permute.xlu2 %1591  ;;  %v9718_v28 = vld [vmem:[#allocation75_spill] sm:$0xff] }
 0x183   : > { %9711 = vst [vmem:[#allocation174_spill] sm:$0xff] %v5629_v38 }
 0x184   : > { %v5631_v59 = vpop.permute.xlu1 %1571 }
 0x185   : > { %9712 = vst [vmem:[#allocation175_spill] sm:$0xff] %v5631_v59  ;;  %1696 = vrot.lane.b32.xlu0 %v9713_v52, %s4588_s13 }
 0x187   : > { %v5635_v54 = vpop.permute.xlu0 %1575 }
 0x188   : > { %9714 = vst [vmem:[#allocation69_spill] sm:$0xff] %v5635_v54  ;;  %1700 = vrot.lane.b32.xlu2 %v5175_v18, %s4588_s13  ;;  %v9722_v18 = vld [vmem:[#allocation81_spill] sm:$0xff] }
 0x18a   : > { %1698 = vrot.lane.b32.xlu1 %v9715_v3, %s4588_s13  ;;  %v5641_v62 = vpop.permute.xlu2 %1597 }
 0x18b   : > { %9716 = vst [vmem:[#allocation72_spill] sm:$0xff] %v5641_v62 }
 0x18c   : > { %v5643_v8 = vpop.permute.xlu1 %1577 }
 0x18d   : > { %9717 = vst [vmem:[#allocation176_spill] sm:$0xff] %v5643_v8  ;;  %1702 = vrot.lane.b32.xlu0 %v9718_v28, %s4588_s13 }
 0x18f   : > { %v5647_v38 = vpop.permute.xlu0 %1581 }
 0x190   : > { %9719 = vst [vmem:[#allocation75_spill] sm:$0xff] %v5647_v38  ;;  %1706 = vrot.lane.b32.xlu2 %v5200_v34, %s4588_s13  ;;  %v9724_v38 = vld [vmem:[#allocation84_spill] sm:$0xff] }
 0x192   : > { %1704 = vrot.lane.b32.xlu1 %v5182_v27, %s4588_s13  ;;  %v5653_v54 = vpop.permute.xlu2 %1603  ;;  %v9727_v27 = vld [vmem:[#allocation87_spill] sm:$0xff] }
 0x193   : > { %9720 = vst [vmem:[#allocation177_spill] sm:$0xff] %v5653_v54 }
 0x194   : > { %v5655_v59 = vpop.permute.xlu1 %1583 }
 0x195   : > { %9721 = vst [vmem:[#allocation178_spill] sm:$0xff] %v5655_v59  ;;  %1708 = vrot.lane.b32.xlu0 %v9722_v18, %s4588_s13 }
 0x197   : > { %v5659_v62 = vpop.permute.xlu0 %1587 }
 0x198   : > { %9723 = vst [vmem:[#allocation81_spill] sm:$0xff] %v5659_v62  ;;  %1712 = vrot.lane.b32.xlu2 %v5226_v7, %s4588_s13 }
 0x19a   : > { %1710 = vrot.lane.b32.xlu1 %v9724_v38, %s4588_s13  ;;  %v5665_v8 = vpop.permute.xlu2 %1609 }
 0x19b   : > { %9725 = vst [vmem:[#allocation84_spill] sm:$0xff] %v5665_v8 }
 0x19c   : > { %v5667_v34 = vpop.permute.xlu1 %1589 }
 0x19d   : > { %9726 = vst [vmem:[#allocation179_spill] sm:$0xff] %v5667_v34  ;;  %1714 = vrot.lane.b32.xlu0 %v9727_v27, %s4588_s13 }
 0x19f   : > { %v5671_v54 = vpop.permute.xlu0 %1593 }
 0x1a0   : > { %9728 = vst [vmem:[#allocation87_spill] sm:$0xff] %v5671_v54  ;;  %1718 = vrot.lane.b32.xlu2 %v5251_v30, %s4588_s13  ;;  %v9732_v54 = vld [vmem:[#allocation94_spill] sm:$0xff] }
 0x1a2   : > { %1716 = vrot.lane.b32.xlu1 %v5233_v29, %s4588_s13  ;;  %v5677_v62 = vpop.permute.xlu2 %1615 }
 0x1a3   : > { %9729 = vst [vmem:[#allocation180_spill] sm:$0xff] %v5677_v62  ;;  %v1667_v62 = vrot.slane %v5421_v37, 2 }
 0x1a4   : > { %v5679_v59 = vpop.permute.xlu1 %1595 }
 0x1a5   : > { %9730 = vst [vmem:[#allocation181_spill] sm:$0xff] %v5679_v59  ;;  %1720 = vrot.lane.b32.xlu0 %v5245_v43, %s4588_s13  ;;  %v1668_v59 = vrot.slane %v5433_v6, 2 }
 0x1a7   : > { %v5683_v8 = vpop.permute.xlu0 %1599 }
 0x1a8   : > { %9731 = vst [vmem:[#allocation182_spill] sm:$0xff] %v5683_v8  ;;  %1724 = vrot.lane.b32.xlu2 %v5277_v9, %s4588_s13  ;;  %v5704_v8 = vsel %vm1291_vm2, %v1667_v62, %v1668_v59 }
 0x1aa   : > { %1722 = vrot.lane.b32.xlu1 %v9732_v54, %s4588_s13  ;;  %v5689_v34 = vpop.permute.xlu2 %1621 }
 0x1ab   : > { %9733 = vst [vmem:[#allocation94_spill] sm:$0xff] %v5689_v34 }
 0x1ac   : > { %v5691_v30 = vpop.permute.xlu1 %1601 }
 0x1ad   : > { %9734 = vst [vmem:[#allocation183_spill] sm:$0xff] %v5691_v30  ;;  %1726 = vrot.lane.b32.xlu0 %v5270_v14, %s4588_s13  ;;  %v1670_v30 = vrot.slane %v5554_v39, 2 }
 0x1af   : > { %v5697_v43 = vpop.permute.xlu0 %1605 }
 0x1b0   : > { %9735 = vst [vmem:[#allocation184_spill] sm:$0xff] %v5697_v43  ;;  %1730 = vrot.lane.b32.xlu2 %v5296_v4, %s4588_s13  ;;  %v5716_v43 = vsel %vm1291_vm2, %v1668_v59, %v1670_v30 }
 0x1b2   : > { %1728 = vrot.lane.b32.xlu1 %v5284_v26, %s4588_s13  ;;  %v5706_v34 = vpop.permute.xlu2 %1627 }
 0x1b3   : > { %9736 = vst [vmem:[#allocation185_spill] sm:$0xff] %v5706_v34 }
 0x1b4   : > { %v5709_v9 = vpop.permute.xlu1 %1607 }
 0x1b5   : > { %9737 = vst [vmem:[#allocation186_spill] sm:$0xff] %v5709_v9  ;;  %1732 = vrot.lane.b32.xlu0 %v5704_v8, %s4588_s13 }
 0x1b7   : > { %v5713_v14 = vpop.permute.xlu0 %1611 }
 0x1b8   : > { %9738 = vst [vmem:[#allocation187_spill] sm:$0xff] %v5713_v14  ;;  %1769 = vrot.lane.b32.xlu2 %v4708_v25, %s4589_s14 }
 0x1ba   : > { %1734 = vrot.lane.b32.xlu1 %v5716_v43, %s4588_s13  ;;  %v5722_v62 = vpop.permute.xlu2 %1633 }
 0x1bb   : > { %9739 = vst [vmem:[#allocation188_spill] sm:$0xff] %v5722_v62 }
 0x1bc   : > { %v5724_v39 = vpop.permute.xlu1 %1613 }
 0x1bd   : > { %9740 = vst [vmem:[#allocation189_spill] sm:$0xff] %v5724_v39  ;;  %1771 = vrot.lane.b32.xlu0 %v4699_v22, %s4589_s14 }
 0x1bf   : > { %v5728_v9 = vpop.permute.xlu0 %1617 }
 0x1c0   : > { %9741 = vst [vmem:[#allocation190_spill] sm:$0xff] %v5728_v9  ;;  %1775 = vrot.lane.b32.xlu2 %v4722_v33, %s4589_s14 }
 0x1c2   : > { %1773 = vrot.lane.b32.xlu1 %v4728_v35, %s4589_s14  ;;  %v5734_v59 = vpop.permute.xlu2 %1676 }
 0x1c3   : > { %9742 = vst [vmem:[#allocation191_spill] sm:$0xff] %v5734_v59 }
 0x1c4   : > { %v5736_v30 = vpop.permute.xlu1 %1619 }
 0x1c5   : > { %9743 = vst [vmem:[#allocation192_spill] sm:$0xff] %v5736_v30  ;;  %1777 = vrot.lane.b32.xlu0 %v4767_v56, %s4589_s14 }
 0x1c7   : > { %v5740_v14 = vpop.permute.xlu0 %1623 }
 0x1c8   : > { %9744 = vst [vmem:[#allocation193_spill] sm:$0xff] %v5740_v14  ;;  %1781 = vrot.lane.b32.xlu2 %v4784_v0, %s4589_s14 }
 0x1ca   : > { %1779 = vrot.lane.b32.xlu1 %v4760_v51, %s4589_s14  ;;  %v5746_v9 = vpop.permute.xlu2 %1682 }
 0x1cb   : > { %9745 = vst [vmem:[#allocation194_spill] sm:$0xff] %v5746_v9 }
 0x1cc   : > { %v5748_v39 = vpop.permute.xlu1 %1625 }
 0x1cd   : > { %9746 = vst [vmem:[#allocation195_spill] sm:$0xff] %v5748_v39  ;;  %1783 = vrot.lane.b32.xlu0 %v4781_v63, %s4589_s14 }
 0x1cf   : > { %v5752_v59 = vpop.permute.xlu0 %1629 }
 0x1d0   : > { %9747 = vst [vmem:[#allocation196_spill] sm:$0xff] %v5752_v59  ;;  %1787 = vrot.lane.b32.xlu2 %v4797_v10, %s4589_s14  ;;  %v6387_v10 = vld [vmem:[%s6086_s19 + $0xe8] sm:$0xff] }
 0x1d1   : > { %v9344_v63 = vrot.slane %v6387_v10, 7 }
 0x1d2   : > { %1785 = vrot.lane.b32.xlu1 %v4800_v11, %s4589_s14  ;;  %v5758_v14 = vpop.permute.xlu2 %1688 }
 0x1d3   : > { %9748 = vst [vmem:[#allocation197_spill] sm:$0xff] %v5758_v14 }
 0x1d4   : > { %v5760_v30 = vpop.permute.xlu1 %1631 }
 0x1d5   : > { %9749 = vst [vmem:[#allocation198_spill] sm:$0xff] %v5760_v30  ;;  %1789 = vrot.lane.b32.xlu0 %v4829_v36, %s4589_s14  ;;  %v882_v30 = vld [vmem:[%s6086_s19 + $0x90] sm:$0xff] }
 0x1d7   : > { %v5764_v9 = vpop.permute.xlu0 %1672 }
 0x1d8   : > { %9750 = vst [vmem:[#allocation199_spill] sm:$0xff] %v5764_v9  ;;  %1793 = vrot.lane.b32.xlu2 %v4856_v57, %s4589_s14  ;;  %v6324_v9 = vld [vmem:[%s6086_s19 + $0xb8] sm:$0xff] }
 0x1da   : > { %1791 = vrot.lane.b32.xlu1 %v4835_v41, %s4589_s14  ;;  %v5770_v39 = vpop.permute.xlu2 %1694 }
 0x1db   : > { %9751 = vst [vmem:[#allocation200_spill] sm:$0xff] %v5770_v39 }
 0x1dc   : > { %v5772_v62 = vpop.permute.xlu1 %1674 }
 0x1dd   : > { %9752 = vst [vmem:[#allocation201_spill] sm:$0xff] %v5772_v62  ;;  %1795 = vrot.lane.b32.xlu0 %v4853_v55, %s4589_s14  ;;  %v6261_v62 = vld [vmem:[%s6086_s19 + $0x88] sm:$0xff] }
 0x1df   : > { %v5776_v14 = vpop.permute.xlu0 %1678 }
 0x1e0   : > { %9753 = vst [vmem:[#allocation202_spill] sm:$0xff] %v5776_v14  ;;  %1799 = vrot.lane.b32.xlu2 %v4870_v13, %s4589_s14 }
 0x1e2   : > { %1797 = vrot.lane.b32.xlu1 %v4873_v15, %s4589_s14  ;;  %v5782_v36 = vpop.permute.xlu2 %1700 }
 0x1e3   : > { %9754 = vst [vmem:[#allocation203_spill] sm:$0xff] %v5782_v36 }
 0x1e4   : > { %v5784_v57 = vpop.permute.xlu1 %1680 }
 0x1e5   : > { %9755 = vst [vmem:[#allocation204_spill] sm:$0xff] %v5784_v57  ;;  %1801 = vrot.lane.b32.xlu0 %v4911_v17, %s4589_s14 }
 0x1e7   : > { %v5788_v39 = vpop.permute.xlu0 %1684 }
 0x1e8   : > { %9756 = vst [vmem:[#allocation205_spill] sm:$0xff] %v5788_v39  ;;  %1805 = vrot.lane.b32.xlu2 %v4928_v44, %s4589_s14 }
 0x1ea   : > { %1803 = vrot.lane.b32.xlu1 %v4901_v53, %s4589_s14  ;;  %v5794_v55 = vpop.permute.xlu2 %1706 }
 0x1eb   : > { %9757 = vst [vmem:[#allocation206_spill] sm:$0xff] %v5794_v55 }
 0x1ec   : > { %v5796_v13 = vpop.permute.xlu1 %1686 }
 0x1ed   : > { %9758 = vst [vmem:[#allocation207_spill] sm:$0xff] %v5796_v13  ;;  %1807 = vrot.lane.b32.xlu0 %v4925_v32, %s4589_s14 }
 0x1ef   : > { %v5800_v36 = vpop.permute.xlu0 %1690 }
 0x1f0   : > { %9759 = vst [vmem:[#allocation208_spill] sm:$0xff] %v5800_v36  ;;  %1811 = vrot.lane.b32.xlu2 %v4947_v60, %s4589_s14 }
 0x1f2   : > { %1809 = vrot.lane.b32.xlu1 %v4938_v50, %s4589_s14  ;;  %v5806_v17 = vpop.permute.xlu2 %1712 }
 0x1f3   : > { %9760 = vst [vmem:[#allocation209_spill] sm:$0xff] %v5806_v17 }
 0x1f4   : > { %v5808_v44 = vpop.permute.xlu1 %1692 }
 0x1f5   : > { %9761 = vst [vmem:[#allocation210_spill] sm:$0xff] %v5808_v44  ;;  %1813 = vrot.lane.b32.xlu0 %v4982_v45, %s4589_s14 }
 0x1f7   : > { %v5812_v53 = vpop.permute.xlu0 %1696 }
 0x1f8   : > { %9762 = vst [vmem:[#allocation211_spill] sm:$0xff] %v5812_v53  ;;  %1817 = vrot.lane.b32.xlu2 %v5000_v47, %s4589_s14 }
 0x1fa   : > { %1815 = vrot.lane.b32.xlu1 %v4976_v31, %s4589_s14  ;;  %v5818_v32 = vpop.permute.xlu2 %1718  ;;  %v9769_v31 = vld [vmem:[#allocation2_spill] sm:$0xff] }
 0x1fb   : > { %9763 = vst [vmem:[#allocation212_spill] sm:$0xff] %v5818_v32  ;;  %v9768_v32 = vld [vmem:[#allocation3_spill] sm:$0xff] }
 0x1fc   : > { %v5820_v60 = vpop.permute.xlu1 %1698  ;;  %v5838_v55 = vpack.i.bf16 %v9769_v31, %v9768_v32 }
 0x1fd   : > { %9764 = vst [vmem:[#allocation213_spill] sm:$0xff] %v5820_v60  ;;  %1819 = vrot.lane.b32.xlu0 %v4997_v46, %s4589_s14 }
 0x1ff   : > { %v5824_v50 = vpop.permute.xlu0 %1702 }
 0x200   : > { %9765 = vst [vmem:[#allocation214_spill] sm:$0xff] %v5824_v50  ;;  %1823 = vrot.lane.b32.xlu2 %v5013_v58, %s4589_s14  ;;  %v9779_v50 = vld [vmem:[#allocation18_spill] sm:$0xff] }
 0x202   : > { %1821 = vrot.lane.b32.xlu1 %v5016_v12, %s4589_s14  ;;  %v5830_v45 = vpop.permute.xlu2 %1724 }
 0x203   : > { %9766 = vst [vmem:[#allocation215_spill] sm:$0xff] %v5830_v45 }
 0x204   : > { %v5832_v17 = vpop.permute.xlu1 %1704 }
 0x205   : > { %9767 = vst [vmem:[#allocation216_spill] sm:$0xff] %v5832_v17  ;;  %1825 = vrot.lane.b32.xlu0 %v5421_v37, %s4589_s14  ;;  %v9774_v17 = vld [vmem:[#allocation11_spill] sm:$0xff] }
 0x207   : > { %v5840_v60 = vpop.permute.xlu0 %1708 }
 0x208   : > { %9770 = vst [vmem:[#allocation217_spill] sm:$0xff] %v5840_v60  ;;  %4524 = vrot.lane.b32.xlu2 %v5838_v55, %s4589_s14 }
 0x20a   : > { %1827 = vrot.lane.b32.xlu1 %v5433_v6, %s4589_s14  ;;  %v5846_v44 = vpop.permute.xlu2 %1730  ;;  %v9777_v6 = vld [vmem:[#allocation15_spill] sm:$0xff] }
 0x20b   : > { %9771 = vst [vmem:[#allocation218_spill] sm:$0xff] %v5846_v44 }
 0x20c   : > { %v5848_v45 = vpop.permute.xlu1 %1710 }
 0x20d   : > { %9772 = vst [vmem:[#allocation219_spill] sm:$0xff] %v5848_v45  ;;  %1871 = vrot.lane.b32.xlu0 %v4756_v49, %s4590_s15  ;;  %v9780_v49 = vld [vmem:[#allocation19_spill] sm:$0xff] }
 0x20f   : > { %v5852_v37 = vpop.permute.xlu0 %1714 }
 0x210   : > { %9773 = vst [vmem:[#allocation220_spill] sm:$0xff] %v5852_v37  ;;  %1875 = vrot.lane.b32.xlu2 %v4753_v48, %s4590_s15 }
 0x212   : > { %1873 = vrot.lane.b32.xlu1 %v9774_v17, %s4590_s15  ;;  %v5858_v60 = vpop.permute.xlu2 %1769  ;;  %v9783_v17 = vld [vmem:[#allocation22_spill] sm:$0xff] }
 0x213   : > { %9775 = vst [vmem:[#allocation11_spill] sm:$0xff] %v5858_v60 }
 0x214   : > { %v5860_v13 = vpop.permute.xlu1 %1716 }
 0x215   : > { %9776 = vst [vmem:[#allocation221_spill] sm:$0xff] %v5860_v13  ;;  %1877 = vrot.lane.b32.xlu0 %v9777_v6, %s4590_s15  ;;  %v9785_v13 = vld [vmem:[#allocation23_spill] sm:$0xff]  ;;  %v9786_v6 = vld [vmem:[#allocation25_spill] sm:$0xff] }
 0x217   : > { %v5864_v45 = vpop.permute.xlu0 %1720 }
 0x218   : > { %9778 = vst [vmem:[#allocation15_spill] sm:$0xff] %v5864_v45  ;;  %1881 = vrot.lane.b32.xlu2 %v9779_v50, %s4590_s15 }
 0x21a   : > { %1879 = vrot.lane.b32.xlu1 %v9780_v49, %s4590_s15  ;;  %v5870_v37 = vpop.permute.xlu2 %1775  ;;  %v9789_v49 = vld [vmem:[#allocation27_spill] sm:$0xff] }
 0x21b   : > { %9781 = vst [vmem:[#allocation18_spill] sm:$0xff] %v5870_v37  ;;  %v970_v37 = vrot.slane %v882_v30, 7 }
 0x21c   : > { %v5872_v48 = vpop.permute.xlu1 %1722 }
 0x21d   : > { %9782 = vst [vmem:[#allocation19_spill] sm:$0xff] %v5872_v48  ;;  %1883 = vrot.lane.b32.xlu0 %v9783_v17, %s4590_s15  ;;  %v9791_v48 = vld [vmem:[#allocation30_spill] sm:$0xff]  ;;  %v9792_v17 = vld [vmem:[#allocation31_spill] sm:$0xff] }
 0x21f   : > { %v5876_v57 = vpop.permute.xlu0 %1726 }
 0x220   : > { %9784 = vst [vmem:[#allocation22_spill] sm:$0xff] %v5876_v57  ;;  %1887 = vrot.lane.b32.xlu2 %v9785_v13, %s4590_s15 }
 0x222   : > { %1885 = vrot.lane.b32.xlu1 %v9786_v6, %s4590_s15  ;;  %v5882_v45 = vpop.permute.xlu2 %1781  ;;  %v9795_v6 = vld [vmem:[#allocation34_spill] sm:$0xff] }
 0x223   : > { %9787 = vst [vmem:[#allocation23_spill] sm:$0xff] %v5882_v45 }
 0x224   : > { %v5884_v50 = vpop.permute.xlu1 %1728 }
 0x225   : > { %9788 = vst [vmem:[#allocation25_spill] sm:$0xff] %v5884_v50  ;;  %1889 = vrot.lane.b32.xlu0 %v9789_v49, %s4590_s15  ;;  %v9797_v50 = vld [vmem:[#allocation35_spill] sm:$0xff]  ;;  %v9798_v49 = vld [vmem:[#allocation37_spill] sm:$0xff] }
 0x227   : > { %v5888_v53 = vpop.permute.xlu0 %1732 }
 0x228   : > { %9790 = vst [vmem:[#allocation27_spill] sm:$0xff] %v5888_v53  ;;  %1893 = vrot.lane.b32.xlu2 %v9791_v48, %s4590_s15 }
 0x22a   : > { %1891 = vrot.lane.b32.xlu1 %v9792_v17, %s4590_s15  ;;  %v5894_v57 = vpop.permute.xlu2 %1787  ;;  %v9801_v17 = vld [vmem:[#allocation39_spill] sm:$0xff] }
 0x22b   : > { %9793 = vst [vmem:[#allocation30_spill] sm:$0xff] %v5894_v57 }
 0x22c   : > { %v5896_v13 = vpop.permute.xlu1 %1734 }
 0x22d   : > { %9794 = vst [vmem:[#allocation31_spill] sm:$0xff] %v5896_v13  ;;  %1895 = vrot.lane.b32.xlu0 %v9795_v6, %s4590_s15  ;;  %v9803_v13 = vld [vmem:[#allocation42_spill] sm:$0xff]  ;;  %v9804_v6 = vld [vmem:[#allocation44_spill] sm:$0xff] }
 0x22f   : > { %v5900_v45 = vpop.permute.xlu0 %1771 }
 0x230   : > { %9796 = vst [vmem:[#allocation34_spill] sm:$0xff] %v5900_v45  ;;  %1899 = vrot.lane.b32.xlu2 %v9797_v50, %s4590_s15 }
 0x232   : > { %1897 = vrot.lane.b32.xlu1 %v9798_v49, %s4590_s15  ;;  %v5906_v53 = vpop.permute.xlu2 %1793  ;;  %v9807_v49 = vld [vmem:[#allocation46_spill] sm:$0xff] }
 0x233   : > { %9799 = vst [vmem:[#allocation35_spill] sm:$0xff] %v5906_v53 }
 0x234   : > { %v5908_v48 = vpop.permute.xlu1 %1773 }
 0x235   : > { %9800 = vst [vmem:[#allocation37_spill] sm:$0xff] %v5908_v48  ;;  %1901 = vrot.lane.b32.xlu0 %v9801_v17, %s4590_s15  ;;  %v9809_v48 = vld [vmem:[#allocation47_spill] sm:$0xff] }
 0x237   : > { %v5912_v57 = vpop.permute.xlu0 %1777 }
 0x238   : > { %9802 = vst [vmem:[#allocation39_spill] sm:$0xff] %v5912_v57  ;;  %1905 = vrot.lane.b32.xlu2 %v9803_v13, %s4590_s15 }
 0x23a   : > { %1903 = vrot.lane.b32.xlu1 %v9804_v6, %s4590_s15  ;;  %v5918_v45 = vpop.permute.xlu2 %1799  ;;  %v9812_v6 = vld [vmem:[#allocation51_spill] sm:$0xff] }
 0x23b   : > { %9805 = vst [vmem:[#allocation42_spill] sm:$0xff] %v5918_v45 }
 0x23c   : > { %v5920_v50 = vpop.permute.xlu1 %1779 }
 0x23d   : > { %9806 = vst [vmem:[#allocation44_spill] sm:$0xff] %v5920_v50  ;;  %1907 = vrot.lane.b32.xlu0 %v9807_v49, %s4590_s15  ;;  %v9814_v49 = vld [vmem:[#allocation55_spill] sm:$0xff] }
 0x23f   : > { %v5924_v53 = vpop.permute.xlu0 %1783 }
 0x240   : > { %9808 = vst [vmem:[#allocation46_spill] sm:$0xff] %v5924_v53  ;;  %1911 = vrot.lane.b32.xlu2 %v9809_v48, %s4590_s15 }
 0x242   : > { %1909 = vrot.lane.b32.xlu1 %v9680_v24, %s4590_s15  ;;  %v5930_v17 = vpop.permute.xlu2 %1805  ;;  %v9817_v24 = vld [vmem:[#allocation58_spill] sm:$0xff] }
 0x243   : > { %9810 = vst [vmem:[#allocation47_spill] sm:$0xff] %v5930_v17 }
 0x244   : > { %v5932_v13 = vpop.permute.xlu1 %1785 }
 0x245   : > { %9811 = vst [vmem:[#allocation222_spill] sm:$0xff] %v5932_v13  ;;  %1913 = vrot.lane.b32.xlu0 %v9812_v6, %s4590_s15  ;;  %v9819_v6 = vld [vmem:[#allocation59_spill] sm:$0xff] }
 0x247   : > { %v5936_v45 = vpop.permute.xlu0 %1789 }
 0x248   : > { %9813 = vst [vmem:[#allocation51_spill] sm:$0xff] %v5936_v45  ;;  %1917 = vrot.lane.b32.xlu2 %v9685_v21, %s4590_s15 }
 0x24a   : > { %1915 = vrot.lane.b32.xlu1 %v9814_v49, %s4590_s15  ;;  %v5942_v53 = vpop.permute.xlu2 %1811 }
 0x24b   : > { %9815 = vst [vmem:[#allocation55_spill] sm:$0xff] %v5942_v53 }
 0x24c   : > { %v5944_v48 = vpop.permute.xlu1 %1791 }
 0x24d   : > { %9816 = vst [vmem:[#allocation223_spill] sm:$0xff] %v5944_v48  ;;  %1919 = vrot.lane.b32.xlu0 %v9817_v24, %s4590_s15  ;;  %v868_v48 = vld [vmem:[%s6086_s19 + $0x20] sm:$0xff] }
 0x24f   : > { %v5948_v17 = vpop.permute.xlu0 %1795 }
 0x250   : > { %9818 = vst [vmem:[#allocation58_spill] sm:$0xff] %v5948_v17  ;;  %1923 = vrot.lane.b32.xlu2 %v5037_v16, %s4590_s15 }
 0x252   : > { %1921 = vrot.lane.b32.xlu1 %v9819_v6, %s4590_s15  ;;  %v5954_v45 = vpop.permute.xlu2 %1817  ;;  %v9825_v6 = vld [vmem:[#allocation5_spill] sm:$0xff] }
 0x253   : > { %9820 = vst [vmem:[#allocation59_spill] sm:$0xff] %v5954_v45 }
 0x254   : > { %v5956_v21 = vpop.permute.xlu1 %1797 }
 0x255   : > { %9821 = vst [vmem:[#allocation224_spill] sm:$0xff] %v5956_v21  ;;  %1925 = vrot.lane.b32.xlu0 %v5051_v40, %s4590_s15  ;;  %v6103_v21 = vld [vmem:[%s6086_s19 + $0x8] sm:$0xff] }
 0x257   : > { %v5960_v49 = vpop.permute.xlu0 %1801 }
 0x258   : > { %9822 = vst [vmem:[#allocation225_spill] sm:$0xff] %v5960_v49  ;;  %1929 = vrot.lane.b32.xlu2 %v5570_v42, %s4590_s15 }
 0x25a   : > { %1927 = vrot.lane.b32.xlu1 %v5575_v61, %s4590_s15  ;;  %v5966_v24 = vpop.permute.xlu2 %1823 }
 0x25b   : > { %9823 = vst [vmem:[#allocation226_spill] sm:$0xff] %v5966_v24 }
 0x25c   : > { %v5968_v16 = vpop.permute.xlu1 %1803 }
 0x25d   : > { %9824 = vst [vmem:[#allocation227_spill] sm:$0xff] %v5968_v16  ;;  %4529 = vrot.lane.b32.xlu0 %v9825_v6, %s4590_s15  ;;  %v9856_v16 = vld [vmem:[#allocation93_spill] sm:$0xff] }
 0x25f   : > { %v5972_v53 = vpop.permute.xlu0 %1807 }
 0x260   : > { %9826 = vst [vmem:[#allocation228_spill] sm:$0xff] %v5972_v53  ;;  %1974 = vrot.lane.b32.xlu2 %v5078_v1, %s4591_s16 }
 0x262   : > { %1972 = vrot.lane.b32.xlu1 %v5083_v20, %s4591_s16  ;;  %v5978_v40 = vpop.permute.xlu2 %4524  ;;  %v9832_v20 = vld [vmem:[#allocation63_spill] sm:$0xff] }
 0x263   : > { %9827 = vst [vmem:[#allocation229_spill] sm:$0xff] %v5978_v40 }
 0x264   : > { %v5980_v42 = vpop.permute.xlu1 %1809 }
 0x265   : > { %9828 = vst [vmem:[#allocation230_spill] sm:$0xff] %v5980_v42  ;;  %1976 = vrot.lane.b32.xlu0 %v5090_v23, %s4591_s16  ;;  %v9834_v23 = vld [vmem:[#allocation66_spill] sm:$0xff] }
 0x267   : > { %v5984_v61 = vpop.permute.xlu0 %1813 }
 0x268   : > { %9829 = vst [vmem:[#allocation231_spill] sm:$0xff] %v5984_v61  ;;  %1980 = vrot.lane.b32.xlu2 %v9703_v5, %s4591_s16 }
 0x26a   : > { %1978 = vrot.lane.b32.xlu1 %v5104_v2, %s4591_s16  ;;  %v5990_v24 = vpop.permute.xlu2 %1875  ;;  %v9837_v2 = vld [vmem:[#allocation67_spill] sm:$0xff] }
 0x26b   : > { %9830 = vst [vmem:[#allocation232_spill] sm:$0xff] %v5990_v24  ;;  %v6198_v24 = vld [vmem:[%s6086_s19 + $0x58] sm:$0xff] }
 0x26c   : > { %v5992_v1 = vpop.permute.xlu1 %1815 }
 0x26d   : > { %9831 = vst [vmem:[#allocation233_spill] sm:$0xff] %v5992_v1  ;;  %1982 = vrot.lane.b32.xlu0 %v9832_v20, %s4591_s16  ;;  %v9839_v20 = vld [vmem:[#allocation71_spill] sm:$0xff] }
 0x26f   : > { %v5996_v45 = vpop.permute.xlu0 %1819 }
 0x270   : > { %9833 = vst [vmem:[#allocation63_spill] sm:$0xff] %v5996_v45  ;;  %1986 = vrot.lane.b32.xlu2 %v9708_v19, %s4591_s16 }
 0x272   : > { %1984 = vrot.lane.b32.xlu1 %v9834_v23, %s4591_s16  ;;  %v6002_v61 = vpop.permute.xlu2 %1881 }
 0x273   : > { %9835 = vst [vmem:[#allocation66_spill] sm:$0xff] %v6002_v61  ;;  %v6166_v61 = vld [vmem:[%s6086_s19 + $0x38] sm:$0xff] }
 0x274   : > { %v6004_v5 = vpop.permute.xlu1 %1821 }
 0x275   : > { %9836 = vst [vmem:[#allocation234_spill] sm:$0xff] %v6004_v5  ;;  %1988 = vrot.lane.b32.xlu0 %v9837_v2, %s4591_s16  ;;  %v9843_v2 = vld [vmem:[#allocation77_spill] sm:$0xff] }
 0x277   : > { %v6008_v42 = vpop.permute.xlu0 %1825 }
 0x278   : > { %9838 = vst [vmem:[#allocation67_spill] sm:$0xff] %v6008_v42  ;;  %1992 = vrot.lane.b32.xlu2 %v9713_v52, %s4591_s16 }
 0x27a   : > { %1990 = vrot.lane.b32.xlu1 %v9839_v20, %s4591_s16  ;;  %v6014_v1 = vpop.permute.xlu2 %1887  ;;  %v9846_v20 = vld [vmem:[#allocation78_spill] sm:$0xff] }
 0x27b   : > { %9840 = vst [vmem:[#allocation71_spill] sm:$0xff] %v6014_v1  ;;  %v870_v1 = vld [vmem:[%s6086_s19 + $0x30] sm:$0xff] }
 0x27c   : > { %v6016_v19 = vpop.permute.xlu1 %1827 }
 0x27d   : > { %9841 = vst [vmem:[#allocation235_spill] sm:$0xff] %v6016_v19  ;;  %1994 = vrot.lane.b32.xlu0 %v9715_v3, %s4591_s16  ;;  %v9848_v3 = vld [vmem:[#allocation83_spill] sm:$0xff] }
 0x27f   : > { %v6020_v23 = vpop.permute.xlu0 %1871 }
 0x280   : > { %9842 = vst [vmem:[#allocation236_spill] sm:$0xff] %v6020_v23  ;;  %1998 = vrot.lane.b32.xlu2 %v9718_v28, %s4591_s16 }
 0x282   : > { %1996 = vrot.lane.b32.xlu1 %v9843_v2, %s4591_s16  ;;  %v6026_v5 = vpop.permute.xlu2 %1893 }
 0x283   : > { %9844 = vst [vmem:[#allocation77_spill] sm:$0xff] %v6026_v5 }
 0x284   : > { %v6028_v52 = vpop.permute.xlu1 %1873 }
 0x285   : > { %9845 = vst [vmem:[#allocation237_spill] sm:$0xff] %v6028_v52  ;;  %2000 = vrot.lane.b32.xlu0 %v9846_v20, %s4591_s16 }
 0x287   : > { %v6032_v45 = vpop.permute.xlu0 %1877 }
 0x288   : > { %9847 = vst [vmem:[#allocation78_spill] sm:$0xff] %v6032_v45  ;;  %2004 = vrot.lane.b32.xlu2 %v9722_v18, %s4591_s16 }
 0x28a   : > { %2002 = vrot.lane.b32.xlu1 %v9848_v3, %s4591_s16  ;;  %v6038_v53 = vpop.permute.xlu2 %1899 }
 0x28b   : > { %9849 = vst [vmem:[#allocation83_spill] sm:$0xff] %v6038_v53 }
 0x28c   : > { %v6040_v28 = vpop.permute.xlu1 %1879 }
 0x28d   : > { %9850 = vst [vmem:[#allocation238_spill] sm:$0xff] %v6040_v28  ;;  %2006 = vrot.lane.b32.xlu0 %v9724_v38, %s4591_s16  ;;  %v9855_v38 = vld [vmem:[#allocation91_spill] sm:$0xff] }
 0x28f   : > { %v6044_v2 = vpop.permute.xlu0 %1883 }
 0x290   : > { %9851 = vst [vmem:[#allocation239_spill] sm:$0xff] %v6044_v2  ;;  %2010 = vrot.lane.b32.xlu2 %v9727_v27, %s4591_s16 }
 0x292   : > { %2008 = vrot.lane.b32.xlu1 %v5226_v7, %s4591_s16  ;;  %v6050_v20 = vpop.permute.xlu2 %1905 }
 0x293   : > { %9852 = vst [vmem:[#allocation240_spill] sm:$0xff] %v6050_v20  ;;  %v9860_v20 = vld [vmem:[#allocation97_spill] sm:$0xff] }
 0x294   : > { %v6052_v18 = vpop.permute.xlu1 %1885 }
 0x295   : > { %9853 = vst [vmem:[#allocation241_spill] sm:$0xff] %v6052_v18  ;;  %2012 = vrot.lane.b32.xlu0 %v5233_v29, %s4591_s16  ;;  %v9861_v29 = vld [vmem:[#allocation99_spill] sm:$0xff]  ;;  %v952_v18 = vrot.slane %v870_v1, 7 }
 0x297   : > { %v6056_v3 = vpop.permute.xlu0 %1889 }
 0x298   : > { %9854 = vst [vmem:[#allocation242_spill] sm:$0xff] %v6056_v3  ;;  %2016 = vrot.lane.b32.xlu2 %v9855_v38, %s4591_s16 }
 0x29a   : > { %2014 = vrot.lane.b32.xlu1 %v9856_v16, %s4591_s16  ;;  %v6062_v27 = vpop.permute.xlu2 %1911 }
 0x29b   : > { %9857 = vst [vmem:[#allocation91_spill] sm:$0xff] %v6062_v27  ;;  %v866_v27 = vld [vmem:[%s6086_s19 + $0x10] sm:$0xff] }
 0x29c   : > { %v6064_v49 = vpop.permute.xlu1 %1891 }
 0x29d   : > { %9858 = vst [vmem:[#allocation93_spill] sm:$0xff] %v6064_v49  ;;  %2018 = vrot.lane.b32.xlu0 %v9732_v54, %s4591_s16  ;;  %v6135_v49 = vld [vmem:[%s6086_s19 + $0x28] sm:$0xff] }
 0x29f   : > { %v6068_v7 = vpop.permute.xlu0 %1895 }
 0x2a0   : > { %9859 = vst [vmem:[#allocation243_spill] sm:$0xff] %v6068_v7  ;;  %2022 = vrot.lane.b32.xlu2 %v9860_v20, %s4591_s16  ;;  %v876_v7 = vld [vmem:[%s6086_s19 + $0x60] sm:$0xff] }
 0x2a1   : > { %v961_v3 = vrot.slane %v876_v7, 7 }
 0x2a2   : > { %2020 = vrot.lane.b32.xlu1 %v9861_v29, %s4591_s16  ;;  %v6074_v53 = vpop.permute.xlu2 %1917 }
 0x2a3   : > { %9862 = vst [vmem:[#allocation97_spill] sm:$0xff] %v6074_v53 }
 0x2a4   : > { %v6076_v38 = vpop.permute.xlu1 %1897 }
 0x2a5   : > { %9863 = vst [vmem:[#allocation99_spill] sm:$0xff] %v6076_v38  ;;  %2024 = vrot.lane.b32.xlu0 %v5284_v26, %s4591_s16  ;;  %v864_v26 = vld [vmem:[%s6086_s19] sm:$0xff] }
 0x2a6   : > { %v943_v29 = vrot.slane %v864_v26, 7  ;;  %v9320_v26 = vrot.slane %v6103_v21, 7 }
 0x2a7   : > { %v6080_v16 = vpop.permute.xlu0 %1901 }
 0x2a8   : > { %9864 = vst [vmem:[#allocation244_spill] sm:$0xff] %v6080_v16  ;;  %2028 = vrot.lane.b32.xlu2 %v5704_v8, %s4591_s16  ;;  %v9868_v8 = vld [vmem:[#allocation60_spill] sm:$0xff] }
 0x2aa   : > { %2026 = vrot.lane.b32.xlu1 %v5296_v4, %s4591_s16  ;;  %v6092_v54 = vpop.permute.xlu2 %1923  ;;  %v6110_v4 = vsel %vm721_vm0, 0.0, %v943_v29 }
 0x2ab   : > { %9865 = vst [vmem:[#allocation245_spill] sm:$0xff] %v6092_v54  ;;  %v946_v54 = vrot.slane %v866_v27, 7  ;;  %v6131_v27 = vsel %vm721_vm0, %v943_v29, %v9320_v26  ;;  %v9322_v29 = vrot.slane %v6135_v49, 7 }
 0x2ac   : > { %v6095_v20 = vpop.permute.xlu1 %1903 }
 0x2ad   : > { %9866 = vst [vmem:[#allocation246_spill] sm:$0xff] %v6095_v20  ;;  %2030 = vrot.lane.b32.xlu0 %v5716_v43, %s4591_s16  ;;  %v6116_v20 = vld [vmem:[%s6086_s19 + $0x18] sm:$0xff] }
 0x2ae   : > { %v9321_v17 = vrot.slane %v6116_v20, 7 }
 0x2af   : > { %v6099_v53 = vpop.permute.xlu0 %1907 }
 0x2b0   : > { %9867 = vst [vmem:[#allocation247_spill] sm:$0xff] %v6099_v53  ;;  %4539 = vrot.lane.b32.xlu2 %v5838_v55, %s4592_s20  ;;  %v6123_v55 = vsel %vm721_vm0, 0.0, %v946_v54 }
 0x2b1   : > { %9871 = vst [vmem:[#allocation249_spill] sm:$0xff] %v6123_v55 }
 0x2b2   : > { %4534 = vrot.lane.b32.xlu1 %v9868_v8, %s4591_s16  ;;  %v6112_v43 = vpop.permute.xlu2 %1929 }
 0x2b3   : > { %9869 = vst [vmem:[#allocation60_spill] sm:$0xff] %v6112_v43  ;;  %v888_v43 = vld [vmem:[%s6086_s19 + $0xc0] sm:$0xff] }
 0x2b4   : > { %v6118_v38 = vpop.permute.xlu1 %1909  ;;  %v979_v59 = vrot.slane %v888_v43, 7 }
 0x2b5   : > { %9870 = vst [vmem:[#allocation248_spill] sm:$0xff] %v6118_v38  ;;  %2088 = vrot.lane.b32.xlu0 %v6110_v4, %s4592_s20  ;;  %v949_v38 = vrot.slane %v868_v48, 7 }
 0x2b7   : > { %v6126_v5 = vpop.permute.xlu0 %1913  ;;  %v6157_v13 = vsel %vm721_vm0, %v949_v38, %v9322_v29  ;;  %v6162_v48 = vsel %vm721_vm0, 0.0, %v949_v38  ;;  %v6173_v29 = vsel %vm721_vm0, 0.0, %v952_v18  ;;  %v9323_v38 = vrot.slane %v6166_v61, 7 }
 0x2b8   : > { %9872 = vst [vmem:[#allocation250_spill] sm:$0xff] %v6126_v5  ;;  %2092 = vrot.lane.b32.xlu2 %v6123_v55, %s4592_s20  ;;  %v6144_v5 = vsel %vm721_vm0, %v946_v54, %v9321_v17  ;;  %v872_v17 = vld [vmem:[%s6086_s19 + $0x40] sm:$0xff] }
 0x2b9   : > { %9873 = vst [vmem:[#allocation251_spill] sm:$0xff] %v6144_v5  ;;  %v955_v1 = vrot.slane %v872_v17, 7  ;;  %v6194_v17 = vsel %vm721_vm0, %v952_v18, %v9323_v38  ;;  %v9325_v18 = vrot.slane %v6198_v24, 7  ;;  %v2207_v15 = vrot.slane %v6144_v5, 1 }
 0x2ba   : > { %2090 = vrot.lane.b32.xlu1 %v6131_v27, %s4592_s20  ;;  %v6147_v26 = vpop.permute.xlu2 %1974  ;;  %9876 = vst [vmem:[#allocation254_spill] sm:$0xff] %v6157_v13 }
 0x2bb   : > { %9874 = vst [vmem:[#allocation252_spill] sm:$0xff] %v6147_v26  ;;  %v6186_v50 = vsel %vm721_vm0, 0.0, %v955_v1 }
 0x2bc   : > { %v6150_v53 = vpop.permute.xlu1 %1915  ;;  %9878 = vst [vmem:[#allocation256_spill] sm:$0xff] %v6162_v48 }
 0x2bd   : > { %9875 = vst [vmem:[#allocation253_spill] sm:$0xff] %v6150_v53  ;;  %2094 = vrot.lane.b32.xlu0 %v6144_v5, %s4592_s20 }
 0x2be   : > { %9879 = vst [vmem:[#allocation257_spill] sm:$0xff] %v6173_v29 }
 0x2bf   : > { %v6159_v54 = vpop.permute.xlu0 %1919  ;;  %9882 = vst [vmem:[#allocation260_spill] sm:$0xff] %v6186_v50 }
 0x2c0   : > { %9877 = vst [vmem:[#allocation255_spill] sm:$0xff] %v6159_v54  ;;  %2098 = vrot.lane.b32.xlu2 %v6157_v13, %s4592_s20  ;;  %v6179_v54 = vld [vmem:[%s6086_s19 + $0x48] sm:$0xff] }
 0x2c1   : > { %v9324_v28 = vrot.slane %v6179_v54, 7  ;;  %9884 = vst [vmem:[#allocation262_spill] sm:$0xff] %v6194_v17  ;;  %v9947_v51 = vrot.slane %v6179_v54, 7 }
 0x2c2   : > { %2096 = vrot.lane.b32.xlu1 %v6162_v48, %s4592_s20  ;;  %v6175_v53 = vpop.permute.xlu2 %1980 }
 0x2c3   : > { %9880 = vst [vmem:[#allocation258_spill] sm:$0xff] %v6175_v53  ;;  %v874_v53 = vld [vmem:[%s6086_s19 + $0x50] sm:$0xff] }
 0x2c4   : > { %v6181_v16 = vpop.permute.xlu1 %1921 }
 0x2c5   : > { %9881 = vst [vmem:[#allocation259_spill] sm:$0xff] %v6181_v16  ;;  %2100 = vrot.lane.b32.xlu0 %v6173_v29, %s4592_s20  ;;  %v958_v16 = vrot.slane %v874_v53, 7 }
 0x2c7   : > { %v6189_v57 = vpop.permute.xlu0 %1925  ;;  %v6220_v52 = vsel %vm721_vm0, %v958_v16, %v9325_v18  ;;  %v6225_v53 = vsel %vm721_vm0, 0.0, %v958_v16  ;;  %v6236_v18 = vsel %vm721_vm0, 0.0, %v961_v3 }
 0x2c8   : > { %9883 = vst [vmem:[#allocation261_spill] sm:$0xff] %v6189_v57  ;;  %2104 = vrot.lane.b32.xlu2 %v6186_v50, %s4592_s20  ;;  %v6207_v57 = vsel %vm721_vm0, %v955_v1, %v9324_v28  ;;  %v878_v28 = vld [vmem:[%s6086_s19 + $0x70] sm:$0xff]  ;;  %v2226_v35 = vrot.slane %v6225_v53, 1 }
 0x2c9   : > { %9885 = vst [vmem:[#allocation263_spill] sm:$0xff] %v6207_v57  ;;  %v964_v7 = vrot.slane %v878_v28, 7 }
 0x2ca   : > { %2102 = vrot.lane.b32.xlu1 %v6194_v17, %s4592_s20  ;;  %v6210_v38 = vpop.permute.xlu2 %1986  ;;  %9888 = vst [vmem:[#allocation266_spill] sm:$0xff] %v6220_v52 }
 0x2cb   : > { %9886 = vst [vmem:[#allocation264_spill] sm:$0xff] %v6210_v38  ;;  %v6229_v38 = vld [vmem:[%s6086_s19 + $0x68] sm:$0xff]  ;;  %v6249_v2 = vsel %vm721_vm0, 0.0, %v964_v7 }
 0x2cc   : > { %v6213_v26 = vpop.permute.xlu1 %1927  ;;  %9890 = vst [vmem:[#allocation268_spill] sm:$0xff] %v6225_v53  ;;  %v9328_v16 = vrot.slane %v6229_v38, 7 }
 0x2cd   : > { %9887 = vst [vmem:[#allocation265_spill] sm:$0xff] %v6213_v26  ;;  %2106 = vrot.lane.b32.xlu0 %v6207_v57, %s4592_s20 }
 0x2ce   : > { %9891 = vst [vmem:[#allocation269_spill] sm:$0xff] %v6236_v18  ;;  %v6257_v28 = vsel %vm721_vm0, %v961_v3, %v9328_v16  ;;  %v9330_v3 = vrot.slane %v6261_v62, 7 }
 0x2cf   : > { %v6222_v1 = vpop.permute.xlu0 %4529  ;;  %9894 = vst [vmem:[#allocation272_spill] sm:$0xff] %v6249_v2 }
 0x2d0   : > { %9889 = vst [vmem:[#allocation267_spill] sm:$0xff] %v6222_v1  ;;  %2110 = vrot.lane.b32.xlu2 %v6220_v52, %s4592_s20  ;;  %v6242_v1 = vld [vmem:[%s6086_s19 + $0x78] sm:$0xff] }
 0x2d1   : > { %v9329_v40 = vrot.slane %v6242_v1, 7  ;;  %9896 = vst [vmem:[#allocation274_spill] sm:$0xff] %v6257_v28 }
 0x2d2   : > { %2108 = vrot.lane.b32.xlu1 %v6225_v53, %s4592_s20  ;;  %v6238_v26 = vpop.permute.xlu2 %1992 }
 0x2d3   : > { %9892 = vst [vmem:[#allocation270_spill] sm:$0xff] %v6238_v26  ;;  %v880_v26 = vld [vmem:[%s6086_s19 + $0x80] sm:$0xff] }
 0x2d4   : > { %v6244_v42 = vpop.permute.xlu1 %1972  ;;  %v967_v39 = vrot.slane %v880_v26, 7 }
 0x2d5   : > { %9893 = vst [vmem:[#allocation271_spill] sm:$0xff] %v6244_v42  ;;  %2112 = vrot.lane.b32.xlu0 %v6236_v18, %s4592_s20 }
 0x2d6   : > { %v6283_v45 = vsel %vm721_vm0, %v967_v39, %v9330_v3  ;;  %v6288_v26 = vsel %vm721_vm0, 0.0, %v967_v39  ;;  %v6299_v3 = vsel %vm721_vm0, 0.0, %v970_v37 }
 0x2d7   : > { %v6252_v36 = vpop.permute.xlu0 %1976  ;;  %9900 = vst [vmem:[#allocation278_spill] sm:$0xff] %v6283_v45 }
 0x2d8   : > { %9895 = vst [vmem:[#allocation273_spill] sm:$0xff] %v6252_v36  ;;  %2116 = vrot.lane.b32.xlu2 %v6249_v2, %s4592_s20  ;;  %v6270_v36 = vsel %vm721_vm0, %v964_v7, %v9329_v40  ;;  %v884_v40 = vld [vmem:[%s6086_s19 + $0xa0] sm:$0xff] }
 0x2d9   : > { %9897 = vst [vmem:[#allocation275_spill] sm:$0xff] %v6270_v36  ;;  %v973_v30 = vrot.slane %v884_v40, 7 }
 0x2da   : > { %2114 = vrot.lane.b32.xlu1 %v6257_v28, %s4592_s20  ;;  %v6273_v16 = vpop.permute.xlu2 %1998  ;;  %9902 = vst [vmem:[#allocation280_spill] sm:$0xff] %v6288_v26 }
 0x2db   : > { %9898 = vst [vmem:[#allocation276_spill] sm:$0xff] %v6273_v16  ;;  %v6292_v16 = vld [vmem:[%s6086_s19 + $0x98] sm:$0xff]  ;;  %v6312_v42 = vsel %vm721_vm0, 0.0, %v973_v30 }
 0x2dc   : > { %v6276_v34 = vpop.permute.xlu1 %1978  ;;  %9903 = vst [vmem:[#allocation281_spill] sm:$0xff] %v6299_v3  ;;  %v9331_v39 = vrot.slane %v6292_v16, 7 }
 0x2dd   : > { %9899 = vst [vmem:[#allocation277_spill] sm:$0xff] %v6276_v34  ;;  %2118 = vrot.lane.b32.xlu0 %v6270_v36, %s4592_s20 }
 0x2de   : > { %9906 = vst [vmem:[#allocation284_spill] sm:$0xff] %v6312_v42  ;;  %v6320_v40 = vsel %vm721_vm0, %v970_v37, %v9331_v39  ;;  %v9333_v37 = vrot.slane %v6324_v9, 7 }
 0x2df   : > { %v6285_v7 = vpop.permute.xlu0 %1982  ;;  %9908 = vst [vmem:[#allocation286_spill] sm:$0xff] %v6320_v40 }
 0x2e0   : > { %9901 = vst [vmem:[#allocation279_spill] sm:$0xff] %v6285_v7  ;;  %2122 = vrot.lane.b32.xlu2 %v6283_v45, %s4592_s20  ;;  %v6305_v7 = vld [vmem:[%s6086_s19 + $0xa8] sm:$0xff] }
 0x2e1   : > { %v9332_v23 = vrot.slane %v6305_v7, 7 }
 0x2e2   : > { %2120 = vrot.lane.b32.xlu1 %v6288_v26, %s4592_s20  ;;  %v6301_v34 = vpop.permute.xlu2 %2004 }
 0x2e3   : > { %9904 = vst [vmem:[#allocation282_spill] sm:$0xff] %v6301_v34  ;;  %v886_v34 = vld [vmem:[%s6086_s19 + $0xb0] sm:$0xff] }
 0x2e4   : > { %v6307_v14 = vpop.permute.xlu1 %1984 }
 0x2e5   : > { %9905 = vst [vmem:[#allocation283_spill] sm:$0xff] %v6307_v14  ;;  %2124 = vrot.lane.b32.xlu0 %v6299_v3, %s4592_s20  ;;  %v976_v14 = vrot.slane %v886_v34, 7 }
 0x2e7   : > { %v6315_v60 = vpop.permute.xlu0 %1988  ;;  %v6346_v44 = vsel %vm721_vm0, %v976_v14, %v9333_v37  ;;  %v6351_v34 = vsel %vm721_vm0, 0.0, %v976_v14  ;;  %v6362_v37 = vsel %vm721_vm0, 0.0, %v979_v59 }
 0x2e8   : > { %9907 = vst [vmem:[#allocation285_spill] sm:$0xff] %v6315_v60  ;;  %2128 = vrot.lane.b32.xlu2 %v6312_v42, %s4592_s20  ;;  %v6333_v60 = vsel %vm721_vm0, %v973_v30, %v9332_v23  ;;  %v890_v23 = vld [vmem:[%s6086_s19 + $0xd0] sm:$0xff] }
 0x2e9   : > { %9909 = vst [vmem:[#allocation287_spill] sm:$0xff] %v6333_v60  ;;  %v982_v43 = vrot.slane %v890_v23, 7 }
 0x2ea   : > { %2126 = vrot.lane.b32.xlu1 %v6320_v40, %s4592_s20  ;;  %v6336_v39 = vpop.permute.xlu2 %2010  ;;  %9912 = vst [vmem:[#allocation290_spill] sm:$0xff] %v6346_v44 }
 0x2eb   : > { %9910 = vst [vmem:[#allocation288_spill] sm:$0xff] %v6336_v39  ;;  %v6355_v39 = vld [vmem:[%s6086_s19 + $0xc8] sm:$0xff]  ;;  %v6375_v47 = vsel %vm721_vm0, 0.0, %v982_v43 }
 0x2ec   : > { %v6339_v19 = vpop.permute.xlu1 %1990  ;;  %9914 = vst [vmem:[#allocation292_spill] sm:$0xff] %v6351_v34  ;;  %v9341_v14 = vrot.slane %v6355_v39, 7 }
 0x2ed   : > { %9911 = vst [vmem:[#allocation289_spill] sm:$0xff] %v6339_v19  ;;  %2130 = vrot.lane.b32.xlu0 %v6333_v60, %s4592_s20 }
 0x2ee   : > { %9915 = vst [vmem:[#allocation293_spill] sm:$0xff] %v6362_v37  ;;  %v6383_v23 = vsel %vm721_vm0, %v979_v59, %v9341_v14 }
 0x2ef   : > { %v6348_v30 = vpop.permute.xlu0 %1994  ;;  %9918 = vst [vmem:[#allocation296_spill] sm:$0xff] %v6375_v47 }
 0x2f0   : > { %9913 = vst [vmem:[#allocation291_spill] sm:$0xff] %v6348_v30  ;;  %2134 = vrot.lane.b32.xlu2 %v6346_v44, %s4592_s20  ;;  %v6368_v30 = vld [vmem:[%s6086_s19 + $0xd8] sm:$0xff] }
 0x2f1   : > { %v9343_v46 = vrot.slane %v6368_v30, 7  ;;  %9920 = vst [vmem:[#allocation298_spill] sm:$0xff] %v6383_v23 }
 0x2f2   : > { %2132 = vrot.lane.b32.xlu1 %v6351_v34, %s4592_s20  ;;  %v6364_v19 = vpop.permute.xlu2 %2016 }
 0x2f3   : > { %9916 = vst [vmem:[#allocation294_spill] sm:$0xff] %v6364_v19  ;;  %v892_v19 = vld [vmem:[%s6086_s19 + $0xe0] sm:$0xff] }
 0x2f4   : > { %v6370_v58 = vpop.permute.xlu1 %1996 }
 0x2f5   : > { %9917 = vst [vmem:[#allocation295_spill] sm:$0xff] %v6370_v58  ;;  %2136 = vrot.lane.b32.xlu0 %v6362_v37, %s4592_s20  ;;  %v6396_v58 = vsel %vm721_vm0, %v982_v43, %v9343_v46 }
 0x2f6   : > { %9921 = vst [vmem:[#allocation299_spill] sm:$0xff] %v6396_v58 }
 0x2f7   : > { %v6378_v12 = vpop.permute.xlu0 %2000 }
 0x2f8   : > { %9919 = vst [vmem:[#allocation297_spill] sm:$0xff] %v6378_v12  ;;  %2140 = vrot.lane.b32.xlu2 %v6375_v47, %s4592_s20  ;;  %v985_v12 = vrot.slane %v892_v19, 7  ;;  %v9927_v19 = vrot.slane %v6103_v21, 7 }
 0x2fa   : > { %2138 = vrot.lane.b32.xlu1 %v6383_v23, %s4592_s20  ;;  %v6399_v0 = vpop.permute.xlu2 %2022  ;;  %v6408_v14 = vsel %vm721_vm0, %v985_v12, %v9344_v63  ;;  %v6413_v43 = vsel %vm721_vm0, 0.0, %v985_v12  ;;  %v6418_v46 = vsel %vm721_vm0, %v9927_v19, 0.0  ;;  %v2206_v19 = vrot.slane %v6123_v55, 1 }
 0x2fb   : > { %9922 = vst [vmem:[#allocation300_spill] sm:$0xff] %v6399_v0  ;;  %v2202_v0 = vrot.slane %v6131_v27, 1  ;;  %v2204_v63 = vrot.slane %v6418_v46, 1 }
 0x2fc   : > { %v6401_v59 = vpop.permute.xlu1 %2002  ;;  %9924 = vst [vmem:[#allocation302_spill] sm:$0xff] %v6408_v14 }
 0x2fd   : > { %9923 = vst [vmem:[#allocation301_spill] sm:$0xff] %v6401_v59  ;;  %2142 = vrot.lane.b32.xlu0 %v6396_v58, %s4592_s20  ;;  %v6434_v21 = vsel %vm1114_vm1, %v2202_v0, %v2204_v63  ;;  %v6453_v63 = vsel %vm1114_vm1, %v2206_v19, %v2207_v15 }
 0x2fe   : > { %9926 = vst [vmem:[#allocation304_spill] sm:$0xff] %v6413_v43 }
 0x2ff   : > { %v6410_v56 = vpop.permute.xlu0 %2006 }
 0x300   : > { %9925 = vst [vmem:[#allocation303_spill] sm:$0xff] %v6410_v56  ;;  %2146 = vrot.lane.b32.xlu2 %v6408_v14, %s4592_s20  ;;  %v2201_v56 = vrot.slane %v6110_v4, 1 }
 0x302   : > { %2144 = vrot.lane.b32.xlu1 %v6413_v43, %s4592_s20  ;;  %v6427_v59 = vpop.permute.xlu2 %2028  ;;  %v6441_v25 = vsel %vm1114_vm1, %v2201_v56, %v2202_v0 }
 0x303   : > { %9928 = vst [vmem:[#allocation305_spill] sm:$0xff] %v6427_v59  ;;  %v9931_v59 = vrot.slane %v6116_v20, 7  ;;  %v9934_v20 = vrot.slane %v6135_v49, 7  ;;  %v9939_v49 = vrot.slane %v6166_v61, 7  ;;  %v2216_v61 = vrot.slane %v6173_v29, 1 }
 0x304   : > { %v6429_v12 = vpop.permute.xlu1 %2008 }
 0x305   : > { %9929 = vst [vmem:[#allocation306_spill] sm:$0xff] %v6429_v12  ;;  %4544 = vrot.lane.b32.xlu0 %v9825_v6, %s4593_s21  ;;  %v6446_v12 = vsel %vm721_vm0, %v9931_v59, 0.0  ;;  %v2211_v6 = vrot.slane %v6162_v48, 1  ;;  %v6463_v59 = vsel %vm721_vm0, %v9934_v20, 0.0  ;;  %v6483_v20 = vsel %vm721_vm0, %v9939_v49, 0.0 }
 0x306   : > { %9932 = vst [vmem:[#allocation308_spill] sm:$0xff] %v6446_v12  ;;  %v9351_v0 = vrot.slane %v6446_v12, 1  ;;  %v9352_v31 = vrot.slane %v6463_v59, 1 }
 0x307   : > { %v6438_v33 = vpop.permute.xlu0 %2012  ;;  %9935 = vst [vmem:[#allocation310_spill] sm:$0xff] %v6463_v59 }
 0x308   : > { %9930 = vst [vmem:[#allocation307_spill] sm:$0xff] %v6438_v33  ;;  %2282 = vrot.lane.b32.xlu2 %v6434_v21, %s4593_s21  ;;  %v2212_v33 = vrot.slane %v6157_v13, 1 }
 0x309   : > { %9940 = vst [vmem:[#allocation314_spill] sm:$0xff] %v6483_v20 }
 0x30a   : > { %2280 = vrot.lane.b32.xlu1 %v6441_v25, %s4593_s21  ;;  %v6457_v56 = vpop.permute.xlu2 %4539  ;;  %v6470_v19 = vsel %vm1114_vm1, %v2211_v6, %v2212_v33  ;;  %v6492_v6 = vsel %vm1114_vm1, %v2212_v33, %v9352_v31  ;;  %v2221_v33 = vrot.slane %v6186_v50, 1  ;;  %v2222_v31 = vrot.slane %v6207_v57, 1 }
 0x30b   : > { %9933 = vst [vmem:[#allocation309_spill] sm:$0xff] %v6457_v56  ;;  %v6478_v56 = vsel %vm1114_vm1, %v2207_v15, %v9351_v0  ;;  %v9355_v15 = vrot.slane %v6483_v20, 1 }
 0x30c   : > { %v6465_v41 = vpop.permute.xlu1 %2014  ;;  %9937 = vst [vmem:[#allocation312_spill] sm:$0xff] %v6470_v19 }
 0x30d   : > { %9936 = vst [vmem:[#allocation311_spill] sm:$0xff] %v6465_v41  ;;  %2284 = vrot.lane.b32.xlu0 %v6453_v63, %s4593_s21 }
 0x30e   : > { %9941 = vst [vmem:[#allocation315_spill] sm:$0xff] %v6492_v6 }
 0x30f   : > { %v6473_v32 = vpop.permute.xlu0 %2018 }
 0x310   : > { %9938 = vst [vmem:[#allocation313_spill] sm:$0xff] %v6473_v32  ;;  %2288 = vrot.lane.b32.xlu2 %v6470_v19, %s4593_s21  ;;  %v2217_v32 = vrot.slane %v6194_v17, 1 }
 0x312   : > { %2286 = vrot.lane.b32.xlu1 %v6478_v56, %s4593_s21  ;;  %v6496_v0 = vpop.permute.xlu2 %2092  ;;  %v6506_v41 = vsel %vm1114_vm1, %v2217_v32, %v9355_v15  ;;  %v6525_v15 = vsel %vm1114_vm1, %v2221_v33, %v2222_v31 }
 0x313   : > { %9942 = vst [vmem:[#allocation316_spill] sm:$0xff] %v6496_v0  ;;  %v6513_v0 = vsel %vm1114_vm1, %v2216_v61, %v2217_v32 }
 0x314   : > { %v6499_v49 = vpop.permute.xlu1 %2020  ;;  %9944 = vst [vmem:[#allocation318_spill] sm:$0xff] %v6506_v41 }
 0x315   : > { %9943 = vst [vmem:[#allocation317_spill] sm:$0xff] %v6499_v49  ;;  %2290 = vrot.lane.b32.xlu0 %v6492_v6, %s4593_s21  ;;  %v6518_v49 = vsel %vm721_vm0, %v9947_v51, 0.0  ;;  %v9951_v51 = vrot.slane %v6198_v24, 7  ;;  %v9957_v24 = vrot.slane %v6229_v38, 7  ;;  %v2231_v38 = vrot.slane %v6236_v18, 1 }
 0x316   : > { %9946 = vst [vmem:[#allocation320_spill] sm:$0xff] %v6513_v0  ;;  %v9362_v54 = vrot.slane %v6518_v49, 1 }
 0x317   : > { %v6510_v11 = vpop.permute.xlu0 %2024  ;;  %9948 = vst [vmem:[#allocation321_spill] sm:$0xff] %v6518_v49  ;;  %v6535_v61 = vsel %vm721_vm0, %v9951_v51, 0.0  ;;  %v6555_v51 = vsel %vm721_vm0, %v9957_v24, 0.0 }
 0x318   : > { %9945 = vst [vmem:[#allocation319_spill] sm:$0xff] %v6510_v11  ;;  %2294 = vrot.lane.b32.xlu2 %v6506_v41, %s4593_s21  ;;  %v2227_v11 = vrot.slane %v6220_v52, 1 }
 0x319   : > { %9949 = vst [vmem:[#allocation322_spill] sm:$0xff] %v6525_v15 }
 0x31a   : > { %2292 = vrot.lane.b32.xlu1 %v6513_v0, %s4593_s21  ;;  %v6529_v32 = vpop.permute.xlu2 %2098  ;;  %9952 = vst [vmem:[#allocation324_spill] sm:$0xff] %v6535_v61  ;;  %v6542_v33 = vsel %vm1114_vm1, %v2226_v35, %v2227_v11  ;;  %v9363_v0 = vrot.slane %v6535_v61, 1 }
 0x31b   : > { %9950 = vst [vmem:[#allocation323_spill] sm:$0xff] %v6529_v32  ;;  %v6550_v32 = vsel %vm1114_vm1, %v2222_v31, %v9362_v54  ;;  %v9369_v31 = vrot.slane %v6555_v51, 1 }
 0x31c   : > { %v6537_v22 = vpop.permute.xlu1 %2026  ;;  %9954 = vst [vmem:[#allocation326_spill] sm:$0xff] %v6542_v33  ;;  %v6564_v35 = vsel %vm1114_vm1, %v2227_v11, %v9363_v0  ;;  %v2236_v11 = vrot.slane %v6249_v2, 1  ;;  %v2237_v0 = vrot.slane %v6270_v36, 1 }
 0x31d   : > { %9953 = vst [vmem:[#allocation325_spill] sm:$0xff] %v6537_v22  ;;  %2296 = vrot.lane.b32.xlu0 %v6525_v15, %s4593_s21  ;;  %v2232_v22 = vrot.slane %v6257_v28, 1 }
 0x31e   : > { %9956 = vst [vmem:[#allocation328_spill] sm:$0xff] %v6550_v32 }
 0x31f   : > { %v6545_v41 = vpop.permute.xlu0 %2030  ;;  %9958 = vst [vmem:[#allocation329_spill] sm:$0xff] %v6555_v51 }
 0x320   : > { %9955 = vst [vmem:[#allocation327_spill] sm:$0xff] %v6545_v41  ;;  %2300 = vrot.lane.b32.xlu2 %v6542_v33, %s4593_s21  ;;  %v6578_v41 = vsel %vm1114_vm1, %v2232_v22, %v9369_v31  ;;  %v9965_v33 = vrot.slane %v6242_v1, 7  ;;  %v6597_v31 = vsel %vm1114_vm1, %v2236_v11, %v2237_v0 }
 0x321   : > { %9959 = vst [vmem:[#allocation330_spill] sm:$0xff] %v6564_v35 }
 0x322   : > { %2298 = vrot.lane.b32.xlu1 %v6550_v32, %s4593_s21  ;;  %v6568_v54 = vpop.permute.xlu2 %2104  ;;  %9962 = vst [vmem:[#allocation333_spill] sm:$0xff] %v6578_v41 }
 0x323   : > { %9960 = vst [vmem:[#allocation331_spill] sm:$0xff] %v6568_v54  ;;  %v6585_v54 = vsel %vm1114_vm1, %v2231_v38, %v2232_v22 }
 0x324   : > { %v6571_v24 = vpop.permute.xlu1 %4534  ;;  %9964 = vst [vmem:[#allocation335_spill] sm:$0xff] %v6585_v54 }
 0x325   : > { %9961 = vst [vmem:[#allocation332_spill] sm:$0xff] %v6571_v24  ;;  %2302 = vrot.lane.b32.xlu0 %v6564_v35, %s4593_s21  ;;  %v6590_v24 = vsel %vm721_vm0, %v9965_v33, 0.0  ;;  %v2241_v35 = vrot.slane %v6288_v26, 1  ;;  %v9969_v33 = vrot.slane %v6261_v62, 7  ;;  %v9975_v62 = vrot.slane %v6292_v16, 7 }
 0x326   : > { %9966 = vst [vmem:[#allocation336_spill] sm:$0xff] %v6590_v24  ;;  %v9378_v1 = vrot.slane %v6590_v24, 1  ;;  %v2246_v16 = vrot.slane %v6299_v3, 1 }
 0x327   : > { %v6582_v32 = vpop.permute.xlu0 %2088  ;;  %9967 = vst [vmem:[#allocation337_spill] sm:$0xff] %v6597_v31  ;;  %v6607_v38 = vsel %vm721_vm0, %v9969_v33, 0.0  ;;  %v6627_v33 = vsel %vm721_vm0, %v9975_v62, 0.0 }
 0x328   : > { %9963 = vst [vmem:[#allocation334_spill] sm:$0xff] %v6582_v32  ;;  %2306 = vrot.lane.b32.xlu2 %v6578_v41, %s4593_s21  ;;  %v2242_v32 = vrot.slane %v6283_v45, 1 }
 0x329   : > { %9970 = vst [vmem:[#allocation339_spill] sm:$0xff] %v6607_v38 }
 0x32a   : > { %2304 = vrot.lane.b32.xlu1 %v6585_v54, %s4593_s21  ;;  %v6601_v22 = vpop.permute.xlu2 %2110  ;;  %v6614_v11 = vsel %vm1114_vm1, %v2241_v35, %v2242_v32  ;;  %v9379_v54 = vrot.slane %v6607_v38, 1  ;;  %9976 = vst [vmem:[#allocation344_spill] sm:$0xff] %v6627_v33 }
 0x32b   : > { %9968 = vst [vmem:[#allocation338_spill] sm:$0xff] %v6601_v22  ;;  %v6622_v22 = vsel %vm1114_vm1, %v2237_v0, %v9378_v1  ;;  %v9384_v0 = vrot.slane %v6627_v33, 1 }
 0x32c   : > { %v6609_v41 = vpop.permute.xlu1 %2090  ;;  %9972 = vst [vmem:[#allocation341_spill] sm:$0xff] %v6614_v11  ;;  %v6636_v35 = vsel %vm1114_vm1, %v2242_v32, %v9379_v54  ;;  %v2251_v32 = vrot.slane %v6312_v42, 1  ;;  %v2252_v54 = vrot.slane %v6333_v60, 1 }
 0x32d   : > { %9971 = vst [vmem:[#allocation340_spill] sm:$0xff] %v6609_v41  ;;  %2308 = vrot.lane.b32.xlu0 %v6597_v31, %s4593_s21 }
 0x32e   : > { %9974 = vst [vmem:[#allocation343_spill] sm:$0xff] %v6622_v22 }
 0x32f   : > { %v6617_v15 = vpop.permute.xlu0 %2094  ;;  %9977 = vst [vmem:[#allocation345_spill] sm:$0xff] %v6636_v35 }
 0x330   : > { %9973 = vst [vmem:[#allocation342_spill] sm:$0xff] %v6617_v15  ;;  %2312 = vrot.lane.b32.xlu2 %v6614_v11, %s4593_s21  ;;  %v2247_v15 = vrot.slane %v6320_v40, 1  ;;  %v9983_v11 = vrot.slane %v6305_v7, 7 }
 0x332   : > { %2310 = vrot.lane.b32.xlu1 %v6622_v22, %s4593_s21  ;;  %v6640_v1 = vpop.permute.xlu2 %2116  ;;  %v6650_v41 = vsel %vm1114_vm1, %v2247_v15, %v9384_v0  ;;  %v6669_v0 = vsel %vm1114_vm1, %v2251_v32, %v2252_v54 }
 0x333   : > { %9978 = vst [vmem:[#allocation346_spill] sm:$0xff] %v6640_v1  ;;  %v6657_v1 = vsel %vm1114_vm1, %v2246_v16, %v2247_v15 }
 0x334   : > { %v6643_v62 = vpop.permute.xlu1 %2096  ;;  %9980 = vst [vmem:[#allocation348_spill] sm:$0xff] %v6650_v41 }
 0x335   : > { %9979 = vst [vmem:[#allocation347_spill] sm:$0xff] %v6643_v62  ;;  %2314 = vrot.lane.b32.xlu0 %v6636_v35, %s4593_s21  ;;  %v6662_v62 = vsel %vm721_vm0, %v9983_v11, 0.0  ;;  %v2256_v35 = vrot.slane %v6351_v34, 1  ;;  %v9987_v11 = vrot.slane %v6324_v9, 7  ;;  %v9993_v9 = vrot.slane %v6355_v39, 7 }
 0x336   : > { %9982 = vst [vmem:[#allocation350_spill] sm:$0xff] %v6657_v1  ;;  %v9393_v7 = vrot.slane %v6662_v62, 1  ;;  %v2261_v39 = vrot.slane %v6362_v37, 1 }
 0x337   : > { %v6654_v22 = vpop.permute.xlu0 %2100  ;;  %9984 = vst [vmem:[#allocation351_spill] sm:$0xff] %v6662_v62  ;;  %v6679_v16 = vsel %vm721_vm0, %v9987_v11, 0.0  ;;  %v6699_v11 = vsel %vm721_vm0, %v9993_v9, 0.0 }
 0x338   : > { %9981 = vst [vmem:[#allocation349_spill] sm:$0xff] %v6654_v22  ;;  %2318 = vrot.lane.b32.xlu2 %v6650_v41, %s4593_s21  ;;  %v2257_v22 = vrot.slane %v6346_v44, 1 }
 0x339   : > { %9985 = vst [vmem:[#allocation352_spill] sm:$0xff] %v6669_v0 }
 0x33a   : > { %2316 = vrot.lane.b32.xlu1 %v6657_v1, %s4593_s21  ;;  %v6673_v15 = vpop.permute.xlu2 %2122  ;;  %9988 = vst [vmem:[#allocation354_spill] sm:$0xff] %v6679_v16  ;;  %v6686_v32 = vsel %vm1114_vm1, %v2256_v35, %v2257_v22  ;;  %v9394_v1 = vrot.slane %v6679_v16, 1 }
 0x33b   : > { %9986 = vst [vmem:[#allocation353_spill] sm:$0xff] %v6673_v15  ;;  %v6694_v15 = vsel %vm1114_vm1, %v2252_v54, %v9393_v7  ;;  %v9399_v54 = vrot.slane %v6699_v11, 1 }
 0x33c   : > { %v6681_v41 = vpop.permute.xlu1 %2102  ;;  %9990 = vst [vmem:[#allocation356_spill] sm:$0xff] %v6686_v32  ;;  %v6708_v35 = vsel %vm1114_vm1, %v2257_v22, %v9394_v1  ;;  %v2266_v22 = vrot.slane %v6375_v47, 1  ;;  %v2267_v1 = vrot.slane %v6396_v58, 1 }
 0x33d   : > { %9989 = vst [vmem:[#allocation355_spill] sm:$0xff] %v6681_v41  ;;  %2320 = vrot.lane.b32.xlu0 %v6669_v0, %s4593_s21 }
 0x33e   : > { %9992 = vst [vmem:[#allocation358_spill] sm:$0xff] %v6694_v15 }
 0x33f   : > { %v6689_v31 = vpop.permute.xlu0 %2106  ;;  %9994 = vst [vmem:[#allocation359_spill] sm:$0xff] %v6699_v11 }
 0x340   : > { %9991 = vst [vmem:[#allocation357_spill] sm:$0xff] %v6689_v31  ;;  %2324 = vrot.lane.b32.xlu2 %v6686_v32, %s4593_s21  ;;  %v2262_v31 = vrot.slane %v6383_v23, 1  ;;  %v10001_v32 = vrot.slane %v6368_v30, 7 }
 0x341   : > { %9995 = vst [vmem:[#allocation360_spill] sm:$0xff] %v6708_v35 }
 0x342   : > { %2322 = vrot.lane.b32.xlu1 %v6694_v15, %s4593_s21  ;;  %v6712_v7 = vpop.permute.xlu2 %2128  ;;  %v6722_v41 = vsel %vm1114_vm1, %v2262_v31, %v9399_v54  ;;  %v6741_v54 = vsel %vm1114_vm1, %v2266_v22, %v2267_v1 }
 0x343   : > { %9996 = vst [vmem:[#allocation361_spill] sm:$0xff] %v6712_v7  ;;  %v6729_v7 = vsel %vm1114_vm1, %v2261_v39, %v2262_v31 }
 0x344   : > { %v6715_v9 = vpop.permute.xlu1 %2108  ;;  %9998 = vst [vmem:[#allocation363_spill] sm:$0xff] %v6722_v41 }
 0x345   : > { %9997 = vst [vmem:[#allocation362_spill] sm:$0xff] %v6715_v9  ;;  %2326 = vrot.lane.b32.xlu0 %v6708_v35, %s4593_s21  ;;  %v6734_v9 = vsel %vm721_vm0, %v10001_v32, 0.0  ;;  %v2271_v35 = vrot.slane %v6413_v43, 1  ;;  %v10004_v32 = vrot.slane %v6387_v10, 7  ;;  %v2377_v10 = vrot.slane %v6110_v4, 2 }
 0x346   : > { %10000 = vst [vmem:[#allocation365_spill] sm:$0xff] %v6729_v7  ;;  %v9408_v30 = vrot.slane %v6734_v9, 1 }
 0x347   : > { %v6726_v15 = vpop.permute.xlu0 %2112  ;;  %10002 = vst [vmem:[#allocation366_spill] sm:$0xff] %v6734_v9  ;;  %v6751_v39 = vsel %vm721_vm0, %v10004_v32, 0.0  ;;  %v2378_v32 = vrot.slane %v6131_v27, 2 }
 0x348   : > { %9999 = vst [vmem:[#allocation364_spill] sm:$0xff] %v6726_v15  ;;  %2330 = vrot.lane.b32.xlu2 %v6722_v41, %s4593_s21  ;;  %v2272_v15 = vrot.slane %v6408_v14, 1 }
 0x349   : > { %10005 = vst [vmem:[#allocation368_spill] sm:$0xff] %v6751_v39 }
 0x34a   : > { %2328 = vrot.lane.b32.xlu1 %v6729_v7, %s4593_s21  ;;  %v6745_v31 = vpop.permute.xlu2 %2134  ;;  %v6758_v22 = vsel %vm1114_vm1, %v2271_v35, %v2272_v15  ;;  %v9411_v7 = vrot.slane %v6751_v39, 1 }
 0x34b   : > { %10003 = vst [vmem:[#allocation367_spill] sm:$0xff] %v6745_v31  ;;  %v6766_v31 = vsel %vm1114_vm1, %v2267_v1, %v9408_v30  ;;  %v6786_v1 = vsel %vm1291_vm2, %v2377_v10, %v2378_v32  ;;  %v2380_v30 = vrot.slane %v6418_v46, 2  ;;  %v2382_v46 = vrot.slane %v6123_v55, 2 }
 0x34c   : > { %v6753_v41 = vpop.permute.xlu1 %2114  ;;  %10007 = vst [vmem:[#allocation370_spill] sm:$0xff] %v6758_v22  ;;  %v6777_v35 = vsel %vm1114_vm1, %v2272_v15, %v9411_v7  ;;  %v2383_v7 = vrot.slane %v6144_v5, 2 }
 0x34d   : > { %10006 = vst [vmem:[#allocation369_spill] sm:$0xff] %v6753_v41  ;;  %2332 = vrot.lane.b32.xlu0 %v6741_v54, %s4593_s21  ;;  %v6796_v15 = vsel %vm1291_vm2, %v2378_v32, %v2380_v30  ;;  %v2388_v30 = vrot.slane %v6157_v13, 2 }
 0x34e   : > { %10009 = vst [vmem:[#allocation372_spill] sm:$0xff] %v6777_v35 }
 0x34f   : > { %v6761_v0 = vpop.permute.xlu0 %2118  ;;  %10012 = vst [vmem:[#allocation375_spill] sm:$0xff] %v6786_v1 }
 0x350   : > { %10008 = vst [vmem:[#allocation371_spill] sm:$0xff] %v6761_v0  ;;  %2336 = vrot.lane.b32.xlu2 %v6758_v22, %s4593_s21 }
 0x351   : > { %10014 = vst [vmem:[#allocation377_spill] sm:$0xff] %v6796_v15 }
 0x352   : > { %2334 = vrot.lane.b32.xlu1 %v6766_v31, %s4593_s21  ;;  %v6779_v0 = vpop.permute.xlu2 %2140 }
 0x353   : > { %10010 = vst [vmem:[#allocation373_spill] sm:$0xff] %v6779_v0 }
 0x354   : > { %v6781_v41 = vpop.permute.xlu1 %2120 }
 0x355   : > { %10011 = vst [vmem:[#allocation374_spill] sm:$0xff] %v6781_v41  ;;  %2338 = vrot.lane.b32.xlu0 %v6777_v35, %s4593_s21  ;;  %v2385_v41 = vrot.slane %v6446_v12, 2  ;;  %v6815_v12 = vsel %vm1291_vm2, %v2382_v46, %v2383_v7  ;;  %v2395_v46 = vrot.slane %v6483_v20, 2 }
 0x357   : > { %v6789_v22 = vpop.permute.xlu0 %2124 }
 0x358   : > { %10013 = vst [vmem:[#allocation376_spill] sm:$0xff] %v6789_v22  ;;  %2456 = vrot.lane.b32.xlu2 %v6786_v1, %s4594_s22  ;;  %v6808_v22 = vsel %vm1291_vm2, %v2383_v7, %v2385_v41  ;;  %v2392_v41 = vrot.slane %v6173_v29, 2 }
 0x359   : > { %10017 = vst [vmem:[#allocation380_spill] sm:$0xff] %v6808_v22 }
 0x35a   : > { %4549 = vrot.lane.b32.xlu1 %v9868_v8, %s4594_s22  ;;  %v6800_v10 = vpop.permute.xlu2 %2146  ;;  %v2387_v8 = vrot.slane %v6162_v48, 2 }
 0x35b   : > { %10015 = vst [vmem:[#allocation378_spill] sm:$0xff] %v6800_v10  ;;  %v2393_v10 = vrot.slane %v6194_v17, 2 }
 0x35c   : > { %v6803_v0 = vpop.permute.xlu1 %2126 }
 0x35d   : > { %10016 = vst [vmem:[#allocation379_spill] sm:$0xff] %v6803_v0  ;;  %2458 = vrot.lane.b32.xlu0 %v6796_v15, %s4594_s22  ;;  %v6822_v0 = vsel %vm1291_vm2, %v2387_v8, %v2388_v30  ;;  %v6834_v7 = vsel %vm1291_vm2, %v2392_v41, %v2393_v10  ;;  %v2400_v41 = vrot.slane %v6518_v49, 2 }
 0x35e   : > { %10021 = vst [vmem:[#allocation384_spill] sm:$0xff] %v6834_v7 }
 0x35f   : > { %v6812_v32 = vpop.permute.xlu0 %2130 }
 0x360   : > { %10018 = vst [vmem:[#allocation381_spill] sm:$0xff] %v6812_v32  ;;  %2462 = vrot.lane.b32.xlu2 %v6808_v22, %s4594_s22  ;;  %v2390_v32 = vrot.slane %v6463_v59, 2  ;;  %v2398_v59 = vrot.slane %v6207_v57, 2 }
 0x362   : > { %2460 = vrot.lane.b32.xlu1 %v6815_v12, %s4594_s22  ;;  %v6826_v15 = vpop.permute.xlu2 %2282  ;;  %v6840_v22 = vsel %vm1291_vm2, %v2388_v30, %v2390_v32  ;;  %v6859_v30 = vsel %vm1291_vm2, %v2398_v59, %v2400_v41  ;;  %v2402_v32 = vrot.slane %v6225_v53, 2  ;;  %v2407_v41 = vrot.slane %v6236_v18, 2 }
 0x363   : > { %10019 = vst [vmem:[#allocation382_spill] sm:$0xff] %v6826_v15 }
 0x364   : > { %v6829_v1 = vpop.permute.xlu1 %2132  ;;  %10026 = vst [vmem:[#allocation389_spill] sm:$0xff] %v6859_v30 }
 0x365   : > { %10020 = vst [vmem:[#allocation383_spill] sm:$0xff] %v6829_v1  ;;  %2464 = vrot.lane.b32.xlu0 %v6822_v0, %s4594_s22  ;;  %v6847_v1 = vsel %vm1291_vm2, %v2393_v10, %v2395_v46  ;;  %v2403_v10 = vrot.slane %v6220_v52, 2 }
 0x366   : > { %10023 = vst [vmem:[#allocation386_spill] sm:$0xff] %v6847_v1 }
 0x367   : > { %v6837_v8 = vpop.permute.xlu0 %2136 }
 0x368   : > { %10022 = vst [vmem:[#allocation385_spill] sm:$0xff] %v6837_v8  ;;  %2468 = vrot.lane.b32.xlu2 %v6834_v7, %s4594_s22  ;;  %v2397_v8 = vrot.slane %v6186_v50, 2 }
 0x36a   : > { %2466 = vrot.lane.b32.xlu1 %v6840_v22, %s4594_s22  ;;  %v6851_v15 = vpop.permute.xlu2 %2288  ;;  %v6866_v49 = vsel %vm1291_vm2, %v2397_v8, %v2398_v59  ;;  %v2410_v8 = vrot.slane %v6555_v51, 2  ;;  %v2412_v51 = vrot.slane %v6249_v2, 2 }
 0x36b   : > { %10024 = vst [vmem:[#allocation387_spill] sm:$0xff] %v6851_v15  ;;  %v2408_v15 = vrot.slane %v6257_v28, 2 }
 0x36c   : > { %v6854_v20 = vpop.permute.xlu1 %2138 }
 0x36d   : > { %10025 = vst [vmem:[#allocation388_spill] sm:$0xff] %v6854_v20  ;;  %2470 = vrot.lane.b32.xlu0 %v6847_v1, %s4594_s22  ;;  %v6873_v20 = vsel %vm1291_vm2, %v2402_v32, %v2403_v10  ;;  %v6885_v59 = vsel %vm1291_vm2, %v2407_v41, %v2408_v15  ;;  %v2415_v41 = vrot.slane %v6590_v24, 2 }
 0x36e   : > { %10030 = vst [vmem:[#allocation393_spill] sm:$0xff] %v6885_v59 }
 0x36f   : > { %v6863_v46 = vpop.permute.xlu0 %2142 }
 0x370   : > { %10027 = vst [vmem:[#allocation390_spill] sm:$0xff] %v6863_v46  ;;  %2474 = vrot.lane.b32.xlu2 %v6859_v30, %s4594_s22  ;;  %v2405_v46 = vrot.slane %v6535_v61, 2 }
 0x372   : > { %2472 = vrot.lane.b32.xlu1 %v6866_v49, %s4594_s22  ;;  %v6877_v1 = vpop.permute.xlu2 %2294  ;;  %v6891_v30 = vsel %vm1291_vm2, %v2403_v10, %v2405_v46  ;;  %v2417_v46 = vrot.slane %v6288_v26, 2 }
 0x373   : > { %10028 = vst [vmem:[#allocation391_spill] sm:$0xff] %v6877_v1  ;;  %v6898_v1 = vsel %vm1291_vm2, %v2408_v15, %v2410_v8  ;;  %v2418_v15 = vrot.slane %v6283_v45, 2 }
 0x374   : > { %v6880_v7 = vpop.permute.xlu1 %2144  ;;  %10032 = vst [vmem:[#allocation395_spill] sm:$0xff] %v6898_v1 }
 0x375   : > { %10029 = vst [vmem:[#allocation392_spill] sm:$0xff] %v6880_v7  ;;  %2476 = vrot.lane.b32.xlu0 %v6873_v20, %s4594_s22  ;;  %v2413_v7 = vrot.slane %v6270_v36, 2 }
 0x377   : > { %v6888_v32 = vpop.permute.xlu0 %4544  ;;  %v6910_v10 = vsel %vm1291_vm2, %v2413_v7, %v2415_v41  ;;  %v6917_v24 = vsel %vm1291_vm2, %v2412_v51, %v2413_v7  ;;  %v2422_v41 = vrot.slane %v6299_v3, 2  ;;  %v2425_v7 = vrot.slane %v6627_v33, 2 }
 0x378   : > { %10031 = vst [vmem:[#allocation394_spill] sm:$0xff] %v6888_v32  ;;  %2480 = vrot.lane.b32.xlu2 %v6885_v59, %s4594_s22 }
 0x379   : > { %10035 = vst [vmem:[#allocation398_spill] sm:$0xff] %v6910_v10 }
 0x37a   : > { %2478 = vrot.lane.b32.xlu1 %v6891_v30, %s4594_s22  ;;  %v6902_v61 = vpop.permute.xlu2 %2300 }
 0x37b   : > { %10033 = vst [vmem:[#allocation396_spill] sm:$0xff] %v6902_v61  ;;  %v2423_v61 = vrot.slane %v6320_v40, 2 }
 0x37c   : > { %v6905_v32 = vpop.permute.xlu1 %2280 }
 0x37d   : > { %10034 = vst [vmem:[#allocation397_spill] sm:$0xff] %v6905_v32  ;;  %2482 = vrot.lane.b32.xlu0 %v6898_v1, %s4594_s22  ;;  %v6924_v32 = vsel %vm1291_vm2, %v2417_v46, %v2418_v15  ;;  %v6936_v51 = vsel %vm1291_vm2, %v2422_v41, %v2423_v61  ;;  %v2430_v41 = vrot.slane %v6662_v62, 2 }
 0x37e   : > { %10039 = vst [vmem:[#allocation402_spill] sm:$0xff] %v6936_v51 }
 0x37f   : > { %v6914_v8 = vpop.permute.xlu0 %2284 }
 0x380   : > { %10036 = vst [vmem:[#allocation399_spill] sm:$0xff] %v6914_v8  ;;  %2486 = vrot.lane.b32.xlu2 %v6910_v10, %s4594_s22  ;;  %v2420_v8 = vrot.slane %v6607_v38, 2  ;;  %v6949_v38 = vsel %vm1291_vm2, %v2423_v61, %v2425_v7  ;;  %v2433_v61 = vrot.slane %v6346_v44, 2 }
 0x381   : > { %10041 = vst [vmem:[#allocation404_spill] sm:$0xff] %v6949_v38 }
 0x382   : > { %2484 = vrot.lane.b32.xlu1 %v6917_v24, %s4594_s22  ;;  %v6928_v1 = vpop.permute.xlu2 %2306  ;;  %v6942_v10 = vsel %vm1291_vm2, %v2418_v15, %v2420_v8  ;;  %v2432_v8 = vrot.slane %v6351_v34, 2 }
 0x383   : > { %10037 = vst [vmem:[#allocation400_spill] sm:$0xff] %v6928_v1 }
 0x384   : > { %v6931_v59 = vpop.permute.xlu1 %2286 }
 0x385   : > { %10038 = vst [vmem:[#allocation401_spill] sm:$0xff] %v6931_v59  ;;  %2488 = vrot.lane.b32.xlu0 %v6924_v32, %s4594_s22  ;;  %v2428_v59 = vrot.slane %v6333_v60, 2 }
 0x387   : > { %v6939_v46 = vpop.permute.xlu0 %2290  ;;  %v6961_v15 = vsel %vm1291_vm2, %v2428_v59, %v2430_v41  ;;  %v2437_v41 = vrot.slane %v6362_v37, 2 }
 0x388   : > { %10040 = vst [vmem:[#allocation403_spill] sm:$0xff] %v6939_v46  ;;  %2492 = vrot.lane.b32.xlu2 %v6936_v51, %s4594_s22  ;;  %v2427_v46 = vrot.slane %v6312_v42, 2 }
 0x389   : > { %10044 = vst [vmem:[#allocation407_spill] sm:$0xff] %v6961_v15 }
 0x38a   : > { %2490 = vrot.lane.b32.xlu1 %v6942_v10, %s4594_s22  ;;  %v6953_v1 = vpop.permute.xlu2 %2312  ;;  %v6968_v62 = vsel %vm1291_vm2, %v2427_v46, %v2428_v59  ;;  %v2440_v46 = vrot.slane %v6699_v11, 2  ;;  %v2442_v11 = vrot.slane %v6375_v47, 2 }
 0x38b   : > { %10042 = vst [vmem:[#allocation405_spill] sm:$0xff] %v6953_v1  ;;  %v2438_v1 = vrot.slane %v6383_v23, 2 }
 0x38c   : > { %v6956_v33 = vpop.permute.xlu1 %2292 }
 0x38d   : > { %10043 = vst [vmem:[#allocation406_spill] sm:$0xff] %v6956_v33  ;;  %2494 = vrot.lane.b32.xlu0 %v6949_v38, %s4594_s22  ;;  %v6975_v33 = vsel %vm1291_vm2, %v2432_v8, %v2433_v61  ;;  %v6987_v59 = vsel %vm1291_vm2, %v2437_v41, %v2438_v1  ;;  %v2445_v41 = vrot.slane %v6734_v9, 2 }
 0x38f   : > { %v6965_v7 = vpop.permute.xlu0 %2296 }
 0x390   : > { %10045 = vst [vmem:[#allocation408_spill] sm:$0xff] %v6965_v7  ;;  %2498 = vrot.lane.b32.xlu2 %v6961_v15, %s4594_s22  ;;  %v2435_v7 = vrot.slane %v6679_v16, 2  ;;  %v2443_v16 = vrot.slane %v6396_v58, 2 }
 0x392   : > { %2496 = vrot.lane.b32.xlu1 %v6968_v62, %s4594_s22  ;;  %v6979_v38 = vpop.permute.xlu2 %2318  ;;  %v6993_v15 = vsel %vm1291_vm2, %v2433_v61, %v2435_v7  ;;  %v7012_v61 = vsel %vm1291_vm2, %v2443_v16, %v2445_v41  ;;  %v2447_v7 = vrot.slane %v6413_v43, 2  ;;  %v7019_v9 = vsel %vm1291_vm2, %v2442_v11, %v2443_v16 }
 0x393   : > { %10046 = vst [vmem:[#allocation409_spill] sm:$0xff] %v6979_v38  ;;  %v7000_v38 = vsel %vm1291_vm2, %v2438_v1, %v2440_v46  ;;  %v2448_v1 = vrot.slane %v6408_v14, 2 }
 0x394   : > { %v6982_v51 = vpop.permute.xlu1 %2298  ;;  %10049 = vst [vmem:[#allocation412_spill] sm:$0xff] %v7000_v38 }
 0x395   : > { %10047 = vst [vmem:[#allocation410_spill] sm:$0xff] %v6982_v51  ;;  %2500 = vrot.lane.b32.xlu0 %v6975_v33, %s4594_s22 }
 0x397   : > { %v6990_v8 = vpop.permute.xlu0 %2302 }
 0x398   : > { %10048 = vst [vmem:[#allocation411_spill] sm:$0xff] %v6990_v8  ;;  %2504 = vrot.lane.b32.xlu2 %v6987_v59, %s4594_s22 }
 0x39a   : > { %2502 = vrot.lane.b32.xlu1 %v6993_v15, %s4594_s22  ;;  %v7004_v51 = vpop.permute.xlu2 %2324 }
 0x39b   : > { %10050 = vst [vmem:[#allocation413_spill] sm:$0xff] %v7004_v51  ;;  %v7026_v51 = vsel %vm1291_vm2, %v2447_v7, %v2448_v1 }
 0x39c   : > { %v7007_v8 = vpop.permute.xlu1 %2304 }
 0x39d   : > { %10051 = vst [vmem:[#allocation414_spill] sm:$0xff] %v7007_v8  ;;  %2506 = vrot.lane.b32.xlu0 %v7000_v38, %s4594_s22  ;;  %v2450_v8 = vrot.slane %v6751_v39, 2 }
 0x39f   : > { %v7016_v46 = vpop.permute.xlu0 %2308  ;;  %v7038_v11 = vsel %vm1291_vm2, %v2448_v1, %v2450_v8 }
 0x3a0   : > { %10052 = vst [vmem:[#allocation415_spill] sm:$0xff] %v7016_v46  ;;  %2510 = vrot.lane.b32.xlu2 %v7012_v61, %s4594_s22 }
 0x3a2   : > { %2508 = vrot.lane.b32.xlu1 %v7019_v9, %s4594_s22  ;;  %v7028_v41 = vpop.permute.xlu2 %2330 }
 0x3a3   : > { %10053 = vst [vmem:[#allocation416_spill] sm:$0xff] %v7028_v41 }
 0x3a4   : > { %v7031_v38 = vpop.permute.xlu1 %2310 }
 0x3a5   : > { %10054 = vst [vmem:[#allocation417_spill] sm:$0xff] %v7031_v38  ;;  %2512 = vrot.lane.b32.xlu0 %v7026_v51, %s4594_s22 }
 0x3a7   : > { %v7035_v16 = vpop.permute.xlu0 %2314 }
 0x3a8   : > { %10055 = vst [vmem:[#allocation418_spill] sm:$0xff] %v7035_v16  ;;  %2549 = vrot.lane.b32.xlu2 %v6110_v4, %s4595_s23 }
 0x3aa   : > { %2514 = vrot.lane.b32.xlu1 %v7038_v11, %s4594_s22  ;;  %v7044_v7 = vpop.permute.xlu2 %2336 }
 0x3ab   : > { %10056 = vst [vmem:[#allocation419_spill] sm:$0xff] %v7044_v7 }
 0x3ac   : > { %v7046_v41 = vpop.permute.xlu1 %2316 }
 0x3ad   : > { %10057 = vst [vmem:[#allocation420_spill] sm:$0xff] %v7046_v41  ;;  %2551 = vrot.lane.b32.xlu0 %v6131_v27, %s4595_s23 }
 0x3af   : > { %v7050_v38 = vpop.permute.xlu0 %2320 }
 0x3b0   : > { %10058 = vst [vmem:[#allocation421_spill] sm:$0xff] %v7050_v38  ;;  %2555 = vrot.lane.b32.xlu2 %v6144_v5, %s4595_s23 }
 0x3b2   : > { %2553 = vrot.lane.b32.xlu1 %v6123_v55, %s4595_s23  ;;  %v7056_v8 = vpop.permute.xlu2 %2456 }
 0x3b3   : > { %10059 = vst [vmem:[#allocation422_spill] sm:$0xff] %v7056_v8 }
 0x3b4   : > { %v7058_v4 = vpop.permute.xlu1 %2322 }
 0x3b5   : > { %10060 = vst [vmem:[#allocation423_spill] sm:$0xff] %v7058_v4  ;;  %2557 = vrot.lane.b32.xlu0 %v6162_v48, %s4595_s23 }
 0x3b7   : > { %v7062_v1 = vpop.permute.xlu0 %2326 }
 0x3b8   : > { %10061 = vst [vmem:[#allocation424_spill] sm:$0xff] %v7062_v1  ;;  %2561 = vrot.lane.b32.xlu2 %v6173_v29, %s4595_s23 }
 0x3ba   : > { %2559 = vrot.lane.b32.xlu1 %v6157_v13, %s4595_s23  ;;  %v7068_v27 = vpop.permute.xlu2 %2462 }
 0x3bb   : > { %10062 = vst [vmem:[#allocation425_spill] sm:$0xff] %v7068_v27 }
 0x3bc   : > { %v7070_v38 = vpop.permute.xlu1 %2328 }
 0x3bd   : > { %10063 = vst [vmem:[#allocation426_spill] sm:$0xff] %v7070_v38  ;;  %2563 = vrot.lane.b32.xlu0 %v6194_v17, %s4595_s23 }
 0x3bf   : > { %v7074_v41 = vpop.permute.xlu0 %2332 }
 0x3c0   : > { %10064 = vst [vmem:[#allocation427_spill] sm:$0xff] %v7074_v41  ;;  %2567 = vrot.lane.b32.xlu2 %v6207_v57, %s4595_s23 }
 0x3c2   : > { %2565 = vrot.lane.b32.xlu1 %v6186_v50, %s4595_s23  ;;  %v7080_v4 = vpop.permute.xlu2 %2468 }
 0x3c3   : > { %10065 = vst [vmem:[#allocation428_spill] sm:$0xff] %v7080_v4 }
 0x3c4   : > { %v7082_v1 = vpop.permute.xlu1 %2334 }
 0x3c5   : > { %2569 = vrot.lane.b32.xlu0 %v6225_v53, %s4595_s23 }
 0x3c7   : > { %v7086_v16 = vpop.permute.xlu0 %2338 }
 0x3c8   : > { %10066 = vst [vmem:[#allocation429_spill] sm:$0xff] %v7086_v16  ;;  %2573 = vrot.lane.b32.xlu2 %v6236_v18, %s4595_s23 }
 0x3ca   : > { %2571 = vrot.lane.b32.xlu1 %v6220_v52, %s4595_s23  ;;  %v7092_v38 = vpop.permute.xlu2 %2474 }
 0x3cb   : > { %10067 = vst [vmem:[#allocation430_spill] sm:$0xff] %v7092_v38 }
 0x3cc   : > { %v7094_v46 = vpop.permute.xlu1 %4549 }
 0x3cd   : > { %2575 = vrot.lane.b32.xlu0 %v6257_v28, %s4595_s23 }
 0x3cf   : > { %v7098_v4 = vpop.permute.xlu0 %2458 }
 0x3d0   : > { %10068 = vst [vmem:[#allocation431_spill] sm:$0xff] %v7098_v4  ;;  %2579 = vrot.lane.b32.xlu2 %v6270_v36, %s4595_s23 }
 0x3d2   : > { %2577 = vrot.lane.b32.xlu1 %v6249_v2, %s4595_s23  ;;  %v7104_v27 = vpop.permute.xlu2 %2480 }
 0x3d3   : > { %10069 = vst [vmem:[#allocation432_spill] sm:$0xff] %v7104_v27 }
 0x3d4   : > { %v7106_v8 = vpop.permute.xlu1 %2460 }
 0x3d5   : > { %10070 = vst [vmem:[#allocation433_spill] sm:$0xff] %v7106_v8  ;;  %2581 = vrot.lane.b32.xlu0 %v6288_v26, %s4595_s23 }
 0x3d7   : > { %v7110_v38 = vpop.permute.xlu0 %2464 }
 0x3d8   : > { %10071 = vst [vmem:[#allocation434_spill] sm:$0xff] %v7110_v38  ;;  %2585 = vrot.lane.b32.xlu2 %v6299_v3, %s4595_s23 }
 0x3da   : > { %2583 = vrot.lane.b32.xlu1 %v6283_v45, %s4595_s23  ;;  %v7116_v39 = vpop.permute.xlu2 %2486 }
 0x3db   : > { %10072 = vst [vmem:[#allocation435_spill] sm:$0xff] %v7116_v39 }
 0x3dc   : > { %v7118_v16 = vpop.permute.xlu1 %2466 }
 0x3dd   : > { %10073 = vst [vmem:[#allocation436_spill] sm:$0xff] %v7118_v16  ;;  %2587 = vrot.lane.b32.xlu0 %v6320_v40, %s4595_s23 }
 0x3df   : > { %v7122_v27 = vpop.permute.xlu0 %2470 }
 0x3e0   : > { %10074 = vst [vmem:[#allocation437_spill] sm:$0xff] %v7122_v27  ;;  %2591 = vrot.lane.b32.xlu2 %v6333_v60, %s4595_s23 }
 0x3e2   : > { %2589 = vrot.lane.b32.xlu1 %v6312_v42, %s4595_s23  ;;  %v7128_v8 = vpop.permute.xlu2 %2492 }
 0x3e3   : > { %10075 = vst [vmem:[#allocation438_spill] sm:$0xff] %v7128_v8 }
 0x3e4   : > { %v7130_v7 = vpop.permute.xlu1 %2472 }
 0x3e5   : > { %10076 = vst [vmem:[#allocation439_spill] sm:$0xff] %v7130_v7  ;;  %2593 = vrot.lane.b32.xlu0 %v6351_v34, %s4595_s23  ;;  %v894_v7 = vld [vmem:[%s6086_s19 + $0xf0] sm:$0xff] }
 0x3e7   : > { %v7134_v39 = vpop.permute.xlu0 %2476 }
 0x3e8   : > { %10077 = vst [vmem:[#allocation440_spill] sm:$0xff] %v7134_v39  ;;  %2597 = vrot.lane.b32.xlu2 %v6362_v37, %s4595_s23  ;;  %v988_v37 = vrot.slane %v894_v7, 7 }
 0x3ea   : > { %2595 = vrot.lane.b32.xlu1 %v6346_v44, %s4595_s23  ;;  %v7140_v16 = vpop.permute.xlu2 %2498  ;;  %v7156_v44 = vld [vmem:[%s6086_s19 + $0xf8] sm:$0xff] }
 0x3eb   : > { %10078 = vst [vmem:[#allocation441_spill] sm:$0xff] %v7140_v16 }
 0x3ec   : > { %v7142_v27 = vpop.permute.xlu1 %2478 }
 0x3ed   : > { %10079 = vst [vmem:[#allocation442_spill] sm:$0xff] %v7142_v27  ;;  %2599 = vrot.lane.b32.xlu0 %v6383_v23, %s4595_s23  ;;  %v7163_v23 = vsel %vm721_vm0, 0.0, %v988_v37  ;;  %v9466_v27 = vrot.slane %v7156_v44, 7 }
 0x3ee   : > { %10083 = vst [vmem:[#allocation446_spill] sm:$0xff] %v7163_v23 }
 0x3ef   : > { %v7146_v8 = vpop.permute.xlu0 %2482  ;;  %v7175_v7 = vsel %vm721_vm0, %v988_v37, %v9466_v27 }
 0x3f0   : > { %10080 = vst [vmem:[#allocation443_spill] sm:$0xff] %v7146_v8  ;;  %2603 = vrot.lane.b32.xlu2 %v6396_v58, %s4595_s23 }
 0x3f1   : > { %10085 = vst [vmem:[#allocation448_spill] sm:$0xff] %v7175_v7 }
 0x3f2   : > { %2601 = vrot.lane.b32.xlu1 %v6375_v47, %s4595_s23  ;;  %v7153_v39 = vpop.permute.xlu2 %2504  ;;  %v10097_v47 = vld [vmem:[#allocation322_spill] sm:$0xff] }
 0x3f3   : > { %10081 = vst [vmem:[#allocation444_spill] sm:$0xff] %v7153_v39 }
 0x3f4   : > { %v7158_v16 = vpop.permute.xlu1 %2484 }
 0x3f5   : > { %10082 = vst [vmem:[#allocation445_spill] sm:$0xff] %v7158_v16  ;;  %2605 = vrot.lane.b32.xlu0 %v6413_v43, %s4595_s23 }
 0x3f7   : > { %v7166_v8 = vpop.permute.xlu0 %2488 }
 0x3f8   : > { %10084 = vst [vmem:[#allocation447_spill] sm:$0xff] %v7166_v8  ;;  %2609 = vrot.lane.b32.xlu2 %v7163_v23, %s4595_s23 }
 0x3fa   : > { %2607 = vrot.lane.b32.xlu1 %v6408_v14, %s4595_s23  ;;  %v7177_v39 = vpop.permute.xlu2 %2510 }
 0x3fc   : > { %v7179_v43 = vpop.permute.xlu1 %2490 }
 0x3fd   : > { %10086 = vst [vmem:[#allocation449_spill] sm:$0xff] %v7179_v43  ;;  %2611 = vrot.lane.b32.xlu0 %v7175_v7, %s4595_s23 }
 0x3ff   : > { %v7183_v58 = vpop.permute.xlu0 %2494 }
 0x400   : > { %10087 = vst [vmem:[#allocation450_spill] sm:$0xff] %v7183_v58  ;;  %2653 = vrot.lane.b32.xlu2 %v6434_v21, %s4596_s24 }
 0x402   : > { %2651 = vrot.lane.b32.xlu1 %v6441_v25, %s4596_s24  ;;  %v7189_v14 = vpop.permute.xlu2 %2549 }
 0x404   : > { %v7191_v37 = vpop.permute.xlu1 %2496 }
 0x405   : > { %10088 = vst [vmem:[#allocation451_spill] sm:$0xff] %v7191_v37  ;;  %2655 = vrot.lane.b32.xlu0 %v6453_v63, %s4596_s24  ;;  %v10093_v37 = vld [vmem:[#allocation318_spill] sm:$0xff] }
 0x407   : > { %v7195_v27 = vpop.permute.xlu0 %2500 }
 0x408   : > { %10089 = vst [vmem:[#allocation452_spill] sm:$0xff] %v7195_v27  ;;  %2659 = vrot.lane.b32.xlu2 %v6470_v19, %s4596_s24  ;;  %v10094_v27 = vld [vmem:[#allocation320_spill] sm:$0xff] }
 0x40a   : > { %2657 = vrot.lane.b32.xlu1 %v6478_v56, %s4596_s24  ;;  %v7201_v58 = vpop.permute.xlu2 %2555 }
 0x40b   : > { %10090 = vst [vmem:[#allocation453_spill] sm:$0xff] %v7201_v58  ;;  %v10127_v58 = vld [vmem:[#allocation360_spill] sm:$0xff] }
 0x40c   : > { %v7203_v21 = vpop.permute.xlu1 %2502 }
 0x40d   : > { %10091 = vst [vmem:[#allocation454_spill] sm:$0xff] %v7203_v21  ;;  %2661 = vrot.lane.b32.xlu0 %v6492_v6, %s4596_s24  ;;  %v10099_v21 = vld [vmem:[#allocation326_spill] sm:$0xff] }
 0x40f   : > { %v7207_v25 = vpop.permute.xlu0 %2506 }
 0x410   : > { %10092 = vst [vmem:[#allocation455_spill] sm:$0xff] %v7207_v25  ;;  %2665 = vrot.lane.b32.xlu2 %v10093_v37, %s4596_s24  ;;  %v10100_v25 = vld [vmem:[#allocation328_spill] sm:$0xff] }
 0x412   : > { %2663 = vrot.lane.b32.xlu1 %v10094_v27, %s4596_s24  ;;  %v7213_v43 = vpop.permute.xlu2 %2561  ;;  %v10103_v27 = vld [vmem:[#allocation330_spill] sm:$0xff] }
 0x413   : > { %10095 = vst [vmem:[#allocation456_spill] sm:$0xff] %v7213_v43 }
 0x414   : > { %v7215_v16 = vpop.permute.xlu1 %2508 }
 0x415   : > { %10096 = vst [vmem:[#allocation457_spill] sm:$0xff] %v7215_v16  ;;  %2667 = vrot.lane.b32.xlu0 %v10097_v47, %s4596_s24  ;;  %v10105_v16 = vld [vmem:[#allocation333_spill] sm:$0xff]  ;;  %v10106_v47 = vld [vmem:[#allocation335_spill] sm:$0xff] }
 0x417   : > { %v7219_v8 = vpop.permute.xlu0 %2512 }
 0x418   : > { %10098 = vst [vmem:[#allocation458_spill] sm:$0xff] %v7219_v8  ;;  %2671 = vrot.lane.b32.xlu2 %v10099_v21, %s4596_s24 }
 0x41a   : > { %2669 = vrot.lane.b32.xlu1 %v10100_v25, %s4596_s24  ;;  %v7225_v6 = vpop.permute.xlu2 %2567  ;;  %v10109_v25 = vld [vmem:[#allocation337_spill] sm:$0xff] }
 0x41b   : > { %10101 = vst [vmem:[#allocation326_spill] sm:$0xff] %v7225_v6 }
 0x41c   : > { %v7227_v37 = vpop.permute.xlu1 %2514 }
 0x41d   : > { %10102 = vst [vmem:[#allocation459_spill] sm:$0xff] %v7227_v37  ;;  %2673 = vrot.lane.b32.xlu0 %v10103_v27, %s4596_s24  ;;  %v10111_v37 = vld [vmem:[#allocation341_spill] sm:$0xff] }
 0x41f   : > { %v7231_v43 = vpop.permute.xlu0 %2551 }
 0x420   : > { %10104 = vst [vmem:[#allocation330_spill] sm:$0xff] %v7231_v43  ;;  %2677 = vrot.lane.b32.xlu2 %v10105_v16, %s4596_s24  ;;  %v10112_v43 = vld [vmem:[#allocation343_spill] sm:$0xff] }
 0x422   : > { %2675 = vrot.lane.b32.xlu1 %v10106_v47, %s4596_s24  ;;  %v7237_v8 = vpop.permute.xlu2 %2573  ;;  %v10115_v47 = vld [vmem:[#allocation345_spill] sm:$0xff] }
 0x423   : > { %10107 = vst [vmem:[#allocation460_spill] sm:$0xff] %v7237_v8 }
 0x424   : > { %v7239_v41 = vpop.permute.xlu1 %2553 }
 0x425   : > { %10108 = vst [vmem:[#allocation461_spill] sm:$0xff] %v7239_v41  ;;  %2679 = vrot.lane.b32.xlu0 %v10109_v25, %s4596_s24  ;;  %v10117_v41 = vld [vmem:[#allocation348_spill] sm:$0xff]  ;;  %v10118_v25 = vld [vmem:[#allocation350_spill] sm:$0xff] }
 0x427   : > { %v7243_v6 = vpop.permute.xlu0 %2557 }
 0x428   : > { %10110 = vst [vmem:[#allocation462_spill] sm:$0xff] %v7243_v6  ;;  %2683 = vrot.lane.b32.xlu2 %v10111_v37, %s4596_s24 }
 0x42a   : > { %2681 = vrot.lane.b32.xlu1 %v10112_v43, %s4596_s24  ;;  %v7249_v38 = vpop.permute.xlu2 %2579  ;;  %v10121_v43 = vld [vmem:[#allocation352_spill] sm:$0xff] }
 0x42b   : > { %10113 = vst [vmem:[#allocation463_spill] sm:$0xff] %v7249_v38 }
 0x42c   : > { %v7251_v16 = vpop.permute.xlu1 %2559 }
 0x42d   : > { %10114 = vst [vmem:[#allocation464_spill] sm:$0xff] %v7251_v16  ;;  %2685 = vrot.lane.b32.xlu0 %v10115_v47, %s4596_s24  ;;  %v10123_v16 = vld [vmem:[#allocation356_spill] sm:$0xff]  ;;  %v10124_v47 = vld [vmem:[#allocation358_spill] sm:$0xff] }
 0x42f   : > { %v7255_v8 = vpop.permute.xlu0 %2563 }
 0x430   : > { %10116 = vst [vmem:[#allocation465_spill] sm:$0xff] %v7255_v8  ;;  %2689 = vrot.lane.b32.xlu2 %v10117_v41, %s4596_s24 }
 0x432   : > { %2687 = vrot.lane.b32.xlu1 %v10118_v25, %s4596_s24  ;;  %v7261_v6 = vpop.permute.xlu2 %2585 }
 0x433   : > { %10119 = vst [vmem:[#allocation348_spill] sm:$0xff] %v7261_v6 }
 0x434   : > { %v7263_v37 = vpop.permute.xlu1 %2565 }
 0x435   : > { %10120 = vst [vmem:[#allocation350_spill] sm:$0xff] %v7263_v37  ;;  %2691 = vrot.lane.b32.xlu0 %v10121_v43, %s4596_s24  ;;  %v10129_v37 = vld [vmem:[#allocation363_spill] sm:$0xff] }
 0x437   : > { %v7267_v38 = vpop.permute.xlu0 %2569 }
 0x438   : > { %10122 = vst [vmem:[#allocation352_spill] sm:$0xff] %v7267_v38  ;;  %2695 = vrot.lane.b32.xlu2 %v10123_v16, %s4596_s24  ;;  %v10130_v38 = vld [vmem:[#allocation365_spill] sm:$0xff] }
 0x43a   : > { %2693 = vrot.lane.b32.xlu1 %v10124_v47, %s4596_s24  ;;  %v7273_v8 = vpop.permute.xlu2 %2591 }
 0x43b   : > { %10125 = vst [vmem:[#allocation358_spill] sm:$0xff] %v7273_v8 }
 0x43c   : > { %v7275_v19 = vpop.permute.xlu1 %2571 }
 0x43d   : > { %10126 = vst [vmem:[#allocation466_spill] sm:$0xff] %v7275_v19  ;;  %2697 = vrot.lane.b32.xlu0 %v10127_v58, %s4596_s24  ;;  %v10134_v19 = vrot.slane %v7156_v44, 7 }
 0x43f   : > { %v7279_v6 = vpop.permute.xlu0 %2575  ;;  %v7296_v58 = vsel %vm721_vm0, %v10134_v19, 0.0  ;;  %vm3374_vm0 = vcmask 457728  }
 0x440   : > { %10128 = vst [vmem:[#allocation467_spill] sm:$0xff] %v7279_v6  ;;  %2701 = vrot.lane.b32.xlu2 %v10129_v37, %s4596_s24  ;;  %v10136_v6 = vld [vmem:[#allocation370_spill] sm:$0xff] }
 0x441   : > { %10135 = vst [vmem:[#allocation471_spill] sm:$0xff] %v7296_v58 }
 0x442   : > { %2699 = vrot.lane.b32.xlu1 %v10130_v38, %s4596_s24  ;;  %v7285_v4 = vpop.permute.xlu2 %2597  ;;  %v9472_v38 = vrot.slane %v7296_v58, 1 }
 0x443   : > { %10131 = vst [vmem:[#allocation468_spill] sm:$0xff] %v7285_v4  ;;  %v2647_v4 = vrot.slane %v7175_v7, 1 }
 0x444   : > { %v7287_v16 = vpop.permute.xlu1 %2577 }
 0x445   : > { %10132 = vst [vmem:[#allocation469_spill] sm:$0xff] %v7287_v16  ;;  %2703 = vrot.lane.b32.xlu0 %v6741_v54, %s4596_s24  ;;  %v2646_v16 = vrot.slane %v7163_v23, 1  ;;  %v7314_v44 = vsel %vm1114_vm1, %v2647_v4, %v9472_v38 }
 0x446   : > { %10139 = vst [vmem:[#allocation474_spill] sm:$0xff] %v7314_v44 }
 0x447   : > { %v7291_v8 = vpop.permute.xlu0 %2581 }
 0x448   : > { %10133 = vst [vmem:[#allocation470_spill] sm:$0xff] %v7291_v8  ;;  %2707 = vrot.lane.b32.xlu2 %v10136_v6, %s4596_s24  ;;  %v7319_v6 = vsel %vm1114_vm1, %v2646_v16, %v2647_v4  ;;  %v10145_v16 = vld [vmem:[#allocation377_spill] sm:$0xff] }
 0x449   : > { %10141 = vst [vmem:[#allocation476_spill] sm:$0xff] %v7319_v6 }
 0x44a   : > { %2705 = vrot.lane.b32.xlu1 %v6766_v31, %s4596_s24  ;;  %v7304_v37 = vpop.permute.xlu2 %2603 }
 0x44b   : > { %10137 = vst [vmem:[#allocation472_spill] sm:$0xff] %v7304_v37 }
 0x44c   : > { %v7307_v8 = vpop.permute.xlu1 %2583 }
 0x44d   : > { %10138 = vst [vmem:[#allocation473_spill] sm:$0xff] %v7307_v8  ;;  %2709 = vrot.lane.b32.xlu0 %v6777_v35, %s4596_s24  ;;  %v10143_v35 = vld [vmem:[#allocation375_spill] sm:$0xff] }
 0x44f   : > { %v7316_v19 = vpop.permute.xlu0 %2587 }
 0x450   : > { %10140 = vst [vmem:[#allocation475_spill] sm:$0xff] %v7316_v19  ;;  %2713 = vrot.lane.b32.xlu2 %v7314_v44, %s4596_s24  ;;  %v10230_v44 = vld [vmem:[#allocation111_spill] sm:$0xff] }
 0x452   : > { %2711 = vrot.lane.b32.xlu1 %v7319_v6, %s4596_s24  ;;  %v7325_v37 = vpop.permute.xlu2 %2609  ;;  %v10147_v6 = vld [vmem:[#allocation380_spill] sm:$0xff] }
 0x454   : > { %v7327_v8 = vpop.permute.xlu1 %2589 }
 0x455   : > { %10142 = vst [vmem:[#allocation477_spill] sm:$0xff] %v7327_v8  ;;  %2752 = vrot.lane.b32.xlu0 %v10143_v35, %s4597_s25 }
 0x457   : > { %v7331_v38 = vpop.permute.xlu0 %2593 }
 0x458   : > { %10144 = vst [vmem:[#allocation375_spill] sm:$0xff] %v7331_v38  ;;  %2756 = vrot.lane.b32.xlu2 %v6815_v12, %s4597_s25 }
 0x45a   : > { %2754 = vrot.lane.b32.xlu1 %v10145_v16, %s4597_s25  ;;  %v7337_v4 = vpop.permute.xlu2 %2653  ;;  %v10151_v16 = vld [vmem:[#allocation384_spill] sm:$0xff] }
 0x45c   : > { %v7339_v19 = vpop.permute.xlu1 %2595 }
 0x45d   : > { %10146 = vst [vmem:[#allocation377_spill] sm:$0xff] %v7339_v19  ;;  %2758 = vrot.lane.b32.xlu0 %v10147_v6, %s4597_s25  ;;  %v10152_v6 = vld [vmem:[#allocation386_spill] sm:$0xff] }
 0x45f   : > { %v7343_v8 = vpop.permute.xlu0 %2599 }
 0x460   : > { %10148 = vst [vmem:[#allocation380_spill] sm:$0xff] %v7343_v8  ;;  %2762 = vrot.lane.b32.xlu2 %v6840_v22, %s4597_s25 }
 0x462   : > { %2760 = vrot.lane.b32.xlu1 %v6822_v0, %s4597_s25  ;;  %v7349_v35 = vpop.permute.xlu2 %2659  ;;  %v10154_v0 = vld [vmem:[#allocation389_spill] sm:$0xff] }
 0x463   : > { %10149 = vst [vmem:[#allocation478_spill] sm:$0xff] %v7349_v35 }
 0x464   : > { %v7351_v12 = vpop.permute.xlu1 %2601 }
 0x465   : > { %10150 = vst [vmem:[#allocation479_spill] sm:$0xff] %v7351_v12  ;;  %2764 = vrot.lane.b32.xlu0 %v10151_v16, %s4597_s25 }
 0x467   : > { %v7355_v38 = vpop.permute.xlu0 %2605 }
 0x468   : > { %2768 = vrot.lane.b32.xlu2 %v6866_v49, %s4597_s25 }
 0x46a   : > { %2766 = vrot.lane.b32.xlu1 %v10152_v6, %s4597_s25  ;;  %v7361_v19 = vpop.permute.xlu2 %2665  ;;  %v10156_v6 = vld [vmem:[#allocation393_spill] sm:$0xff] }
 0x46b   : > { %10153 = vst [vmem:[#allocation384_spill] sm:$0xff] %v7361_v19 }
 0x46c   : > { %v7363_v22 = vpop.permute.xlu1 %2607 }
 0x46d   : > { %2770 = vrot.lane.b32.xlu0 %v10154_v0, %s4597_s25  ;;  %v10157_v0 = vld [vmem:[#allocation395_spill] sm:$0xff] }
 0x46f   : > { %v7367_v8 = vpop.permute.xlu0 %2611 }
 0x470   : > { %2774 = vrot.lane.b32.xlu2 %v6891_v30, %s4597_s25 }
 0x472   : > { %2772 = vrot.lane.b32.xlu1 %v6873_v20, %s4597_s25  ;;  %v7373_v16 = vpop.permute.xlu2 %2671  ;;  %v10159_v20 = vld [vmem:[#allocation398_spill] sm:$0xff] }
 0x473   : > { %10155 = vst [vmem:[#allocation386_spill] sm:$0xff] %v7373_v16 }
 0x474   : > { %v7375_v49 = vpop.permute.xlu1 %2651 }
 0x475   : > { %2776 = vrot.lane.b32.xlu0 %v10156_v6, %s4597_s25 }
 0x477   : > { %v7379_v12 = vpop.permute.xlu0 %2655 }
 0x478   : > { %2780 = vrot.lane.b32.xlu2 %v6917_v24, %s4597_s25 }
 0x47a   : > { %2778 = vrot.lane.b32.xlu1 %v10157_v0, %s4597_s25  ;;  %v7385_v19 = vpop.permute.xlu2 %2677  ;;  %v10162_v0 = vld [vmem:[#allocation402_spill] sm:$0xff] }
 0x47b   : > { %10158 = vst [vmem:[#allocation389_spill] sm:$0xff] %v7385_v19 }
 0x47c   : > { %v7387_v30 = vpop.permute.xlu1 %2657 }
 0x47d   : > { %2782 = vrot.lane.b32.xlu0 %v10159_v20, %s4597_s25  ;;  %v10164_v20 = vld [vmem:[#allocation404_spill] sm:$0xff] }
 0x47f   : > { %v7391_v16 = vpop.permute.xlu0 %2661 }
 0x480   : > { %10160 = vst [vmem:[#allocation393_spill] sm:$0xff] %v7391_v16  ;;  %2786 = vrot.lane.b32.xlu2 %v6942_v10, %s4597_s25 }
 0x482   : > { %2784 = vrot.lane.b32.xlu1 %v6924_v32, %s4597_s25  ;;  %v7397_v6 = vpop.permute.xlu2 %2683  ;;  %v10166_v32 = vld [vmem:[#allocation407_spill] sm:$0xff] }
 0x483   : > { %10161 = vst [vmem:[#allocation395_spill] sm:$0xff] %v7397_v6 }
 0x484   : > { %v7399_v24 = vpop.permute.xlu1 %2663 }
 0x485   : > { %2788 = vrot.lane.b32.xlu0 %v10162_v0, %s4597_s25 }
 0x487   : > { %v7403_v19 = vpop.permute.xlu0 %2667 }
 0x488   : > { %10163 = vst [vmem:[#allocation398_spill] sm:$0xff] %v7403_v19  ;;  %2792 = vrot.lane.b32.xlu2 %v6968_v62, %s4597_s25 }
 0x48a   : > { %2790 = vrot.lane.b32.xlu1 %v10164_v20, %s4597_s25  ;;  %v7409_v16 = vpop.permute.xlu2 %2689 }
 0x48b   : > { %10165 = vst [vmem:[#allocation402_spill] sm:$0xff] %v7409_v16 }
 0x48c   : > { %v7411_v10 = vpop.permute.xlu1 %2669 }
 0x48d   : > { %2794 = vrot.lane.b32.xlu0 %v10166_v32, %s4597_s25  ;;  %v10170_v32 = vld [vmem:[#allocation412_spill] sm:$0xff] }
 0x48f   : > { %v7415_v6 = vpop.permute.xlu0 %2673 }
 0x490   : > { %10167 = vst [vmem:[#allocation404_spill] sm:$0xff] %v7415_v6  ;;  %2798 = vrot.lane.b32.xlu2 %v6993_v15, %s4597_s25  ;;  %v10207_v6 = vld [vmem:[#allocation26_spill] sm:$0xff] }
 0x492   : > { %2796 = vrot.lane.b32.xlu1 %v6975_v33, %s4597_s25  ;;  %v7421_v0 = vpop.permute.xlu2 %2695  ;;  %v2747_v33 = vrot.slane %v7163_v23, 2 }
 0x493   : > { %10168 = vst [vmem:[#allocation407_spill] sm:$0xff] %v7421_v0  ;;  %v2748_v0 = vrot.slane %v7175_v7, 2 }
 0x494   : > { %v7423_v62 = vpop.permute.xlu1 %2675 }
 0x495   : > { %2800 = vrot.lane.b32.xlu0 %v6987_v59, %s4597_s25 }
 0x497   : > { %v7427_v20 = vpop.permute.xlu0 %2679 }
 0x498   : > { %10169 = vst [vmem:[#allocation480_spill] sm:$0xff] %v7427_v20  ;;  %2804 = vrot.lane.b32.xlu2 %v7019_v9, %s4597_s25  ;;  %v2749_v9 = vsel %vm1291_vm2, %v2747_v33, %v2748_v0 }
 0x49a   : > { %2802 = vrot.lane.b32.xlu1 %v10170_v32, %s4597_s25  ;;  %v7433_v16 = vpop.permute.xlu2 %2701 }
 0x49b   : > { %10171 = vst [vmem:[#allocation412_spill] sm:$0xff] %v7433_v16  ;;  %v2750_v16 = vrot.slane %v7296_v58, 2 }
 0x49c   : > { %v7435_v15 = vpop.permute.xlu1 %2681 }
 0x49d   : > { %10172 = vst [vmem:[#allocation481_spill] sm:$0xff] %v7435_v15  ;;  %2806 = vrot.lane.b32.xlu0 %v7012_v61, %s4597_s25  ;;  %v2751_v7 = vsel %vm1291_vm2, %v2748_v0, %v2750_v16  ;;  %vm3407_vm2 = vcmask 490496  }
 0x49f   : > { %v7441_v59 = vpop.permute.xlu0 %2685 }
 0x4a0   : > { %10173 = vst [vmem:[#allocation482_spill] sm:$0xff] %v7441_v59  ;;  %2810 = vrot.lane.b32.xlu2 %v7038_v11, %s4597_s25  ;;  %v10200_v59 = vld [vmem:[#allocation2_spill] sm:$0xff] }
 0x4a2   : > { %2808 = vrot.lane.b32.xlu1 %v7026_v51, %s4597_s25  ;;  %v7448_v32 = vpop.permute.xlu2 %2707 }
 0x4a4   : > { %v7451_v20 = vpop.permute.xlu1 %2687 }
 0x4a5   : > { %10174 = vst [vmem:[#allocation483_spill] sm:$0xff] %v7451_v20  ;;  %2812 = vrot.lane.b32.xlu0 %v2749_v9, %s4597_s25 }
 0x4a7   : > { %v7454_v61 = vpop.permute.xlu0 %2691 }
 0x4a8   : > { %10175 = vst [vmem:[#allocation484_spill] sm:$0xff] %v7454_v61  ;;  %2849 = vrot.lane.b32.xlu2 %v6123_v55, %s4598_s1  ;;  %v10193_v55 = vld [vmem:[#allocation64_spill] sm:$0xff] }
 0x4aa   : > { %2814 = vrot.lane.b32.xlu1 %v2751_v7, %s4597_s25  ;;  %v7460_v51 = vpop.permute.xlu2 %2713 }
 0x4ac   : > { %v7462_v11 = vpop.permute.xlu1 %2693 }
 0x4ad   : > { %10176 = vst [vmem:[#allocation485_spill] sm:$0xff] %v7462_v11  ;;  %2851 = vrot.lane.b32.xlu0 %v6144_v5, %s4598_s1  ;;  %v10192_v5 = vld [vmem:[#allocation6_spill] sm:$0xff] }
 0x4af   : > { %v7466_v33 = vpop.permute.xlu0 %2697 }
 0x4b0   : > { %10177 = vst [vmem:[#allocation486_spill] sm:$0xff] %v7466_v33  ;;  %2855 = vrot.lane.b32.xlu2 %v6157_v13, %s4598_s1 }
 0x4b2   : > { %2853 = vrot.lane.b32.xlu1 %v6162_v48, %s4598_s1  ;;  %v7472_v16 = vpop.permute.xlu2 %2756 }
 0x4b4   : > { %v7474_v0 = vpop.permute.xlu1 %2699 }
 0x4b5   : > { %10178 = vst [vmem:[#allocation487_spill] sm:$0xff] %v7474_v0  ;;  %2857 = vrot.lane.b32.xlu0 %v6173_v29, %s4598_s1 }
 0x4b7   : > { %v7478_v7 = vpop.permute.xlu0 %2703 }
 0x4b8   : > { %10179 = vst [vmem:[#allocation488_spill] sm:$0xff] %v7478_v7  ;;  %2861 = vrot.lane.b32.xlu2 %v6186_v50, %s4598_s1 }
 0x4ba   : > { %2859 = vrot.lane.b32.xlu1 %v6194_v17, %s4598_s1  ;;  %v7484_v9 = vpop.permute.xlu2 %2762 }
 0x4bb   : > { %10180 = vst [vmem:[#allocation489_spill] sm:$0xff] %v7484_v9  ;;  %v10225_v9 = vld [vmem:[#allocation57_spill] sm:$0xff] }
 0x4bc   : > { %v7486_v33 = vpop.permute.xlu1 %2705 }
 0x4bd   : > { %10181 = vst [vmem:[#allocation490_spill] sm:$0xff] %v7486_v33  ;;  %2863 = vrot.lane.b32.xlu0 %v6207_v57, %s4598_s1 }
 0x4bf   : > { %v7490_v11 = vpop.permute.xlu0 %2709 }
 0x4c0   : > { %2867 = vrot.lane.b32.xlu2 %v6220_v52, %s4598_s1  ;;  %v10194_v52 = vld [vmem:[#allocation12_spill] sm:$0xff] }
 0x4c2   : > { %2865 = vrot.lane.b32.xlu1 %v6225_v53, %s4598_s1  ;;  %v7496_v7 = vpop.permute.xlu2 %2768  ;;  %v2952_v53 = vsel %vm2945_vm3, %v10194_v52, %v10193_v55  ;;  %v10202_v52 = vld [vmem:[#allocation74_spill] sm:$0xff]  ;;  %v10203_v55 = vld [vmem:[#allocation9_spill] sm:$0xff] }
 0x4c3   : > { %10182 = vst [vmem:[#allocation491_spill] sm:$0xff] %v7496_v7 }
 0x4c4   : > { %v7498_v50 = vpop.permute.xlu1 %2711 }
 0x4c5   : > { %2869 = vrot.lane.b32.xlu0 %v6236_v18, %s4598_s1  ;;  %v10190_v18 = vld [vmem:[#allocation70_spill] sm:$0xff] }
 0x4c7   : > { %v7502_v0 = vpop.permute.xlu0 %2752 }
 0x4c8   : > { %2873 = vrot.lane.b32.xlu2 %v6249_v2, %s4598_s1 }
 0x4ca   : > { %2871 = vrot.lane.b32.xlu1 %v6257_v28, %s4598_s1  ;;  %v7508_v33 = vpop.permute.xlu2 %2774  ;;  %v4517_v28 = vunpack.i.h.bf16 %v10190_v18 }
 0x4cb   : > { %10183 = vst [vmem:[#allocation492_spill] sm:$0xff] %v7508_v33  ;;  %v10205_v33 = vld [vmem:[#allocation7_spill] sm:$0xff] }
 0x4cc   : > { %v7510_v57 = vpop.permute.xlu1 %2754 }
 0x4cd   : > { %2875 = vrot.lane.b32.xlu0 %v6270_v36, %s4598_s1 }
 0x4cf   : > { %v7514_v23 = vpop.permute.xlu0 %2758 }
 0x4d0   : > { %2879 = vrot.lane.b32.xlu2 %v6283_v45, %s4598_s1 }
 0x4d2   : > { %2877 = vrot.lane.b32.xlu1 %v6288_v26, %s4598_s1  ;;  %v7520_v17 = vpop.permute.xlu2 %2780 }
 0x4d3   : > { %10184 = vst [vmem:[#allocation493_spill] sm:$0xff] %v7520_v17  ;;  %v10204_v17 = vld [vmem:[#allocation76_spill] sm:$0xff] }
 0x4d4   : > { %v7522_v2 = vpop.permute.xlu1 %2760 }
 0x4d5   : > { %10185 = vst [vmem:[#allocation494_spill] sm:$0xff] %v7522_v2  ;;  %2881 = vrot.lane.b32.xlu0 %v6299_v3, %s4598_s1  ;;  %v10197_v3 = vld [vmem:[#allocation73_spill] sm:$0xff] }
 0x4d6   : > { %v10231_v2 = vld [vmem:[#allocation53_spill] sm:$0xff] }
 0x4d7   : > { %v7526_v29 = vpop.permute.xlu0 %2764 }
 0x4d8   : > { %2885 = vrot.lane.b32.xlu2 %v6312_v42, %s4598_s1  ;;  %v4516_v42 = vunpack.i.l.bf16 %v10190_v18 }
 0x4da   : > { %2883 = vrot.lane.b32.xlu1 %v6320_v40, %s4598_s1  ;;  %v7532_v36 = vpop.permute.xlu2 %2786  ;;  %v10196_v40 = vld [vmem:[#allocation13_spill] sm:$0xff] }
 0x4db   : > { %10186 = vst [vmem:[#allocation495_spill] sm:$0xff] %v7532_v36 }
 0x4dc   : > { %v7534_v45 = vpop.permute.xlu1 %2766 }
 0x4dd   : > { %10187 = vst [vmem:[#allocation496_spill] sm:$0xff] %v7534_v45  ;;  %2887 = vrot.lane.b32.xlu0 %v6333_v60, %s4598_s1  ;;  %v10224_v45 = vld [vmem:[#allocation103_spill] sm:$0xff] }
 0x4df   : > { %v7538_v26 = vpop.permute.xlu0 %2770 }
 0x4e0   : > { %3494 = vrot.lane.b32.xlu2 %v10118_v25, %s4584_s9  ;;  %v10191_v25 = vld [vmem:[#allocation61_spill] sm:$0xff] }
 0x4e2   : > { %2889 = vrot.lane.b32.xlu1 %v6351_v34, %s4598_s1  ;;  %v7544_v13 = vpop.permute.xlu2 %2792  ;;  %v2951_v34 = vsel %vm2945_vm3, %v10192_v5, %v10191_v25  ;;  %v2947_v5 = vsel %vm2945_vm3, %v10200_v59, %v4517_v28  ;;  %v10212_v59 = vld [vmem:[#allocation10_spill] sm:$0xff] }
 0x4e3   : > { %10188 = vst [vmem:[#allocation497_spill] sm:$0xff] %v7544_v13  ;;  %v10198_v13 = vld [vmem:[#allocation21_spill] sm:$0xff] }
 0x4e4   : > { %v7546_v48 = vpop.permute.xlu1 %2772  ;;  %v2958_v61 = vsel %vm2945_vm3, %v10198_v13, %v10197_v3 }
 0x4e5   : > { %10189 = vst [vmem:[#allocation498_spill] sm:$0xff] %v7546_v48  ;;  %3496 = vrot.lane.b32.xlu0 %v10117_v41, %s4584_s9  ;;  %v10195_v41 = vld [vmem:[#allocation68_spill] sm:$0xff] }
 0x4e6   : > { %v2955_v18 = vsel %vm2945_vm3, %v10196_v40, %v10195_v41  ;;  %v2948_v40 = vsel %vm2945_vm3, %v10205_v33, %v10204_v17  ;;  %v10206_v41 = vld [vmem:[#allocation79_spill] sm:$0xff]  ;;  %v10215_v17 = vld [vmem:[#allocation86_spill] sm:$0xff] }
 0x4e7   : > { %v7552_v60 = vpop.permute.xlu0 %2776  ;;  %v2961_v13 = vsel %vm2945_vm3, %v10207_v6, %v10206_v41  ;;  %v10216_v33 = vld [vmem:[#allocation14_spill] sm:$0xff]  ;;  %v10217_v6 = vld [vmem:[#allocation88_spill] sm:$0xff]  ;;  %v10218_v41 = vld [vmem:[#allocation17_spill] sm:$0xff] }
 0x4e8   : > { %3520 = vrot.lane.b32.xlu2 %v6766_v31, %s4584_s9  ;;  %v10199_v31 = vld [vmem:[#allocation3_spill] sm:$0xff]  ;;  %v2954_v7 = vsel %vm2945_vm3, %v10216_v33, %v10215_v17  ;;  %v7614_v17 = vsel %vm2945_vm3, %v10225_v9, %v10224_v45  ;;  %v2974_v45 = vsel %vm2945_vm3, %v10231_v2, %v10230_v44  ;;  %v10232_v9 = vld [vmem:[#allocation133_spill] sm:$0xff] }
 0x4e9   : > { %v2946_v36 = vsel %vm2945_vm3, %v10199_v31, %v4516_v42  ;;  %v10209_v42 = vld [vmem:[#allocation80_spill] sm:$0xff]  ;;  %v10237_v2 = vld [vmem:[#allocation115_spill] sm:$0xff] }
 0x4ea   : > { %3518 = vrot.lane.b32.xlu1 %v6741_v54, %s4584_s9  ;;  %v7574_v25 = vpop.permute.xlu2 %2798  ;;  %v2949_v54 = vsel %vm2945_vm3, %v10203_v55, %v10202_v52  ;;  %v10210_v31 = vld [vmem:[#allocation8_spill] sm:$0xff]  ;;  %v10213_v52 = vld [vmem:[#allocation85_spill] sm:$0xff] }
 0x4eb   : > { %10201 = vst [vmem:[#allocation70_spill] sm:$0xff] %v7574_v25  ;;  %v2950_v28 = vsel %vm2945_vm3, %v10210_v31, %v10209_v42  ;;  %v10211_v25 = vld [vmem:[#allocation82_spill] sm:$0xff]  ;;  %v10214_v55 = vld [vmem:[#allocation33_spill] sm:$0xff]  ;;  %v10220_v42 = vld [vmem:[#allocation16_spill] sm:$0xff] }
 0x4ec   : > { %v7585_v3 = vpop.permute.xlu1 %2778  ;;  %v2953_v58 = vsel %vm2945_vm3, %v10212_v59, %v10211_v25  ;;  %v2964_v48 = vsel %vm2945_vm3, %v10214_v55, %v10213_v52  ;;  %v10219_v31 = vld [vmem:[#allocation90_spill] sm:$0xff]  ;;  %v10221_v59 = vld [vmem:[#allocation92_spill] sm:$0xff] }
 0x4ed   : > { %10208 = vst [vmem:[#allocation61_spill] sm:$0xff] %v7585_v3  ;;  %3446 = vrot.lane.b32.xlu0 %v6453_v63, %s4584_s9  ;;  %v2956_v3 = vsel %vm2945_vm3, %v10218_v41, %v10217_v6  ;;  %v2957_v19 = vsel %vm2945_vm3, %v10220_v42, %v10219_v31  ;;  %v10222_v25 = vld [vmem:[#allocation20_spill] sm:$0xff]  ;;  %v10226_v63 = vld [vmem:[#allocation106_spill] sm:$0xff]  ;;  %v10227_v6 = vld [vmem:[#allocation113_spill] sm:$0xff] }
 0x4ee   : > { %v2959_v20 = vsel %vm2945_vm3, %v10222_v25, %v10221_v59  ;;  %v10223_v52 = vld [vmem:[#allocation116_spill] sm:$0xff]  ;;  %v7618_v33 = vsel %vm2978_vm4, %v2948_v40, %v10226_v63  ;;  %v10229_v59 = vld [vmem:[#allocation109_spill] sm:$0xff]  ;;  %v7650_v44 = vsel %vm2978_vm4, %v2957_v19, %v10237_v2  ;;  %v10244_v2 = vld [vmem:[#allocation235_spill] sm:$0xff] }
 0x4ef   : > { %v4521_v55 = vunpack.i.l.bf16 %v10223_v52  ;;  %v10228_v41 = vld [vmem:[#allocation52_spill] sm:$0xff]  ;;  %v4522_v31 = vunpack.i.h.bf16 %v10223_v52  ;;  %v7624_v42 = vpop.permute.xlu0 %2782  ;;  %v7628_v25 = vsel %vm2978_vm4, %v2951_v34, %v10229_v59  ;;  %v10236_v34 = vld [vmem:[#allocation173_spill] sm:$0xff] }
 0x4f0   : > { %v2975_v15 = vsel %vm2945_vm3, %v10228_v41, %v10227_v6  ;;  %v10233_v63 = vld [vmem:[#allocation112_spill] sm:$0xff]  ;;  %v10234_v6 = vld [vmem:[#allocation114_spill] sm:$0xff]  ;;  %3470 = vrot.lane.b32.xlu2 %v10099_v21, %s4584_s9 }
 0x4f1   : > { %v3008_v40 = vsel %vm2978_vm4, %v2975_v15, %v10232_v9  ;;  %v7637_v35 = vsel %vm2978_vm4, %v2954_v7, %v10233_v63  ;;  %v10235_v52 = vld [vmem:[#allocation56_spill] sm:$0xff]  ;;  %v2979_v15 = vsel %vm2978_vm4, %v2946_v36, %v4521_v55  ;;  %v10239_v63 = vld [vmem:[#allocation117_spill] sm:$0xff] }
 0x4f2   : > { %v7642_v41 = vsel %vm2945_vm3, %v10235_v52, %v10234_v6  ;;  %v3041_v59 = vsel %vm3011_vm5, %v3008_v40, %v10236_v34  ;;  %v10238_v7 = vld [vmem:[#allocation196_spill] sm:$0xff]  ;;  %3448 = vrot.lane.b32.xlu1 %v6478_v56, %s4584_s9  ;;  %v2982_v6 = vsel %vm2978_vm4, %v2949_v54, %v10239_v63  ;;  %v2980_v40 = vsel %vm2978_vm4, %v2947_v5, %v4522_v31  ;;  %v10240_v52 = vld [vmem:[#allocation218_spill] sm:$0xff]  ;;  %v7662_v19 = vpop.permute.xlu2 %2804  ;;  %v10242_v34 = vld [vmem:[#allocation119_spill] sm:$0xff] }
 0x4f3   : > { %v3074_v9 = vsel %vm3044_vm6, %v3041_v59, %v10238_v7  ;;  %10241 = vst [vmem:[#allocation6_spill] sm:$0xff] %v7662_v19  ;;  %v2983_v36 = vsel %vm2978_vm4, %v2950_v28, %v10242_v34  ;;  %v10243_v55 = vld [vmem:[#allocation120_spill] sm:$0xff]  ;;  %v10246_v54 = vld [vmem:[#allocation122_spill] sm:$0xff]  ;;  %v10247_v31 = vld [vmem:[#allocation123_spill] sm:$0xff] }
 0x4f4   : > { %v3107_v21 = vsel %vm9506_vm7, %v3074_v9, %v10240_v52  ;;  %v2985_v59 = vsel %vm2978_vm4, %v2952_v53, %v10243_v55  ;;  %v7670_v7 = vpop.permute.xlu1 %2784  ;;  %v2986_v5 = vsel %vm2978_vm4, %v2953_v58, %v10246_v54  ;;  %v2988_v9 = vsel %vm2978_vm4, %v2955_v18, %v10247_v31  ;;  %v10248_v63 = vld [vmem:[#allocation60_spill] sm:$0xff]  ;;  %v10249_v53 = vld [vmem:[#allocation125_spill] sm:$0xff]  ;;  %v10250_v34 = vld [vmem:[#allocation126_spill] sm:$0xff] }
 0x4f5   : > { %v3140_v56 = vsel %vm9504_vm8, %v3107_v21, %v10244_v2  ;;  %10245 = vst [vmem:[#allocation64_spill] sm:$0xff] %v7670_v7  ;;  %3472 = vrot.lane.b32.xlu0 %v10103_v27, %s4584_s9  ;;  %v2989_v28 = vsel %vm2978_vm4, %v2956_v3, %v10249_v53  ;;  %v2991_v21 = vsel %vm2978_vm4, %v2958_v61, %v10250_v34  ;;  %v10251_v55 = vld [vmem:[#allocation327_spill] sm:$0xff]  ;;  %v10252_v2 = vld [vmem:[#allocation128_spill] sm:$0xff]  ;;  %v10253_v54 = vld [vmem:[#allocation129_spill] sm:$0xff] }
 0x4f6   : > { %v3173_v52 = vsel %vm9505_vm9, %v3140_v56, %v10248_v63  ;;  %v7688_v18 = vsel %vm2978_vm4, %v2959_v20, %v10252_v2  ;;  %v2994_v56 = vsel %vm2978_vm4, %v2961_v13, %v10253_v54  ;;  %v10254_v31 = vld [vmem:[#allocation390_spill] sm:$0xff]  ;;  %v10255_v3 = vld [vmem:[#allocation132_spill] sm:$0xff]  ;;  %v10258_v13 = vld [vmem:[#allocation175_spill] sm:$0xff] }
 0x4f7   : > { %v3206_v58 = vsel %vm3176_vm10, %v3173_v52, %v10251_v55  ;;  %v7694_v63 = vpop.permute.xlu0 %2788  ;;  %v2997_v61 = vsel %vm2978_vm4, %v2964_v48, %v10255_v3  ;;  %v10256_v53 = vld [vmem:[#allocation136_spill] sm:$0xff]  ;;  %v10257_v52 = vld [vmem:[#allocation139_spill] sm:$0xff]  ;;  %v10259_v54 = vld [vmem:[#allocation366_spill] sm:$0xff] }
 0x4f8   : > { %v3239_v27 = vsel %vm9502_vm11, %v3206_v58, %v10254_v31  ;;  %v3012_v34 = vsel %vm3011_vm5, %v2979_v15, %v10256_v53  ;;  %v3015_v55 = vsel %vm3011_vm5, %v2982_v6, %v10257_v52  ;;  %v10260_v48 = vrot.slane %v10259_v54, 1  ;;  %v10261_v31 = vld [vmem:[#allocation199_spill] sm:$0xff]  ;;  %v10262_v3 = vld [vmem:[#allocation309_spill] sm:$0xff]  ;;  %v10263_v6 = vld [vmem:[#allocation344_spill] sm:$0xff] }
 0x4f9   : > { %v3272_v20 = vsel %vm9503_vm12, %v3239_v27, %v7082_v1  ;;  %v3045_v2 = vsel %vm3044_vm6, %v3012_v34, %v10258_v13  ;;  %v4541_v53 = vunpack.i.l.bf16 %v10262_v3  ;;  %v10264_v27 = vrot.slane %v10263_v6, 1  ;;  %v10265_v34 = vld [vmem:[#allocation11_spill] sm:$0xff]  ;;  %v10268_v19 = vld [vmem:[#allocation236_spill] sm:$0xff] }
 0x4fa   : > { %v3305_v58 = vsel %vm3275_vm13, %v3272_v20, %v7177_v39  ;;  %3522 = vrot.lane.b32.xlu2 %v10260_v48, %s4584_s9  ;;  %v3078_v15 = vsel %vm9506_vm7, %v3045_v2, %v10261_v31  ;;  %v10266_v20 = vld [vmem:[#allocation394_spill] sm:$0xff]  ;;  %v2811_v2 = vpop.permute.xlu2 %2810  ;;  %v10271_v54 = vld [vmem:[#allocation144_spill] sm:$0xff] }
 0x4fb   : > { %v3338_v1 = vsel %vm3308_vm14, %v3305_v58, %v7363_v22  ;;  %3498 = vrot.lane.b32.xlu1 %v10264_v27, %s4584_s9  ;;  %v3111_v39 = vsel %vm9504_vm8, %v3078_v15, %v10265_v34  ;;  %v4546_v52 = vunpack.i.l.bf16 %v10266_v20  ;;  %v10267_v48 = vld [vmem:[#allocation142_spill] sm:$0xff]  ;;  %v4551_v58 = vunpack.i.l.bf16 %v7094_v46  ;;  %v10270_v15 = vld [vmem:[#allocation143_spill] sm:$0xff] }
 0x4fc   : > { %v3371_v13 = vsel %vm3341_vm15, %v3338_v1, %v7490_v11  ;;  %v3018_v31 = vsel %vm3011_vm5, %v2985_v59, %v10267_v48  ;;  %v3144_v22 = vsel %vm9505_vm9, %v3111_v39, %v10268_v19  ;;  %v7732_v6 = vpop.permute.xlu1 %2790  ;;  %v3007_v34 = vsel %vm2978_vm4, %v2974_v45, %v10270_v15  ;;  %v10272_v1 = vld [vmem:[#allocation145_spill] sm:$0xff]  ;;  %v10273_v48 = vld [vmem:[#allocation271_spill] sm:$0xff]  ;;  %v10274_v39 = vld [vmem:[#allocation308_spill] sm:$0xff] }
 0x4fd   : > { %v7730_v27 = vsel %vm3374_vm0, %v3371_v13, %v2811_v2  ;;  %v3009_v11 = vsel %vm2978_vm4, %v7614_v17, %v10271_v54  ;;  %v3021_v59 = vsel %vm3011_vm5, %v2988_v9, %v10272_v1  ;;  %v3177_v19 = vsel %vm3176_vm10, %v3144_v22, %v10273_v48  ;;  %v10276_v13 = vld [vmem:[#allocation146_spill] sm:$0xff]  ;;  %v10278_v15 = vld [vmem:[#allocation148_spill] sm:$0xff]  ;;  %v10279_v9 = vld [vmem:[#allocation149_spill] sm:$0xff] }
 0x4fe   : > { %10269 = vst [vmem:[#allocation12_spill] sm:$0xff] %v7730_v27  ;;  %v10275_v7 = vrot.slane %v10274_v39, 1  ;;  %v3010_v2 = vsel %vm2978_vm4, %v7642_v41, %v10276_v13  ;;  %v10277_v27 = vld [vmem:[#allocation147_spill] sm:$0xff]  ;;  %v3024_v17 = vsel %vm3011_vm5, %v2991_v21, %v10278_v15  ;;  %v3210_v54 = vsel %vm9502_vm11, %v3177_v19, %v4541_v53  ;;  %v10280_v1 = vld [vmem:[#allocation150_spill] sm:$0xff] }
 0x4ff   : > { %v3013_v45 = vsel %vm3011_vm5, %v2980_v40, %v10277_v27  ;;  %v3014_v22 = vsel %vm3011_vm5, %v7618_v33, %v10279_v9  ;;  %v3016_v48 = vsel %vm3011_vm5, %v2983_v36, %v10280_v1  ;;  %v3243_v41 = vsel %vm9503_vm12, %v3210_v54, %v4546_v52  ;;  %v7762_v13 = vpop.permute.xlu0 %2794  ;;  %v10283_v40 = vld [vmem:[#allocation152_spill] sm:$0xff]  ;;  %v10284_v27 = vld [vmem:[#allocation153_spill] sm:$0xff]  ;;  %v10285_v19 = vld [vmem:[#allocation154_spill] sm:$0xff] }
 0x500   : > { %3450 = vrot.lane.b32.xlu0 %v10275_v7, %s4584_s9  ;;  %v10281_v7 = vld [vmem:[#allocation151_spill] sm:$0xff]  ;;  %10282 = vst [vmem:[#allocation68_spill] sm:$0xff] %v7762_v13  ;;  %v3017_v21 = vsel %vm3011_vm5, %v7628_v25, %v10283_v40  ;;  %v3019_v53 = vsel %vm3011_vm5, %v2986_v5, %v10284_v27  ;;  %v3030_v33 = vsel %vm3011_vm5, %v2997_v61, %v10285_v19  ;;  %v10287_v9 = vld [vmem:[#allocation176_spill] sm:$0xff]  ;;  %v10289_v61 = vld [vmem:[#allocation157_spill] sm:$0xff] }
 0x501   : > { %v3027_v39 = vsel %vm3011_vm5, %v2994_v56, %v10281_v7  ;;  %v3276_v15 = vsel %vm3275_vm13, %v3243_v41, %v4551_v58  ;;  %v10286_v36 = vld [vmem:[#allocation155_spill] sm:$0xff]  ;;  %v3048_v52 = vsel %vm3044_vm6, %v3015_v55, %v10287_v9  ;;  %v10288_v25 = vld [vmem:[#allocation156_spill] sm:$0xff]  ;;  %v7786_v58 = vsel %vm3011_vm5, %v7650_v44, %v10289_v61  ;;  %v10290_v1 = vld [vmem:[#allocation202_spill] sm:$0xff] }
 0x502   : > { %v3020_v56 = vsel %vm3011_vm5, %v7637_v35, %v10286_v36  ;;  %v3309_v54 = vsel %vm3308_vm14, %v3276_v15, %v7189_v14  ;;  %3500 = vrot.lane.b32.xlu2 %v10121_v43, %s4584_s9  ;;  %v3022_v5 = vsel %vm3011_vm5, %v2989_v28, %v10288_v25  ;;  %v3081_v35 = vsel %vm9506_vm7, %v3048_v52, %v10290_v1  ;;  %v10291_v14 = vld [vmem:[#allocation324_spill] sm:$0xff]  ;;  %v10294_v40 = vld [vmem:[#allocation167_spill] sm:$0xff]  ;;  %v10295_v27 = vld [vmem:[#allocation18_spill] sm:$0xff]  ;;  %v2850_v15 = vpop.permute.xlu2 %2849 }
 0x503   : > { %v3342_v55 = vsel %vm3341_vm15, %v3309_v54, %v7375_v49  ;;  %v10292_v7 = vrot.slane %v10291_v14, 1  ;;  %v10293_v41 = vld [vmem:[#allocation164_spill] sm:$0xff]  ;;  %v3046_v28 = vsel %vm3044_vm6, %v3013_v45, %v10294_v40  ;;  %v3114_v44 = vsel %vm9504_vm8, %v3081_v35, %v10295_v27  ;;  %v10296_v36 = vld [vmem:[#allocation170_spill] sm:$0xff]  ;;  %v10305_v27 = vld [vmem:[#allocation75_spill] sm:$0xff] }
 0x504   : > { %v3042_v43 = vsel %vm3011_vm5, %v3009_v11, %v10293_v41  ;;  %v3375_v19 = vsel %vm3374_vm0, %v3342_v55, %v7502_v0  ;;  %v7805_v49 = vsel %vm3044_vm6, %v3016_v48, %v10296_v36  ;;  %v10297_v9 = vld [vmem:[#allocation62_spill] sm:$0xff]  ;;  %v7814_v45 = vpop.permute.xlu1 %2796  ;;  %v10300_v61 = vld [vmem:[#allocation172_spill] sm:$0xff]  ;;  %v10301_v0 = vld [vmem:[#allocation65_spill] sm:$0xff] }
 0x505   : > { %3474 = vrot.lane.b32.xlu1 %v10292_v7, %s4584_s9  ;;  %v3040_v52 = vsel %vm3011_vm5, %v3007_v34, %v10297_v9  ;;  %v10298_v54 = vld [vmem:[#allocation78_spill] sm:$0xff]  ;;  %v7812_v25 = vsel %vm3407_vm2, %v3375_v19, %v2850_v15  ;;  %10299 = vst [vmem:[#allocation13_spill] sm:$0xff] %v7814_v45  ;;  %v7818_v1 = vsel %vm3044_vm6, %v3019_v53, %v10300_v61  ;;  %v10303_v34 = vld [vmem:[#allocation277_spill] sm:$0xff]  ;;  %v10309_v9 = vld [vmem:[#allocation179_spill] sm:$0xff] }
 0x506   : > { %v3147_v11 = vsel %vm9505_vm9, %v3114_v44, %v10298_v54  ;;  %v3043_v35 = vsel %vm3011_vm5, %v3010_v2, %v10301_v0  ;;  %v10302_v48 = vld [vmem:[#allocation174_spill] sm:$0xff]  ;;  %v10304_v41 = vld [vmem:[#allocation69_spill] sm:$0xff]  ;;  %v3050_v53 = vsel %vm3044_vm6, %v3017_v21, %v10305_v27  ;;  %v10307_v2 = vld [vmem:[#allocation340_spill] sm:$0xff]  ;;  %v3054_v54 = vsel %vm3044_vm6, %v3021_v59, %v10309_v9 }
 0x507   : > { %v7824_v55 = vsel %vm3044_vm6, %v3022_v5, %v10302_v48  ;;  %v3180_v7 = vsel %vm3176_vm10, %v3147_v11, %v10303_v34  ;;  %v3047_v40 = vsel %vm3044_vm6, %v3014_v22, %v10304_v41  ;;  %v10306_v44 = vld [vmem:[#allocation178_spill] sm:$0xff]  ;;  %v10308_v5 = vld [vmem:[#allocation81_spill] sm:$0xff]  ;;  %v7848_v21 = vpop.permute.xlu0 %2800  ;;  %v10312_v0 = vld [vmem:[#allocation183_spill] sm:$0xff] }
 0x508   : > { %3502 = vrot.lane.b32.xlu0 %v10124_v47, %s4584_s9  ;;  %v3051_v19 = vsel %vm3044_vm6, %v3018_v31, %v10306_v44  ;;  %v3213_v15 = vsel %vm9502_vm11, %v3180_v7, %v10307_v2  ;;  %v3053_v36 = vsel %vm3044_vm6, %v3020_v56, %v10308_v5  ;;  %v10310_v11 = vld [vmem:[#allocation181_spill] sm:$0xff]  ;;  %v10311_v22 = vld [vmem:[#allocation382_spill] sm:$0xff]  ;;  %v7852_v31 = vsel %vm3044_vm6, %v3027_v39, %v10312_v0  ;;  %v10315_v59 = vld [vmem:[#allocation431_spill] sm:$0xff] }
 0x509   : > { %v7844_v47 = vsel %vm3044_vm6, %v3024_v17, %v10310_v11  ;;  %v3246_v61 = vsel %vm9503_vm12, %v3213_v15, %v10311_v22  ;;  %v10313_v48 = vld [vmem:[#allocation185_spill] sm:$0xff]  ;;  %v10314_v56 = vld [vmem:[#allocation186_spill] sm:$0xff]  ;;  %v10316_v41 = vld [vmem:[#allocation188_spill] sm:$0xff] }
 0x50a   : > { %v3073_v34 = vsel %vm3044_vm6, %v3040_v52, %v10313_v48  ;;  %v7858_v7 = vsel %vm3044_vm6, %v3030_v33, %v10314_v56  ;;  %v3279_v17 = vsel %vm3275_vm13, %v3246_v61, %v10315_v59  ;;  %v3076_v27 = vsel %vm3044_vm6, %v3043_v35, %v10316_v41  ;;  %v10317_v44 = vld [vmem:[#allocation191_spill] sm:$0xff]  ;;  %v10318_v15 = vld [vmem:[#allocation194_spill] sm:$0xff]  ;;  %v10319_v5 = vld [vmem:[#allocation453_spill] sm:$0xff] }
 0x50b   : > { %v7866_v2 = vsel %vm9506_vm7, %v3047_v40, %v10317_v44  ;;  %v7870_v39 = vsel %vm9506_vm7, %v3050_v53, %v10318_v15  ;;  %v3312_v52 = vsel %vm3308_vm14, %v3279_v17, %v10319_v5  ;;  %v10320_v33 = vld [vmem:[#allocation372_spill] sm:$0xff]  ;;  %v10321_v9 = vld [vmem:[#allocation197_spill] sm:$0xff]  ;;  %v10322_v22 = vld [vmem:[#allocation198_spill] sm:$0xff]  ;;  %v2856_v44 = vpop.permute.xlu2 %2855 }
 0x50c   : > { %3526 = vrot.lane.b32.xlu2 %v10320_v33, %s4584_s9  ;;  %v7878_v11 = vsel %vm9506_vm7, %v3053_v36, %v10321_v9  ;;  %v3075_v35 = vsel %vm3044_vm6, %v3042_v43, %v10322_v22  ;;  %v10323_v61 = vld [vmem:[#allocation205_spill] sm:$0xff]  ;;  %v3345_v53 = vsel %vm3341_vm15, %v3312_v52, %v7387_v30  ;;  %v10324_v0 = vld [vmem:[#allocation370_spill] sm:$0xff]  ;;  %v10326_v59 = vld [vmem:[#allocation208_spill] sm:$0xff]  ;;  %v7904_v9 = vpop.permute.xlu1 %2802 }
 0x50d   : > { %v3084_v40 = vsel %vm9506_vm7, %v3051_v19, %v10323_v61  ;;  %3524 = vrot.lane.b32.xlu1 %v10324_v0, %s4584_s9  ;;  %v10325_v48 = vld [vmem:[#allocation201_spill] sm:$0xff]  ;;  %v3087_v17 = vsel %vm9506_vm7, %v3054_v54, %v10326_v59  ;;  %v10327_v36 = vld [vmem:[#allocation23_spill] sm:$0xff]  ;;  %v3378_v43 = vsel %vm3374_vm0, %v3345_v53, %v7514_v23  ;;  %v10334_v0 = vld [vmem:[#allocation312_spill] sm:$0xff] }
 0x50e   : > { %v3079_v56 = vsel %vm9506_vm7, %v3046_v28, %v10325_v48  ;;  %v3117_v41 = vsel %vm9504_vm8, %v3084_v40, %v10327_v36  ;;  %v10328_v19 = vld [vmem:[#allocation25_spill] sm:$0xff]  ;;  %v10330_v52 = vld [vmem:[#allocation239_spill] sm:$0xff]  ;;  %v7902_v28 = vsel %vm3407_vm2, %v3378_v43, %v2856_v44  ;;  %v10337_v43 = vld [vmem:[#allocation332_spill] sm:$0xff] }
 0x50f   : > { %v3106_v15 = vsel %vm9506_vm7, %v3073_v34, %v10328_v19  ;;  %v10329_v30 = vld [vmem:[#allocation229_spill] sm:$0xff]  ;;  %v3150_v33 = vsel %vm9505_vm9, %v3117_v41, %v10330_v52  ;;  %v10331_v22 = vld [vmem:[#allocation67_spill] sm:$0xff]  ;;  %v4536_v44 = vunpack.i.l.bf16 %v10337_v43 }
 0x510   : > { %v4526_v5 = vunpack.i.l.bf16 %v10329_v30  ;;  %v4527_v54 = vunpack.i.h.bf16 %v10329_v30  ;;  %v3139_v61 = vsel %vm9504_vm8, %v3106_v15, %v10331_v22  ;;  %v10332_v23 = vld [vmem:[#allocation267_spill] sm:$0xff]  ;;  %3452 = vrot.lane.b32.xlu0 %v10334_v0, %s4584_s9  ;;  %v10336_v36 = vld [vmem:[#allocation265_spill] sm:$0xff]  ;;  %v10339_v15 = vld [vmem:[#allocation30_spill] sm:$0xff] }
 0x511   : > { %v4531_v40 = vunpack.i.l.bf16 %v10332_v23  ;;  %v10333_v53 = vld [vmem:[#allocation283_spill] sm:$0xff]  ;;  %v3172_v41 = vsel %vm9505_vm9, %v3139_v61, %v10336_v36  ;;  %v3120_v52 = vsel %vm9504_vm8, %v3087_v17, %v10339_v15  ;;  %v10343_v61 = vld [vmem:[#allocation34_spill] sm:$0xff] }
 0x512   : > { %v3183_v34 = vsel %vm3176_vm10, %v3150_v33, %v10333_v53  ;;  %v10335_v48 = vld [vmem:[#allocation27_spill] sm:$0xff]  ;;  %v10341_v53 = vld [vmem:[#allocation305_spill] sm:$0xff]  ;;  %v3112_v36 = vsel %vm9504_vm8, %v3079_v56, %v10343_v61  ;;  %v10345_v17 = vld [vmem:[#allocation434_spill] sm:$0xff] }
 0x513   : > { %v3108_v59 = vsel %vm9506_vm7, %v3075_v35, %v10335_v48  ;;  %v10338_v19 = vld [vmem:[#allocation347_spill] sm:$0xff]  ;;  %v3205_v0 = vsel %vm3176_vm10, %v3172_v41, %v10341_v53  ;;  %v7929_v48 = vpop.permute.xlu0 %2806 }
 0x514   : > { %v3216_v30 = vsel %vm9502_vm11, %v3183_v34, %v10338_v19  ;;  %v10340_v22 = vld [vmem:[#allocation31_spill] sm:$0xff]  ;;  %v3141_v13 = vsel %vm9504_vm8, %v3108_v59, %v4526_v5  ;;  %v10344_v34 = vld [vmem:[#allocation373_spill] sm:$0xff]  ;;  %v4532_v5 = vunpack.i.h.bf16 %v10332_v23 }
 0x515   : > { %v3109_v33 = vsel %vm9506_vm7, %v3076_v27, %v10340_v22  ;;  %v10342_v45 = vld [vmem:[#allocation387_spill] sm:$0xff]  ;;  %v3238_v19 = vsel %vm9502_vm11, %v3205_v0, %v10344_v34  ;;  %v3174_v41 = vsel %vm9505_vm9, %v3141_v13, %v4531_v40  ;;  %v10349_v0 = vld [vmem:[#allocation457_spill] sm:$0xff]  ;;  %v4537_v40 = vunpack.i.h.bf16 %v10337_v43 }
 0x516   : > { %v3249_v35 = vsel %vm9503_vm12, %v3216_v30, %v10342_v45  ;;  %v3142_v27 = vsel %vm9504_vm8, %v3109_v33, %v4527_v54  ;;  %v10346_v22 = vld [vmem:[#allocation427_spill] sm:$0xff]  ;;  %v10347_v30 = vld [vmem:[#allocation456_spill] sm:$0xff]  ;;  %v3207_v59 = vsel %vm3176_vm10, %v3174_v41, %v4536_v44  ;;  %v2862_v44 = vpop.permute.xlu2 %2861 }
 0x517   : > { %v3282_v15 = vsel %vm3275_vm13, %v3249_v35, %v10345_v17  ;;  %v3271_v45 = vsel %vm9503_vm12, %v3238_v19, %v10346_v22  ;;  %v10348_v56 = vld [vmem:[#allocation335_spill] sm:$0xff]  ;;  %v10351_v33 = vld [vmem:[#allocation392_spill] sm:$0xff]  ;;  %v10352_v19 = vld [vmem:[#allocation242_spill] sm:$0xff]  ;;  %v2809_v22 = vpop.permute.xlu1 %2808 }
 0x518   : > { %v3315_v53 = vsel %vm3308_vm14, %v3282_v15, %v10347_v30  ;;  %3476 = vrot.lane.b32.xlu2 %v10348_v56, %s4584_s9  ;;  %v3304_v35 = vsel %vm3275_vm13, %v3271_v45, %v10349_v0  ;;  %v10350_v13 = vld [vmem:[#allocation315_spill] sm:$0xff]  ;;  %v3240_v61 = vsel %vm9502_vm11, %v3207_v59, %v10351_v33  ;;  %v3153_v17 = vsel %vm9505_vm9, %v3120_v52, %v10352_v19  ;;  %v10354_v45 = vld [vmem:[#allocation237_spill] sm:$0xff] }
 0x519   : > { %v3348_v54 = vsel %vm3341_vm15, %v3315_v53, %v7399_v24  ;;  %3454 = vrot.lane.b32.xlu1 %v10350_v13, %s4584_s9  ;;  %v3337_v34 = vsel %vm3308_vm14, %v3304_v35, %v7355_v38  ;;  %v10353_v15 = vld [vmem:[#allocation419_spill] sm:$0xff]  ;;  %v3145_v38 = vsel %vm9505_vm9, %v3112_v36, %v10354_v45  ;;  %v10355_v30 = vld [vmem:[#allocation289_spill] sm:$0xff]  ;;  %v10356_v53 = vld [vmem:[#allocation458_spill] sm:$0xff] }
 0x51a   : > { %v3381_v23 = vsel %vm3374_vm0, %v3348_v54, %v7526_v29  ;;  %v3273_v24 = vsel %vm9503_vm12, %v3240_v61, %v10353_v15  ;;  %v3370_v41 = vsel %vm3341_vm15, %v3337_v34, %v7448_v32  ;;  %v3186_v29 = vsel %vm3176_vm10, %v3153_v17, %v10355_v30  ;;  %v10357_v59 = vld [vmem:[#allocation333_spill] sm:$0xff]  ;;  %v10358_v0 = vld [vmem:[#allocation355_spill] sm:$0xff] }
 0x51b   : > { %v7968_v43 = vsel %vm3407_vm2, %v3381_v23, %v2862_v44  ;;  %v3306_v56 = vsel %vm3275_vm13, %v3273_v24, %v10356_v53  ;;  %v7977_v52 = vsel %vm3374_vm0, %v3370_v41, %v2809_v22  ;;  %3478 = vrot.lane.b32.xlu0 %v10357_v59, %s4584_s9  ;;  %v4542_v32 = vunpack.i.h.bf16 %v10262_v3  ;;  %v10359_v33 = vld [vmem:[#allocation391_spill] sm:$0xff]  ;;  %v2813_v44 = vpop.permute.xlu0 %2812  ;;  %v10360_v3 = vld [vmem:[#allocation378_spill] sm:$0xff] }
 0x51c   : > { %v3219_v35 = vsel %vm9502_vm11, %v3186_v29, %v10358_v0  ;;  %v3175_v54 = vsel %vm9505_vm9, %v3142_v27, %v4532_v5  ;;  %v3339_v36 = vsel %vm3308_vm14, %v3306_v56, %v7325_v37  ;;  %v4547_v34 = vunpack.i.h.bf16 %v10266_v20  ;;  %v10361_v27 = vld [vmem:[#allocation437_spill] sm:$0xff]  ;;  %v10363_v20 = vld [vmem:[#allocation252_spill] sm:$0xff]  ;;  %v10365_v22 = vld [vmem:[#allocation326_spill] sm:$0xff] }
 0x51d   : > { %v3208_v13 = vsel %vm3176_vm10, %v3175_v54, %v4537_v40  ;;  %v3252_v61 = vsel %vm9503_vm12, %v3219_v35, %v10359_v33  ;;  %v3372_v23 = vsel %vm3341_vm15, %v3339_v36, %v7498_v50  ;;  %v4552_v17 = vunpack.i.h.bf16 %v7094_v46  ;;  %v10362_v40 = vld [vmem:[#allocation211_spill] sm:$0xff]  ;;  %v10364_v50 = vld [vmem:[#allocation429_spill] sm:$0xff]  ;;  %v10366_v46 = vld [vmem:[#allocation368_spill] sm:$0xff] }
 0x51e   : > { %v3241_v19 = vsel %vm9502_vm11, %v3208_v13, %v10360_v3  ;;  %v3285_v5 = vsel %vm3275_vm13, %v3252_v61, %v10361_v27  ;;  %v7999_v37 = vsel %vm3374_vm0, %v3372_v23, %v2813_v44  ;;  %v3090_v15 = vsel %vm9506_vm7, %v7844_v47, %v10362_v40  ;;  %v10368_v29 = vld [vmem:[#allocation35_spill] sm:$0xff]  ;;  %v10372_v54 = vld [vmem:[#allocation37_spill] sm:$0xff]  ;;  %v2868_v61 = vpop.permute.xlu2 %2867 }
 0x51f   : > { %v3178_v24 = vsel %vm3176_vm10, %v3145_v38, %v10363_v20  ;;  %v3274_v41 = vsel %vm9503_vm12, %v3241_v19, %v10364_v50  ;;  %v3318_v45 = vsel %vm3308_vm14, %v3285_v5, %v10365_v22  ;;  %v10367_v30 = vrot.slane %v10366_v46, 1  ;;  %v10369_v59 = vld [vmem:[#allocation459_spill] sm:$0xff]  ;;  %v10380_v50 = vld [vmem:[#allocation273_spill] sm:$0xff]  ;;  %v10381_v22 = vld [vmem:[#allocation362_spill] sm:$0xff] }
 0x520   : > { %v3123_v53 = vsel %vm9504_vm8, %v3090_v15, %v10368_v29  ;;  %v3211_v56 = vsel %vm9502_vm11, %v3178_v24, %v4542_v32  ;;  %v3307_v47 = vsel %vm3275_vm13, %v3274_v41, %v10369_v59  ;;  %v3351_v38 = vsel %vm3341_vm15, %v3318_v45, %v7411_v10  ;;  %v10370_v0 = vld [vmem:[#allocation351_spill] sm:$0xff] }
 0x521   : > { %3528 = vrot.lane.b32.xlu2 %v10367_v30, %s4584_s9  ;;  %v10371_v35 = vrot.slane %v10370_v0, 1  ;;  %v3113_v36 = vsel %vm9504_vm8, %v7866_v2, %v10372_v54  ;;  %v3244_v13 = vsel %vm9503_vm12, %v3211_v56, %v4547_v34  ;;  %v3340_v33 = vsel %vm3308_vm14, %v3307_v47, %v7367_v8  ;;  %v10373_v23 = vld [vmem:[#allocation243_spill] sm:$0xff]  ;;  %v2815_v2 = vpop.permute.xlu1 %2814  ;;  %v10374_v34 = vld [vmem:[#allocation232_spill] sm:$0xff]  ;;  %v10383_v56 = vld [vmem:[#allocation334_spill] sm:$0xff] }
 0x522   : > { %v3384_v32 = vsel %vm3374_vm0, %v3351_v38, %v7538_v26  ;;  %v3156_v10 = vsel %vm9505_vm9, %v3123_v53, %v10373_v23  ;;  %v3277_v44 = vsel %vm3275_vm13, %v3244_v13, %v4552_v17  ;;  %v3373_v3 = vsel %vm3341_vm15, %v3340_v33, %v7460_v51  ;;  %v10375_v8 = vld [vmem:[#allocation295_spill] sm:$0xff]  ;;  %v10376_v26 = vld [vmem:[#allocation330_spill] sm:$0xff]  ;;  %v10379_v51 = vld [vmem:[#allocation204_spill] sm:$0xff] }
 0x523   : > { %3504 = vrot.lane.b32.xlu1 %v10371_v35, %s4584_s9  ;;  %v8037_v19 = vsel %vm3407_vm2, %v3384_v32, %v2868_v61  ;;  %v3146_v27 = vsel %vm9505_vm9, %v3113_v36, %v10374_v34  ;;  %v3189_v5 = vsel %vm3176_vm10, %v3156_v10, %v10375_v8  ;;  %v3310_v40 = vsel %vm3308_vm14, %v3277_v44, %v10376_v26  ;;  %v10377_v17 = vld [vmem:[#allocation310_spill] sm:$0xff]  ;;  %v10382_v29 = vld [vmem:[#allocation39_spill] sm:$0xff]  ;;  %v10384_v47 = vld [vmem:[#allocation396_spill] sm:$0xff]  ;;  %v2852_v35 = vpop.permute.xlu0 %2851 }
 0x524   : > { %v8046_v15 = vsel %vm3374_vm0, %v3373_v3, %v2815_v2  ;;  %v10378_v20 = vrot.slane %v10377_v17, 1  ;;  %v3082_v24 = vsel %vm9506_vm7, %v7805_v49, %v10379_v51  ;;  %v3179_v41 = vsel %vm3176_vm10, %v3146_v27, %v10380_v50  ;;  %v10385_v54 = vld [vmem:[#allocation238_spill] sm:$0xff]  ;;  %v10386_v13 = vld [vmem:[#allocation397_spill] sm:$0xff]  ;;  %v10391_v34 = vld [vmem:[#allocation460_spill] sm:$0xff] }
 0x525   : > { %v3222_v45 = vsel %vm9502_vm11, %v3189_v5, %v10381_v22  ;;  %v3343_v30 = vsel %vm3341_vm15, %v3310_v40, %v7337_v4  ;;  %v3115_v53 = vsel %vm9504_vm8, %v3082_v24, %v10382_v29  ;;  %v3212_v59 = vsel %vm9502_vm11, %v3179_v41, %v10383_v56  ;;  %v10387_v4 = vld [vmem:[#allocation440_spill] sm:$0xff]  ;;  %v10388_v23 = vld [vmem:[#allocation214_spill] sm:$0xff]  ;;  %v10395_v51 = vld [vmem:[#allocation461_spill] sm:$0xff] }
 0x526   : > { %3456 = vrot.lane.b32.xlu0 %v10378_v20, %s4584_s9  ;;  %v3255_v38 = vsel %vm9503_vm12, %v3222_v45, %v10384_v47  ;;  %v3376_v49 = vsel %vm3374_vm0, %v3343_v30, %v7510_v57  ;;  %v3148_v36 = vsel %vm9505_vm9, %v3115_v53, %v10385_v54  ;;  %v3245_v33 = vsel %vm9503_vm12, %v3212_v59, %v10386_v13  ;;  %v10389_v44 = vld [vmem:[#allocation258_spill] sm:$0xff]  ;;  %v10392_v8 = vld [vmem:[#allocation356_spill] sm:$0xff]  ;;  %v10396_v50 = vld [vmem:[#allocation329_spill] sm:$0xff]  ;;  %v2874_v59 = vpop.permute.xlu2 %2873 }
 0x527   : > { %v3288_v32 = vsel %vm3275_vm13, %v3255_v38, %v10387_v4  ;;  %v8075_v61 = vsel %vm3407_vm2, %v3376_v49, %v2852_v35  ;;  %v3093_v10 = vsel %vm9506_vm7, %v7852_v31, %v10388_v23  ;;  %v3181_v57 = vsel %vm3176_vm10, %v3148_v36, %v10389_v44  ;;  %v10390_v3 = vld [vmem:[#allocation422_spill] sm:$0xff]  ;;  %v10394_v40 = vld [vmem:[#allocation316_spill] sm:$0xff]  ;;  %v10399_v30 = vld [vmem:[#allocation399_spill] sm:$0xff] }
 0x528   : > { %v3278_v2 = vsel %vm3275_vm13, %v3245_v33, %v10390_v3  ;;  %v3321_v27 = vsel %vm3308_vm14, %v3288_v32, %v10391_v34  ;;  %v10393_v5 = vld [vmem:[#allocation42_spill] sm:$0xff]  ;;  %v3214_v20 = vsel %vm9502_vm11, %v3181_v57, %v10394_v40  ;;  %v10397_v41 = vrot.slane %v10396_v50, 1  ;;  %v10398_v22 = vld [vmem:[#allocation44_spill] sm:$0xff]  ;;  %v10401_v38 = vld [vmem:[#allocation433_spill] sm:$0xff] }
 0x529   : > { %3506 = vrot.lane.b32.xlu2 %v10392_v8, %s4584_s9  ;;  %v3126_v26 = vsel %vm9504_vm8, %v3093_v10, %v10393_v5  ;;  %v3311_v31 = vsel %vm3308_vm14, %v3278_v2, %v10395_v51  ;;  %v3354_v24 = vsel %vm3341_vm15, %v3321_v27, %v7423_v62  ;;  %v3116_v45 = vsel %vm9504_vm8, %v7870_v39, %v10398_v22  ;;  %v10400_v47 = vld [vmem:[#allocation244_spill] sm:$0xff]  ;;  %v2854_v54 = vpop.permute.xlu1 %2853  ;;  %v10402_v36 = vld [vmem:[#allocation66_spill] sm:$0xff]  ;;  %v10403_v13 = vld [vmem:[#allocation301_spill] sm:$0xff] }
 0x52a   : > { %v3247_v29 = vsel %vm9503_vm12, %v3214_v20, %v10399_v30  ;;  %v3344_v53 = vsel %vm3341_vm15, %v3311_v31, %v7379_v12  ;;  %v3387_v56 = vsel %vm3374_vm0, %v3354_v24, %v7552_v60  ;;  %v3159_v62 = vsel %vm9505_vm9, %v3126_v26, %v10400_v47  ;;  %v10404_v33 = vld [vmem:[#allocation462_spill] sm:$0xff]  ;;  %v10405_v23 = vld [vmem:[#allocation360_spill] sm:$0xff]  ;;  %v10407_v44 = vld [vmem:[#allocation279_spill] sm:$0xff] }
 0x52b   : > { %3480 = vrot.lane.b32.xlu1 %v10397_v41, %s4584_s9  ;;  %v3280_v49 = vsel %vm3275_vm13, %v3247_v29, %v10401_v38  ;;  %v3377_v35 = vsel %vm3374_vm0, %v3344_v53, %v7472_v16  ;;  %v8115_v39 = vsel %vm3407_vm2, %v3387_v56, %v2874_v59  ;;  %v3149_v12 = vsel %vm9505_vm9, %v3116_v45, %v10402_v36  ;;  %v10406_v16 = vld [vmem:[#allocation207_spill] sm:$0xff]  ;;  %v10408_v3 = vld [vmem:[#allocation369_spill] sm:$0xff]  ;;  %v10409_v34 = vld [vmem:[#allocation478_spill] sm:$0xff]  ;;  %v2858_v24 = vpop.permute.xlu0 %2857 }
 0x52c   : > { %v3192_v60 = vsel %vm3176_vm10, %v3159_v62, %v10403_v13  ;;  %v3313_v4 = vsel %vm3308_vm14, %v3280_v49, %v10404_v33  ;;  %v8124_v32 = vsel %vm3407_vm2, %v3377_v35, %v2854_v54  ;;  %v3085_v10 = vsel %vm9506_vm7, %v7818_v1, %v10406_v16  ;;  %v10410_v8 = vld [vmem:[#allocation46_spill] sm:$0xff]  ;;  %v10412_v20 = vld [vmem:[#allocation400_spill] sm:$0xff]  ;;  %v10414_v41 = vld [vmem:[#allocation241_spill] sm:$0xff] }
 0x52d   : > { %v3182_v57 = vsel %vm3176_vm10, %v3149_v12, %v10407_v44  ;;  %v3225_v2 = vsel %vm9502_vm11, %v3192_v60, %v10408_v3  ;;  %v3346_v27 = vsel %vm3341_vm15, %v3313_v4, %v10409_v34  ;;  %v3118_v5 = vsel %vm9504_vm8, %v3085_v10, %v10410_v8  ;;  %v10411_v26 = vld [vmem:[#allocation342_spill] sm:$0xff]  ;;  %v10415_v45 = vld [vmem:[#allocation401_spill] sm:$0xff]  ;;  %v10416_v29 = vld [vmem:[#allocation443_spill] sm:$0xff] }
 0x52e   : > { %3508 = vrot.lane.b32.xlu0 %v10405_v23, %s4584_s9  ;;  %v3215_v40 = vsel %vm9502_vm11, %v3182_v57, %v10411_v26  ;;  %v3258_v51 = vsel %vm9503_vm12, %v3225_v2, %v10412_v20  ;;  %v10413_v31 = vld [vmem:[#allocation494_spill] sm:$0xff]  ;;  %v3151_v22 = vsel %vm9505_vm9, %v3118_v5, %v10414_v41  ;;  %v10417_v59 = vld [vmem:[#allocation217_spill] sm:$0xff]  ;;  %v10418_v62 = vld [vmem:[#allocation264_spill] sm:$0xff]  ;;  %v2880_v26 = vpop.permute.xlu2 %2879 }
 0x52f   : > { %v3379_v1 = vsel %vm3374_vm0, %v3346_v27, %v10413_v31  ;;  %v3248_v30 = vsel %vm9503_vm12, %v3215_v40, %v10415_v45  ;;  %v3291_v53 = vsel %vm3275_vm13, %v3258_v51, %v10416_v29  ;;  %v3096_v47 = vsel %vm9506_vm7, %v7858_v7, %v10417_v59  ;;  %v10419_v49 = vld [vmem:[#allocation425_spill] sm:$0xff]  ;;  %v10420_v54 = vld [vmem:[#allocation463_spill] sm:$0xff]  ;;  %v10421_v12 = vld [vmem:[#allocation474_spill] sm:$0xff] }
 0x530   : > { %v8152_v56 = vsel %vm3407_vm2, %v3379_v1, %v2858_v24  ;;  %v3184_v38 = vsel %vm3176_vm10, %v3151_v22, %v10418_v62  ;;  %v3281_v35 = vsel %vm3275_vm13, %v3248_v30, %v10419_v49  ;;  %v3324_v36 = vsel %vm3308_vm14, %v3291_v53, %v10420_v54  ;;  %v10422_v13 = vld [vmem:[#allocation47_spill] sm:$0xff]  ;;  %v10424_v23 = vld [vmem:[#allocation464_spill] sm:$0xff]  ;;  %v10425_v16 = vld [vmem:[#allocation481_spill] sm:$0xff] }
 0x531   : > { %3532 = vrot.lane.b32.xlu2 %v10421_v12, %s4584_s9  ;;  %v3129_v60 = vsel %vm9504_vm8, %v3096_v47, %v10422_v13  ;;  %v10423_v33 = vld [vmem:[#allocation323_spill] sm:$0xff]  ;;  %v3314_v7 = vsel %vm3308_vm14, %v3281_v35, %v10424_v23  ;;  %v3357_v10 = vsel %vm3341_vm15, %v3324_v36, %v10425_v16  ;;  %v10426_v44 = vld [vmem:[#allocation476_spill] sm:$0xff]  ;;  %v10427_v57 = vld [vmem:[#allocation222_spill] sm:$0xff]  ;;  %v2860_v41 = vpop.permute.xlu1 %2859 }
 0x532   : > { %v3217_v4 = vsel %vm9502_vm11, %v3184_v38, %v10423_v33  ;;  %v3119_v3 = vsel %vm9504_vm8, %v7878_v11, %v10427_v57  ;;  %v10428_v2 = vld [vmem:[#allocation403_spill] sm:$0xff]  ;;  %v10429_v27 = vld [vmem:[#allocation393_spill] sm:$0xff]  ;;  %v3390_v5 = vsel %vm3374_vm0, %v3357_v10, %v7624_v42  ;;  %v10431_v51 = vld [vmem:[#allocation436_spill] sm:$0xff] }
 0x533   : > { %3530 = vrot.lane.b32.xlu1 %v10426_v44, %s4584_s9  ;;  %v3250_v34 = vsel %vm9503_vm12, %v3217_v4, %v10428_v2  ;;  %v3347_v8 = vsel %vm3341_vm15, %v3314_v7, %v10429_v27  ;;  %v10430_v40 = vld [vmem:[#allocation247_spill] sm:$0xff]  ;;  %v10432_v1 = vld [vmem:[#allocation489_spill] sm:$0xff]  ;;  %v8191_v11 = vsel %vm3407_vm2, %v3390_v5, %v2880_v26  ;;  %v10434_v30 = vld [vmem:[#allocation306_spill] sm:$0xff]  ;;  %v2864_v44 = vpop.permute.xlu0 %2863 }
 0x534   : > { %v3162_v20 = vsel %vm9505_vm9, %v3129_v60, %v10430_v40  ;;  %v3283_v31 = vsel %vm3275_vm13, %v3250_v34, %v10431_v51  ;;  %v3380_v24 = vsel %vm3374_vm0, %v3347_v8, %v10432_v1  ;;  %v10433_v22 = vld [vmem:[#allocation71_spill] sm:$0xff]  ;;  %v10435_v29 = vld [vmem:[#allocation465_spill] sm:$0xff]  ;;  %v10436_v47 = vld [vmem:[#allocation320_spill] sm:$0xff] }
 0x535   : > { %v3152_v45 = vsel %vm9505_vm9, %v3119_v3, %v10433_v22  ;;  %v3195_v42 = vsel %vm3176_vm10, %v3162_v20, %v10434_v30  ;;  %v3316_v53 = vsel %vm3308_vm14, %v3283_v31, %v10435_v29  ;;  %v8200_v59 = vsel %vm3407_vm2, %v3380_v24, %v2860_v41  ;;  %v10437_v62 = vld [vmem:[#allocation210_spill] sm:$0xff]  ;;  %v10438_v49 = vld [vmem:[#allocation285_spill] sm:$0xff]  ;;  %v10440_v12 = vld [vmem:[#allocation384_spill] sm:$0xff] }
 0x536   : > { %3458 = vrot.lane.b32.xlu0 %v10436_v47, %s4584_s9  ;;  %v3088_v38 = vsel %vm9506_vm7, %v7824_v55, %v10437_v62  ;;  %v3185_v35 = vsel %vm3176_vm10, %v3152_v45, %v10438_v49  ;;  %v10439_v54 = vld [vmem:[#allocation374_spill] sm:$0xff]  ;;  %v3349_v13 = vsel %vm3341_vm15, %v3316_v53, %v10440_v12  ;;  %v10441_v60 = vld [vmem:[#allocation51_spill] sm:$0xff]  ;;  %v10442_v4 = vld [vmem:[#allocation349_spill] sm:$0xff] }
 0x537   : > { %v3228_v36 = vsel %vm9502_vm11, %v3195_v42, %v10439_v54  ;;  %v3121_v33 = vsel %vm9504_vm8, %v3088_v38, %v10441_v60  ;;  %v3218_v23 = vsel %vm9502_vm11, %v3185_v35, %v10442_v4  ;;  %v10443_v7 = vld [vmem:[#allocation405_spill] sm:$0xff]  ;;  %v10444_v10 = vld [vmem:[#allocation496_spill] sm:$0xff]  ;;  %v10446_v2 = vld [vmem:[#allocation406_spill] sm:$0xff]  ;;  %v2886_v60 = vpop.permute.xlu2 %2885 }
 0x538   : > { %v3261_v16 = vsel %vm9503_vm12, %v3228_v36, %v10443_v7  ;;  %v3382_v55 = vsel %vm3374_vm0, %v3349_v13, %v10444_v10  ;;  %v10445_v57 = vld [vmem:[#allocation93_spill] sm:$0xff]  ;;  %v3251_v34 = vsel %vm9503_vm12, %v3218_v23, %v10446_v2  ;;  %v10447_v27 = vld [vmem:[#allocation447_spill] sm:$0xff]  ;;  %v10448_v26 = vld [vmem:[#allocation158_spill] sm:$0xff] }
 0x539   : > { %v3154_v3 = vsel %vm9505_vm9, %v3121_v33, %v10445_v57  ;;  %v3294_v8 = vsel %vm3275_vm13, %v3261_v16, %v10447_v27  ;;  %v8228_v5 = vsel %vm3407_vm2, %v3382_v55, %v2864_v44  ;;  %v3025_v40 = vsel %vm3011_vm5, %v7688_v18, %v10448_v26  ;;  %v10449_v20 = vld [vmem:[#allocation270_spill] sm:$0xff]  ;;  %v10450_v31 = vld [vmem:[#allocation428_spill] sm:$0xff]  ;;  %v10452_v22 = vld [vmem:[#allocation337_spill] sm:$0xff]  ;;  %v2866_v44 = vpop.permute.xlu1 %2865 }
 0x53a   : > { %v3187_v51 = vsel %vm3176_vm10, %v3154_v3, %v10449_v20  ;;  %v3284_v1 = vsel %vm3275_vm13, %v3251_v34, %v10450_v31  ;;  %v10451_v24 = vld [vmem:[#allocation348_spill] sm:$0xff]  ;;  %3482 = vrot.lane.b32.xlu2 %v10452_v22, %s4584_s9  ;;  %v10453_v45 = vld [vmem:[#allocation87_spill] sm:$0xff]  ;;  %v10455_v18 = vld [vmem:[#allocation350_spill] sm:$0xff] }
 0x53b   : > { %v3327_v41 = vsel %vm3308_vm14, %v3294_v8, %v10451_v24  ;;  %v3056_v30 = vsel %vm3044_vm6, %v7786_v58, %v10453_v45  ;;  %v10454_v42 = vld [vmem:[#allocation331_spill] sm:$0xff]  ;;  %v3317_v53 = vsel %vm3308_vm14, %v3284_v1, %v10455_v18  ;;  %v10457_v38 = vld [vmem:[#allocation318_spill] sm:$0xff]  ;;  %v10458_v49 = vld [vmem:[#allocation200_spill] sm:$0xff] }
 0x53c   : > { %v3220_v29 = vsel %vm9502_vm11, %v3187_v51, %v10454_v42  ;;  %v10456_v47 = vld [vmem:[#allocation483_spill] sm:$0xff]  ;;  %3460 = vrot.lane.b32.xlu1 %v10457_v38, %s4584_s9  ;;  %v3089_v35 = vsel %vm9506_vm7, %v3056_v30, %v10458_v49  ;;  %v10459_v54 = vld [vmem:[#allocation408_spill] sm:$0xff]  ;;  %v10460_v12 = vld [vmem:[#allocation398_spill] sm:$0xff] }
 0x53d   : > { %v3360_v62 = vsel %vm3341_vm15, %v3327_v41, %v10456_v47  ;;  %v3253_v36 = vsel %vm9503_vm12, %v3220_v29, %v10459_v54  ;;  %v3350_v58 = vsel %vm3341_vm15, %v3317_v53, %v10460_v12  ;;  %v10461_v33 = vld [vmem:[#allocation223_spill] sm:$0xff]  ;;  %v10464_v57 = vld [vmem:[#allocation72_spill] sm:$0xff]  ;;  %v10465_v2 = vld [vmem:[#allocation77_spill] sm:$0xff] }
 0x53e   : > { %v3393_v13 = vsel %vm3374_vm0, %v3360_v62, %v7694_v63  ;;  %v3122_v4 = vsel %vm9504_vm8, %v3089_v35, %v10461_v33  ;;  %v10462_v23 = vld [vmem:[#allocation439_spill] sm:$0xff]  ;;  %v3058_v3 = vsel %vm3044_vm6, %v3025_v40, %v10464_v57  ;;  %v10466_v34 = vld [vmem:[#allocation352_spill] sm:$0xff]  ;;  %v10468_v20 = vld [vmem:[#allocation213_spill] sm:$0xff]  ;;  %v2870_v62 = vpop.permute.xlu0 %2869 }
 0x53f   : > { %v3286_v7 = vsel %vm3275_vm13, %v3253_v36, %v10462_v23  ;;  %v10463_v16 = vld [vmem:[#allocation491_spill] sm:$0xff]  ;;  %v8267_v55 = vsel %vm3407_vm2, %v3393_v13, %v2886_v60  ;;  %v3155_v63 = vsel %vm9505_vm9, %v3122_v4, %v10465_v2  ;;  %v3091_v51 = vsel %vm9506_vm7, %v3058_v3, %v10468_v20  ;;  %v10470_v24 = vld [vmem:[#allocation386_spill] sm:$0xff]  ;;  %v10471_v41 = vld [vmem:[#allocation96_spill] sm:$0xff] }
 0x540   : > { %v3383_v10 = vsel %vm3374_vm0, %v3350_v58, %v10463_v16  ;;  %v3319_v27 = vsel %vm3308_vm14, %v3286_v7, %v10466_v34  ;;  %v10467_v26 = vld [vmem:[#allocation343_spill] sm:$0xff]  ;;  %v10472_v22 = vld [vmem:[#allocation24_spill] sm:$0xff]  ;;  %v10473_v30 = vld [vmem:[#allocation58_spill] sm:$0xff] }
 0x541   : > { %v8276_v8 = vsel %vm3407_vm2, %v3383_v10, %v2866_v44  ;;  %3484 = vrot.lane.b32.xlu0 %v10467_v26, %s4584_s9  ;;  %v10469_v31 = vld [vmem:[#allocation291_spill] sm:$0xff]  ;;  %v3352_v40 = vsel %vm3341_vm15, %v3319_v27, %v10470_v24  ;;  %v2960_v45 = vsel %vm2945_vm3, %v10472_v22, %v10471_v41  ;;  %v3124_v42 = vsel %vm9504_vm8, %v3091_v51, %v10473_v30  ;;  %v10474_v29 = vld [vmem:[#allocation357_spill] sm:$0xff]  ;;  %v10475_v53 = vld [vmem:[#allocation498_spill] sm:$0xff] }
 0x542   : > { %v3188_v1 = vsel %vm3176_vm10, %v3155_v63, %v10469_v31  ;;  %v3385_v47 = vsel %vm3374_vm0, %v3352_v40, %v10475_v53  ;;  %v10476_v38 = vld [vmem:[#allocation118_spill] sm:$0xff]  ;;  %v10477_v35 = vld [vmem:[#allocation99_spill] sm:$0xff]  ;;  %v10480_v33 = vld [vmem:[#allocation276_spill] sm:$0xff] }
 0x543   : > { %v3221_v18 = vsel %vm9502_vm11, %v3188_v1, %v10474_v29  ;;  %v2993_v49 = vsel %vm2978_vm4, %v2960_v45, %v10476_v38  ;;  %v3157_v54 = vsel %vm9505_vm9, %v3124_v42, %v10477_v35  ;;  %v10478_v36 = vld [vmem:[#allocation410_spill] sm:$0xff]  ;;  %v8302_v58 = vsel %vm3407_vm2, %v3385_v47, %v2870_v62  ;;  %v10479_v13 = vld [vmem:[#allocation159_spill] sm:$0xff]  ;;  %v10485_v57 = vld [vmem:[#allocation29_spill] sm:$0xff] }
 0x544   : > { %v3254_v12 = vsel %vm9503_vm12, %v3221_v18, %v10478_v36  ;;  %v3026_v60 = vsel %vm3011_vm5, %v2993_v49, %v10479_v13  ;;  %v3190_v4 = vsel %vm3176_vm10, %v3157_v54, %v10480_v33  ;;  %v10481_v23 = vld [vmem:[#allocation430_spill] sm:$0xff]  ;;  %v10482_v16 = vld [vmem:[#allocation471_spill] sm:$0xff]  ;;  %v10494_v30 = vld [vmem:[#allocation404_spill] sm:$0xff]  ;;  %v2872_v54 = vpop.permute.xlu1 %2871 }
 0x545   : > { %v3287_v7 = vsel %vm3275_vm13, %v3254_v12, %v10481_v23  ;;  %v10483_v10 = vrot.slane %v10482_v16, 1  ;;  %v10484_v44 = vld [vmem:[#allocation98_spill] sm:$0xff]  ;;  %v10491_v1 = vld [vmem:[#allocation131_spill] sm:$0xff]  ;;  %v10495_v29 = vld [vmem:[#allocation160_spill] sm:$0xff] }
 0x546   : > { %v2962_v3 = vsel %vm2945_vm3, %v10485_v57, %v10484_v44  ;;  %v10486_v2 = vld [vmem:[#allocation182_spill] sm:$0xff]  ;;  %v10492_v40 = vld [vmem:[#allocation203_spill] sm:$0xff]  ;;  %v10496_v53 = vld [vmem:[#allocation224_spill] sm:$0xff] }
 0x547   : > { %3534 = vrot.lane.b32.xlu2 %v10483_v10, %s4584_s9  ;;  %v3059_v63 = vsel %vm3044_vm6, %v3026_v60, %v10486_v2  ;;  %v10487_v34 = vld [vmem:[#allocation338_spill] sm:$0xff]  ;;  %v2995_v24 = vsel %vm2978_vm4, %v2962_v3, %v10491_v1  ;;  %v10493_v22 = vld [vmem:[#allocation411_spill] sm:$0xff]  ;;  %v10498_v49 = vld [vmem:[#allocation492_spill] sm:$0xff] }
 0x548   : > { %v3223_v27 = vsel %vm9502_vm11, %v3190_v4, %v10487_v34  ;;  %v10488_v26 = vld [vmem:[#allocation466_spill] sm:$0xff]  ;;  %v3092_v41 = vsel %vm9506_vm7, %v3059_v63, %v10492_v40  ;;  %v3028_v18 = vsel %vm3011_vm5, %v2995_v24, %v10495_v29  ;;  %v10499_v36 = vld [vmem:[#allocation177_spill] sm:$0xff]  ;;  %v10500_v13 = vld [vmem:[#allocation83_spill] sm:$0xff] }
 0x549   : > { %v3320_v20 = vsel %vm3308_vm14, %v3287_v7, %v10488_v26  ;;  %v10489_v51 = vld [vmem:[#allocation354_spill] sm:$0xff]  ;;  %v3256_v45 = vsel %vm9503_vm12, %v3223_v27, %v10493_v22  ;;  %v3125_v47 = vsel %vm9504_vm8, %v3092_v41, %v10496_v53  ;;  %v3061_v12 = vsel %vm3044_vm6, %v3028_v18, %v10499_v36  ;;  %v10501_v33 = vld [vmem:[#allocation467_spill] sm:$0xff]  ;;  %v10502_v7 = vld [vmem:[#allocation296_spill] sm:$0xff]  ;;  %v2876_v22 = vpop.permute.xlu0 %2875 }
 0x54a   : > { %v10490_v31 = vrot.slane %v10489_v51, 1  ;;  %v3353_v42 = vsel %vm3341_vm15, %v3320_v20, %v10494_v30  ;;  %v10497_v62 = vld [vmem:[#allocation442_spill] sm:$0xff]  ;;  %v3158_v60 = vsel %vm9505_vm9, %v3125_v47, %v10500_v13  ;;  %2897 = vrot.lane.b32.xlu0 %v10502_v7, %s4598_s1  ;;  %v10503_v10 = vld [vmem:[#allocation216_spill] sm:$0xff]  ;;  %v10504_v57 = vld [vmem:[#allocation297_spill] sm:$0xff] }
 0x54b   : > { %v3289_v38 = vsel %vm3275_vm13, %v3256_v45, %v10497_v62  ;;  %v3386_v35 = vsel %vm3374_vm0, %v3353_v42, %v10498_v49  ;;  %v3094_v44 = vsel %vm9506_vm7, %v3061_v12, %v10503_v10  ;;  %v3191_v3 = vsel %vm3176_vm10, %v3158_v60, %v10504_v57  ;;  %v10505_v2 = vld [vmem:[#allocation389_spill] sm:$0xff]  ;;  %v10507_v27 = vld [vmem:[#allocation28_spill] sm:$0xff]  ;;  %v10512_v42 = vld [vmem:[#allocation246_spill] sm:$0xff] }
 0x54c   : > { %3510 = vrot.lane.b32.xlu1 %v10490_v31, %s4584_s9  ;;  %v3322_v4 = vsel %vm3308_vm14, %v3289_v38, %v10501_v33  ;;  %v8348_v23 = vsel %vm3407_vm2, %v3386_v35, %v2872_v54  ;;  %v10506_v34 = vld [vmem:[#allocation101_spill] sm:$0xff]  ;;  %v10509_v1 = vld [vmem:[#allocation364_spill] sm:$0xff]  ;;  %v10513_v18 = vld [vmem:[#allocation414_spill] sm:$0xff] }
 0x54d   : > { %v3355_v63 = vsel %vm3341_vm15, %v3322_v4, %v10505_v2  ;;  %v2963_v26 = vsel %vm2945_vm3, %v10507_v27, %v10506_v34  ;;  %v10508_v20 = vld [vmem:[#allocation225_spill] sm:$0xff]  ;;  %v3224_v24 = vsel %vm9502_vm11, %v3191_v3, %v10509_v1  ;;  %v10514_v62 = vld [vmem:[#allocation162_spill] sm:$0xff]  ;;  %v10516_v54 = vld [vmem:[#allocation432_spill] sm:$0xff] }
 0x54e   : > { %v3127_v31 = vsel %vm9504_vm8, %v3094_v44, %v10508_v20  ;;  %v10510_v40 = vld [vmem:[#allocation61_spill] sm:$0xff]  ;;  %v3257_v53 = vsel %vm9503_vm12, %v3224_v24, %v10513_v18  ;;  %v10515_v49 = vld [vmem:[#allocation282_spill] sm:$0xff]  ;;  %v10518_v13 = vld [vmem:[#allocation32_spill] sm:$0xff]  ;;  %v2878_v18 = vpop.permute.xlu1 %2877 }
 0x54f   : > { %v3388_v41 = vsel %vm3374_vm0, %v3355_v63, %v10510_v40  ;;  %v10511_v45 = vld [vmem:[#allocation121_spill] sm:$0xff]  ;;  %v3160_v29 = vsel %vm9505_vm9, %v3127_v31, %v10512_v42  ;;  %v3290_v36 = vsel %vm3275_vm13, %v3257_v53, %v10516_v54  ;;  %v10517_v12 = vld [vmem:[#allocation102_spill] sm:$0xff]  ;;  %v10519_v33 = vld [vmem:[#allocation184_spill] sm:$0xff]  ;;  %v3495_v53 = vpop.permute.xlu2 %3494 }
 0x550   : > { %v2996_v30 = vsel %vm2978_vm4, %v2963_v26, %v10511_v45  ;;  %v8374_v47 = vsel %vm3407_vm2, %v3388_v41, %v2876_v22  ;;  %v3193_v35 = vsel %vm3176_vm10, %v3160_v29, %v10515_v49  ;;  %v2965_v60 = vsel %vm2945_vm3, %v10518_v13, %v10517_v12  ;;  %v10520_v10 = vld [vmem:[#allocation346_spill] sm:$0xff]  ;;  %v10521_v57 = vld [vmem:[#allocation469_spill] sm:$0xff]  ;;  %v10524_v26 = vld [vmem:[#allocation415_spill] sm:$0xff] }
 0x551   : > { %v3029_v38 = vsel %vm3011_vm5, %v2996_v30, %v10514_v62  ;;  %v3226_v44 = vsel %vm9502_vm11, %v3193_v35, %v10520_v10  ;;  %v3323_v3 = vsel %vm3308_vm14, %v3290_v36, %v10521_v57  ;;  %v10522_v2 = vld [vmem:[#allocation134_spill] sm:$0xff]  ;;  %v10525_v31 = vld [vmem:[#allocation480_spill] sm:$0xff]  ;;  %v10526_v24 = vld [vmem:[#allocation163_spill] sm:$0xff] }
 0x552   : > { %v3062_v4 = vsel %vm3044_vm6, %v3029_v38, %v10519_v33  ;;  %v2998_v63 = vsel %vm2978_vm4, %v2965_v60, %v10522_v2  ;;  %v10523_v34 = vld [vmem:[#allocation206_spill] sm:$0xff]  ;;  %v3259_v20 = vsel %vm9503_vm12, %v3226_v44, %v10524_v26  ;;  %v3356_v1 = vsel %vm3341_vm15, %v3323_v3, %v10525_v31  ;;  %v10527_v41 = vld [vmem:[#allocation227_spill] sm:$0xff]  ;;  %v10528_v45 = vld [vmem:[#allocation445_spill] sm:$0xff] }
 0x553   : > { %v3095_v27 = vsel %vm9506_vm7, %v3062_v4, %v10523_v34  ;;  %v3031_v40 = vsel %vm3011_vm5, %v2998_v63, %v10526_v24  ;;  %v3292_v30 = vsel %vm3275_vm13, %v3259_v20, %v10528_v45  ;;  %v10529_v42 = vld [vmem:[#allocation493_spill] sm:$0xff]  ;;  %v10530_v62 = vld [vmem:[#allocation84_spill] sm:$0xff]  ;;  %v10532_v54 = vld [vmem:[#allocation470_spill] sm:$0xff] }
 0x554   : > { %v3128_v22 = vsel %vm9504_vm8, %v3095_v27, %v10527_v41  ;;  %v3389_v29 = vsel %vm3374_vm0, %v3356_v1, %v10529_v42  ;;  %v3064_v38 = vsel %vm3044_vm6, %v3031_v40, %v10530_v62  ;;  %v10531_v49 = vld [vmem:[#allocation240_spill] sm:$0xff]  ;;  %v3325_v36 = vsel %vm3308_vm14, %v3292_v30, %v10532_v54  ;;  %v10533_v13 = vld [vmem:[#allocation314_spill] sm:$0xff]  ;;  %v10535_v33 = vld [vmem:[#allocation219_spill] sm:$0xff]  ;;  %v2882_v40 = vpop.permute.xlu0 %2881 }
 0x555   : > { %v3161_v35 = vsel %vm9505_vm9, %v3128_v22, %v10531_v49  ;;  %v8414_v12 = vsel %vm3407_vm2, %v3389_v29, %v2878_v18  ;;  %v10534_v60 = vrot.slane %v10533_v13, 1  ;;  %v3097_v4 = vsel %vm9506_vm7, %v3064_v38, %v10535_v33  ;;  %v10536_v10 = vld [vmem:[#allocation303_spill] sm:$0xff]  ;;  %v10538_v2 = vld [vmem:[#allocation104_spill] sm:$0xff]  ;;  %v10539_v63 = vld [vmem:[#allocation38_spill] sm:$0xff] }
 0x556   : > { %v3194_v44 = vsel %vm3176_vm10, %v3161_v35, %v10536_v10  ;;  %v10537_v57 = vld [vmem:[#allocation395_spill] sm:$0xff]  ;;  %v2966_v34 = vsel %vm2945_vm3, %v10539_v63, %v10538_v2  ;;  %v10540_v27 = vld [vmem:[#allocation228_spill] sm:$0xff]  ;;  %v10545_v42 = vld [vmem:[#allocation417_spill] sm:$0xff] }
 0x557   : > { %3462 = vrot.lane.b32.xlu0 %v10534_v60, %s4584_s9  ;;  %v3358_v3 = vsel %vm3341_vm15, %v3325_v36, %v10537_v57  ;;  %v3130_v26 = vsel %vm9504_vm8, %v3097_v4, %v10540_v27  ;;  %v10541_v20 = vld [vmem:[#allocation371_spill] sm:$0xff]  ;;  %v10542_v1 = vld [vmem:[#allocation64_spill] sm:$0xff]  ;;  %v10546_v62 = vld [vmem:[#allocation165_spill] sm:$0xff] }
 0x558   : > { %v3227_v31 = vsel %vm9502_vm11, %v3194_v44, %v10541_v20  ;;  %v3391_v24 = vsel %vm3374_vm0, %v3358_v3, %v10542_v1  ;;  %v10543_v41 = vld [vmem:[#allocation124_spill] sm:$0xff]  ;;  %v10548_v54 = vld [vmem:[#allocation435_spill] sm:$0xff]  ;;  %v10550_v4 = vld [vmem:[#allocation353_spill] sm:$0xff] }
 0x559   : > { %v2999_v22 = vsel %vm2978_vm4, %v2966_v34, %v10543_v41  ;;  %v10544_v45 = vld [vmem:[#allocation248_spill] sm:$0xff]  ;;  %v3260_v29 = vsel %vm9503_vm12, %v3227_v31, %v10545_v42  ;;  %v8441_v18 = vsel %vm3407_vm2, %v3391_v24, %v2882_v40  ;;  %v10549_v60 = vld [vmem:[#allocation187_spill] sm:$0xff]  ;;  %v10551_v44 = vld [vmem:[#allocation473_spill] sm:$0xff] }
 0x55a   : > { %v3163_v30 = vsel %vm9505_vm9, %v3130_v26, %v10544_v45  ;;  %v3032_v38 = vsel %vm3011_vm5, %v2999_v22, %v10546_v62  ;;  %v10547_v49 = vld [vmem:[#allocation288_spill] sm:$0xff]  ;;  %v3293_v36 = vsel %vm3275_vm13, %v3260_v29, %v10548_v54  ;;  %v10552_v3 = vld [vmem:[#allocation209_spill] sm:$0xff]  ;;  %v10553_v63 = vld [vmem:[#allocation418_spill] sm:$0xff]  ;;  %v2884_v22 = vpop.permute.xlu1 %2883 }
 0x55b   : > { %v3196_v35 = vsel %vm3176_vm10, %v3163_v30, %v10547_v49  ;;  %v3065_v33 = vsel %vm3044_vm6, %v3032_v38, %v10549_v60  ;;  %v3326_v57 = vsel %vm3308_vm14, %v3293_v36, %v10551_v44  ;;  %v10554_v27 = vld [vmem:[#allocation482_spill] sm:$0xff]  ;;  %v10556_v1 = vld [vmem:[#allocation449_spill] sm:$0xff]  ;;  %v10557_v40 = vld [vmem:[#allocation495_spill] sm:$0xff]  ;;  %v3521_v60 = vpop.permute.xlu2 %3520 }
 0x55c   : > { %v3229_v10 = vsel %vm9502_vm11, %v3196_v35, %v10550_v4  ;;  %v3098_v2 = vsel %vm9506_vm7, %v3065_v33, %v10552_v3  ;;  %v3359_v26 = vsel %vm3341_vm15, %v3326_v57, %v10554_v27  ;;  %v10555_v20 = vld [vmem:[#allocation230_spill] sm:$0xff]  ;;  %v10558_v45 = vld [vmem:[#allocation91_spill] sm:$0xff]  ;;  %v10563_v33 = vld [vmem:[#allocation376_spill] sm:$0xff]  ;;  %v2888_v44 = vpop.permute.xlu0 %2887 }
 0x55d   : > { %v3262_v34 = vsel %vm9503_vm12, %v3229_v10, %v10553_v63  ;;  %v3131_v31 = vsel %vm9504_vm8, %v3098_v2, %v10555_v20  ;;  %v3392_v41 = vsel %vm3374_vm0, %v3359_v26, %v10557_v40  ;;  %v10559_v42 = vld [vmem:[#allocation475_spill] sm:$0xff]  ;;  %v10562_v54 = vld [vmem:[#allocation402_spill] sm:$0xff]  ;;  %v10564_v57 = vld [vmem:[#allocation420_spill] sm:$0xff] }
 0x55e   : > { %v3295_v24 = vsel %vm3275_vm13, %v3262_v34, %v10556_v1  ;;  %v3164_v30 = vsel %vm9505_vm9, %v3131_v31, %v10558_v45  ;;  %v8472_v62 = vsel %vm3407_vm2, %v3392_v41, %v2884_v22  ;;  %v10560_v38 = vld [vmem:[#allocation363_spill] sm:$0xff]  ;;  %v10565_v63 = vld [vmem:[#allocation438_spill] sm:$0xff]  ;;  %v10566_v27 = vld [vmem:[#allocation477_spill] sm:$0xff] }
 0x55f   : > { %v3328_v29 = vsel %vm3308_vm14, %v3295_v24, %v10559_v42  ;;  %3514 = vrot.lane.b32.xlu0 %v10560_v38, %s4584_s9  ;;  %v10561_v49 = vld [vmem:[#allocation307_spill] sm:$0xff]  ;;  %v10567_v20 = vld [vmem:[#allocation484_spill] sm:$0xff]  ;;  %v10568_v1 = vld [vmem:[#allocation497_spill] sm:$0xff] }
 0x560   : > { %v3197_v35 = vsel %vm3176_vm10, %v3164_v30, %v10561_v49  ;;  %v3361_v36 = vsel %vm3341_vm15, %v3328_v29, %v10562_v54  ;;  %v10570_v42 = vld [vmem:[#allocation286_spill] sm:$0xff]  ;;  %v10571_v49 = vld [vmem:[#allocation299_spill] sm:$0xff] }
 0x561   : > { %v3230_v4 = vsel %vm9502_vm11, %v3197_v35, %v10563_v33  ;;  %v3394_v10 = vsel %vm3374_vm0, %v3361_v36, %v7732_v6  ;;  %v10569_v6 = vld [vmem:[#allocation281_spill] sm:$0xff]  ;;  %v3627_v35 = vsel %vm2945_vm3, %v10571_v49, %v3521_v60 }
 0x562   : > { %v3263_v3 = vsel %vm9503_vm12, %v3230_v4, %v10564_v57  ;;  %v8487_v2 = vsel %vm3407_vm2, %v3394_v10, %v2888_v44  ;;  %v3614_v40 = vsel %vm2945_vm3, %v10569_v6, %v3495_v53  ;;  %v2890_v41 = vpop.permute.xlu1 %2889  ;;  %v3747_v33 = vrot.slane %v3627_v35, 1 }
 0x563   : > { %v3296_v34 = vsel %vm3275_vm13, %v3263_v3, %v10565_v63  ;;  %v3726_v45 = vrot.slane %v3614_v40, 1  ;;  %v3471_v38 = vpop.permute.xlu2 %3470  ;;  %v10572_v63 = vld [vmem:[#allocation268_spill] sm:$0xff]  ;;  %v10577_v40 = vld [vmem:[#allocation251_spill] sm:$0xff] }
 0x564   : > { %v3329_v26 = vsel %vm3308_vm14, %v3296_v34, %v10566_v27  ;;  %v3497_v30 = vpop.permute.xlu0 %3496  ;;  %v3602_v60 = vsel %vm2945_vm3, %v10572_v63, %v3471_v38  ;;  %v10573_v27 = vld [vmem:[#allocation336_spill] sm:$0xff] }
 0x565   : > { %v3362_v31 = vsel %vm3341_vm15, %v3329_v26, %v10567_v20  ;;  %v3615_v29 = vsel %vm2945_vm3, %v10570_v42, %v3497_v30  ;;  %v10574_v26 = vrot.slane %v10573_v27, 1  ;;  %v3706_v20 = vrot.slane %v3602_v60, 1  ;;  %v10578_v30 = vld [vmem:[#allocation365_spill] sm:$0xff]  ;;  %v10581_v60 = vld [vmem:[#allocation344_spill] sm:$0xff] }
 0x566   : > { %v3395_v24 = vsel %vm3374_vm0, %v3362_v31, %v10568_v1  ;;  %v3727_v54 = vrot.slane %v3615_v29, 1  ;;  %v10575_v1 = vld [vmem:[#allocation266_spill] sm:$0xff] }
 0x567   : > { %v8500_v22 = vsel %vm3407_vm2, %v3395_v24, %v2890_v41  ;;  %v10576_v24 = vld [vmem:[#allocation249_spill] sm:$0xff] }
 0x568   : > { %v3728_v36 = vsel %vm1114_vm1, %v3726_v45, %v3727_v54 }
 0x569   : > { %3798 = vrot.lane.b32.xlu1 %v3728_v36, %s4599_s26  ;;  %v10579_v36 = vld [vmem:[#allocation366_spill] sm:$0xff] }
 0x56a   : > { %v3519_v4 = vpop.permute.xlu1 %3518 }
 0x56b   : > { %v3626_v53 = vsel %vm2945_vm3, %v10502_v7, %v3519_v4  ;;  %v3523_v3 = vpop.permute.xlu2 %3522 }
 0x56c   : > { %v3746_v10 = vrot.slane %v3626_v53, 1  ;;  %v3447_v44 = vpop.permute.xlu0 %3446  ;;  %v3628_v4 = vsel %vm2945_vm3, %v10579_v36, %v3523_v3  ;;  %v10587_v36 = vld [vmem:[#allocation4_spill] sm:$0xff] }
 0x56d   : > { %v3590_v6 = vsel %vm2945_vm3, %v10576_v24, %v3447_v44  ;;  %v3749_v44 = vrot.slane %v3628_v4, 1  ;;  %v10588_v4 = vrot.slane %v10587_v36, 1 }
 0x56e   : > { %v3748_v57 = vsel %vm1114_vm1, %v3746_v10, %v3747_v33  ;;  %v3686_v38 = vrot.slane %v3590_v6, 1  ;;  %v10580_v10 = vld [vmem:[#allocation5_spill] sm:$0xff]  ;;  %v10582_v6 = vld [vmem:[#allocation322_spill] sm:$0xff] }
 0x56f   : > { %3814 = vrot.lane.b32.xlu2 %v3748_v57, %s4599_s26 }
 0x571   : > { %3486 = vrot.lane.b32.xlu1 %v10574_v26, %s4584_s9  ;;  %v3750_v26 = vsel %vm1114_vm1, %v3747_v33, %v3749_v44 }
 0x572   : > { %v3449_v34 = vpop.permute.xlu1 %3448 }
 0x573   : > { %v3591_v41 = vsel %vm2945_vm3, %v10577_v40, %v3449_v34  ;;  %v3501_v42 = vpop.permute.xlu2 %3500  ;;  %v10583_v40 = vld [vmem:[#allocation341_spill] sm:$0xff] }
 0x574   : > { %v3473_v31 = vpop.permute.xlu0 %3472  ;;  %v3687_v35 = vrot.slane %v3591_v41, 1 }
 0x575   : > { %v8519_v7 = vsel %vm2945_vm3, %v10575_v1, %v3473_v31 }
 0x576   : > { %v3707_v45 = vrot.slane %v8519_v7, 1  ;;  %v3688_v63 = vsel %vm1114_vm1, %v3686_v38, %v3687_v35 }
 0x577   : > { %3512 = vrot.lane.b32.xlu2 %v10578_v30, %s4584_s9 }
 0x578   : > { %v3708_v29 = vsel %vm1114_vm1, %v3706_v20, %v3707_v45 }
 0x579   : > { %4554 = vrot.lane.b32.xlu1 %v10580_v10, %s4584_s9  ;;  %3782 = vrot.lane.b32.xlu0 %v3708_v29, %s4599_s26  ;;  %v10585_v29 = vld [vmem:[#allocation308_spill] sm:$0xff] }
 0x57a   : > { %v3499_v53 = vpop.permute.xlu1 %3498 }
 0x57b   : > { %v3616_v34 = vsel %vm2945_vm3, %v10581_v60, %v3499_v53  ;;  %v3527_v3 = vpop.permute.xlu2 %3526 }
 0x57c   : > { %v3451_v57 = vpop.permute.xlu0 %3450  ;;  %v3729_v20 = vrot.slane %v3616_v34, 1  ;;  %v10589_v34 = vld [vmem:[#allocation359_spill] sm:$0xff] }
 0x57d   : > { %v3592_v38 = vsel %vm2945_vm3, %v10585_v29, %v3451_v57  ;;  %v3903_v57 = vld [vmem:[%s9211_s6 + $0x40] sm:$0xff] }
 0x57e   : > { %v3730_v24 = vsel %vm1114_vm1, %v3727_v54, %v3729_v20  ;;  %v10586_v54 = vld [vmem:[#allocation345_spill] sm:$0xff]  ;;  %v3689_v10 = vrot.slane %v3592_v38, 1  ;;  %v10591_v20 = vld [vmem:[#allocation287_spill] sm:$0xff]  ;;  %4447 = vmatpush.msra.mxu3 %v3903_v57  ;;  %4012 = vmatpush.msra.mxu0 %v3903_v57 }
 0x57f   : > { %3766 = vrot.lane.b32.xlu2 %v3688_v63, %s4599_s26  ;;  %4446 = vmatpush.msra.mxu2 %v3903_v57 }
 0x580   : > { %4445 = vmatpush.msra.mxu1 %v3903_v57 }
 0x581   : > { %2899 = vrot.lane.b32.xlu1 %v10571_v49, %s4598_s1  ;;  %3816 = vrot.lane.b32.xlu0 %v3750_v26, %s4599_s26  ;;  %v10584_v49 = vld [vmem:[#allocation328_spill] sm:$0xff]  ;;  %v10590_v26 = vrot.slane %v10589_v34, 1 }
 0x582   : > { %v3475_v31 = vpop.permute.xlu1 %3474 }
 0x583   : > { %v3477_v41 = vpop.permute.xlu2 %3476  ;;  %v3604_v60 = vsel %vm2945_vm3, %v10291_v14, %v3475_v31  ;;  %v10593_v31 = vld [vmem:[#allocation304_spill] sm:$0xff] }
 0x584   : > { %v3503_v1 = vpop.permute.xlu0 %3502  ;;  %v3709_v14 = vrot.slane %v3604_v60, 1 }
 0x587   : > { %3800 = vrot.lane.b32.xlu2 %v3730_v24, %s4599_s26  ;;  %v8573_v24 = vsel %vm2945_vm3, %v10591_v20, %v3503_v1  ;;  %v3902_v1 = vld [vmem:[%s9211_s6 + $0x38] sm:$0xff] }
 0x588   : > { %4450 = vmatpush.msra.mxu3 %v3902_v1  ;;  %4013 = vmatpush.msra.mxu0 %v3902_v1 }
 0x589   : > { %3464 = vrot.lane.b32.xlu1 %v10582_v6, %s4584_s9  ;;  %3488 = vrot.lane.b32.xlu0 %v10583_v40, %s4584_s9  ;;  %v10592_v6 = vld [vmem:[#allocation284_spill] sm:$0xff] }
 0x58a   : > { %v3525_v33 = vpop.permute.xlu1 %3524  ;;  %v3617_v40 = vsel %vm2945_vm3, %v10592_v6, %v3501_v42  ;;  %v3901_v42 = vld [vmem:[%s9211_s6 + $0x30] sm:$0xff]  ;;  %4449 = vmatpush.msra.mxu2 %v3902_v1  ;;  %4448 = vmatpush.msra.mxu1 %v3902_v1  ;;  %v10595_v6 = vld [vmem:[#allocation274_spill] sm:$0xff] }
 0x58b   : > { %v8561_v63 = vpop.permute.xlu2 %3528  ;;  %v3731_v38 = vrot.slane %v3617_v40, 1  ;;  %4453 = vmatpush.msra.mxu3 %v3901_v42  ;;  %4014 = vmatpush.msra.mxu0 %v3901_v42 }
 0x58c   : > { %v8550_v30 = vpop.permute.xlu0 %3452  ;;  %4452 = vmatpush.msra.mxu2 %v3901_v42  ;;  %4451 = vmatpush.msra.mxu1 %v3901_v42 }
 0x58f   : > { %3466 = vrot.lane.b32.xlu2 %v10584_v49, %s4584_s9  ;;  %v3690_v49 = vsel %vm1114_vm1, %v3687_v35, %v3689_v10  ;;  %v3732_v35 = vrot.slane %v8573_v24, 1 }
 0x591   : > { %3490 = vrot.lane.b32.xlu1 %v10586_v54, %s4584_s9  ;;  %3540 = vrot.lane.b32.xlu0 %v10588_v4, %s4584_s9  ;;  %v3629_v54 = vsel %vm2945_vm3, %v10593_v31, %v3525_v33  ;;  %v10594_v4 = vld [vmem:[#allocation302_spill] sm:$0xff]  ;;  %v3733_v33 = vsel %vm1114_vm1, %v3731_v38, %v3732_v35 }
 0x592   : > { %v3455_v53 = vpop.permute.xlu1 %3454  ;;  %v8594_v10 = vsel %vm2945_vm3, %v10594_v4, %v3527_v3  ;;  %v3900_v3 = vld [vmem:[%s9211_s6 + $0x28] sm:$0xff]  ;;  %v3751_v57 = vrot.slane %v3629_v54, 1 }
 0x593   : > { %v3752_v20 = vrot.slane %v8594_v10, 1  ;;  %4456 = vmatpush.msra.mxu3 %v3900_v3  ;;  %4015 = vmatpush.msra.mxu0 %v3900_v3  ;;  %v3897_v10 = vld [vmem:[%s9211_s6 + $0x10] sm:$0xff] }
 0x594   : > { %v3479_v44 = vpop.permute.xlu0 %3478  ;;  %4455 = vmatpush.msra.mxu2 %v3900_v3  ;;  %4454 = vmatpush.msra.mxu1 %v3900_v3  ;;  %v10600_v3 = vld [vmem:[#allocation254_spill] sm:$0xff] }
 0x595   : > { %v8611_v7 = vsel %vm2945_vm3, %v10595_v6, %v3479_v44  ;;  %v3753_v54 = vsel %vm1114_vm1, %v3751_v57, %v3752_v20  ;;  %v3594_v6 = vsel %vm2945_vm3, %v10600_v3, %v3455_v53  ;;  %v3631_v53 = vsel %vm2945_vm3, %v10366_v46, %v8561_v63 }
 0x596   : > { %v3712_v42 = vrot.slane %v8611_v7, 1 }
 0x597   : > { %3516 = vrot.lane.b32.xlu2 %v10590_v26, %s4584_s9  ;;  %v3710_v26 = vsel %vm1114_vm1, %v3707_v45, %v3709_v14  ;;  %v10596_v45 = vld [vmem:[#allocation269_spill] sm:$0xff]  ;;  %v3899_v14 = vld [vmem:[%s9211_s6 + $0x20] sm:$0xff] }
 0x598   : > { %v3605_v40 = vsel %vm2945_vm3, %v10596_v45, %v3477_v41  ;;  %v3898_v41 = vld [vmem:[%s9211_s6 + $0x18] sm:$0xff]  ;;  %4459 = vmatpush.msra.mxu3 %v3899_v14  ;;  %4016 = vmatpush.msra.mxu0 %v3899_v14 }
 0x599   : > { %2901 = vrot.lane.b32.xlu0 %v10593_v31, %s4598_s1  ;;  %3768 = vrot.lane.b32.xlu1 %v3690_v49, %s4599_s26  ;;  %v8615_v49 = vpop.permute.xlu2 %3506  ;;  %v10597_v31 = vld [vmem:[#allocation321_spill] sm:$0xff]  ;;  %v3711_v38 = vrot.slane %v3605_v40, 1  ;;  %v3896_v40 = vld [vmem:[%s9211_s6 + $0x8] sm:$0xff] }
 0x59a   : > { %v8581_v29 = vpop.permute.xlu1 %3504  ;;  %v10598_v1 = vrot.slane %v10597_v31, 1  ;;  %4458 = vmatpush.msra.mxu2 %v3899_v14  ;;  %4457 = vmatpush.msra.mxu1 %v3899_v14  ;;  %v3692_v14 = vrot.slane %v3594_v6, 1 }
 0x59b   : > { %4462 = vmatpush.msra.mxu3 %v3898_v41  ;;  %4017 = vmatpush.msra.mxu0 %v3898_v41  ;;  %v3713_v57 = vsel %vm1114_vm1, %v3711_v38, %v3712_v42 }
 0x59c   : > { %v8596_v60 = vpop.permute.xlu0 %3456  ;;  %4461 = vmatpush.msra.mxu2 %v3898_v41  ;;  %4460 = vmatpush.msra.mxu1 %v3898_v41  ;;  %v10601_v41 = vld [vmem:[#allocation339_spill] sm:$0xff] }
 0x59d   : > { %4465 = vmatpush.msra.mxu3 %v3897_v10  ;;  %4018 = vmatpush.msra.mxu0 %v3897_v10  ;;  %v10602_v38 = vrot.slane %v10601_v41, 1 }
 0x59e   : > { %4464 = vmatpush.msra.mxu2 %v3897_v10  ;;  %4463 = vmatpush.msra.mxu1 %v3897_v10  ;;  %v3619_v10 = vsel %vm2945_vm3, %v10370_v0, %v8581_v29 }
 0x59f   : > { %3784 = vrot.lane.b32.xlu2 %v3710_v26, %s4599_s26  ;;  %v10599_v26 = vld [vmem:[#allocation256_spill] sm:$0xff]  ;;  %4468 = vmatpush.msra.mxu3 %v3896_v40  ;;  %v3734_v6 = vrot.slane %v3619_v10, 1  ;;  %v10608_v10 = vld [vmem:[#allocation43_spill] sm:$0xff] }
 0x5a0   : > { %4019 = vmatpush.msra.mxu0 %v3896_v40  ;;  %4467 = vmatpush.msra.mxu2 %v3896_v40 }
 0x5a1   : > { %3468 = vrot.lane.b32.xlu0 %v10598_v1, %s4584_s9  ;;  %3802 = vrot.lane.b32.xlu1 %v3733_v33, %s4599_s26  ;;  %v3593_v33 = vsel %vm2945_vm3, %v10599_v26, %v8550_v30  ;;  %v3895_v1 = vld [vmem:[%s9211_s6] sm:$0xff]  ;;  %v3754_v26 = vrot.slane %v3631_v53, 1  ;;  %v3735_v0 = vsel %vm1114_vm1, %v3732_v35, %v3734_v6  ;;  %v10607_v35 = vld [vmem:[#allocation95_spill] sm:$0xff] }
 0x5a2   : > { %v3481_v44 = vpop.permute.xlu1 %3480  ;;  %v3691_v30 = vrot.slane %v3593_v33, 1  ;;  %4471 = vmatpush.msra.mxu3 %v3895_v1  ;;  %4466 = vmatpush.msra.mxu1 %v3896_v40 }
 0x5a3   : > { %4020 = vmatpush.msra.mxu0 %v3895_v1  ;;  %4470 = vmatpush.msra.mxu2 %v3895_v1  ;;  %v3755_v3 = vsel %vm1114_vm1, %v3752_v20, %v3754_v26  ;;  %v3607_v29 = vsel %vm2945_vm3, %v10396_v50, %v3481_v44  ;;  %v10603_v20 = vld [vmem:[#allocation290_spill] sm:$0xff]  ;;  %v2970_v50 = vsel %vm2945_vm3, %v10608_v10, %v10607_v35 }
 0x5a4   : > { %v3509_v45 = vpop.permute.xlu0 %3508  ;;  %v3693_v46 = vsel %vm1114_vm1, %v3691_v30, %v3692_v14  ;;  %4469 = vmatpush.msra.mxu1 %v3895_v1  ;;  %v3714_v6 = vrot.slane %v3607_v29, 1 }
 0x5a7   : > { %3818 = vrot.lane.b32.xlu2 %v3753_v54, %s4599_s26  ;;  %v3533_v54 = vpop.permute.xlu2 %3532 }
 0x5a9   : > { %3492 = vrot.lane.b32.xlu1 %v10602_v38, %s4584_s9  ;;  %3786 = vrot.lane.b32.xlu0 %v3713_v57, %s4599_s26  ;;  %v3595_v57 = vsel %vm2945_vm3, %v10377_v17, %v8596_v60  ;;  %v8674_v17 = vsel %vm2945_vm3, %v10603_v20, %v3509_v45  ;;  %v10605_v38 = vld [vmem:[#allocation257_spill] sm:$0xff] }
 0x5aa   : > { %v3531_v33 = vpop.permute.xlu1 %3530  ;;  %v3694_v30 = vrot.slane %v3595_v57, 1  ;;  %v10610_v57 = vld [vmem:[#allocation446_spill] sm:$0xff] }
 0x5ab   : > { %v3632_v29 = vsel %vm2945_vm3, %v10610_v57, %v3531_v33 }
 0x5ac   : > { %v3459_v63 = vpop.permute.xlu0 %3458  ;;  %v3695_v44 = vsel %vm1114_vm1, %v3692_v14, %v3694_v30  ;;  %v10613_v30 = vld [vmem:[#allocation448_spill] sm:$0xff]  ;;  %v3756_v33 = vrot.slane %v3632_v29, 1 }
 0x5ad   : > { %v3596_v26 = vsel %vm2945_vm3, %v10605_v38, %v3459_v63  ;;  %v3633_v35 = vsel %vm2945_vm3, %v10613_v30, %v3533_v54 }
 0x5af   : > { %3770 = vrot.lane.b32.xlu2 %v3693_v46, %s4599_s26  ;;  %v3483_v40 = vpop.permute.xlu2 %3482  ;;  %v10606_v46 = vld [vmem:[#allocation262_spill] sm:$0xff] }
 0x5b1   : > { %2903 = vrot.lane.b32.xlu1 %v10594_v4, %s4598_s1  ;;  %3820 = vrot.lane.b32.xlu0 %v3755_v3, %s4599_s26  ;;  %v10604_v4 = vld [vmem:[#allocation292_spill] sm:$0xff]  ;;  %v10609_v3 = vld [vmem:[#allocation138_spill] sm:$0xff] }
 0x5b2   : > { %v3461_v1 = vpop.permute.xlu1 %3460  ;;  %v3620_v60 = vsel %vm2945_vm3, %v10604_v4, %v8615_v49  ;;  %v3003_v45 = vsel %vm2978_vm4, %v2970_v50, %v10609_v3  ;;  %v3737_v49 = vrot.slane %v8674_v17, 1  ;;  %v10611_v4 = vld [vmem:[#allocation54_spill] sm:$0xff]  ;;  %v10614_v50 = vld [vmem:[#allocation15_spill] sm:$0xff]  ;;  %v3715_v17 = vsel %vm1114_vm1, %v3712_v42, %v3714_v6  ;;  %v10619_v6 = vld [vmem:[#allocation317_spill] sm:$0xff] }
 0x5b3   : > { %v3597_v24 = vsel %vm2945_vm3, %v10606_v46, %v3461_v1  ;;  %v3736_v63 = vrot.slane %v3620_v60, 1  ;;  %v3036_v38 = vsel %vm3011_vm5, %v3003_v45, %v10611_v4  ;;  %v10612_v46 = vld [vmem:[#allocation192_spill] sm:$0xff]  ;;  %v10615_v60 = vld [vmem:[#allocation59_spill] sm:$0xff]  ;;  %v3757_v45 = vrot.slane %v3633_v35, 1 }
 0x5b4   : > { %v3485_v53 = vpop.permute.xlu0 %3484  ;;  %v3697_v1 = vrot.slane %v3597_v24, 1  ;;  %v3069_v14 = vsel %vm3044_vm6, %v3036_v38, %v10612_v46  ;;  %v10617_v38 = vld [vmem:[#allocation272_spill] sm:$0xff]  ;;  %v10618_v46 = vld [vmem:[#allocation255_spill] sm:$0xff] }
 0x5b5   : > { %v3738_v3 = vsel %vm1114_vm1, %v3736_v63, %v3737_v49  ;;  %v3608_v7 = vsel %vm2945_vm3, %v10617_v38, %v3483_v40  ;;  %v10620_v63 = vld [vmem:[#allocation383_spill] sm:$0xff]  ;;  %v3758_v40 = vsel %vm1114_vm1, %v3756_v33, %v3757_v45 }
 0x5b6   : > { %v3716_v29 = vrot.slane %v3608_v7, 1 }
 0x5b7   : > { %3804 = vrot.lane.b32.xlu2 %v3735_v0, %s4599_s26  ;;  %v3696_v0 = vrot.slane %v3596_v26, 1  ;;  %v3535_v24 = vpop.permute.xlu2 %3534 }
 0x5b9   : > { %2905 = vrot.lane.b32.xlu0 %v10610_v57, %s4598_s1  ;;  %3772 = vrot.lane.b32.xlu1 %v3695_v44, %s4599_s26  ;;  %v3102_v44 = vsel %vm9506_vm7, %v3069_v14, %v10614_v50  ;;  %v3698_v54 = vsel %vm1114_vm1, %v3696_v0, %v3697_v1  ;;  %v10616_v57 = vld [vmem:[#allocation275_spill] sm:$0xff]  ;;  %v10621_v50 = vld [vmem:[#allocation413_spill] sm:$0xff] }
 0x5ba   : > { %v3135_v26 = vsel %vm9504_vm8, %v3102_v44, %v10615_v60  ;;  %v3609_v4 = vsel %vm2945_vm3, %v10616_v57, %v3485_v53  ;;  %v10622_v44 = vld [vmem:[#allocation452_spill] sm:$0xff] }
 0x5bb   : > { %v3168_v42 = vsel %vm9505_vm9, %v3135_v26, %v10618_v46  ;;  %v3717_v35 = vrot.slane %v3609_v4, 1  ;;  %v10623_v26 = vld [vmem:[#allocation468_spill] sm:$0xff] }
 0x5bc   : > { %v2898_v10 = vpop.permute.xlu0 %2897  ;;  %v3201_v14 = vsel %vm3176_vm10, %v3168_v42, %v10619_v6 }
 0x5bd   : > { %v3234_v0 = vsel %vm9502_vm11, %v3201_v14, %v10620_v63  ;;  %v3718_v4 = vsel %vm1114_vm1, %v3716_v29, %v3717_v35  ;;  %vm3862_vm11 = vcmask 523264   ;;  %v3634_v63 = vsel %vm2945_vm3, %v10482_v16, %v3535_v24  ;;  %v10625_v16 = vld [vmem:[#allocation3_spill] sm:$0xff]  ;;  %v10626_v24 = vld [vmem:[#allocation293_spill] sm:$0xff] }
 0x5be   : > { %v3267_v53 = vsel %vm9503_vm12, %v3234_v0, %v10621_v50  ;;  %v3511_v38 = vpop.permute.xlu1 %3510  ;;  %vm3908_vm12 = vcmask 588800  }
 0x5bf   : > { %3788 = vrot.lane.b32.xlu2 %v3715_v17, %s4599_s26  ;;  %v3300_v17 = vsel %vm3275_vm13, %v3267_v53, %v10622_v44  ;;  %v3622_v6 = vsel %vm2945_vm3, %v10489_v51, %v3511_v38  ;;  %v3759_v51 = vrot.slane %v3634_v63, 1  ;;  %v10630_v38 = vld [vmem:[#allocation140_spill] sm:$0xff] }
 0x5c0   : > { %v3333_v57 = vsel %vm3308_vm14, %v3300_v17, %v10623_v26  ;;  %v10628_v26 = vld [vmem:[#allocation45_spill] sm:$0xff] }
 0x5c1   : > { %3806 = vrot.lane.b32.xlu1 %v3738_v3, %s4599_s26  ;;  %3774 = vrot.lane.b32.xlu0 %v3698_v54, %s4599_s26  ;;  %v10624_v3 = vld [vmem:[#allocation487_spill] sm:$0xff]  ;;  %v3760_v29 = vsel %vm1114_vm1, %v3757_v45, %v3759_v51 }
 0x5c2   : > { %v3366_v54 = vsel %vm3341_vm15, %v3333_v57, %v10624_v3  ;;  %v10629_v3 = vld [vmem:[#allocation298_spill] sm:$0xff] }
 0x5c3   : > { %v3399_v7 = vsel %vm3374_vm0, %v3366_v54, %v7848_v21 }
 0x5c4   : > { %v3432_v46 = vsel %vm3407_vm2, %v3399_v7, %v2898_v10 }
 0x5c7   : > { %3822 = vrot.lane.b32.xlu2 %v3758_v40, %s4599_s26 }
 0x5c9   : > { %v3463_v60 = vpop.permute.xlu0 %3462  ;;  %v3815_v42 = vpop.permute.xlu2 %3814  ;;  %2907 = vrot.lane.b32.xlu0 %v10613_v30, %s4598_s1  ;;  %3790 = vrot.lane.b32.xlu1 %v3718_v4, %s4599_s26 }
 0x5ca   : > { %v3598_v33 = vsel %vm2945_vm3, %v10533_v13, %v3463_v60  ;;  %v3887_v14 = vsel %vm3862_vm11, %v3432_v46, %v3815_v42  ;;  %v3739_v13 = vrot.slane %v3622_v6, 1  ;;  %v10627_v60 = vld [vmem:[#allocation108_spill] sm:$0xff]  ;;  %v10632_v46 = vld [vmem:[#allocation94_spill] sm:$0xff] }
 0x5cb   : > { %4426 = vmatmul.msk.f32.vlgmr.msra.gmra.mxu3 %vm3908_vm12, %v3887_v14  ;;  %v3699_v21 = vrot.slane %v3598_v33, 1 }
 0x5cc   : > { %v3740_v30 = vsel %vm1114_vm1, %v3737_v49, %v3739_v13  ;;  %v10634_v13 = vld [vmem:[#allocation63_spill] sm:$0xff] }
 0x5cd   : > { %v3700_v10 = vsel %vm1114_vm1, %v3697_v1, %v3699_v21  ;;  %v10633_v21 = vld [vmem:[#allocation19_spill] sm:$0xff] }
 0x5cf   : > { %2891 = vrot.lane.b32.xlu2 %v10603_v20, %s4598_s1 }
 0x5d1   : > { %v3513_v0 = vpop.permute.xlu2 %3512  ;;  %3808 = vrot.lane.b32.xlu1 %v3740_v30, %s4599_s26  ;;  %3776 = vrot.lane.b32.xlu0 %v3700_v10, %s4599_s26  ;;  %v3515_v53 = vpop.permute.xlu0 %3514 }
 0x5d2   : > { %v3623_v57 = vsel %vm2945_vm3, %v10626_v24, %v3513_v0  ;;  %v8778_v54 = vsel %vm2945_vm3, %v10629_v3, %v3515_v53  ;;  %v10635_v0 = vld [vmem:[#allocation259_spill] sm:$0xff] }
 0x5d3   : > { %v3741_v6 = vrot.slane %v3623_v57, 1  ;;  %v3742_v14 = vrot.slane %v8778_v54, 1  ;;  %v10668_v54 = vld [vmem:[#allocation100_spill] sm:$0xff] }
 0x5d7   : > { %3824 = vrot.lane.b32.xlu2 %v3760_v29, %s4599_s26 }
 0x5d9   : > { %v3767_v50 = vpop.permute.xlu2 %3766  ;;  %2909 = vrot.lane.b32.xlu0 %v10625_v16, %s4598_s1 }
 0x5da   : > { %v3863_v20 = vsel %vm3862_vm11, %v7812_v25, %v3767_v50 }
 0x5db   : > { %4402 = vmatmul.msk.f32.vlgmr.msra.gmra.mxu0 %vm3908_vm12, %v3863_v20  ;;  %v3799_v1 = vpop.permute.xlu1 %3798 }
 0x5dc   : > { %v3879_v49 = vsel %vm3862_vm11, %v8441_v18, %v3799_v1  ;;  %v2971_v18 = vsel %vm2945_vm3, %v10628_v26, %v10627_v60  ;;  %v10636_v1 = vld [vmem:[#allocation300_spill] sm:$0xff] }
 0x5dd   : > { %4418 = vmatmul.msk.f32.vlgmr.msra.gmra.mxu2 %vm3908_vm12, %v3879_v49 }
 0x5df   : > { %2893 = vrot.lane.b32.xlu2 %v10626_v24, %s4598_s1  ;;  %v3743_v24 = vsel %vm1114_vm1, %v3741_v6, %v3742_v14 }
 0x5e1   : > { %v3801_v45 = vpop.permute.xlu2 %3800 }
 0x5e2   : > { %v3880_v25 = vsel %vm3862_vm11, %v8472_v62, %v3801_v45  ;;  %v10631_v62 = vld [vmem:[#allocation169_spill] sm:$0xff]  ;;  %v10637_v45 = vld [vmem:[#allocation367_spill] sm:$0xff] }
 0x5e3   : > { %v3487_v40 = vpop.permute.xlu1 %3486 }
 0x5e4   : > { %v3610_v44 = vsel %vm2945_vm3, %v10573_v27, %v3487_v40  ;;  %v3004_v27 = vsel %vm2978_vm4, %v2971_v18, %v10630_v38  ;;  %v10639_v40 = vld [vmem:[#allocation2_spill] sm:$0xff] }
 0x5e5   : > { %v3719_v17 = vrot.slane %v3610_v44, 1  ;;  %4419 = vmatmul.msk.f32.gmra.mxu2 %vm3908_vm12, %v3880_v25  ;;  %v3037_v7 = vsel %vm3011_vm5, %v3004_v27, %v10631_v62  ;;  %v10642_v18 = vld [vmem:[#allocation454_spill] sm:$0xff]  ;;  %v10643_v27 = vld [vmem:[#allocation380_spill] sm:$0xff] }
 0x5e6   : > { %v3070_v42 = vsel %vm3044_vm6, %v3037_v7, %v10632_v46  ;;  %v10644_v7 = vld [vmem:[#allocation412_spill] sm:$0xff] }
 0x5e7   : > { %v3720_v4 = vsel %vm1114_vm1, %v3717_v35, %v3719_v17  ;;  %v3103_v63 = vsel %vm9506_vm7, %v3070_v42, %v10633_v21  ;;  %v10640_v17 = vld [vmem:[#allocation424_spill] sm:$0xff] }
 0x5e8   : > { %3792 = vrot.lane.b32.xlu1 %v3720_v4, %s4599_s26  ;;  %v3136_v10 = vsel %vm9504_vm8, %v3103_v63, %v10634_v13  ;;  %vm10638_vm8 = vcmask 293888   ;;  %v10645_v13 = vld [vmem:[#allocation263_spill] sm:$0xff] }
 0x5e9   : > { %v3467_v33 = vpop.permute.xlu2 %3466  ;;  %v3169_v30 = vsel %vm9505_vm9, %v3136_v10, %v10635_v0  ;;  %vm10641_vm9 = vcmask 326656  }
 0x5ea   : > { %v3202_v49 = vsel %vm3176_vm10, %v3169_v30, %v10636_v1  ;;  %v8827_v10 = vsel %vm2945_vm3, %v10645_v13, %v3467_v33  ;;  %v10647_v1 = vld [vmem:[#allocation110_spill] sm:$0xff]  ;;  %v10659_v13 = vld [vmem:[#allocation319_spill] sm:$0xff] }
 0x5eb   : > { %v4555_v51 = vpop.permute.xlu1 %4554  ;;  %v3783_v35 = vpop.permute.xlu0 %3782  ;;  %v3235_v53 = vsel %vm10638_vm8, %v3202_v49, %v10637_v45  ;;  %v10648_v33 = vld [vmem:[#allocation50_spill] sm:$0xff]  ;;  %vm10655_vm8 = vcmask 195584  }
 0x5ec   : > { %v4557_v29 = vunpack.i.h.bf16 %v4555_v51  ;;  %v4556_v50 = vunpack.i.l.bf16 %v4555_v51  ;;  %v3871_v20 = vsel %vm3862_vm11, %v8276_v8, %v3783_v35  ;;  %v3268_v8 = vsel %vm10641_vm9, %v3235_v53, %v10640_v17  ;;  %v10650_v53 = vld [vmem:[#allocation171_spill] sm:$0xff] }
 0x5ed   : > { %4410 = vmatmul.msk.f32.vlgmr.msra.gmra.mxu1 %vm3908_vm12, %v3871_v20  ;;  %v3301_v57 = vsel %vm3275_vm13, %v3268_v8, %v10642_v18  ;;  %v2972_v49 = vsel %vm2945_vm3, %v10648_v33, %v10647_v1  ;;  %v10652_v8 = vld [vmem:[#allocation193_spill] sm:$0xff]  ;;  %v10653_v18 = vld [vmem:[#allocation215_spill] sm:$0xff]  ;;  %vm10657_vm9 = vcmask 228352   ;;  %v10664_v33 = vld [vmem:[#allocation444_spill] sm:$0xff] }
 0x5ee   : > { %v3636_v44 = vsel %vm2945_vm3, %v10639_v40, %v4557_v29  ;;  %v3635_v25 = vsel %vm2945_vm3, %v10625_v16, %v4556_v50  ;;  %v3334_v4 = vsel %vm3308_vm14, %v3301_v57, %v10643_v27  ;;  %v10646_v29 = vld [vmem:[#allocation260_spill] sm:$0xff]  ;;  %v10654_v27 = vld [vmem:[#allocation234_spill] sm:$0xff] }
 0x5ef   : > { %v3762_v60 = vrot.slane %v3636_v44, 1  ;;  %v3761_v26 = vrot.slane %v3635_v25, 1  ;;  %v3367_v46 = vsel %vm3341_vm15, %v3334_v4, %v10644_v7  ;;  %v10651_v44 = vld [vmem:[#allocation280_spill] sm:$0xff] }
 0x5f0   : > { %3810 = vrot.lane.b32.xlu1 %v3743_v24, %s4599_s26  ;;  %v3400_v16 = vsel %vm3374_vm0, %v3367_v46, %v7904_v9  ;;  %v3702_v9 = vrot.slane %v8827_v10, 1  ;;  %v10649_v24 = vld [vmem:[#allocation130_spill] sm:$0xff] }
 0x5f1   : > { %v3517_v38 = vpop.permute.xlu2 %3516  ;;  %v3763_v62 = vsel %vm1114_vm1, %v3761_v26, %v3762_v60 }
 0x5f2   : > { %3826 = vrot.lane.b32.xlu2 %v3763_v62, %s4599_s26 }
 0x5f3   : > { %v2900_v42 = vpop.permute.xlu1 %2899  ;;  %v3817_v6 = vpop.permute.xlu0 %3816 }
 0x5f4   : > { %v3433_v21 = vsel %vm3407_vm2, %v3400_v16, %v2900_v42  ;;  %v10656_v16 = vld [vmem:[#allocation245_spill] sm:$0xff] }
 0x5f5   : > { %v3888_v63 = vsel %vm3862_vm11, %v3433_v21, %v3817_v6  ;;  %v10658_v6 = vld [vmem:[#allocation278_spill] sm:$0xff] }
 0x5f6   : > { %4427 = vmatmul.msk.f32.gmra.mxu3 %vm3908_vm12, %v3888_v63 }
 0x5f9   : > { %v3785_v51 = vpop.permute.xlu2 %3784 }
 0x5fa   : > { %v3872_v35 = vsel %vm3862_vm11, %v8037_v19, %v3785_v51  ;;  %2895 = vrot.lane.b32.xlu2 %v10629_v3, %s4598_s1  ;;  %v3005_v19 = vsel %vm2978_vm4, %v2972_v49, %v10649_v24 }
 0x5fb   : > { %4411 = vmatmul.msk.f32.gmra.mxu1 %vm3908_vm12, %v3872_v35  ;;  %v3465_v0 = vpop.permute.xlu1 %3464  ;;  %v3489_v30 = vpop.permute.xlu0 %3488  ;;  %v3038_v3 = vsel %vm3011_vm5, %v3005_v19, %v10650_v53  ;;  %v10665_v19 = vld [vmem:[#allocation479_spill] sm:$0xff]  ;;  %v10666_v53 = vld [vmem:[#allocation488_spill] sm:$0xff] }
 0x5fc   : > { %v3599_v50 = vsel %vm2945_vm3, %v10646_v29, %v3465_v0  ;;  %v3611_v25 = vsel %vm2945_vm3, %v10651_v44, %v3489_v30  ;;  %v3071_v26 = vsel %vm3044_vm6, %v3038_v3, %v10652_v8  ;;  %v10660_v0 = vld [vmem:[#allocation385_spill] sm:$0xff]  ;;  %v10662_v29 = vld [vmem:[#allocation426_spill] sm:$0xff] }
 0x5fd   : > { %v3701_v20 = vrot.slane %v3599_v50, 1  ;;  %v3104_v57 = vsel %vm9506_vm7, %v3071_v26, %v10653_v18  ;;  %v3721_v62 = vrot.slane %v3611_v25, 1  ;;  %vm10661_vm7 = vcmask 293888   ;;  %v10667_v3 = vld [vmem:[#allocation6_spill] sm:$0xff] }
 0x5fe   : > { %v3137_v4 = vsel %vm10655_vm8, %v3104_v57, %v10654_v27  ;;  %vm10663_vm8 = vcmask 326656  }
 0x5ff   : > { %v3703_v45 = vsel %vm1114_vm1, %v3701_v20, %v3702_v9  ;;  %v3170_v42 = vsel %vm10657_vm9, %v3137_v4, %v10656_v16  ;;  %v10670_v16 = vld [vmem:[#allocation141_spill] sm:$0xff]  ;;  %vm10676_vm9 = vcmask 195584  }
 0x600   : > { %3778 = vrot.lane.b32.xlu0 %v3703_v45, %s4599_s26  ;;  %v3203_v10 = vsel %vm3176_vm10, %v3170_v42, %v10659_v13 }
 0x601   : > { %v3819_v17 = vpop.permute.xlu2 %3818  ;;  %v3236_v30 = vsel %vm10661_vm7, %v3203_v10, %v10660_v0  ;;  %vm10674_vm7 = vcmask 162816   ;;  %v10675_v10 = vld [vmem:[#allocation226_spill] sm:$0xff] }
 0x602   : > { %v3269_v50 = vsel %vm10663_vm8, %v3236_v30, %v10662_v29  ;;  %v10677_v29 = vld [vmem:[#allocation261_spill] sm:$0xff]  ;;  %vm10678_vm8 = vcmask 228352  }
 0x603   : > { %v3491_v7 = vpop.permute.xlu1 %3490  ;;  %v3541_v46 = vpop.permute.xlu0 %3540  ;;  %v3302_v49 = vsel %vm3275_vm13, %v3269_v50, %v10664_v33 }
 0x604   : > { %v3612_v21 = vsel %vm2945_vm3, %v10658_v6, %v3491_v7  ;;  %v3637_v63 = vsel %vm2945_vm3, %v10587_v36, %v3541_v46  ;;  %v3625_v36 = vsel %vm2945_vm3, %v10589_v34, %v3517_v38  ;;  %v3335_v45 = vsel %vm3308_vm14, %v3302_v49, %v10665_v19  ;;  %v10671_v6 = vld [vmem:[#allocation161_spill] sm:$0xff]  ;;  %v10680_v19 = vld [vmem:[#allocation388_spill] sm:$0xff] }
 0x605   : > { %v3722_v51 = vrot.slane %v3612_v21, 1  ;;  %v3764_v35 = vrot.slane %v3637_v63, 1  ;;  %v3744_v25 = vrot.slane %v3625_v36, 1  ;;  %v10673_v63 = vld [vmem:[#allocation22_spill] sm:$0xff]  ;;  %v10679_v49 = vld [vmem:[#allocation325_spill] sm:$0xff] }
 0x607   : > { %v3723_v20 = vsel %vm1114_vm1, %v3721_v62, %v3722_v51  ;;  %v3765_v1 = vsel %vm1114_vm1, %v3762_v60, %v3764_v35  ;;  %v3368_v60 = vsel %vm3341_vm15, %v3335_v45, %v10666_v53  ;;  %v3745_v18 = vsel %vm1114_vm1, %v3742_v14, %v3744_v25  ;;  %v10669_v14 = vld [vmem:[#allocation49_spill] sm:$0xff]  ;;  %v10682_v53 = vld [vmem:[#allocation416_spill] sm:$0xff]  ;;  %v10686_v25 = vld [vmem:[#allocation490_spill] sm:$0xff] }
 0x608   : > { %2911 = vrot.lane.b32.xlu0 %v10639_v40, %s4598_s1  ;;  %3794 = vrot.lane.b32.xlu1 %v3723_v20, %s4599_s26  ;;  %v3401_v44 = vsel %vm3374_vm0, %v3368_v60, %v10667_v3  ;;  %v2973_v46 = vsel %vm2945_vm3, %v10669_v14, %v10668_v54 }
 0x609   : > { %v3771_v24 = vpop.permute.xlu2 %3770  ;;  %3828 = vrot.lane.b32.xlu2 %v3765_v1, %s4599_s26  ;;  %v3006_v42 = vsel %vm2978_vm4, %v2973_v46, %v10670_v16  ;;  %v10687_v46 = vld [vmem:[#allocation89_spill] sm:$0xff] }
 0x60b   : > { %v3769_v8 = vpop.permute.xlu1 %3768  ;;  %v2902_v34 = vpop.permute.xlu0 %2901 }
 0x60c   : > { %v3434_v38 = vsel %vm3407_vm2, %v3401_v44, %v2902_v34  ;;  %v3864_v40 = vsel %vm3862_vm11, %v8075_v61, %v3769_v8  ;;  %v3865_v61 = vsel %vm3862_vm11, %v8124_v32, %v3771_v24  ;;  %v3039_v32 = vsel %vm3011_vm5, %v3006_v42, %v10671_v6 }
 0x60d   : > { %4403 = vmatmul.msk.f32.gmra.mxu0 %vm3908_vm12, %v3864_v40  ;;  %v3889_v26 = vsel %vm3862_vm11, %v3434_v38, %v3819_v17 }
 0x60e   : > { %4428 = vmatmul.msk.f32.gmra.mxu3 %vm3908_vm12, %v3889_v26 }
 0x610   : > { %3812 = vrot.lane.b32.xlu1 %v3745_v18, %s4599_s26 }
 0x611   : > { %v3805_v57 = vpop.permute.xlu2 %3804 }
 0x612   : > { %v3882_v33 = vsel %vm3862_vm11, %v8487_v2, %v3805_v57  ;;  %v10685_v2 = vld [vmem:[#allocation472_spill] sm:$0xff] }
 0x613   : > { %v3803_v27 = vpop.permute.xlu1 %3802  ;;  %v3469_v4 = vpop.permute.xlu0 %3468 }
 0x614   : > { %v3601_v62 = vsel %vm2945_vm3, %v10597_v31, %v3469_v4  ;;  %v3881_v17 = vsel %vm3862_vm11, %v8267_v55, %v3803_v27  ;;  %v10672_v55 = vld [vmem:[#allocation195_spill] sm:$0xff] }
 0x615   : > { %v3704_v7 = vrot.slane %v3601_v62, 1  ;;  %4404 = vmatmul.msk.f32.gmra.mxu0 %vm3908_vm12, %v3865_v61  ;;  %4420 = vmatmul.msk.f32.gmra.mxu2 %vm3908_vm12, %v3881_v17  ;;  %v3072_v21 = vsel %vm3044_vm6, %v3039_v32, %v10672_v55  ;;  %v10691_v32 = vld [vmem:[#allocation189_spill] sm:$0xff]  ;;  %v10692_v55 = vld [vmem:[#allocation220_spill] sm:$0xff] }
 0x616   : > { %v3105_v13 = vsel %vm10674_vm7, %v3072_v21, %v10673_v63  ;;  %vm10681_vm7 = vcmask 293888   ;;  %v10694_v21 = vld [vmem:[#allocation55_spill] sm:$0xff] }
 0x617   : > { %v3705_v31 = vsel %vm1114_vm1, %v3702_v9, %v3704_v7  ;;  %v3138_v35 = vsel %vm10676_vm9, %v3105_v13, %v10675_v10  ;;  %vm10683_vm9 = vcmask 326656   ;;  %v10696_v10 = vld [vmem:[#allocation250_spill] sm:$0xff] }
 0x618   : > { %3780 = vrot.lane.b32.xlu0 %v3705_v31, %s4599_s26  ;;  %v3171_v50 = vsel %vm10678_vm8, %v3138_v35, %v10677_v29  ;;  %v10690_v31 = vld [vmem:[#allocation48_spill] sm:$0xff]  ;;  %vm10695_vm8 = vcmask 195584   ;;  %v10698_v29 = vld [vmem:[#allocation311_spill] sm:$0xff] }
 0x619   : > { %v3789_v9 = vpop.permute.xlu2 %3788  ;;  %v3204_v36 = vsel %vm3176_vm10, %v3171_v50, %v10679_v49 }
 0x61a   : > { %v3237_v45 = vsel %vm10681_vm7, %v3204_v36, %v10680_v19  ;;  %vm10697_vm7 = vcmask 228352  }
 0x61b   : > { %v3493_v0 = vpop.permute.xlu1 %3492  ;;  %v3787_v30 = vpop.permute.xlu0 %3786 }
 0x61c   : > { %v3613_v20 = vsel %vm2945_vm3, %v10601_v41, %v3493_v0  ;;  %v3873_v1 = vsel %vm3862_vm11, %v8302_v58, %v3787_v30  ;;  %v3270_v41 = vsel %vm10683_vm9, %v3237_v45, %v10682_v53  ;;  %v10684_v58 = vld [vmem:[#allocation455_spill] sm:$0xff]  ;;  %vm10701_vm9 = vcmask 293888   ;;  %v10704_v45 = vld [vmem:[#allocation450_spill] sm:$0xff] }
 0x61d   : > { %v3724_v24 = vrot.slane %v3613_v20, 1  ;;  %4412 = vmatmul.msk.f32.gmra.mxu1 %vm3908_vm12, %v3873_v1  ;;  %4421 = vmatmul.msk.f32.gmra.mxu2 %vm3908_vm12, %v3882_v33  ;;  %v3303_v3 = vsel %vm3275_vm13, %v3270_v41, %v10684_v58  ;;  %v10700_v33 = vld [vmem:[#allocation379_spill] sm:$0xff]  ;;  %v10705_v41 = vld [vmem:[#allocation358_spill] sm:$0xff]  ;;  %v10706_v58 = vld [vmem:[#allocation485_spill] sm:$0xff] }
 0x61e   : > { %v3336_v44 = vsel %vm3308_vm14, %v3303_v3, %v10685_v2  ;;  %v10707_v3 = vld [vmem:[#allocation68_spill] sm:$0xff] }
 0x61f   : > { %v3725_v60 = vsel %vm1114_vm1, %v3722_v51, %v3724_v24  ;;  %v3369_v8 = vsel %vm3341_vm15, %v3336_v44, %v10686_v25  ;;  %v3874_v51 = vsel %vm3862_vm11, %v8348_v23, %v3789_v9  ;;  %vm10693_vm1 = vcmask 162816   ;;  %v10699_v9 = vld [vmem:[#allocation12_spill] sm:$0xff]  ;;  %v10702_v24 = vld [vmem:[#allocation409_spill] sm:$0xff] }
 0x620   : > { %3796 = vrot.lane.b32.xlu1 %v3725_v60, %s4599_s26  ;;  %v3402_v34 = vsel %vm3374_vm0, %v3369_v8, %v7929_v48 }
 0x621   : > { %v3823_v57 = vpop.permute.xlu2 %3822 }
 0x623   : > { %v2904_v38 = vpop.permute.xlu1 %2903  ;;  %v3821_v40 = vpop.permute.xlu0 %3820 }
 0x624   : > { %v3435_v26 = vsel %vm3407_vm2, %v3402_v34, %v2904_v38 }
 0x625   : > { %4413 = vmatmul.msk.f32.gmra.mxu1 %vm3908_vm12, %v3874_v51  ;;  %v3890_v18 = vsel %vm3862_vm11, %v3435_v26, %v3821_v40  ;;  %v9005_v26 = vld [vmem:[%s9212_s7] ss:$0 sm:$0xff] }
 0x626   : > { %4429 = vmatmul.msk.f32.gmra.mxu3 %vm3908_vm12, %v3890_v18 }
 0x629   : > { %v2892_v23 = vpop.permute.xlu2 %2891 }
 0x62b   : > { %v3773_v27 = vpop.permute.xlu1 %3772  ;;  %v2906_v4 = vpop.permute.xlu0 %2905 }
 0x62c   : > { %v3436_v62 = vsel %vm3407_vm2, %v7977_v52, %v2906_v4  ;;  %v3866_v48 = vsel %vm3862_vm11, %v7902_v28, %v3773_v27  ;;  %v10688_v52 = vld [vmem:[#allocation36_spill] sm:$0xff]  ;;  %v10689_v28 = vld [vmem:[#allocation135_spill] sm:$0xff] }
 0x62d   : > { %4405 = vmatmul.msk.f32.gmra.mxu0 %vm3908_vm12, %v3866_v48  ;;  %v3891_v61 = vsel %vm3862_vm11, %v3436_v62, %v3823_v57  ;;  %v2967_v16 = vsel %vm2945_vm3, %v10688_v52, %v10687_v46  ;;  %v10708_v48 = vld [vmem:[#allocation105_spill] sm:$0xff] }
 0x62e   : > { %4430 = vmatmul.msk.f32.gmra.mxu3 %vm3908_vm12, %v3891_v61  ;;  %v3000_v42 = vsel %vm2978_vm4, %v2967_v16, %v10689_v28  ;;  %v10713_v16 = vld [vmem:[#allocation221_spill] sm:$0xff] }
 0x62f   : > { %v3033_v6 = vsel %vm3011_vm5, %v3000_v42, %v10690_v31  ;;  %v10715_v31 = vld [vmem:[#allocation231_spill] sm:$0xff] }
 0x631   : > { %v3825_v13 = vpop.permute.xlu2 %3824 }
 0x633   : > { %v3807_v17 = vpop.permute.xlu1 %3806  ;;  %v3775_v7 = vpop.permute.xlu0 %3774 }
 0x634   : > { %v3867_v54 = vsel %vm3862_vm11, %v8152_v56, %v3775_v7  ;;  %v3883_v14 = vsel %vm3862_vm11, %v8500_v22, %v3807_v17  ;;  %v3066_v56 = vsel %vm3044_vm6, %v3033_v6, %v10691_v32  ;;  %v10711_v7 = vld [vmem:[#allocation166_spill] sm:$0xff]  ;;  %v10717_v32 = vld [vmem:[#allocation253_spill] sm:$0xff] }
 0x635   : > { %4406 = vmatmul.msk.f32.gmra.mxu0 %vm3908_vm12, %v3867_v54  ;;  %4422 = vmatmul.msk.f32.gmra.mxu2 %vm3908_vm12, %v3883_v14  ;;  %v3099_v22 = vsel %vm10693_vm1, %v3066_v56, %v10692_v55  ;;  %vm10703_vm1 = vcmask 326656   ;;  %v10712_v14 = vld [vmem:[#allocation180_spill] sm:$0xff] }
 0x636   : > { %v3132_v63 = vsel %vm10695_vm8, %v3099_v22, %v10694_v21  ;;  %vm10714_vm8 = vcmask 162816   ;;  %v10719_v21 = vld [vmem:[#allocation294_spill] sm:$0xff] }
 0x637   : > { %v3165_v35 = vsel %vm10697_vm7, %v3132_v63, %v10696_v10  ;;  %vm10716_vm7 = vcmask 195584   ;;  %v10720_v10 = vld [vmem:[#allocation361_spill] sm:$0xff] }
 0x638   : > { %v3198_v50 = vsel %vm3176_vm10, %v3165_v35, %v10698_v29  ;;  %v10724_v29 = vld [vmem:[#allocation451_spill] sm:$0xff] }
 0x639   : > { %v3231_v49 = vsel %vm10701_vm9, %v3198_v50, %v10700_v33  ;;  %v2894_v34 = vpop.permute.xlu2 %2893  ;;  %vm10718_vm9 = vcmask 228352  }
 0x63a   : > { %v3264_v19 = vsel %vm10703_vm1, %v3231_v49, %v10702_v24  ;;  %vm10721_vm1 = vcmask 293888   ;;  %v10727_v49 = vld [vmem:[#allocation13_spill] sm:$0xff] }
 0x63b   : > { %v3791_v0 = vpop.permute.xlu1 %3790  ;;  %v2908_v30 = vpop.permute.xlu0 %2907  ;;  %v3297_v53 = vsel %vm3275_vm13, %v3264_v19, %v10704_v45 }
 0x63c   : > { %v3437_v20 = vsel %vm3407_vm2, %v10699_v9, %v2908_v30  ;;  %v3875_v1 = vsel %vm3862_vm11, %v8115_v39, %v3791_v0  ;;  %v3330_v60 = vsel %vm3308_vm14, %v3297_v53, %v10705_v41  ;;  %v10722_v0 = vld [vmem:[#allocation421_spill] sm:$0xff]  ;;  %v10725_v9 = vld [vmem:[#allocation375_spill] sm:$0xff] }
 0x63d   : > { %4414 = vmatmul.msk.f32.gmra.mxu1 %vm3908_vm12, %v3875_v1  ;;  %v3892_v36 = vsel %vm3862_vm11, %v3437_v20, %v3825_v13  ;;  %v3363_v39 = vsel %vm3341_vm15, %v3330_v60, %v10706_v58  ;;  %v10726_v1 = vld [vmem:[#allocation407_spill] sm:$0xff] }
 0x63e   : > { %4431 = vmatmul.msk.f32.gmra.mxu3 %vm3908_vm12, %v3892_v36  ;;  %v3396_v2 = vsel %vm3374_vm0, %v3363_v39, %v10707_v3 }
 0x63f   : > { %v3429_v44 = vsel %vm3407_vm2, %v3396_v2, %v2892_v23  ;;  %v10710_v23 = vld [vmem:[#allocation137_spill] sm:$0xff] }
 0x643   : > { %v3809_v25 = vpop.permute.xlu1 %3808  ;;  %v3777_v8 = vpop.permute.xlu0 %3776 }
 0x644   : > { %v3868_v38 = vsel %vm3862_vm11, %v8200_v59, %v3777_v8  ;;  %v3884_v40 = vsel %vm3862_vm11, %v3429_v44, %v3809_v25 }
 0x645   : > { %4407 = vmatmul.msk.f32.gmra.mxu0 %vm3908_vm12, %v3868_v38  ;;  %4423 = vmatmul.msk.f32.gmra.mxu2 %vm3908_vm12, %v3884_v40  ;;  %v10728_v38 = vld [vmem:[#allocation107_spill] sm:$0xff]  ;;  %v10729_v40 = vld [vmem:[#allocation40_spill] sm:$0xff] }
 0x64b   : > { %v2910_v51 = vpop.permute.xlu0 %2909 }
 0x64c   : > { %v3438_v18 = vsel %vm3407_vm2, %v7999_v37, %v2910_v51  ;;  %v3827_v57 = vpop.permute.xlu2 %3826  ;;  %v10709_v37 = vld [vmem:[#allocation41_spill] sm:$0xff]  ;;  %v2969_v51 = vsel %vm2945_vm3, %v10729_v40, %v10728_v38 }
 0x64d   : > { %v3893_v4 = vsel %vm3862_vm11, %v3438_v18, %v3827_v57  ;;  %v2968_v61 = vsel %vm2945_vm3, %v10709_v37, %v10708_v48  ;;  %v10730_v18 = vld [vmem:[#allocation127_spill] sm:$0xff]  ;;  %v10733_v37 = vld [vmem:[#allocation212_spill] sm:$0xff]  ;;  %vm10736_vm3 = vcmask 195584  }
 0x64e   : > { %v4094_v27 = vpop.f32.mrf.mxu3  ;;  %4432 = vmatmul.msk.f32.gmra.mxu3 %vm3908_vm12, %v3893_v4  ;;  %v3001_v17 = vsel %vm2978_vm4, %v2968_v61, %v10710_v23  ;;  %v3002_v57 = vsel %vm2978_vm4, %v2969_v51, %v10730_v18  ;;  %v10735_v23 = vld [vmem:[#allocation233_spill] sm:$0xff] }
 0x64f   : > { %v4095_v59 = vadd.f32 %v9005_v26, %v4094_v27  ;;  %v3034_v54 = vsel %vm3011_vm5, %v3001_v17, %v10711_v7  ;;  %v10731_v27 = vld [vmem:[#allocation168_spill] sm:$0xff] }
 0x650   : > { %v3067_v46 = vsel %vm3044_vm6, %v3034_v54, %v10712_v14  ;;  %v3035_v4 = vsel %vm3011_vm5, %v3002_v57, %v10731_v27  ;;  %v10737_v54 = vld [vmem:[#allocation97_spill] sm:$0xff]  ;;  %vm10740_vm5 = vmmov %vm10721_vm1 }
 0x651   : > { %v4142_v62 = vmax.f32 %v4095_v59, 0.0  ;;  %v3100_v28 = vsel %vm10714_vm8, %v3067_v46, %v10713_v16  ;;  %vm10723_vm8 = vcmask 326656   ;;  %v10732_v59 = vld [vmem:[#allocation190_spill] sm:$0xff] }
 0x652   : > { %v3133_v6 = vsel %vm10716_vm7, %v3100_v28, %v10715_v31  ;;  %vm10734_vm7 = vcmask 162816  }
 0x653   : > { %4174 = vst.msk [vmem:[%s9016_s28 + $0xc0] sm:$0xff] %vm2978_vm4, %v4142_v62  ;;  %v3166_v56 = vsel %vm10718_vm9, %v3133_v6, %v10717_v32  ;;  %v3068_v62 = vsel %vm3044_vm6, %v3035_v4, %v10732_v59  ;;  %vm10742_vm6 = vmmov %vm10723_vm8 }
 0x654   : > { %v3199_v63 = vsel %vm3176_vm10, %v3166_v56, %v10719_v21  ;;  %v2896_v8 = vpop.permute.xlu2 %2895 }
 0x655   : > { %v3232_v35 = vsel %vm10721_vm1, %v3199_v63, %v10720_v10 }
 0x656   : > { %v3265_v30 = vsel %vm10723_vm8, %v3232_v35, %v10722_v0  ;;  %v10743_v35 = vld [vmem:[#allocation441_spill] sm:$0xff] }
 0x657   : > { %v3298_v50 = vsel %vm3275_vm13, %v3265_v30, %v10724_v29  ;;  %v10745_v30 = vld [vmem:[#allocation486_spill] sm:$0xff] }
 0x658   : > { %v4022_v52 = vpop.f32.mrf.mxu0  ;;  %v3331_v20 = vsel %vm3308_vm14, %v3298_v50, %v10725_v9  ;;  %v10746_v50 = vld [vmem:[#allocation70_spill] sm:$0xff] }
 0x659   : > { %v4023_v42 = vadd.f32 %v9005_v26, %v4022_v52 }
 0x65a   : > { %v3793_v22 = vpop.permute.xlu1 %3792 }
 0x65b   : > { %v4118_v55 = vmax.f32 %v4023_v42, 0.0  ;;  %v3876_v13 = vsel %vm3862_vm11, %v8374_v47, %v3793_v22  ;;  %v3364_v47 = vsel %vm3341_vm15, %v3331_v20, %v10726_v1  ;;  %v10738_v42 = vld [vmem:[#allocation313_spill] sm:$0xff] }
 0x65c   : > { %4415 = vmatmul.msk.f32.gmra.mxu1 %vm3908_vm12, %v3876_v13  ;;  %v3397_v36 = vsel %vm3374_vm0, %v3364_v47, %v10727_v49  ;;  %v10741_v13 = vld [vmem:[#allocation423_spill] sm:$0xff] }
 0x65d   : > { %4150 = vst.msk [vmem:[%s9016_s28] sm:$0xff] %vm2978_vm4, %v4118_v55  ;;  %v3430_v19 = vsel %vm3407_vm2, %v3397_v36, %v2894_v34  ;;  %v10739_v55 = vld [vmem:[#allocation381_spill] sm:$0xff] }
 0x660   : > { %v4070_v33 = vpop.f32.mrf.mxu2 }
 0x661   : > { %v4071_v24 = vadd.f32 %v9005_v26, %v4070_v33 }
 0x662   : > { %v3811_v45 = vpop.permute.xlu1 %3810 }
 0x663   : > { %v4134_v53 = vmax.f32 %v4071_v24, 0.0  ;;  %v3885_v41 = vsel %vm3862_vm11, %v3430_v19, %v3811_v45  ;;  %v3829_v6 = vpop.permute.xlu2 %3828 }
 0x664   : > { %4424 = vmatmul.msk.f32.gmra.mxu2 %vm3908_vm12, %v3885_v41 }
 0x665   : > { %4166 = vst.msk [vmem:[%s9016_s28 + $0x80] sm:$0xff] %vm2978_vm4, %v4134_v53 }
 0x668   : > { %v4073_v60 = vpop.f32.mrf.mxu2 }
 0x669   : > { %v4074_v58 = vadd.f32 %v9005_v26, %v4073_v60 }
 0x66a   : > { %v4046_v39 = vpop.f32.mrf.mxu1 }
 0x66b   : > { %v4135_v3 = vmax.f32 %v4074_v58, 0.0  ;;  %v4047_v2 = vadd.f32 %v9005_v26, %v4046_v39 }
 0x66d   : > { %4167 = vst.msk [vmem:[%s9016_s28 + $0x88] sm:$0xff] %vm2978_vm4, %v4135_v3  ;;  %v4126_v44 = vmax.f32 %v4047_v2, 0.0 }
 0x66f   : > { %4158 = vst.msk [vmem:[%s9016_s28 + $0x40] sm:$0xff] %vm2978_vm4, %v4126_v44 }
 0x672   : > { %v3779_v25 = vpop.permute.xlu0 %3778 }
 0x673   : > { %v3869_v34 = vsel %vm3862_vm11, %v7968_v43, %v3779_v25  ;;  %v3101_v43 = vsel %vm10734_vm7, %v3068_v62, %v10733_v37 }
 0x674   : > { %4408 = vmatmul.msk.f32.gmra.mxu0 %vm3908_vm12, %v3869_v34  ;;  %v3134_v17 = vsel %vm10736_vm3, %v3101_v43, %v10735_v23 }
 0x675   : > { %v3167_v14 = vsel %vm10718_vm9, %v3134_v17, %v10737_v54 }
 0x676   : > { %v3200_v31 = vsel %vm3176_vm10, %v3167_v14, %v10738_v42 }
 0x677   : > { %v3233_v22 = vsel %vm10740_vm5, %v3200_v31, %v10739_v55 }
 0x678   : > { %v4049_v48 = vpop.f32.mrf.mxu1  ;;  %v3266_v10 = vsel %vm10742_vm6, %v3233_v22, %v10741_v13 }
 0x679   : > { %v4050_v61 = vadd.f32 %v9005_v26, %v4049_v48  ;;  %v4097_v7 = vpop.f32.mrf.mxu3 }
 0x67a   : > { %v4098_v52 = vadd.f32 %v9005_v26, %v4097_v7  ;;  %v3795_v16 = vpop.permute.xlu1 %3794  ;;  %v2912_v28 = vpop.permute.xlu0 %2911 }
 0x67b   : > { %v4127_v46 = vmax.f32 %v4050_v61, 0.0  ;;  %v3439_v32 = vsel %vm3407_vm2, %v8046_v15, %v2912_v28  ;;  %v3877_v56 = vsel %vm3862_vm11, %v8414_v12, %v3795_v16  ;;  %v3299_v15 = vsel %vm3275_vm13, %v3266_v10, %v10743_v35  ;;  %v10744_v12 = vld [vmem:[#allocation377_spill] sm:$0xff] }
 0x67c   : > { %v4143_v21 = vmax.f32 %v4098_v52, 0.0  ;;  %4416 = vmatmul.msk.f32.gmra.mxu1 %vm3908_vm12, %v3877_v56  ;;  %v3894_v63 = vsel %vm3862_vm11, %v3439_v32, %v3829_v6  ;;  %v3332_v0 = vsel %vm3308_vm14, %v3299_v15, %v10744_v12 }
 0x67d   : > { %4159 = vst.msk [vmem:[%s9016_s28 + $0x48] sm:$0xff] %vm2978_vm4, %v4127_v46  ;;  %4433 = vmatmul.msk.f32.gmra.mxu3 %vm3908_vm12, %v3894_v63  ;;  %v3365_v29 = vsel %vm3341_vm15, %v3332_v0, %v10745_v30 }
 0x67e   : > { %4175 = vst.msk [vmem:[%s9016_s28 + $0xc8] sm:$0xff] %vm2978_vm4, %v4143_v21  ;;  %v3398_v9 = vsel %vm3374_vm0, %v3365_v29, %v10746_v50 }
 0x67f   : > { %v3431_v20 = vsel %vm3407_vm2, %v3398_v9, %v2896_v8 }
 0x682   : > { %v3813_v1 = vpop.permute.xlu1 %3812 }
 0x683   : > { %v3886_v47 = vsel %vm3862_vm11, %v3431_v20, %v3813_v1 }
 0x684   : > { %4425 = vmatmul.msk.f32.gmra.mxu2 %vm3908_vm12, %v3886_v47 }
 0x68a   : > { %v3781_v33 = vpop.permute.xlu0 %3780  ;;  %v4025_v49 = vpop.f32.mrf.mxu0 }
 0x68b   : > { %v4026_v36 = vadd.f32 %v9005_v26, %v4025_v49  ;;  %v3870_v24 = vsel %vm3862_vm11, %v8228_v5, %v3781_v33 }
 0x68c   : > { %4409 = vmatmul.msk.f32.gmra.mxu0 %vm3908_vm12, %v3870_v24 }
 0x68d   : > { %v4119_v19 = vmax.f32 %v4026_v36, 0.0 }
 0x68f   : > { %4151 = vst.msk [vmem:[%s9016_s28 + $0x8] sm:$0xff] %vm2978_vm4, %v4119_v19 }
 0x691   : > { %v4100_v45 = vpop.f32.mrf.mxu3 }
 0x692   : > { %v4101_v53 = vadd.f32 %v9005_v26, %v4100_v45  ;;  %v3797_v41 = vpop.permute.xlu1 %3796  ;;  %v4028_v60 = vpop.f32.mrf.mxu0 }
 0x693   : > { %v4029_v58 = vadd.f32 %v9005_v26, %v4028_v60  ;;  %v3878_v39 = vsel %vm3862_vm11, %v8191_v11, %v3797_v41 }
 0x694   : > { %v4144_v3 = vmax.f32 %v4101_v53, 0.0  ;;  %4417 = vmatmul.msk.f32.gmra.mxu1 %vm3908_vm12, %v3878_v39 }
 0x695   : > { %v4120_v5 = vmax.f32 %v4029_v58, 0.0 }
 0x696   : > { %4176 = vst.msk [vmem:[%s9016_s28 + $0xd0] sm:$0xff] %vm2978_vm4, %v4144_v3 }
 0x697   : > { %4152 = vst.msk [vmem:[%s9016_s28 + $0x10] sm:$0xff] %vm2978_vm4, %v4120_v5 }
 0x698   : > { %v4076_v2 = vpop.f32.mrf.mxu2 }
 0x699   : > { %v4077_v44 = vadd.f32 %v9005_v26, %v4076_v2 }
 0x69a   : > { %v4052_v25 = vpop.f32.mrf.mxu1 }
 0x69b   : > { %v4136_v8 = vmax.f32 %v4077_v44, 0.0  ;;  %v4053_v34 = vadd.f32 %v9005_v26, %v4052_v25 }
 0x69d   : > { %4168 = vst.msk [vmem:[%s9016_s28 + $0x90] sm:$0xff] %vm2978_vm4, %v4136_v8  ;;  %v4128_v11 = vmax.f32 %v4053_v34, 0.0 }
 0x69f   : > { %4160 = vst.msk [vmem:[%s9016_s28 + $0x50] sm:$0xff] %vm2978_vm4, %v4128_v11 }
 0x6a0   : > { %v4079_v38 = vpop.f32.mrf.mxu2 }
 0x6a1   : > { %v4080_v40 = vadd.f32 %v9005_v26, %v4079_v38 }
 0x6a2   : > { %v4055_v51 = vpop.f32.mrf.mxu1 }
 0x6a3   : > { %v4137_v18 = vmax.f32 %v4080_v40, 0.0  ;;  %v4056_v57 = vadd.f32 %v9005_v26, %v4055_v51 }
 0x6a5   : > { %4169 = vst.msk [vmem:[%s9016_s28 + $0x98] sm:$0xff] %vm2978_vm4, %v4137_v18  ;;  %v4129_v27 = vmax.f32 %v4056_v57, 0.0 }
 0x6a7   : > { %4161 = vst.msk [vmem:[%s9016_s28 + $0x58] sm:$0xff] %vm2978_vm4, %v4129_v27 }
 0x6a9   : > { %v4103_v4 = vpop.f32.mrf.mxu3 }
 0x6aa   : > { %v4104_v59 = vadd.f32 %v9005_v26, %v4103_v4  ;;  %v4031_v62 = vpop.f32.mrf.mxu0 }
 0x6ab   : > { %v4032_v48 = vadd.f32 %v9005_v26, %v4031_v62 }
 0x6ac   : > { %v4145_v37 = vmax.f32 %v4104_v59, 0.0 }
 0x6ad   : > { %v4121_v43 = vmax.f32 %v4032_v48, 0.0 }
 0x6ae   : > { %4177 = vst.msk [vmem:[%s9016_s28 + $0xd8] sm:$0xff] %vm2978_vm4, %v4145_v37 }
 0x6af   : > { %4153 = vst.msk [vmem:[%s9016_s28 + $0x18] sm:$0xff] %vm2978_vm4, %v4121_v43 }
 0x6b1   : > { %v4106_v61 = vpop.f32.mrf.mxu3 }
 0x6b2   : > { %v4107_v23 = vadd.f32 %v9005_v26, %v4106_v61  ;;  %v4034_v17 = vpop.f32.mrf.mxu0 }
 0x6b3   : > { %v4035_v7 = vadd.f32 %v9005_v26, %v4034_v17 }
 0x6b4   : > { %v4146_v54 = vmax.f32 %v4107_v23, 0.0 }
 0x6b5   : > { %v4122_v14 = vmax.f32 %v4035_v7, 0.0 }
 0x6b6   : > { %4178 = vst.msk [vmem:[%s9016_s28 + $0xe0] sm:$0xff] %vm2978_vm4, %v4146_v54 }
 0x6b7   : > { %4154 = vst.msk [vmem:[%s9016_s28 + $0x20] sm:$0xff] %vm2978_vm4, %v4122_v14 }
 0x6b8   : > { %v4082_v46 = vpop.f32.mrf.mxu2 }
 0x6b9   : > { %v4083_v52 = vadd.f32 %v9005_v26, %v4082_v46 }
 0x6ba   : > { %v4058_v16 = vpop.f32.mrf.mxu1 }
 0x6bb   : > { %v4138_v28 = vmax.f32 %v4083_v52, 0.0  ;;  %v4059_v42 = vadd.f32 %v9005_v26, %v4058_v16 }
 0x6bd   : > { %4170 = vst.msk [vmem:[%s9016_s28 + $0xa0] sm:$0xff] %vm2978_vm4, %v4138_v28  ;;  %v4130_v31 = vmax.f32 %v4059_v42, 0.0 }
 0x6bf   : > { %4162 = vst.msk [vmem:[%s9016_s28 + $0x60] sm:$0xff] %vm2978_vm4, %v4130_v31 }
 0x6c1   : > { %v4109_v6 = vpop.f32.mrf.mxu3 }
 0x6c2   : > { %v4110_v32 = vadd.f32 %v9005_v26, %v4109_v6  ;;  %v4037_v56 = vpop.f32.mrf.mxu0 }
 0x6c3   : > { %v4038_v55 = vadd.f32 %v9005_v26, %v4037_v56 }
 0x6c4   : > { %v4147_v22 = vmax.f32 %v4110_v32, 0.0 }
 0x6c5   : > { %v4123_v21 = vmax.f32 %v4038_v55, 0.0 }
 0x6c6   : > { %4179 = vst.msk [vmem:[%s9016_s28 + $0xe8] sm:$0xff] %vm2978_vm4, %v4147_v22 }
 0x6c7   : > { %4155 = vst.msk [vmem:[%s9016_s28 + $0x28] sm:$0xff] %vm2978_vm4, %v4123_v21 }
 0x6c8   : > { %v4085_v63 = vpop.f32.mrf.mxu2 }
 0x6c9   : > { %v4086_v13 = vadd.f32 %v9005_v26, %v4085_v63 }
 0x6cb   : > { %v4139_v10 = vmax.f32 %v4086_v13, 0.0 }
 0x6cd   : > { %4171 = vst.msk [vmem:[%s9016_s28 + $0xa8] sm:$0xff] %vm2978_vm4, %v4139_v10 }
 0x6d1   : > { %v4112_v35 = vpop.f32.mrf.mxu3 }
 0x6d2   : > { %v4113_v15 = vadd.f32 %v9005_v26, %v4112_v35 }
 0x6d4   : > { %v4148_v12 = vmax.f32 %v4113_v15, 0.0 }
 0x6d6   : > { %4180 = vst.msk [vmem:[%s9016_s28 + $0xf0] sm:$0xff] %vm2978_vm4, %v4148_v12 }
 0x6d9   : > { %v4061_v0 = vpop.f32.mrf.mxu1 }
 0x6da   : > { %v4062_v30 = vadd.f32 %v9005_v26, %v4061_v0 }
 0x6dc   : > { %v4131_v29 = vmax.f32 %v4062_v30, 0.0 }
 0x6de   : > { %4163 = vst.msk [vmem:[%s9016_s28 + $0x68] sm:$0xff] %vm2978_vm4, %v4131_v29 }
 0x6e7   : > { %v4088_v50 = vpop.f32.mrf.mxu2 }
 0x6e8   : > { %v4089_v9 = vadd.f32 %v9005_v26, %v4088_v50 }
 0x6ea   : > { %v4140_v20 = vmax.f32 %v4089_v9, 0.0 }
 0x6ec   : > { %4172 = vst.msk [vmem:[%s9016_s28 + $0xb0] sm:$0xff] %vm2978_vm4, %v4140_v20 }
 0x6f1   : > { %v4040_v1 = vpop.f32.mrf.mxu0 }
 0x6f2   : > { %v4041_v47 = vadd.f32 %v9005_v26, %v4040_v1 }
 0x6f4   : > { %v4124_v33 = vmax.f32 %v4041_v47, 0.0 }
 0x6f6   : > { %4156 = vst.msk [vmem:[%s9016_s28 + $0x30] sm:$0xff] %vm2978_vm4, %v4124_v33 }
 0x6f9   : > { %v4064_v49 = vpop.f32.mrf.mxu1 }
 0x6fa   : > { %v4065_v36 = vadd.f32 %v9005_v26, %v4064_v49 }
 0x6fc   : > { %v4132_v24 = vmax.f32 %v4065_v36, 0.0 }
 0x6fe   : > { %4164 = vst.msk [vmem:[%s9016_s28 + $0x70] sm:$0xff] %vm2978_vm4, %v4132_v24 }
 0x700   : > { %v4115_v19 = vpop.f32.mrf.mxu3 }
 0x701   : > { %v4116_v45 = vadd.f32 %v9005_v26, %v4115_v19 }
 0x703   : > { %v4149_v53 = vmax.f32 %v4116_v45, 0.0 }
 0x705   : > { %4181 = vst.msk [vmem:[%s9016_s28 + $0xf8] sm:$0xff] %vm2978_vm4, %v4149_v53 }
 0x707   : > { %v4091_v41 = vpop.f32.mrf.mxu2 }
 0x708   : > { %v4092_v60 = vadd.f32 %v9005_v26, %v4091_v41 }
 0x709   : > { %v4043_v58 = vpop.f32.mrf.mxu0 }
 0x70a   : > { %v4141_v39 = vmax.f32 %v4092_v60, 0.0  ;;  %v4044_v3 = vadd.f32 %v9005_v26, %v4043_v58 }
 0x70c   : > { %4173 = vst.msk [vmem:[%s9016_s28 + $0xb8] sm:$0xff] %vm2978_vm4, %v4141_v39  ;;  %v4125_v5 = vmax.f32 %v4044_v3, 0.0 }
 0x70e   : > { %4157 = vst.msk [vmem:[%s9016_s28 + $0x38] sm:$0xff] %vm2978_vm4, %v4125_v5 }
 0x711   : > { %v4067_v2 = vpop.f32.mrf.mxu1 }
 0x712   : > { %v4068_v44 = vadd.f32 %v9005_v26, %v4067_v2 }
 0x714   : > { %v4133_v25 = vmax.f32 %v4068_v44, 0.0 }
 0x716   : > { %4165 = vst.msk [vmem:[%s9016_s28 + $0x78] sm:$0xff] %vm2978_vm4, %v4133_v25 }
 0x717 PF: > { %s18_s27 = sadd.s32 1, %s4581_s27   ;;  %s10747_s26 = smov %s4577_s2 }
 0x718   : > { %p15_p5 = scmp.ge.s32.totalorder %s18_s27, 4   ;;  %s10748_s2 = smov %s10750_s4 }
 0x71a   :  { %17 = sbr.rel (!%p15_p5) target bundleno = 2 (0x2), region = 97 }

</bundles_post_ra>
